<compile_context>
chip_gen: v7x
topology: tpu7x:2x2x1
jax: 0.10.0
libtpu: 0.0.40
codegen_flags: <defaults>
</compile_context>

<pallas_src>
import numpy as np
import jax
import jax.numpy as jnp
from jax.experimental import pallas as pl
from jax.experimental.pallas import tpu as pltpu

EPS = 1e-5


def _make_down_layer_kernel(N, H, W, Cin, Cout, T, downsample):
    R = N * H * W
    inv_R = 1.0 / R
    # tap order t = (dy+1)*3 + (dx+1) matches the (kh*kw, Cin, Cout) weight layout
    TAPS = [(dy, dx) for dy in (-1, 0, 1) for dx in (-1, 0, 1)]

    def kernel(x_ref, temb_ref, wfc_ref, bfc_ref,
               w1_ref, g1_ref, be1_ref,
               w2_ref, g2_ref, be2_ref,
               wsc_ref, bsc_ref,
               out_ref, *scratch):
        pool_ref = scratch[0] if downsample else None

        # Spatial index maps, computed once and shared by both convs' boundary masks.
        h_idx = jax.lax.broadcasted_iota(jnp.int32, (N, H, W, 1), 1).reshape(R, 1)
        w_idx = jax.lax.broadcasted_iota(jnp.int32, (N, H, W, 1), 2).reshape(R, 1)

        def tap_mask(dy, dx):
            m = None
            if dy == -1:
                m = h_idx >= 1
            elif dy == 1:
                m = h_idx <= H - 2
            if dx == -1:
                mw = w_idx >= 1
                m = mw if m is None else (m & mw)
            elif dx == 1:
                mw = w_idx <= W - 2
                m = mw if m is None else (m & mw)
            return m

        masks = {(dy, dx): tap_mask(dy, dx) for (dy, dx) in TAPS}

        def conv3x3(x2, w_ref):
            # x2: (R, C) f32 activations (flattened N*H*W rows, channels on lanes).
            # Each tap: roll the flattened row axis by dy*W + dx (sublane rotate,
            # XLU), zero the rows whose source pixel falls outside the image
            # (exactly zero "same" padding), then one bf16 MXU matmul, f32 acc.
            acc = None
            for t, (dy, dx) in enumerate(TAPS):
                d = dy * W + dx
                src = x2 if d == 0 else pltpu.roll(x2, shift=(-d) % R, axis=0)
                m = masks[(dy, dx)]
                if m is not None:
                    src = jnp.where(m, src, 0.0)
                contrib = jnp.dot(src.astype(jnp.bfloat16), w_ref[t],
                                  preferred_element_type=jnp.float32)
                acc = contrib if acc is None else acc + contrib
            return acc

        def bn_relu(y, g_ref, b_ref):
            # One-pass biased batch statistics over all (N,H,W) rows.
            s1 = jnp.sum(y, axis=0, keepdims=True)
            s2 = jnp.sum(y * y, axis=0, keepdims=True)
            mean = s1 * inv_R
            var = jnp.maximum(s2 * inv_R - mean * mean, 0.0)
            scale = g_ref[...] * jax.lax.rsqrt(var + EPS)
            shift = b_ref[...] - mean * scale
            return jnp.maximum(y * scale + shift, 0.0)

        # ---- time-embedding projection: nn.Linear(T, Cin) ----
        tproj = jnp.dot(temb_ref[...], wfc_ref[...],
                        preferred_element_type=jnp.float32) + bfc_ref[...]
        # in-place `x += fc(temb)[:, :, None, None]` -> residual aliases this too
        x_plus = x_ref[...] + tproj.reshape(N, 1, 1, Cin)
        xp2 = x_plus.reshape(R, Cin)          # free reshape (W % 8 == 0)

        # ---- conv1 -> bn1 -> relu ----
        y1 = bn_relu(conv3x3(xp2, w1_ref), g1_ref, be1_ref)

        # ---- conv2 -> bn2 -> relu ----
        y2 = bn_relu(conv3x3(y1, w2_ref), g2_ref, be2_ref)

        # ---- 1x1 shortcut conv + residual add ----
        res = jnp.dot(xp2.astype(jnp.bfloat16), wsc_ref[...],
                      preferred_element_type=jnp.float32) + bsc_ref[...]
        s = y2 + res                          # (R, Cout) f32

        if downsample:
            # MaxPool2d(2): H-pairs via a free major-dim split, W-pairs via
            # strided sublane reads from a half-size VMEM staging buffer.
            s5 = s.reshape(N, H // 2, 2, W, Cout)
            pool_ref[...] = jnp.maximum(s5[:, :, 0, :, :], s5[:, :, 1, :, :])
            out_ref[...] = jnp.maximum(
                pool_ref[:, :, pl.ds(0, W // 2, 2), :],
                pool_ref[:, :, pl.ds(1, W // 2, 2), :])
        else:
            out_ref[...] = s.reshape(N, H, W, Cout)

    return kernel


def down_layer_forward(x, temb, params, *, downsample):
    """x: (N, H, W, Cin) float32, temb: (N, T) float32. Returns NHWC output."""
    N, H, W, Cin = x.shape
    T = temb.shape[1]
    Cout = params["w1"].shape[-1]
    assert W % 8 == 0 and (not downsample or (H % 2 == 0 and W % 2 == 0))
    out_h = H // 2 if downsample else H
    out_w = W // 2 if downsample else W

    kernel = _make_down_layer_kernel(N, H, W, Cin, Cout, T, downsample)

    bf16 = jnp.bfloat16
    inputs = (x, temb,
              params["wfc"], params["bfc"],
              params["w1"].astype(bf16), params["g1"], params["be1"],
              params["w2"].astype(bf16), params["g2"], params["be2"],
              params["wsc"].astype(bf16), params["bsc"])

    flops = int(2 * N * H * W * (9 * Cin * Cout + 9 * Cout * Cout + Cin * Cout)
                + 2 * N * T * Cin)
    bytes_accessed = int(4 * (x.size + temb.size + N * out_h * out_w * Cout
                              + sum(int(np.prod(v.shape)) for v in params.values())))

    vmem = pltpu.MemorySpace.VMEM
    scratch = ([pltpu.VMEM((N, H // 2, W, Cout), jnp.float32)] if downsample else [])
    return pl.pallas_call(
        kernel,
        out_shape=jax.ShapeDtypeStruct((N, out_h, out_w, Cout), jnp.float32),
        in_specs=[pl.BlockSpec(memory_space=vmem)] * len(inputs),
        out_specs=pl.BlockSpec(memory_space=vmem),
        scratch_shapes=scratch,
        compiler_params=pltpu.CompilerParams(vmem_limit_bytes=32 * 1024 * 1024),
        cost_estimate=pl.CostEstimate(flops=flops, transcendentals=0,
                                      bytes_accessed=bytes_accessed),
    )(*inputs)


# ---------------- pure-JAX reference (for verification) ----------------
def ref_forward(x, temb, p, *, downsample):
    tproj = temb @ p["wfc"] + p["bfc"]
    xp = x + tproj[:, None, None, :]

    def conv3(inp, w, b):
        w4 = w.reshape(3, 3, w.shape[1], w.shape[2])
        y = jax.lax.conv_general_dilated(
            inp, w4, window_strides=(1, 1), padding="SAME",
            dimension_numbers=("NHWC", "HWIO", "NHWC"),
            precision=jax.lax.Precision.HIGHEST)
        return y + b

    def bn_relu(y, g, be):
        mean = jnp.mean(y, axis=(0, 1, 2), keepdims=True)
        var = jnp.mean((y - mean) ** 2, axis=(0, 1, 2), keepdims=True)
        return jax.nn.relu((y - mean) / jnp.sqrt(var + EPS) * g + be)

    y1 = bn_relu(conv3(xp, p["w1"], p["b1"]), p["g1"], p["be1"])
    y2 = bn_relu(conv3(y1, p["w2"], p["b2"]), p["g2"], p["be2"])
    res = jnp.einsum("nhwc,cd->nhwd", xp, p["wsc"],
                     precision=jax.lax.Precision.HIGHEST) + p["bsc"]
    s = y2 + res
    if downsample:
        s = jax.lax.reduce_window(s, -jnp.inf, jax.lax.max,
                                  (1, 2, 2, 1), (1, 2, 2, 1), "VALID")
    return s


def init_params(key, Cin, Cout, T):
    ks = jax.random.split(key, 14)
    nrm = lambda k, shape, s: s * jax.random.normal(k, shape, jnp.float32)
    return {
        "wfc": nrm(ks[0], (T, Cin), 1.0 / np.sqrt(T)),
        "bfc": nrm(ks[1], (1, Cin), 0.1),
        "w1":  nrm(ks[2], (9, Cin, Cout), 1.0 / np.sqrt(9 * Cin)),
        "b1":  nrm(ks[3], (1, Cout), 0.1),
        "g1":  1.0 + nrm(ks[4], (1, Cout), 0.1),
        "be1": nrm(ks[5], (1, Cout), 0.1),
        "w2":  nrm(ks[6], (9, Cout, Cout), 1.0 / np.sqrt(9 * Cout)),
        "b2":  nrm(ks[7], (1, Cout), 0.1),
        "g2":  1.0 + nrm(ks[8], (1, Cout), 0.1),
        "be2": nrm(ks[9], (1, Cout), 0.1),
        "wsc": nrm(ks[10], (Cin, Cout), 1.0 / np.sqrt(Cin)),
        "bsc": nrm(ks[11], (1, Cout), 0.1),
    }


if __name__ == "__main__":
    N, H, W = 2, 16, 16
    Cin, Cout, T = 4, 8, 16
    downsample = True

    key = jax.random.PRNGKey(0)
    kx, kt, kp = jax.random.split(key, 3)
    x = jax.random.normal(kx, (N, H, W, Cin), jnp.float32)       # NHWC
    temb = jax.random.normal(kt, (N, T), jnp.float32)
    params = init_params(kp, Cin, Cout, T)

    out = down_layer_forward(x, temb, params, downsample=downsample)
    out = jax.block_until_ready(out)

    ref = ref_forward(x, temb, params, downsample=downsample)
    assert out.shape == (N, H // 2, W // 2, Cout), out.shape
    # kernel uses bf16 MXU operands with f32 accumulation -> slightly looser tol
    np.testing.assert_allclose(np.asarray(out), np.asarray(ref),
                               atol=3e-2, rtol=3e-2)
    print("KERNEL_OK")
</pallas_src>

<mosaic_0001>
module attributes {stable_mosaic.version = 11 : i64} {
  func.func @kernel(%arg0: memref<2x16x16x4xf32, #tpu.memory_space<vmem>>, %arg1: memref<2x16xf32, #tpu.memory_space<vmem>>, %arg2: memref<16x4xf32, #tpu.memory_space<vmem>>, %arg3: memref<1x4xf32, #tpu.memory_space<vmem>>, %arg4: memref<9x4x8xbf16, #tpu.memory_space<vmem>>, %arg5: memref<1x8xf32, #tpu.memory_space<vmem>>, %arg6: memref<1x8xf32, #tpu.memory_space<vmem>>, %arg7: memref<9x8x8xbf16, #tpu.memory_space<vmem>>, %arg8: memref<1x8xf32, #tpu.memory_space<vmem>>, %arg9: memref<1x8xf32, #tpu.memory_space<vmem>>, %arg10: memref<4x8xbf16, #tpu.memory_space<vmem>>, %arg11: memref<1x8xf32, #tpu.memory_space<vmem>>, %arg12: memref<2x8x8x8xf32, #tpu.memory_space<vmem>>, %arg13: memref<2x8x16x8xf32, #tpu.memory_space<vmem>>) attributes {dimension_semantics = [], scalar_prefetch = 0 : i64, scratch_operands = 1 : i64, tpu.core_type = #tpu.core_type<tc>} {
    %0 = tpu.iota {dimensions = array<i32: 1>} : vector<2x16x16x1xi32>
    %1 = vector.shape_cast %0 : vector<2x16x16x1xi32> to vector<512x1xi32>
    %2 = tpu.iota {dimensions = array<i32: 2>} : vector<2x16x16x1xi32>
    %3 = vector.shape_cast %2 : vector<2x16x16x1xi32> to vector<512x1xi32>
    %c1_i32 = arith.constant 1 : i32
    %4 = vector.broadcast %c1_i32 : i32 to vector<512x1xi32>
    %5 = arith.cmpi sge, %1, %4 : vector<512x1xi32>
    %c1_i32_0 = arith.constant 1 : i32
    %6 = vector.broadcast %c1_i32_0 : i32 to vector<512x1xi32>
    %7 = arith.cmpi sge, %3, %6 : vector<512x1xi32>
    %8 = arith.andi %5, %7 : vector<512x1xi1>
    %c1_i32_1 = arith.constant 1 : i32
    %9 = vector.broadcast %c1_i32_1 : i32 to vector<512x1xi32>
    %10 = arith.cmpi sge, %1, %9 : vector<512x1xi32>
    %c1_i32_2 = arith.constant 1 : i32
    %11 = vector.broadcast %c1_i32_2 : i32 to vector<512x1xi32>
    %12 = arith.cmpi sge, %1, %11 : vector<512x1xi32>
    %c14_i32 = arith.constant 14 : i32
    %13 = vector.broadcast %c14_i32 : i32 to vector<512x1xi32>
    %14 = arith.cmpi sle, %3, %13 : vector<512x1xi32>
    %15 = arith.andi %12, %14 : vector<512x1xi1>
    %c1_i32_3 = arith.constant 1 : i32
    %16 = vector.broadcast %c1_i32_3 : i32 to vector<512x1xi32>
    %17 = arith.cmpi sge, %3, %16 : vector<512x1xi32>
    %c14_i32_4 = arith.constant 14 : i32
    %18 = vector.broadcast %c14_i32_4 : i32 to vector<512x1xi32>
    %19 = arith.cmpi sle, %3, %18 : vector<512x1xi32>
    %c14_i32_5 = arith.constant 14 : i32
    %20 = vector.broadcast %c14_i32_5 : i32 to vector<512x1xi32>
    %21 = arith.cmpi sle, %1, %20 : vector<512x1xi32>
    %c1_i32_6 = arith.constant 1 : i32
    %22 = vector.broadcast %c1_i32_6 : i32 to vector<512x1xi32>
    %23 = arith.cmpi sge, %3, %22 : vector<512x1xi32>
    %24 = arith.andi %21, %23 : vector<512x1xi1>
    %c14_i32_7 = arith.constant 14 : i32
    %25 = vector.broadcast %c14_i32_7 : i32 to vector<512x1xi32>
    %26 = arith.cmpi sle, %1, %25 : vector<512x1xi32>
    %c14_i32_8 = arith.constant 14 : i32
    %27 = vector.broadcast %c14_i32_8 : i32 to vector<512x1xi32>
    %28 = arith.cmpi sle, %1, %27 : vector<512x1xi32>
    %c14_i32_9 = arith.constant 14 : i32
    %29 = vector.broadcast %c14_i32_9 : i32 to vector<512x1xi32>
    %30 = arith.cmpi sle, %3, %29 : vector<512x1xi32>
    %31 = arith.andi %28, %30 : vector<512x1xi1>
    %c0 = arith.constant 0 : index
    %c0_10 = arith.constant 0 : index
    %32 = vector.load %arg1[%c0, %c0_10] : memref<2x16xf32, #tpu.memory_space<vmem>>, vector<2x16xf32>
    %c0_11 = arith.constant 0 : index
    %c0_12 = arith.constant 0 : index
    %33 = vector.load %arg2[%c0_11, %c0_12] : memref<16x4xf32, #tpu.memory_space<vmem>>, vector<16x4xf32>
    %cst = arith.constant dense<0.000000e+00> : vector<2x4xf32>
    %34 = tpu.matmul %32, %33, %cst {dimension_numbers = #tpu.dot_dimension_numbers<[1], [0], [0], [1], [0, 0, 1, 1], [], []>} : vector<2x16xf32>, vector<16x4xf32>, vector<2x4xf32> -> vector<2x4xf32>
    %c0_13 = arith.constant 0 : index
    %c0_14 = arith.constant 0 : index
    %35 = vector.load %arg3[%c0_13, %c0_14] : memref<1x4xf32, #tpu.memory_space<vmem>>, vector<1x4xf32>
    %36 = vector.broadcast %35 : vector<1x4xf32> to vector<2x4xf32>
    %37 = arith.addf %34, %36 : vector<2x4xf32>
    %c0_15 = arith.constant 0 : index
    %c0_16 = arith.constant 0 : index
    %c0_17 = arith.constant 0 : index
    %c0_18 = arith.constant 0 : index
    %38 = vector.load %arg0[%c0_15, %c0_16, %c0_17, %c0_18] : memref<2x16x16x4xf32, #tpu.memory_space<vmem>>, vector<2x16x16x4xf32>
    %39 = vector.shape_cast %37 : vector<2x4xf32> to vector<2x1x1x4xf32>
    %40 = vector.broadcast %39 : vector<2x1x1x4xf32> to vector<2x16x16x4xf32>
    %41 = arith.addf %38, %40 : vector<2x16x16x4xf32>
    %42 = vector.shape_cast %41 : vector<2x16x16x4xf32> to vector<512x4xf32>
    %c17_i32 = arith.constant 17 : i32
    %43 = tpu.dynamic_rotate %42 by %c17_i32 dim 0 : vector<512x4xf32>, i32 -> vector<512x4xf32>
    %cst_19 = arith.constant 0.000000e+00 : f32
    %44 = vector.shape_cast %8 : vector<512x1xi1> to vector<512x1xi1>
    %45 = vector.broadcast %44 : vector<512x1xi1> to vector<512x4xi1>
    %46 = vector.broadcast %cst_19 : f32 to vector<512x4xf32>
    %47 = arith.select %45, %43, %46 : vector<512x4xi1>, vector<512x4xf32>
    %48 = arith.truncf %47 : vector<512x4xf32> to vector<512x4xbf16>
    %c0_20 = arith.constant 0 : index
    %c0_21 = arith.constant 0 : index
    %c0_22 = arith.constant 0 : index
    %49 = vector.load %arg4[%c0_20, %c0_21, %c0_22] : memref<9x4x8xbf16, #tpu.memory_space<vmem>>, vector<1x4x8xbf16>
    %50 = vector.shape_cast %49 : vector<1x4x8xbf16> to vector<4x8xbf16>
    %cst_23 = arith.constant dense<0.000000e+00> : vector<512x8xf32>
    %51 = tpu.matmul %48, %50, %cst_23 {dimension_numbers = #tpu.dot_dimension_numbers<[1], [0], [0], [1], [0, 0, 1, 1], [], []>} : vector<512x4xbf16>, vector<4x8xbf16>, vector<512x8xf32> -> vector<512x8xf32>
    %c16_i32 = arith.constant 16 : i32
    %52 = tpu.dynamic_rotate %42 by %c16_i32 dim 0 : vector<512x4xf32>, i32 -> vector<512x4xf32>
    %cst_24 = arith.constant 0.000000e+00 : f32
    %53 = vector.shape_cast %10 : vector<512x1xi1> to vector<512x1xi1>
    %54 = vector.broadcast %53 : vector<512x1xi1> to vector<512x4xi1>
    %55 = vector.broadcast %cst_24 : f32 to vector<512x4xf32>
    %56 = arith.select %54, %52, %55 : vector<512x4xi1>, vector<512x4xf32>
    %57 = arith.truncf %56 : vector<512x4xf32> to vector<512x4xbf16>
    %c1 = arith.constant 1 : index
    %c0_25 = arith.constant 0 : index
    %c0_26 = arith.constant 0 : index
    %58 = vector.load %arg4[%c1, %c0_25, %c0_26] : memref<9x4x8xbf16, #tpu.memory_space<vmem>>, vector<1x4x8xbf16>
    %59 = vector.shape_cast %58 : vector<1x4x8xbf16> to vector<4x8xbf16>
    %cst_27 = arith.constant dense<0.000000e+00> : vector<512x8xf32>
    %60 = tpu.matmul %57, %59, %cst_27 {dimension_numbers = #tpu.dot_dimension_numbers<[1], [0], [0], [1], [0, 0, 1, 1], [], []>} : vector<512x4xbf16>, vector<4x8xbf16>, vector<512x8xf32> -> vector<512x8xf32>
    %61 = arith.addf %51, %60 : vector<512x8xf32>
    %c15_i32 = arith.constant 15 : i32
    %62 = tpu.dynamic_rotate %42 by %c15_i32 dim 0 : vector<512x4xf32>, i32 -> vector<512x4xf32>
    %cst_28 = arith.constant 0.000000e+00 : f32
    %63 = vector.shape_cast %15 : vector<512x1xi1> to vector<512x1xi1>
    %64 = vector.broadcast %63 : vector<512x1xi1> to vector<512x4xi1>
    %65 = vector.broadcast %cst_28 : f32 to vector<512x4xf32>
    %66 = arith.select %64, %62, %65 : vector<512x4xi1>, vector<512x4xf32>
    %67 = arith.truncf %66 : vector<512x4xf32> to vector<512x4xbf16>
    %c2 = arith.constant 2 : index
    %c0_29 = arith.constant 0 : index
    %c0_30 = arith.constant 0 : index
    %68 = vector.load %arg4[%c2, %c0_29, %c0_30] : memref<9x4x8xbf16, #tpu.memory_space<vmem>>, vector<1x4x8xbf16>
    %69 = vector.shape_cast %68 : vector<1x4x8xbf16> to vector<4x8xbf16>
    %cst_31 = arith.constant dense<0.000000e+00> : vector<512x8xf32>
    %70 = tpu.matmul %67, %69, %cst_31 {dimension_numbers = #tpu.dot_dimension_numbers<[1], [0], [0], [1], [0, 0, 1, 1], [], []>} : vector<512x4xbf16>, vector<4x8xbf16>, vector<512x8xf32> -> vector<512x8xf32>
    %71 = arith.addf %61, %70 : vector<512x8xf32>
    %c1_i32_32 = arith.constant 1 : i32
    %72 = tpu.dynamic_rotate %42 by %c1_i32_32 dim 0 : vector<512x4xf32>, i32 -> vector<512x4xf32>
    %cst_33 = arith.constant 0.000000e+00 : f32
    %73 = vector.shape_cast %17 : vector<512x1xi1> to vector<512x1xi1>
    %74 = vector.broadcast %73 : vector<512x1xi1> to vector<512x4xi1>
    %75 = vector.broadcast %cst_33 : f32 to vector<512x4xf32>
    %76 = arith.select %74, %72, %75 : vector<512x4xi1>, vector<512x4xf32>
    %77 = arith.truncf %76 : vector<512x4xf32> to vector<512x4xbf16>
    %c3 = arith.constant 3 : index
    %c0_34 = arith.constant 0 : index
    %c0_35 = arith.constant 0 : index
    %78 = vector.load %arg4[%c3, %c0_34, %c0_35] : memref<9x4x8xbf16, #tpu.memory_space<vmem>>, vector<1x4x8xbf16>
    %79 = vector.shape_cast %78 : vector<1x4x8xbf16> to vector<4x8xbf16>
    %cst_36 = arith.constant dense<0.000000e+00> : vector<512x8xf32>
    %80 = tpu.matmul %77, %79, %cst_36 {dimension_numbers = #tpu.dot_dimension_numbers<[1], [0], [0], [1], [0, 0, 1, 1], [], []>} : vector<512x4xbf16>, vector<4x8xbf16>, vector<512x8xf32> -> vector<512x8xf32>
    %81 = arith.addf %71, %80 : vector<512x8xf32>
    %82 = arith.truncf %42 : vector<512x4xf32> to vector<512x4xbf16>
    %c4 = arith.constant 4 : index
    %c0_37 = arith.constant 0 : index
    %c0_38 = arith.constant 0 : index
    %83 = vector.load %arg4[%c4, %c0_37, %c0_38] : memref<9x4x8xbf16, #tpu.memory_space<vmem>>, vector<1x4x8xbf16>
    %84 = vector.shape_cast %83 : vector<1x4x8xbf16> to vector<4x8xbf16>
    %cst_39 = arith.constant dense<0.000000e+00> : vector<512x8xf32>
    %85 = tpu.matmul %82, %84, %cst_39 {dimension_numbers = #tpu.dot_dimension_numbers<[1], [0], [0], [1], [0, 0, 1, 1], [], []>} : vector<512x4xbf16>, vector<4x8xbf16>, vector<512x8xf32> -> vector<512x8xf32>
    %86 = arith.addf %81, %85 : vector<512x8xf32>
    %c511_i32 = arith.constant 511 : i32
    %87 = tpu.dynamic_rotate %42 by %c511_i32 dim 0 : vector<512x4xf32>, i32 -> vector<512x4xf32>
    %cst_40 = arith.constant 0.000000e+00 : f32
    %88 = vector.shape_cast %19 : vector<512x1xi1> to vector<512x1xi1>
    %89 = vector.broadcast %88 : vector<512x1xi1> to vector<512x4xi1>
    %90 = vector.broadcast %cst_40 : f32 to vector<512x4xf32>
    %91 = arith.select %89, %87, %90 : vector<512x4xi1>, vector<512x4xf32>
    %92 = arith.truncf %91 : vector<512x4xf32> to vector<512x4xbf16>
    %c5 = arith.constant 5 : index
    %c0_41 = arith.constant 0 : index
    %c0_42 = arith.constant 0 : index
    %93 = vector.load %arg4[%c5, %c0_41, %c0_42] : memref<9x4x8xbf16, #tpu.memory_space<vmem>>, vector<1x4x8xbf16>
    %94 = vector.shape_cast %93 : vector<1x4x8xbf16> to vector<4x8xbf16>
    %cst_43 = arith.constant dense<0.000000e+00> : vector<512x8xf32>
    %95 = tpu.matmul %92, %94, %cst_43 {dimension_numbers = #tpu.dot_dimension_numbers<[1], [0], [0], [1], [0, 0, 1, 1], [], []>} : vector<512x4xbf16>, vector<4x8xbf16>, vector<512x8xf32> -> vector<512x8xf32>
    %96 = arith.addf %86, %95 : vector<512x8xf32>
    %c497_i32 = arith.constant 497 : i32
    %97 = tpu.dynamic_rotate %42 by %c497_i32 dim 0 : vector<512x4xf32>, i32 -> vector<512x4xf32>
    %cst_44 = arith.constant 0.000000e+00 : f32
    %98 = vector.shape_cast %24 : vector<512x1xi1> to vector<512x1xi1>
    %99 = vector.broadcast %98 : vector<512x1xi1> to vector<512x4xi1>
    %100 = vector.broadcast %cst_44 : f32 to vector<512x4xf32>
    %101 = arith.select %99, %97, %100 : vector<512x4xi1>, vector<512x4xf32>
    %102 = arith.truncf %101 : vector<512x4xf32> to vector<512x4xbf16>
    %c6 = arith.constant 6 : index
    %c0_45 = arith.constant 0 : index
    %c0_46 = arith.constant 0 : index
    %103 = vector.load %arg4[%c6, %c0_45, %c0_46] : memref<9x4x8xbf16, #tpu.memory_space<vmem>>, vector<1x4x8xbf16>
    %104 = vector.shape_cast %103 : vector<1x4x8xbf16> to vector<4x8xbf16>
    %cst_47 = arith.constant dense<0.000000e+00> : vector<512x8xf32>
    %105 = tpu.matmul %102, %104, %cst_47 {dimension_numbers = #tpu.dot_dimension_numbers<[1], [0], [0], [1], [0, 0, 1, 1], [], []>} : vector<512x4xbf16>, vector<4x8xbf16>, vector<512x8xf32> -> vector<512x8xf32>
    %106 = arith.addf %96, %105 : vector<512x8xf32>
    %c496_i32 = arith.constant 496 : i32
    %107 = tpu.dynamic_rotate %42 by %c496_i32 dim 0 : vector<512x4xf32>, i32 -> vector<512x4xf32>
    %cst_48 = arith.constant 0.000000e+00 : f32
    %108 = vector.shape_cast %26 : vector<512x1xi1> to vector<512x1xi1>
    %109 = vector.broadcast %108 : vector<512x1xi1> to vector<512x4xi1>
    %110 = vector.broadcast %cst_48 : f32 to vector<512x4xf32>
    %111 = arith.select %109, %107, %110 : vector<512x4xi1>, vector<512x4xf32>
    %112 = arith.truncf %111 : vector<512x4xf32> to vector<512x4xbf16>
    %c7 = arith.constant 7 : index
    %c0_49 = arith.constant 0 : index
    %c0_50 = arith.constant 0 : index
    %113 = vector.load %arg4[%c7, %c0_49, %c0_50] : memref<9x4x8xbf16, #tpu.memory_space<vmem>>, vector<1x4x8xbf16>
    %114 = vector.shape_cast %113 : vector<1x4x8xbf16> to vector<4x8xbf16>
    %cst_51 = arith.constant dense<0.000000e+00> : vector<512x8xf32>
    %115 = tpu.matmul %112, %114, %cst_51 {dimension_numbers = #tpu.dot_dimension_numbers<[1], [0], [0], [1], [0, 0, 1, 1], [], []>} : vector<512x4xbf16>, vector<4x8xbf16>, vector<512x8xf32> -> vector<512x8xf32>
    %116 = arith.addf %106, %115 : vector<512x8xf32>
    %c495_i32 = arith.constant 495 : i32
    %117 = tpu.dynamic_rotate %42 by %c495_i32 dim 0 : vector<512x4xf32>, i32 -> vector<512x4xf32>
    %cst_52 = arith.constant 0.000000e+00 : f32
    %118 = vector.shape_cast %31 : vector<512x1xi1> to vector<512x1xi1>
    %119 = vector.broadcast %118 : vector<512x1xi1> to vector<512x4xi1>
    %120 = vector.broadcast %cst_52 : f32 to vector<512x4xf32>
    %121 = arith.select %119, %117, %120 : vector<512x4xi1>, vector<512x4xf32>
    %122 = arith.truncf %121 : vector<512x4xf32> to vector<512x4xbf16>
    %c8 = arith.constant 8 : index
    %c0_53 = arith.constant 0 : index
    %c0_54 = arith.constant 0 : index
    %123 = vector.load %arg4[%c8, %c0_53, %c0_54] : memref<9x4x8xbf16, #tpu.memory_space<vmem>>, vector<1x4x8xbf16>
    %124 = vector.shape_cast %123 : vector<1x4x8xbf16> to vector<4x8xbf16>
    %cst_55 = arith.constant dense<0.000000e+00> : vector<512x8xf32>
    %125 = tpu.matmul %122, %124, %cst_55 {dimension_numbers = #tpu.dot_dimension_numbers<[1], [0], [0], [1], [0, 0, 1, 1], [], []>} : vector<512x4xbf16>, vector<4x8xbf16>, vector<512x8xf32> -> vector<512x8xf32>
    %126 = arith.addf %116, %125 : vector<512x8xf32>
    %cst_56 = arith.constant dense<0.000000e+00> : vector<8xf32>
    %127 = vector.multi_reduction <add>, %126, %cst_56 [0] : vector<512x8xf32> to vector<8xf32>
    %128 = vector.shape_cast %127 : vector<8xf32> to vector<1x8xf32>
    %129 = arith.mulf %126, %126 : vector<512x8xf32>
    %cst_57 = arith.constant dense<0.000000e+00> : vector<8xf32>
    %130 = vector.multi_reduction <add>, %129, %cst_57 [0] : vector<512x8xf32> to vector<8xf32>
    %131 = vector.shape_cast %130 : vector<8xf32> to vector<1x8xf32>
    %cst_58 = arith.constant 0.001953125 : f32
    %132 = vector.broadcast %cst_58 : f32 to vector<1x8xf32>
    %133 = arith.mulf %128, %132 : vector<1x8xf32>
    %cst_59 = arith.constant 0.001953125 : f32
    %134 = vector.broadcast %cst_59 : f32 to vector<1x8xf32>
    %135 = arith.mulf %131, %134 : vector<1x8xf32>
    %136 = arith.mulf %133, %133 : vector<1x8xf32>
    %137 = arith.subf %135, %136 : vector<1x8xf32>
    %cst_60 = arith.constant 0.000000e+00 : f32
    %138 = vector.broadcast %cst_60 : f32 to vector<1x8xf32>
    %139 = arith.maximumf %137, %138 : vector<1x8xf32>
    %c0_61 = arith.constant 0 : index
    %c0_62 = arith.constant 0 : index
    %140 = vector.load %arg5[%c0_61, %c0_62] : memref<1x8xf32, #tpu.memory_space<vmem>>, vector<1x8xf32>
    %cst_63 = arith.constant 9.99999974E-6 : f32
    %141 = vector.broadcast %cst_63 : f32 to vector<1x8xf32>
    %142 = arith.addf %139, %141 : vector<1x8xf32>
    %143 = math.rsqrt %142 : vector<1x8xf32>
    %144 = arith.mulf %140, %143 : vector<1x8xf32>
    %c0_64 = arith.constant 0 : index
    %c0_65 = arith.constant 0 : index
    %145 = vector.load %arg6[%c0_64, %c0_65] : memref<1x8xf32, #tpu.memory_space<vmem>>, vector<1x8xf32>
    %146 = arith.mulf %133, %144 : vector<1x8xf32>
    %147 = arith.subf %145, %146 : vector<1x8xf32>
    %148 = vector.broadcast %144 : vector<1x8xf32> to vector<512x8xf32>
    %149 = arith.mulf %126, %148 : vector<512x8xf32>
    %150 = vector.broadcast %147 : vector<1x8xf32> to vector<512x8xf32>
    %151 = arith.addf %149, %150 : vector<512x8xf32>
    %cst_66 = arith.constant 0.000000e+00 : f32
    %152 = vector.broadcast %cst_66 : f32 to vector<512x8xf32>
    %153 = arith.maximumf %151, %152 : vector<512x8xf32>
    %c17_i32_67 = arith.constant 17 : i32
    %154 = tpu.dynamic_rotate %153 by %c17_i32_67 dim 0 : vector<512x8xf32>, i32 -> vector<512x8xf32>
    %cst_68 = arith.constant 0.000000e+00 : f32
    %155 = vector.shape_cast %8 : vector<512x1xi1> to vector<512x1xi1>
    %156 = vector.broadcast %155 : vector<512x1xi1> to vector<512x8xi1>
    %157 = vector.broadcast %cst_68 : f32 to vector<512x8xf32>
    %158 = arith.select %156, %154, %157 : vector<512x8xi1>, vector<512x8xf32>
    %159 = arith.truncf %158 : vector<512x8xf32> to vector<512x8xbf16>
    %c0_69 = arith.constant 0 : index
    %c0_70 = arith.constant 0 : index
    %c0_71 = arith.constant 0 : index
    %160 = vector.load %arg7[%c0_69, %c0_70, %c0_71] : memref<9x8x8xbf16, #tpu.memory_space<vmem>>, vector<1x8x8xbf16>
    %161 = vector.shape_cast %160 : vector<1x8x8xbf16> to vector<8x8xbf16>
    %cst_72 = arith.constant dense<0.000000e+00> : vector<512x8xf32>
    %162 = tpu.matmul %159, %161, %cst_72 {dimension_numbers = #tpu.dot_dimension_numbers<[1], [0], [0], [1], [0, 0, 1, 1], [], []>} : vector<512x8xbf16>, vector<8x8xbf16>, vector<512x8xf32> -> vector<512x8xf32>
    %c16_i32_73 = arith.constant 16 : i32
    %163 = tpu.dynamic_rotate %153 by %c16_i32_73 dim 0 : vector<512x8xf32>, i32 -> vector<512x8xf32>
    %cst_74 = arith.constant 0.000000e+00 : f32
    %164 = vector.shape_cast %10 : vector<512x1xi1> to vector<512x1xi1>
    %165 = vector.broadcast %164 : vector<512x1xi1> to vector<512x8xi1>
    %166 = vector.broadcast %cst_74 : f32 to vector<512x8xf32>
    %167 = arith.select %165, %163, %166 : vector<512x8xi1>, vector<512x8xf32>
    %168 = arith.truncf %167 : vector<512x8xf32> to vector<512x8xbf16>
    %c1_75 = arith.constant 1 : index
    %c0_76 = arith.constant 0 : index
    %c0_77 = arith.constant 0 : index
    %169 = vector.load %arg7[%c1_75, %c0_76, %c0_77] : memref<9x8x8xbf16, #tpu.memory_space<vmem>>, vector<1x8x8xbf16>
    %170 = vector.shape_cast %169 : vector<1x8x8xbf16> to vector<8x8xbf16>
    %cst_78 = arith.constant dense<0.000000e+00> : vector<512x8xf32>
    %171 = tpu.matmul %168, %170, %cst_78 {dimension_numbers = #tpu.dot_dimension_numbers<[1], [0], [0], [1], [0, 0, 1, 1], [], []>} : vector<512x8xbf16>, vector<8x8xbf16>, vector<512x8xf32> -> vector<512x8xf32>
    %172 = arith.addf %162, %171 : vector<512x8xf32>
    %c15_i32_79 = arith.constant 15 : i32
    %173 = tpu.dynamic_rotate %153 by %c15_i32_79 dim 0 : vector<512x8xf32>, i32 -> vector<512x8xf32>
    %cst_80 = arith.constant 0.000000e+00 : f32
    %174 = vector.shape_cast %15 : vector<512x1xi1> to vector<512x1xi1>
    %175 = vector.broadcast %174 : vector<512x1xi1> to vector<512x8xi1>
    %176 = vector.broadcast %cst_80 : f32 to vector<512x8xf32>
    %177 = arith.select %175, %173, %176 : vector<512x8xi1>, vector<512x8xf32>
    %178 = arith.truncf %177 : vector<512x8xf32> to vector<512x8xbf16>
    %c2_81 = arith.constant 2 : index
    %c0_82 = arith.constant 0 : index
    %c0_83 = arith.constant 0 : index
    %179 = vector.load %arg7[%c2_81, %c0_82, %c0_83] : memref<9x8x8xbf16, #tpu.memory_space<vmem>>, vector<1x8x8xbf16>
    %180 = vector.shape_cast %179 : vector<1x8x8xbf16> to vector<8x8xbf16>
    %cst_84 = arith.constant dense<0.000000e+00> : vector<512x8xf32>
    %181 = tpu.matmul %178, %180, %cst_84 {dimension_numbers = #tpu.dot_dimension_numbers<[1], [0], [0], [1], [0, 0, 1, 1], [], []>} : vector<512x8xbf16>, vector<8x8xbf16>, vector<512x8xf32> -> vector<512x8xf32>
    %182 = arith.addf %172, %181 : vector<512x8xf32>
    %c1_i32_85 = arith.constant 1 : i32
    %183 = tpu.dynamic_rotate %153 by %c1_i32_85 dim 0 : vector<512x8xf32>, i32 -> vector<512x8xf32>
    %cst_86 = arith.constant 0.000000e+00 : f32
    %184 = vector.shape_cast %17 : vector<512x1xi1> to vector<512x1xi1>
    %185 = vector.broadcast %184 : vector<512x1xi1> to vector<512x8xi1>
    %186 = vector.broadcast %cst_86 : f32 to vector<512x8xf32>
    %187 = arith.select %185, %183, %186 : vector<512x8xi1>, vector<512x8xf32>
    %188 = arith.truncf %187 : vector<512x8xf32> to vector<512x8xbf16>
    %c3_87 = arith.constant 3 : index
    %c0_88 = arith.constant 0 : index
    %c0_89 = arith.constant 0 : index
    %189 = vector.load %arg7[%c3_87, %c0_88, %c0_89] : memref<9x8x8xbf16, #tpu.memory_space<vmem>>, vector<1x8x8xbf16>
    %190 = vector.shape_cast %189 : vector<1x8x8xbf16> to vector<8x8xbf16>
    %cst_90 = arith.constant dense<0.000000e+00> : vector<512x8xf32>
    %191 = tpu.matmul %188, %190, %cst_90 {dimension_numbers = #tpu.dot_dimension_numbers<[1], [0], [0], [1], [0, 0, 1, 1], [], []>} : vector<512x8xbf16>, vector<8x8xbf16>, vector<512x8xf32> -> vector<512x8xf32>
    %192 = arith.addf %182, %191 : vector<512x8xf32>
    %193 = arith.truncf %153 : vector<512x8xf32> to vector<512x8xbf16>
    %c4_91 = arith.constant 4 : index
    %c0_92 = arith.constant 0 : index
    %c0_93 = arith.constant 0 : index
    %194 = vector.load %arg7[%c4_91, %c0_92, %c0_93] : memref<9x8x8xbf16, #tpu.memory_space<vmem>>, vector<1x8x8xbf16>
    %195 = vector.shape_cast %194 : vector<1x8x8xbf16> to vector<8x8xbf16>
    %cst_94 = arith.constant dense<0.000000e+00> : vector<512x8xf32>
    %196 = tpu.matmul %193, %195, %cst_94 {dimension_numbers = #tpu.dot_dimension_numbers<[1], [0], [0], [1], [0, 0, 1, 1], [], []>} : vector<512x8xbf16>, vector<8x8xbf16>, vector<512x8xf32> -> vector<512x8xf32>
    %197 = arith.addf %192, %196 : vector<512x8xf32>
    %c511_i32_95 = arith.constant 511 : i32
    %198 = tpu.dynamic_rotate %153 by %c511_i32_95 dim 0 : vector<512x8xf32>, i32 -> vector<512x8xf32>
    %cst_96 = arith.constant 0.000000e+00 : f32
    %199 = vector.shape_cast %19 : vector<512x1xi1> to vector<512x1xi1>
    %200 = vector.broadcast %199 : vector<512x1xi1> to vector<512x8xi1>
    %201 = vector.broadcast %cst_96 : f32 to vector<512x8xf32>
    %202 = arith.select %200, %198, %201 : vector<512x8xi1>, vector<512x8xf32>
    %203 = arith.truncf %202 : vector<512x8xf32> to vector<512x8xbf16>
    %c5_97 = arith.constant 5 : index
    %c0_98 = arith.constant 0 : index
    %c0_99 = arith.constant 0 : index
    %204 = vector.load %arg7[%c5_97, %c0_98, %c0_99] : memref<9x8x8xbf16, #tpu.memory_space<vmem>>, vector<1x8x8xbf16>
    %205 = vector.shape_cast %204 : vector<1x8x8xbf16> to vector<8x8xbf16>
    %cst_100 = arith.constant dense<0.000000e+00> : vector<512x8xf32>
    %206 = tpu.matmul %203, %205, %cst_100 {dimension_numbers = #tpu.dot_dimension_numbers<[1], [0], [0], [1], [0, 0, 1, 1], [], []>} : vector<512x8xbf16>, vector<8x8xbf16>, vector<512x8xf32> -> vector<512x8xf32>
    %207 = arith.addf %197, %206 : vector<512x8xf32>
    %c497_i32_101 = arith.constant 497 : i32
    %208 = tpu.dynamic_rotate %153 by %c497_i32_101 dim 0 : vector<512x8xf32>, i32 -> vector<512x8xf32>
    %cst_102 = arith.constant 0.000000e+00 : f32
    %209 = vector.shape_cast %24 : vector<512x1xi1> to vector<512x1xi1>
    %210 = vector.broadcast %209 : vector<512x1xi1> to vector<512x8xi1>
    %211 = vector.broadcast %cst_102 : f32 to vector<512x8xf32>
    %212 = arith.select %210, %208, %211 : vector<512x8xi1>, vector<512x8xf32>
    %213 = arith.truncf %212 : vector<512x8xf32> to vector<512x8xbf16>
    %c6_103 = arith.constant 6 : index
    %c0_104 = arith.constant 0 : index
    %c0_105 = arith.constant 0 : index
    %214 = vector.load %arg7[%c6_103, %c0_104, %c0_105] : memref<9x8x8xbf16, #tpu.memory_space<vmem>>, vector<1x8x8xbf16>
    %215 = vector.shape_cast %214 : vector<1x8x8xbf16> to vector<8x8xbf16>
    %cst_106 = arith.constant dense<0.000000e+00> : vector<512x8xf32>
    %216 = tpu.matmul %213, %215, %cst_106 {dimension_numbers = #tpu.dot_dimension_numbers<[1], [0], [0], [1], [0, 0, 1, 1], [], []>} : vector<512x8xbf16>, vector<8x8xbf16>, vector<512x8xf32> -> vector<512x8xf32>
    %217 = arith.addf %207, %216 : vector<512x8xf32>
    %c496_i32_107 = arith.constant 496 : i32
    %218 = tpu.dynamic_rotate %153 by %c496_i32_107 dim 0 : vector<512x8xf32>, i32 -> vector<512x8xf32>
    %cst_108 = arith.constant 0.000000e+00 : f32
    %219 = vector.shape_cast %26 : vector<512x1xi1> to vector<512x1xi1>
    %220 = vector.broadcast %219 : vector<512x1xi1> to vector<512x8xi1>
    %221 = vector.broadcast %cst_108 : f32 to vector<512x8xf32>
    %222 = arith.select %220, %218, %221 : vector<512x8xi1>, vector<512x8xf32>
    %223 = arith.truncf %222 : vector<512x8xf32> to vector<512x8xbf16>
    %c7_109 = arith.constant 7 : index
    %c0_110 = arith.constant 0 : index
    %c0_111 = arith.constant 0 : index
    %224 = vector.load %arg7[%c7_109, %c0_110, %c0_111] : memref<9x8x8xbf16, #tpu.memory_space<vmem>>, vector<1x8x8xbf16>
    %225 = vector.shape_cast %224 : vector<1x8x8xbf16> to vector<8x8xbf16>
    %cst_112 = arith.constant dense<0.000000e+00> : vector<512x8xf32>
    %226 = tpu.matmul %223, %225, %cst_112 {dimension_numbers = #tpu.dot_dimension_numbers<[1], [0], [0], [1], [0, 0, 1, 1], [], []>} : vector<512x8xbf16>, vector<8x8xbf16>, vector<512x8xf32> -> vector<512x8xf32>
    %227 = arith.addf %217, %226 : vector<512x8xf32>
    %c495_i32_113 = arith.constant 495 : i32
    %228 = tpu.dynamic_rotate %153 by %c495_i32_113 dim 0 : vector<512x8xf32>, i32 -> vector<512x8xf32>
    %cst_114 = arith.constant 0.000000e+00 : f32
    %229 = vector.shape_cast %31 : vector<512x1xi1> to vector<512x1xi1>
    %230 = vector.broadcast %229 : vector<512x1xi1> to vector<512x8xi1>
    %231 = vector.broadcast %cst_114 : f32 to vector<512x8xf32>
    %232 = arith.select %230, %228, %231 : vector<512x8xi1>, vector<512x8xf32>
    %233 = arith.truncf %232 : vector<512x8xf32> to vector<512x8xbf16>
    %c8_115 = arith.constant 8 : index
    %c0_116 = arith.constant 0 : index
    %c0_117 = arith.constant 0 : index
    %234 = vector.load %arg7[%c8_115, %c0_116, %c0_117] : memref<9x8x8xbf16, #tpu.memory_space<vmem>>, vector<1x8x8xbf16>
    %235 = vector.shape_cast %234 : vector<1x8x8xbf16> to vector<8x8xbf16>
    %cst_118 = arith.constant dense<0.000000e+00> : vector<512x8xf32>
    %236 = tpu.matmul %233, %235, %cst_118 {dimension_numbers = #tpu.dot_dimension_numbers<[1], [0], [0], [1], [0, 0, 1, 1], [], []>} : vector<512x8xbf16>, vector<8x8xbf16>, vector<512x8xf32> -> vector<512x8xf32>
    %237 = arith.addf %227, %236 : vector<512x8xf32>
    %cst_119 = arith.constant dense<0.000000e+00> : vector<8xf32>
    %238 = vector.multi_reduction <add>, %237, %cst_119 [0] : vector<512x8xf32> to vector<8xf32>
    %239 = vector.shape_cast %238 : vector<8xf32> to vector<1x8xf32>
    %240 = arith.mulf %237, %237 : vector<512x8xf32>
    %cst_120 = arith.constant dense<0.000000e+00> : vector<8xf32>
    %241 = vector.multi_reduction <add>, %240, %cst_120 [0] : vector<512x8xf32> to vector<8xf32>
    %242 = vector.shape_cast %241 : vector<8xf32> to vector<1x8xf32>
    %cst_121 = arith.constant 0.001953125 : f32
    %243 = vector.broadcast %cst_121 : f32 to vector<1x8xf32>
    %244 = arith.mulf %239, %243 : vector<1x8xf32>
    %cst_122 = arith.constant 0.001953125 : f32
    %245 = vector.broadcast %cst_122 : f32 to vector<1x8xf32>
    %246 = arith.mulf %242, %245 : vector<1x8xf32>
    %247 = arith.mulf %244, %244 : vector<1x8xf32>
    %248 = arith.subf %246, %247 : vector<1x8xf32>
    %cst_123 = arith.constant 0.000000e+00 : f32
    %249 = vector.broadcast %cst_123 : f32 to vector<1x8xf32>
    %250 = arith.maximumf %248, %249 : vector<1x8xf32>
    %c0_124 = arith.constant 0 : index
    %c0_125 = arith.constant 0 : index
    %251 = vector.load %arg8[%c0_124, %c0_125] : memref<1x8xf32, #tpu.memory_space<vmem>>, vector<1x8xf32>
    %cst_126 = arith.constant 9.99999974E-6 : f32
    %252 = vector.broadcast %cst_126 : f32 to vector<1x8xf32>
    %253 = arith.addf %250, %252 : vector<1x8xf32>
    %254 = math.rsqrt %253 : vector<1x8xf32>
    %255 = arith.mulf %251, %254 : vector<1x8xf32>
    %c0_127 = arith.constant 0 : index
    %c0_128 = arith.constant 0 : index
    %256 = vector.load %arg9[%c0_127, %c0_128] : memref<1x8xf32, #tpu.memory_space<vmem>>, vector<1x8xf32>
    %257 = arith.mulf %244, %255 : vector<1x8xf32>
    %258 = arith.subf %256, %257 : vector<1x8xf32>
    %259 = vector.broadcast %255 : vector<1x8xf32> to vector<512x8xf32>
    %260 = arith.mulf %237, %259 : vector<512x8xf32>
    %261 = vector.broadcast %258 : vector<1x8xf32> to vector<512x8xf32>
    %262 = arith.addf %260, %261 : vector<512x8xf32>
    %cst_129 = arith.constant 0.000000e+00 : f32
    %263 = vector.broadcast %cst_129 : f32 to vector<512x8xf32>
    %264 = arith.maximumf %262, %263 : vector<512x8xf32>
    %265 = arith.truncf %42 : vector<512x4xf32> to vector<512x4xbf16>
    %c0_130 = arith.constant 0 : index
    %c0_131 = arith.constant 0 : index
    %266 = vector.load %arg10[%c0_130, %c0_131] : memref<4x8xbf16, #tpu.memory_space<vmem>>, vector<4x8xbf16>
    %cst_132 = arith.constant dense<0.000000e+00> : vector<512x8xf32>
    %267 = tpu.matmul %265, %266, %cst_132 {dimension_numbers = #tpu.dot_dimension_numbers<[1], [0], [0], [1], [0, 0, 1, 1], [], []>} : vector<512x4xbf16>, vector<4x8xbf16>, vector<512x8xf32> -> vector<512x8xf32>
    %c0_133 = arith.constant 0 : index
    %c0_134 = arith.constant 0 : index
    %268 = vector.load %arg11[%c0_133, %c0_134] : memref<1x8xf32, #tpu.memory_space<vmem>>, vector<1x8xf32>
    %269 = vector.broadcast %268 : vector<1x8xf32> to vector<512x8xf32>
    %270 = arith.addf %267, %269 : vector<512x8xf32>
    %271 = arith.addf %264, %270 : vector<512x8xf32>
    %272 = vector.shape_cast %271 : vector<512x8xf32> to vector<2x8x2x16x8xf32>
    %273 = vector.extract_strided_slice %272 {offsets = [0, 0, 0, 0, 0], sizes = [2, 8, 1, 16, 8], strides = [1, 1, 1, 1, 1]} : vector<2x8x2x16x8xf32> to vector<2x8x1x16x8xf32>
    %274 = vector.shape_cast %273 : vector<2x8x1x16x8xf32> to vector<2x8x16x8xf32>
    %275 = vector.extract_strided_slice %272 {offsets = [0, 0, 1, 0, 0], sizes = [2, 8, 1, 16, 8], strides = [1, 1, 1, 1, 1]} : vector<2x8x2x16x8xf32> to vector<2x8x1x16x8xf32>
    %276 = vector.shape_cast %275 : vector<2x8x1x16x8xf32> to vector<2x8x16x8xf32>
    %277 = arith.maximumf %274, %276 : vector<2x8x16x8xf32>
    %c0_135 = arith.constant 0 : index
    %c0_136 = arith.constant 0 : index
    %c0_137 = arith.constant 0 : index
    %c0_138 = arith.constant 0 : index
    %278 = vector.load %arg13[%c0_135, %c0_136, %c0_137, %c0_138] : memref<2x8x16x8xf32, #tpu.memory_space<vmem>>, vector<2x8x16x8xf32>
    tpu.vector_store %arg13[%c0_135, %c0_136, %c0_137, %c0_138], %277 {strides = array<i32>} : memref<2x8x16x8xf32, #tpu.memory_space<vmem>>, vector<2x8x16x8xf32>,
    %c0_139 = arith.constant 0 : index
    %c0_140 = arith.constant 0 : index
    %c0_141 = arith.constant 0 : index
    %c0_142 = arith.constant 0 : index
    %279 = tpu.strided_load %arg13[%c0_139, %c0_140, %c0_141, %c0_142] {strides = array<i32: 1, 1, 2, 1>} : memref<2x8x16x8xf32, #tpu.memory_space<vmem>>, vector<2x8x8x8xf32>
    %c0_143 = arith.constant 0 : index
    %c0_144 = arith.constant 0 : index
    %c1_145 = arith.constant 1 : index
    %c0_146 = arith.constant 0 : index
    %280 = tpu.strided_load %arg13[%c0_143, %c0_144, %c1_145, %c0_146] {strides = array<i32: 1, 1, 2, 1>} : memref<2x8x16x8xf32, #tpu.memory_space<vmem>>, vector<2x8x8x8xf32>
    %281 = arith.maximumf %279, %280 : vector<2x8x8x8xf32>
    %c0_147 = arith.constant 0 : index
    %c0_148 = arith.constant 0 : index
    %c0_149 = arith.constant 0 : index
    %c0_150 = arith.constant 0 : index
    %282 = vector.load %arg12[%c0_147, %c0_148, %c0_149, %c0_150] : memref<2x8x8x8xf32, #tpu.memory_space<vmem>>, vector<2x8x8x8xf32>
    tpu.vector_store %arg12[%c0_147, %c0_148, %c0_149, %c0_150], %281 {strides = array<i32>} : memref<2x8x8x8xf32, #tpu.memory_space<vmem>>, vector<2x8x8x8xf32>,
    return
  }
}

</mosaic_0001>

<bundles_post_ra>
// kernel: tpu_custom_call.1
= control target key start
LH: loop header
LB: loop body
LE: loop exit
PB: predicated region body
PF: predicated region fallthrough
CT: control target
= control target key end

     0   :  { %v20075_v2 = vmov 0.0|0.0   ;;  %vm13247_vm0 = vmmov 0   ;;  %v13248_v4 = vmov 0.0   ;;  %s20062_s0 = inlined_call_operand.vmem [shape: f32[2,16,16,4], index: 0, kind: input, shape index: {}]   ;;  %s20063_s1 = inlined_call_operand.vmem [shape: f32[2,16], index: 1, kind: input, shape index: {}]   ;;  %s20064_s2 = inlined_call_operand.vmem [shape: f32[16,4], index: 2, kind: input, shape index: {}]   ;;  %s20065_s3 = inlined_call_operand.vmem [shape: f32[1,4], index: 3, kind: input, shape index: {}]   ;;  %s20066_s4 = inlined_call_operand.vmem [shape: bf16[9,4,8], index: 4, kind: input, shape index: {}]   ;;  %s20067_s5 = inlined_call_operand.vmem [shape: f32[1,8], index: 5, kind: input, shape index: {}]   ;;  %s20068_s6 = inlined_call_operand.vmem [shape: f32[1,8], index: 6, kind: input, shape index: {}]   ;;  %s20069_s7 = inlined_call_operand.vmem [shape: bf16[9,8,8], index: 7, kind: input, shape index: {}]   ;;  %s20070_s8 = inlined_call_operand.vmem [shape: f32[1,8], index: 8, kind: input, shape index: {}]   ;;  %s20071_s9 = inlined_call_operand.vmem [shape: f32[1,8], index: 9, kind: input, shape index: {}]   ;;  %s20072_s10 = inlined_call_operand.vmem [shape: bf16[4,8], index: 10, kind: input, shape index: {}]   ;;  %s20073_s11 = inlined_call_operand.vmem [shape: f32[1,8], index: 11, kind: input, shape index: {}]   ;;  %s20074_s12 = inlined_call_operand.hbm [shape: f32[2,8,8,8], index: 12, kind: output, shape index: {}]  }
   0x1   :  { %v51_v0 = vld [vmem:[%s20064_s2] sm:$0xff]  ;;  %v52_v1 = vld [vmem:[%s20064_s2 + $0x8] sm:$0xff]  ;;  %12162 = vmatprep.subr.bf16.mxu0 %v20075_v2  ;;  %10905 = vmatprep.mubr.msk.f32.mxu0 %vm13247_vm0, %v13248_v4 }
   0x2   :  { %v12163_v3 = vpack.c.bf16 %v52_v1, %v51_v0 }
   0x3   :  { %17 = vsyncpa [#allocation4], 0  ;;  %v50_v5 = vld [vmem:[%s20063_s1] sm:$0x3]  ;;  %vm60_vm1 = vcmask 130048   ;;  %vm640_vm2 = vcmask 1041408   ;;  %v43_v9 = vlaneseq }
   0x4   :  { %12164 = vmatpush3.bf16.msra.mxu0 %v12163_v3  ;;  %v9670_v6 = vld [vmem:[%s20066_s4 + $0x2] sm:$0x3]  ;;  %v513_v8 = vld [vmem:[%s20066_s4] sm:$0x3]  ;;  %v13249_v10 = vmov 1966171168  }
   0x5   :  { %13191 = vmatprep.subr.msk.bf16.mxu0 %vm640_vm2, %v9670_v6  ;;  %13192 = vmatprep.subr.msk.bf16.mxu1 %vm640_vm2, %v9670_v6  ;;  %v642_v7 = vsel %vm640_vm2, %v9670_v6, 0  ;;  %v200_v11 = vunpack.c.l.s4 %v13249_v10  ;;  %v13339_v12 = vshrl.u32 %v43_v9, 7  ;;  %v9668_v14 = vld [vmem:[%s20065_s3] ss:$0 sm:$0xff]  ;;  %v135_v24 = vld [vmem:[%s20062_s0 + $0x8] sm:$0xff]  ;;  %v160_v25 = vld [vmem:[%s20062_s0 + $0xd0] sm:$0xff] }
   0x6   :  { %12166 = vmatpush3.bf16.msra.mxu1 %v642_v7  ;;  %v134_v23 = vld [vmem:[%s20062_s0] sm:$0xff]  ;;  %v161_v27 = vld [vmem:[%s20062_s0 + $0xd8] sm:$0xff]  ;;  %v136_v28 = vld [vmem:[%s20062_s0 + $0x10] sm:$0xff]  ;;  %vm546_vm3 = vcmask 31744   ;;  %v1024_v50 = vsel %vm640_vm2, %v513_v8, 0  ;;  %vm4172_vm8 = vcmask 64512  }
   0x7   :  { %10906 = vmatmul.mubr.msk.f32.vlgmr.msra.gmra.mrb[0].mxu0 %vm60_vm1, %v50_v5  ;;  %13193 = vmatprep.subr.msk.bf16.mxu1 %vm640_vm2, %v513_v8  ;;  %20472 = vst [vmem:[#allocation6_spill] sm:$0xff] %v13339_v12  ;;  %v201_v13 = vunpack.c.0.s8 %v200_v11  ;;  %v13346_v20 = vsub.s32 0, %v13339_v12  ;;  %v137_v29 = vld [vmem:[%s20062_s0 + $0x18] sm:$0xff]  ;;  %v162_v30 = vld [vmem:[%s20062_s0 + $0xe0] sm:$0xff]  ;;  %v163_v38 = vld [vmem:[%s20062_s0 + $0xe8] sm:$0xff]  ;;  %vm357_vm4 = vcmp.lt.s32.totalorder %v13339_v12, 1 }
   0x8   :  { %10910 = vmatprep.mubr.bf16.mxu0 %v20075_v2  ;;  %10909 = vmatpush3.bf16.msra.mxu0 %v642_v7  ;;  %v138_v43 = vld [vmem:[%s20062_s0 + $0x20] sm:$0xff]  ;;  %v139_v44 = vld [vmem:[%s20062_s0 + $0x28] sm:$0xff]  ;;  %v140_v46 = vld [vmem:[%s20062_s0 + $0x30] sm:$0xff]  ;;  %vm46_vm5 = vcmp.ge.s32.totalorder %v13339_v12, 1  ;;  %vm1377_vm6 = vcmp.lt.s32.totalorder %v13339_v12, 7  ;;  %vm5056_vm9 = vcmask 1043456  }
   0x9   :  { %v204_v15 = vsub.s32 %v201_v13, %v13339_v12  ;;  %20473 = vst [vmem:[#allocation7_spill] sm:$0xff] %v13346_v20  ;;  %v141_v47 = vld [vmem:[%s20062_s0 + $0x38] sm:$0xff]  ;;  %v166_v53 = vld [vmem:[%s20062_s0 + $0x100] sm:$0xff]  ;;  %v167_v54 = vld [vmem:[%s20062_s0 + $0x108] sm:$0xff] }
   0xa   :  { %v168_v57 = vld [vmem:[%s20062_s0 + $0x110] sm:$0xff]  ;;  %v169_v58 = vld [vmem:[%s20062_s0 + $0x118] sm:$0xff]  ;;  %v13464_v59 = vld [vmem:[%s20066_s4 + $0x4] sm:$0x3] }
   0xb   :  { %v142_v60 = vld [vmem:[%s20062_s0 + $0x40] sm:$0xff]  ;;  %v143_v61 = vld [vmem:[%s20062_s0 + $0x48] sm:$0xff]  ;;  %v144_v4 = vld [vmem:[%s20062_s0 + $0x50] sm:$0xff] }
   0xc   :  { %v145_v5 = vld [vmem:[%s20062_s0 + $0x58] sm:$0xff]  ;;  %v170_v9 = vld [vmem:[%s20062_s0 + $0x120] sm:$0xff]  ;;  %v171_v10 = vld [vmem:[%s20062_s0 + $0x128] sm:$0xff] }
   0xd   :  { %v146_v11 = vld [vmem:[%s20062_s0 + $0x60] sm:$0xff]  ;;  %v147_v13 = vld [vmem:[%s20062_s0 + $0x68] sm:$0xff] }
  0xda   :  { %v130_v16 = vpop.f32.mrb[0].mxu0 }
  0xdb   :  { %v131_v17 = vadd.f32 %v9668_v14, %v130_v16  ;;  %v10907_v18 = vpop.f32.mrb[1].mxu0  ;;  %v172_v14 = vld [vmem:[%s20062_s0 + $0x130] sm:$0xff] }
  0xdc   :  { %v148_v16 = vld [vmem:[%s20062_s0 + $0x70] sm:$0xff] }
  0xdd   :  { %v205_v19 = vrot.slane %v131_v17, %v204_v15 }
  0xdf   :  { %v213_v21 = vrot.slane %v205_v19, %v204_v15  ;;  %v206_v22 = vcombine.high %v205_v19, %v205_v19  ;;  %v149_v19 = vld [vmem:[%s20062_s0 + $0x78] sm:$0xff] }
  0xe1   :  { %v13358_v26 = vrot.slane %v213_v21, %v13346_v20  ;;  %v220_v34 = vrot.slane %v206_v22, %v204_v15  ;;  %v173_v15 = vld [vmem:[%s20062_s0 + $0x138] sm:$0xff]  ;;  %v174_v21 = vld [vmem:[%s20062_s0 + $0x140] sm:$0xff] }
  0xe2   :  { %v150_v22 = vld [vmem:[%s20062_s0 + $0x80] sm:$0xff] }
  0xe3   :  { %v13373_v31 = vadd.f32 %v13358_v26, %v134_v23  ;;  %v13376_v32 = vadd.f32 %v13358_v26, %v135_v24  ;;  %v13379_v33 = vadd.f32 %v13358_v26, %v160_v25  ;;  %v13382_v35 = vadd.f32 %v13358_v26, %v161_v27 }
  0xe4   :  { %v13385_v36 = vadd.f32 %v13358_v26, %v136_v28  ;;  %v13388_v37 = vadd.f32 %v13358_v26, %v137_v29  ;;  %v13398_v40 = vadd.f32 %v13358_v26, %v162_v30  ;;  %v13417_v45 = vadd.f32 %v13358_v26, %v163_v38  ;;  %v175_v28 = vld [vmem:[%s20062_s0 + $0x148] sm:$0xff]  ;;  %v176_v29 = vld [vmem:[%s20062_s0 + $0x150] sm:$0xff]  ;;  %v177_v30 = vld [vmem:[%s20062_s0 + $0x158] sm:$0xff] }
  0xe5   :  { %v13395_v39 = vpack.c.bf16 %v13376_v32, %v13373_v31  ;;  %v13402_v41 = vpack.c.bf16 %v13382_v35, %v13379_v33  ;;  %v13426_v48 = vrot.slane %v220_v34, %v13346_v20  ;;  %v13438_v51 = vadd.f32 %v13358_v26, %v138_v43 }
  0xe6   :  { %v13406_v42 = vpack.c.bf16 %v13388_v37, %v13385_v36  ;;  %v13434_v49 = vpack.c.bf16 %v13417_v45, %v13398_v40  ;;  %v13441_v52 = vadd.f32 %v13358_v26, %v139_v44  ;;  %v13450_v55 = vadd.f32 %v13358_v26, %v140_v46  ;;  %v151_v46 = vld [vmem:[%s20062_s0 + $0x88] sm:$0xff] }
  0xe7   :  { %20474 = vst [vmem:[#allocation8_spill] sm:$0xff] %v13395_v39  ;;  %20475 = vst [vmem:[#allocation9_spill] sm:$0xff] %v13402_v41  ;;  %10911 = vmatmul.mubr.msk.bf16.vlgmr.msra.gmra.mrb[4].mxu0 %vm546_vm3, %v13395_v39  ;;  %10938 = vmatprep.mubr.msk.bf16.mxu1 %vm546_vm3, %v13402_v41  ;;  %v13453_v56 = vadd.f32 %v13358_v26, %v141_v47  ;;  %v13476_v62 = vadd.f32 %v13426_v48, %v166_v53  ;;  %v152_v47 = vld [vmem:[%s20062_s0 + $0x90] sm:$0xff]  ;;  %v157_v41 = vld [vmem:[%s20062_s0 + $0xb8] sm:$0xff] }
  0xe8   :  { %20476 = vst [vmem:[#allocation10_spill] sm:$0xff] %v13406_v42  ;;  %10914 = vmatprep.mubr.msk.bf16.mxu0 %vm546_vm3, %v13406_v42  ;;  %20477 = vst [vmem:[#allocation11_spill] sm:$0xff] %v13434_v49  ;;  %10939 = vmatmul.mubr.msk.bf16.vlgmr.msra.gmra.mrb[0].mxu1 %vm546_vm3, %v13434_v49  ;;  %v13479_v63 = vadd.f32 %v13426_v48, %v167_v54  ;;  %v13483_v0 = vpack.c.bf16 %v13441_v52, %v13438_v51  ;;  %v156_v49 = vld [vmem:[%s20062_s0 + $0xb0] sm:$0xff]  ;;  %v158_v42 = vld [vmem:[%s20062_s0 + $0xc0] sm:$0xff] }
  0xe9   :  { %10975 = vmatpush3.bf16.msra.mxu1 %v1024_v50  ;;  %10942 = vmatprep.mubr.bf16.mxu1 %v20075_v2  ;;  %v13486_v1 = vadd.f32 %v13426_v48, %v168_v57  ;;  %v13489_v3 = vadd.f32 %v13426_v48, %v169_v58  ;;  %v13501_v6 = vpack.c.bf16 %v13453_v56, %v13450_v55  ;;  %v153_v50 = vld [vmem:[%s20062_s0 + $0x98] sm:$0xff]  ;;  %v298_v2 = vrot.slane %v13388_v37, 7 }
  0xea   :  { %20478 = vst [vmem:[#allocation12_spill] sm:$0xff] %v13479_v63  ;;  %20479 = vst [vmem:[#allocation13_spill] sm:$0xff] %v13483_v0  ;;  %13194 = vmatprep.subr.msk.bf16.mxu1 %vm640_vm2, %v13464_v59  ;;  %v13504_v7 = vadd.f32 %v13358_v26, %v142_v60  ;;  %v13507_v8 = vadd.f32 %v13358_v26, %v143_v61  ;;  %v13538_v18 = vpack.c.bf16 %v13479_v63, %v13476_v62  ;;  %v178_v60 = vld [vmem:[%s20062_s0 + $0x160] sm:$0xff]  ;;  %v179_v61 = vld [vmem:[%s20062_s0 + $0x168] sm:$0xff] }
  0xeb   :  { %20480 = vst [vmem:[#allocation14_spill] sm:$0xff] %v13486_v1  ;;  %20481 = vst [vmem:[#allocation15_spill] sm:$0xff] %v13489_v3  ;;  %v13551_v23 = vpack.c.bf16 %v13489_v3, %v13486_v1  ;;  %v13554_v24 = vadd.f32 %v13358_v26, %v144_v4  ;;  %v13557_v25 = vadd.f32 %v13358_v26, %v145_v5 }
  0xec   :  { %20482 = vst [vmem:[#allocation16_spill] sm:$0xff] %v13501_v6  ;;  %20483 = vst [vmem:[#allocation17_spill] sm:$0xff] %v13538_v18  ;;  %v13560_v27 = vadd.f32 %v13426_v48, %v170_v9  ;;  %v13574_v34 = vpack.c.bf16 %v13507_v8, %v13504_v7  ;;  %v13577_v38 = vadd.f32 %v13426_v48, %v171_v10 }
  0xed   :  { %20484 = vst [vmem:[#allocation18_spill] sm:$0xff] %v13551_v23  ;;  %v13580_v43 = vadd.f32 %v13426_v48, %v172_v14  ;;  %v13583_v44 = vadd.f32 %v13426_v48, %v173_v15  ;;  %v13597_v53 = vadd.f32 %v13358_v26, %v146_v11  ;;  %v13600_v54 = vadd.f32 %v13358_v26, %v147_v13 }
  0xee   :  { %20485 = vst [vmem:[#allocation19_spill] sm:$0xff] %v13560_v27  ;;  %20486 = vst [vmem:[#allocation20_spill] sm:$0xff] %v13574_v34  ;;  %v13603_v57 = vadd.f32 %v13358_v26, %v148_v16  ;;  %v13606_v58 = vadd.f32 %v13358_v26, %v149_v19  ;;  %v13617_v4 = vadd.f32 %v13426_v48, %v174_v21  ;;  %v296_v16 = vrot.slane %v13376_v32, 7 }
  0xef   :  { %10915 = vmatmul.mubr.msk.bf16.gmra.mrb[8].mxu0 %vm546_vm3, %v13483_v0  ;;  %20487 = vst [vmem:[#allocation21_spill] sm:$0xff] %v13577_v38  ;;  %20488 = vst [vmem:[#allocation22_spill] sm:$0xff] %v13580_v43  ;;  %v13620_v5 = vadd.f32 %v13426_v48, %v175_v28  ;;  %v13623_v9 = vadd.f32 %v13426_v48, %v176_v29  ;;  %v13626_v10 = vadd.f32 %v13426_v48, %v177_v30  ;;  %v180_v28 = vld [vmem:[%s20062_s0 + $0x170] sm:$0xff]  ;;  %v181_v29 = vld [vmem:[%s20062_s0 + $0x178] sm:$0xff] }
  0xf0   :  { %10918 = vmatprep.mubr.msk.bf16.mxu0 %vm546_vm3, %v13501_v6  ;;  %20489 = vst [vmem:[#allocation23_spill] sm:$0xff] %v13583_v44  ;;  %10943 = vmatmul.mubr.msk.bf16.gmra.mrb[4].mxu1 %vm546_vm3, %v13538_v18  ;;  %20490 = vst [vmem:[#allocation24_spill] sm:$0xff] %v13617_v4  ;;  %v13629_v11 = vadd.f32 %v13358_v26, %v150_v22  ;;  %v13632_v13 = vadd.f32 %v13358_v26, %v151_v46 }
  0xf1   :  { %10946 = vmatprep.mubr.msk.bf16.mxu1 %vm546_vm3, %v13551_v23  ;;  %20491 = vst [vmem:[#allocation25_spill] sm:$0xff] %v13620_v5  ;;  %20492 = vst [vmem:[#allocation26_spill] sm:$0xff] %v13623_v9  ;;  %v13635_v14 = vadd.f32 %v13358_v26, %v152_v47  ;;  %v13638_v15 = vadd.f32 %v13358_v26, %v153_v50  ;;  %v13643_v19 = vpack.c.bf16 %v13557_v25, %v13554_v24  ;;  %v154_v47 = vld [vmem:[%s20062_s0 + $0xa0] sm:$0xff]  ;;  %v155_v50 = vld [vmem:[%s20062_s0 + $0xa8] sm:$0xff] }
  0xf2   :  { %20493 = vst [vmem:[#allocation27_spill] sm:$0xff] %v13626_v10  ;;  %v13646_v21 = vadd.f32 %v13426_v48, %v178_v60  ;;  %v13649_v22 = vadd.f32 %v13426_v48, %v179_v61  ;;  %v13661_v30 = vpack.c.bf16 %v13577_v38, %v13560_v27  ;;  %v13665_v46 = vpack.c.bf16 %v13583_v44, %v13580_v43  ;;  %v197_v60 = vld [vmem:[%s20062_s0 + $0x1f8] sm:$0xff] }
  0xf3   :  { %20494 = vst [vmem:[#allocation28_spill] sm:$0xff] %v13643_v19  ;;  %v297_v61 = vrot.slane %v13385_v36, 7  ;;  %v13682_v17 = vpack.c.bf16 %v13600_v54, %v13597_v53  ;;  %v13686_v20 = vpack.c.bf16 %v13606_v58, %v13603_v57  ;;  %v13690_v23 = vpack.c.bf16 %v13620_v5, %v13617_v4 }
  0xf4   :  { %20495 = vst [vmem:[#allocation29_spill] sm:$0xff] %v13646_v21  ;;  %20496 = vst [vmem:[#allocation30_spill] sm:$0xff] %v13649_v22  ;;  %v13694_v18 = vpack.c.bf16 %v13626_v10, %v13623_v9  ;;  %v13711_v6 = vadd.f32 %v13426_v48, %v180_v28  ;;  %v13714_v0 = vadd.f32 %v13426_v48, %v181_v29  ;;  %v301_v4 = vrot.slane %v13450_v55, 7 }
  0xf5   :  { %20497 = vst [vmem:[#allocation31_spill] sm:$0xff] %v13661_v30  ;;  %20498 = vst [vmem:[#allocation32_spill] sm:$0xff] %v13665_v46  ;;  %v13721_v39 = vpack.c.bf16 %v13649_v22, %v13646_v21  ;;  %v13724_v10 = vadd.f32 %v13358_v26, %v154_v47  ;;  %v13727_v9 = vadd.f32 %v13358_v26, %v155_v50  ;;  %v20509_v22 = vrot.slane %v13373_v31, 7 }
  0xf6   :  { %20499 = vst [vmem:[#allocation33_spill] sm:$0xff] %v13682_v17  ;;  %20500 = vst [vmem:[#allocation34_spill] sm:$0xff] %v13686_v20  ;;  %v13730_v28 = vadd.f32 %v13426_v48, %v197_v60  ;;  %v13735_v29 = vadd.f32 %v13358_v26, %v156_v49  ;;  %v13738_v5 = vadd.f32 %v13358_v26, %v157_v41  ;;  %v302_v44 = vrot.slane %v13453_v56, 7 }
  0xf7   :  { %10919 = vmatmul.mubr.msk.bf16.gmra.mrb[12].mxu0 %vm546_vm3, %v13574_v34  ;;  %20501 = vst [vmem:[#allocation35_spill] sm:$0xff] %v13690_v23  ;;  %20502 = vst [vmem:[#allocation36_spill] sm:$0xff] %v13694_v18  ;;  %v13708_v34 = vpack.c.bf16 %v13638_v15, %v13635_v14  ;;  %v416_v47 = vsel %vm357_vm4, %v20509_v22, %v296_v16  ;;  %v414_v50 = vsel %vm357_vm4, %v297_v61, %v298_v2 }
  0xf8   :  { %10922 = vmatprep.mubr.msk.bf16.mxu0 %vm546_vm3, %v13643_v19  ;;  %v13704_v19 = vpack.c.bf16 %v13632_v13, %v13629_v11  ;;  %20505 = vst [vmem:[#allocation39_spill] sm:$0xff] %v13711_v6  ;;  %20506 = vst [vmem:[#allocation40_spill] sm:$0xff] %v13714_v0  ;;  %10947 = vmatmul.mubr.msk.bf16.gmra.mrb[8].mxu1 %vm546_vm3, %v13661_v30  ;;  %v13749_v60 = vadd.f32 %v13358_v26, %v158_v42  ;;  %v20123_v49 = vrot.slane %v13730_v28, 7 }
  0xf9   :  { %20504 = vst [vmem:[#allocation38_spill] sm:$0xff] %v13708_v34  ;;  %20507 = vst [vmem:[#allocation41_spill] sm:$0xff] %v13721_v39  ;;  %10950 = vmatprep.mubr.msk.bf16.mxu1 %vm546_vm3, %v13665_v46  ;;  %v415_v41 = vsel %vm357_vm4, %v296_v16, %v297_v61  ;;  %v299_v30 = vrot.slane %v13438_v51, 7  ;;  %v300_v22 = vrot.slane %v13441_v52, 7  ;;  %v20510_v46 = vrot.slane %v13373_v31, 7 }
  0xfa   :  { %20503 = vst [vmem:[#allocation37_spill] sm:$0xff] %v13704_v19  ;;  %20508 = vst [vmem:[#allocation42_spill] sm:$0xff] %v13730_v28  ;;  %v424_v21 = vsel %vm46_vm5, %v415_v41, 0.0  ;;  %v303_v61 = vrot.slane %v13504_v7, 7 }
  0xfb   :  { %v417_v42 = vsel %vm357_vm4, %v20123_v49, %v20510_v46  ;;  %v13766_v43 = vpack.c.bf16 %v414_v50, %v424_v21  ;;  %v413_v16 = vsel %vm357_vm4, %v298_v2, %v299_v30  ;;  %v412_v38 = vsel %vm357_vm4, %v299_v30, %v300_v22 }
  0xfc   :  { %v422_v41 = vsel %vm46_vm5, %v417_v42, 0.0  ;;  %v426_v27 = vsel %vm46_vm5, %v413_v16, 0.0  ;;  %v410_v21 = vsel %vm357_vm4, %v301_v4, %v302_v44  ;;  %v411_v50 = vsel %vm357_vm4, %v300_v22, %v301_v4 }
  0xfd   :  { %20511 = vst [vmem:[#allocation43_spill] sm:$0xff] %v13766_v43  ;;  %v13783_v2 = vpack.c.bf16 %v416_v47, %v422_v41  ;;  %v13785_v46 = vpack.c.bf16 %v412_v38, %v426_v27  ;;  %v304_v42 = vrot.slane %v13507_v8, 7  ;;  %v428_v30 = vsel %vm46_vm5, %v411_v50, 0.0 }
  0xfe   :  { %v409_v16 = vsel %vm357_vm4, %v302_v44, %v303_v61  ;;  %v305_v49 = vrot.slane %v13554_v24, 7  ;;  %v307_v4 = vrot.slane %v13597_v53, 7  ;;  %v308_v41 = vrot.slane %v13600_v54, 7 }
  0xff   :  { %10923 = vmatmul.mubr.msk.bf16.gmra.mrb[16].mxu0 %vm546_vm3, %v13682_v17  ;;  %20512 = vst [vmem:[#allocation44_spill] sm:$0xff] %v13783_v2  ;;  %20513 = vst [vmem:[#allocation45_spill] sm:$0xff] %v13785_v46  ;;  %v306_v17 = vrot.slane %v13557_v25, 7  ;;  %v408_v27 = vsel %vm357_vm4, %v303_v61, %v304_v42  ;;  %v430_v38 = vsel %vm46_vm5, %v409_v16, 0.0  ;;  %v309_v50 = vrot.slane %v13603_v57, 7  ;;  %v159_v16 = vld [vmem:[%s20062_s0 + $0xc8] sm:$0xff] }
 0x100   :  { %10926 = vmatprep.mubr.msk.bf16.mxu0 %vm546_vm3, %v13686_v20  ;;  %v13796_v20 = vpack.c.bf16 %v410_v21, %v428_v30  ;;  %10951 = vmatmul.mubr.msk.bf16.gmra.mrb[12].mxu1 %vm546_vm3, %v13690_v23  ;;  %v13805_v47 = vpack.c.bf16 %v408_v27, %v430_v38  ;;  %v407_v22 = vsel %vm357_vm4, %v304_v42, %v305_v49  ;;  %v310_v30 = vrot.slane %v13606_v58, 7 }
 0x101   :  { %v406_v44 = vsel %vm357_vm4, %v305_v49, %v306_v17  ;;  %10954 = vmatprep.mubr.msk.bf16.mxu1 %vm546_vm3, %v13694_v18  ;;  %v432_v61 = vsel %vm46_vm5, %v407_v22, 0.0  ;;  %v405_v21 = vsel %vm357_vm4, %v306_v17, %v307_v4  ;;  %v404_v42 = vsel %vm357_vm4, %v307_v4, %v308_v41 }
 0x102   :  { %20514 = vst [vmem:[#allocation46_spill] sm:$0xff] %v13796_v20  ;;  %20515 = vst [vmem:[#allocation47_spill] sm:$0xff] %v13805_v47  ;;  %v13823_v49 = vpack.c.bf16 %v406_v44, %v432_v61  ;;  %v434_v27 = vsel %vm46_vm5, %v405_v21, 0.0  ;;  %v311_v38 = vrot.slane %v13629_v11, 7  ;;  %v402_v17 = vsel %vm357_vm4, %v309_v50, %v310_v30 }
 0x103   :  { %v13830_v22 = vpack.c.bf16 %v404_v42, %v434_v27  ;;  %v403_v18 = vsel %vm357_vm4, %v308_v41, %v309_v50  ;;  %v312_v23 = vrot.slane %v13632_v13, 7  ;;  %v313_v61 = vrot.slane %v13635_v14, 7  ;;  %v182_v41 = vld [vmem:[%s20062_s0 + $0x180] sm:$0xff]  ;;  %v183_v27 = vld [vmem:[%s20062_s0 + $0x188] sm:$0xff] }
 0x104   :  { %20516 = vst [vmem:[#allocation48_spill] sm:$0xff] %v13823_v49  ;;  %v436_v4 = vsel %vm46_vm5, %v403_v18, 0.0  ;;  %v401_v44 = vsel %vm357_vm4, %v310_v30, %v311_v38  ;;  %v13851_v50 = vadd.f32 %v13358_v26, %v159_v16 }
 0x105   :  { %20517 = vst [vmem:[#allocation49_spill] sm:$0xff] %v13830_v22  ;;  %v13853_v42 = vpack.c.bf16 %v402_v17, %v436_v4  ;;  %v400_v18 = vsel %vm357_vm4, %v311_v38, %v312_v23  ;;  %v438_v30 = vsel %vm46_vm5, %v401_v44, 0.0  ;;  %v399_v17 = vsel %vm357_vm4, %v312_v23, %v313_v61  ;;  %v184_v44 = vld [vmem:[%s20062_s0 + $0x190] sm:$0xff]  ;;  %v185_v4 = vld [vmem:[%s20062_s0 + $0x198] sm:$0xff] }
 0x106   :  { %v13862_v21 = vpack.c.bf16 %v400_v18, %v438_v30  ;;  %v13873_v38 = vpack.c.bf16 %v13714_v0, %v13711_v6  ;;  %v440_v18 = vsel %vm46_vm5, %v399_v17, 0.0  ;;  %v317_v30 = vrot.slane %v13735_v29, 7 }
 0x107   :  { %10927 = vmatmul.mubr.msk.bf16.gmra.mrb[20].mxu0 %vm546_vm3, %v13704_v19  ;;  %20518 = vst [vmem:[#allocation50_spill] sm:$0xff] %v13853_v42  ;;  %v13886_v23 = vpack.c.bf16 %v13727_v9, %v13724_v10  ;;  %v319_v17 = vrot.slane %v13749_v60, 7  ;;  %v20150_v3 = vrot.slane %v13851_v50, 7  ;;  %v13921_v1 = vadd.f32 %v13426_v48, %v185_v4 }
 0x108   :  { %10930 = vmatprep.mubr.msk.bf16.mxu0 %vm546_vm3, %v13708_v34  ;;  %20519 = vst [vmem:[#allocation51_spill] sm:$0xff] %v13862_v21  ;;  %v20520_v34 = vrot.slane %v13638_v15, 7  ;;  %20521 = vst [vmem:[#allocation52_spill] sm:$0xff] %v13873_v38  ;;  %10955 = vmatmul.mubr.msk.bf16.gmra.mrb[16].mxu1 %vm546_vm3, %v13721_v39  ;;  %v13900_v39 = vadd.f32 %v13426_v48, %v183_v27 }
 0x109   :  { %20522 = vst [vmem:[#allocation53_spill] sm:$0xff] %v13886_v23  ;;  %10958 = vmatprep.mubr.msk.bf16.mxu1 %vm546_vm3, %v13873_v38  ;;  %20527 = vst [vmem:[#allocation57_spill] sm:$0xff] %v13921_v1 }
 0x10a   :  { %v398_v16 = vsel %vm357_vm4, %v313_v61, %v20520_v34  ;;  %v318_v34 = vrot.slane %v13738_v5, 7  ;;  %v13889_v61 = vadd.f32 %v13426_v48, %v182_v41  ;;  %v20524_v41 = vrot.slane %v13727_v9, 7 }
 0x10b   :  { %v13894_v19 = vpack.c.bf16 %v398_v16, %v440_v18  ;;  %v13911_v16 = vpack.c.bf16 %v13738_v5, %v13735_v29  ;;  %v13914_v18 = vadd.f32 %v13426_v48, %v184_v44 }
 0x10c   :  { %v394_v0 = vsel %vm357_vm4, %v317_v30, %v318_v34  ;;  %v395_v6 = vsel %vm357_vm4, %v20524_v41, %v317_v30  ;;  %v393_v38 = vsel %vm357_vm4, %v318_v34, %v319_v17  ;;  %v392_v30 = vsel %vm357_vm4, %v319_v17, %v20150_v3  ;;  %v187_v34 = vld [vmem:[%s20062_s0 + $0x1a8] sm:$0xff]  ;;  %v188_v17 = vld [vmem:[%s20062_s0 + $0x1b0] sm:$0xff]  ;;  %v189_v41 = vld [vmem:[%s20062_s0 + $0x1b8] sm:$0xff] }
 0x10d   :  { %20523 = vst [vmem:[#allocation54_spill] sm:$0xff] %v13894_v19  ;;  %20525 = vst [vmem:[#allocation55_spill] sm:$0xff] %v13911_v16  ;;  %v444_v27 = vsel %vm46_vm5, %v395_v6, 0.0  ;;  %v446_v44 = vsel %vm46_vm5, %v393_v38, 0.0  ;;  %v13943_v4 = vpack.c.bf16 %v13921_v1, %v13914_v18  ;;  %v186_v38 = vld [vmem:[%s20062_s0 + $0x1a0] sm:$0xff]  ;;  %v13972_v3 = vadd.f32 %v13426_v48, %v188_v17  ;;  %v191_v17 = vld [vmem:[%s20062_s0 + $0x1c8] sm:$0xff] }
 0x10e   :  { %20526 = vst [vmem:[#allocation56_spill] sm:$0xff] %v13914_v18  ;;  %v13923_v63 = vpack.c.bf16 %v394_v0, %v444_v27  ;;  %v13933_v6 = vpack.c.bf16 %v392_v30, %v446_v44  ;;  %v13939_v0 = vpack.c.bf16 %v13900_v39, %v13889_v61  ;;  %v13963_v27 = vpack.c.bf16 %v13851_v50, %v13749_v60 }
 0x10f   :  { %10931 = vmatmul.mubr.msk.bf16.gmra.mrb[24].mxu0 %vm546_vm3, %v13886_v23  ;;  %20531 = vst [vmem:[#allocation61_spill] sm:$0xff] %v13943_v4  ;;  %v13966_v30 = vadd.f32 %v13426_v48, %v186_v38  ;;  %v13969_v44 = vadd.f32 %v13426_v48, %v187_v34  ;;  %20535 = vst [vmem:[#allocation65_spill] sm:$0xff] %v13972_v3  ;;  %v190_v34 = vld [vmem:[%s20062_s0 + $0x1c0] sm:$0xff]  ;;  %v1317_v1 = vrot.slane %v13385_v36, 1  ;;  %v1625_v18 = vsel %vm640_vm2, %v13464_v59, 0 }
 0x110   :  { %20528 = vst [vmem:[#allocation58_spill] sm:$0xff] %v13923_v63  ;;  %20529 = vst [vmem:[#allocation59_spill] sm:$0xff] %v13933_v6  ;;  %10934 = vmatprep.mubr.msk.bf16.mxu0 %vm546_vm3, %v13911_v16  ;;  %10959 = vmatmul.mubr.msk.bf16.gmra.mrb[20].mxu1 %vm546_vm3, %v13939_v0  ;;  %v14005_v23 = vadd.f32 %v13426_v48, %v190_v34  ;;  %v1323_v59 = vrot.slane %v13504_v7, 1  ;;  %v1326_v7 = vrot.slane %v13557_v25, 1 }
 0x111   :  { %20530 = vst [vmem:[#allocation60_spill] sm:$0xff] %v13939_v0  ;;  %10962 = vmatprep.mubr.msk.bf16.mxu1 %vm546_vm3, %v13943_v4  ;;  %20532 = vst [vmem:[#allocation62_spill] sm:$0xff] %v13963_v27  ;;  %v13975_v0 = vadd.f32 %v13426_v48, %v189_v41  ;;  %v20537_v4 = vmov 0.0|0.0   ;;  %v13982_v16 = vpack.c.bf16 %v13969_v44, %v13966_v30  ;;  %v192_v41 = vld [vmem:[%s20062_s0 + $0x1d0] sm:$0xff] }
 0x112   :  { %20533 = vst [vmem:[#allocation63_spill] sm:$0xff] %v13966_v30  ;;  %20534 = vst [vmem:[#allocation64_spill] sm:$0xff] %v13969_v44  ;;  %v14017_v44 = vadd.s32 8, %v13339_v12 }
 0x113   :  { %20536 = vst [vmem:[#allocation66_spill] sm:$0xff] %v13975_v0  ;;  %20538 = vst [vmem:[#allocation67_spill] sm:$0xff] %v13982_v16  ;;  %v13986_v38 = vpack.c.bf16 %v13975_v0, %v13972_v3  ;;  %v14008_v0 = vadd.f32 %v13426_v48, %v191_v17  ;;  %v14011_v3 = vadd.f32 %v13426_v48, %v192_v41  ;;  %v194_v17 = vld [vmem:[%s20062_s0 + $0x1e0] sm:$0xff]  ;;  %v1315_v41 = vrot.slane %v13373_v31, 1 }
 0x114   :  { %20540 = vst [vmem:[#allocation69_spill] sm:$0xff] %v14005_v23  ;;  %20544 = vst [vmem:[#allocation73_spill] sm:$0xff] %v14017_v44  ;;  %vm49_vm7 = vcmp.le.s32.totalorder %v14017_v44, 14 }
 0x115   :  { %20539 = vst [vmem:[#allocation68_spill] sm:$0xff] %v13986_v38  ;;  %20541 = vst [vmem:[#allocation70_spill] sm:$0xff] %v14008_v0  ;;  %v14021_v30 = vpack.c.bf16 %v14008_v0, %v14005_v23  ;;  %v1319_v0 = vrot.slane %v13438_v51, 1  ;;  %v1320_v23 = vrot.slane %v13441_v52, 1 }
 0x116   :  { %20542 = vst [vmem:[#allocation71_spill] sm:$0xff] %v14011_v3 }
 0x117   :  { %10935 = vmatmul.mubr.msk.bf16.gmra.mrb[28].mxu0 %vm546_vm3, %v13963_v27  ;;  %v193_v27 = vld [vmem:[%s20062_s0 + $0x1d8] sm:$0xff]  ;;  %20545 = vst [vmem:[#allocation74_spill] sm:$0xff] %v14021_v30  ;;  %v1433_v52 = vsel %vm1377_vm6, %v1319_v0, %v1320_v23 }
 0x118   :  { %11504 = vmatprep.mubr.bf16.mxu0 %v20537_v4  ;;  %10963 = vmatmul.mubr.msk.bf16.gmra.mrb[24].mxu1 %vm546_vm3, %v13982_v16  ;;  %v14014_v16 = vadd.f32 %v13426_v48, %v193_v27  ;;  %v195_v27 = vld [vmem:[%s20062_s0 + $0x1e8] sm:$0xff] }
 0x119   :  { %10966 = vmatprep.mubr.msk.bf16.mxu1 %vm546_vm3, %v13986_v38  ;;  %v1316_v38 = vrot.slane %v13376_v32, 1 }
 0x11a   :  { %20543 = vst [vmem:[#allocation72_spill] sm:$0xff] %v14014_v16  ;;  %v14025_v34 = vpack.c.bf16 %v14014_v16, %v14011_v3  ;;  %v14043_v16 = vadd.f32 %v13426_v48, %v194_v17  ;;  %v14046_v3 = vadd.f32 %v13426_v48, %v195_v27 }
 0x11b   :  { %v1436_v32 = vsel %vm1377_vm6, %v1316_v38, %v1317_v1  ;;  %v1437_v36 = vsel %vm1377_vm6, %v1315_v41, %v1316_v38 }
 0x11c   :  { %20546 = vst [vmem:[#allocation75_spill] sm:$0xff] %v14025_v34  ;;  %v14060_v17 = vpack.c.bf16 %v14046_v3, %v14043_v16 }
 0x11e   :  { %20547 = vst [vmem:[#allocation76_spill] sm:$0xff] %v14060_v17 }
 0x120   :  { %10967 = vmatmul.mubr.msk.bf16.gmra.mrb[28].mxu1 %vm546_vm3, %v14021_v30  ;;  %v1443_v30 = vsel %vm49_vm7, %v1436_v32, 0.0 }
 0x121   :  { %10970 = vmatprep.mubr.msk.bf16.mxu1 %vm546_vm3, %v14025_v34  ;;  %v1318_v34 = vrot.slane %v13388_v37, 1  ;;  %v14062_v27 = vpack.c.bf16 %v1443_v30, %v1437_v36  ;;  %v1321_v37 = vrot.slane %v13450_v55, 1  ;;  %v1322_v30 = vrot.slane %v13453_v56, 1 }
 0x123   :  { %v1434_v38 = vsel %vm1377_vm6, %v1318_v34, %v1319_v0  ;;  %v1435_v32 = vsel %vm1377_vm6, %v1317_v1, %v1318_v34  ;;  %v1432_v55 = vsel %vm1377_vm6, %v1320_v23, %v1321_v37  ;;  %v1324_v1 = vrot.slane %v13507_v8, 1 }
 0x124   :  { %v1445_v51 = vsel %vm49_vm7, %v1434_v38, 0.0  ;;  %v1325_v34 = vrot.slane %v13554_v24, 1  ;;  %v1447_v38 = vsel %vm49_vm7, %v1432_v55, 0.0  ;;  %v1430_v0 = vsel %vm1377_vm6, %v1322_v30, %v1323_v59 }
 0x125   :  { %v14081_v36 = vpack.c.bf16 %v1445_v51, %v1435_v32  ;;  %v1431_v56 = vsel %vm1377_vm6, %v1321_v37, %v1322_v30  ;;  %v14094_v32 = vpack.c.bf16 %v1447_v38, %v1433_v52  ;;  %v1449_v23 = vsel %vm49_vm7, %v1430_v0, 0.0 }
 0x126   :  { %v1428_v8 = vsel %vm1377_vm6, %v1324_v1, %v1325_v34  ;;  %v1429_v24 = vsel %vm1377_vm6, %v1323_v59, %v1324_v1  ;;  %v14102_v51 = vpack.c.bf16 %v1449_v23, %v1431_v56  ;;  %v1327_v37 = vrot.slane %v13597_v53, 1 }
 0x127   :  { %v1451_v55 = vsel %vm49_vm7, %v1428_v8, 0.0  ;;  %v1427_v25 = vsel %vm1377_vm6, %v1325_v34, %v1326_v7  ;;  %v1328_v30 = vrot.slane %v13600_v54, 1  ;;  %v1329_v38 = vrot.slane %v13603_v57, 1  ;;  %v14122_v34 = vld [vmem:[%s20066_s4 + $0x6] sm:$0x3] }
 0x128   :  { %10971 = vmatmul.mubr.msk.bf16.gmra.mrb[32].mxu1 %vm546_vm3, %v14060_v17  ;;  %v14109_v52 = vpack.c.bf16 %v1451_v55, %v1429_v24  ;;  %v1330_v0 = vrot.slane %v13606_v58, 1  ;;  %v1426_v59 = vsel %vm1377_vm6, %v1326_v7, %v1327_v37  ;;  %v1331_v1 = vrot.slane %v13629_v11, 1 }
 0x129   :  { %10976 = vmatprep.mubr.bf16.mxu1 %v20537_v4  ;;  %v1332_v56 = vrot.slane %v13632_v13, 1  ;;  %v1333_v53 = vrot.slane %v13635_v14, 1  ;;  %v1453_v54 = vsel %vm49_vm7, %v1426_v59, 0.0  ;;  %v1424_v57 = vsel %vm1377_vm6, %v1328_v30, %v1329_v38 }
 0x12a   :  { %v1425_v58 = vsel %vm1377_vm6, %v1327_v37, %v1328_v30  ;;  %v1423_v11 = vsel %vm1377_vm6, %v1329_v38, %v1330_v0  ;;  %v14134_v13 = vpack.c.bf16 %v1453_v54, %v1427_v25  ;;  %v1455_v14 = vsel %vm49_vm7, %v1424_v57, 0.0 }
 0x12b   :  { %v1422_v7 = vsel %vm1377_vm6, %v1330_v0, %v1331_v1  ;;  %v14142_v23 = vpack.c.bf16 %v1455_v14, %v1425_v58  ;;  %v1420_v24 = vsel %vm1377_vm6, %v1332_v56, %v1333_v53  ;;  %v1421_v55 = vsel %vm1377_vm6, %v1331_v1, %v1332_v56 }
 0x12c   :  { %v1457_v8 = vsel %vm49_vm7, %v1422_v7, 0.0  ;;  %v1334_v25 = vrot.slane %v13638_v15, 1  ;;  %v1335_v30 = vrot.slane %v13724_v10, 1  ;;  %v1336_v0 = vrot.slane %v13727_v9, 1 }
 0x12d   :  { %v14152_v37 = vpack.c.bf16 %v1457_v8, %v1423_v11  ;;  %v1337_v59 = vrot.slane %v13735_v29, 1  ;;  %v1338_v1 = vrot.slane %v13738_v5, 1  ;;  %v1339_v57 = vrot.slane %v13749_v60, 1 }
 0x12e   :  { %v1418_v56 = vsel %vm1377_vm6, %v1334_v25, %v1335_v30  ;;  %v1419_v54 = vsel %vm1377_vm6, %v1333_v53, %v1334_v25  ;;  %v1340_v58 = vrot.slane %v13851_v50, 1  ;;  %v1417_v29 = vsel %vm1377_vm6, %v1335_v30, %v1336_v0 }
 0x12f   :  { %v1461_v11 = vsel %vm49_vm7, %v1418_v56, 0.0  ;;  %v1416_v14 = vsel %vm1377_vm6, %v1336_v0, %v1337_v59  ;;  %v1415_v5 = vsel %vm1377_vm6, %v1337_v59, %v1338_v1  ;;  %v1414_v60 = vsel %vm1377_vm6, %v1338_v1, %v1339_v57  ;;  %v196_v56 = vld [vmem:[%s20062_s0 + $0x1f0] sm:$0xff] }
 0x130   :  { %10977 = vmatmul.mubr.msk.bf16.vlgmr.msra.gmra.mrb[36].mxu1 %vm546_vm3, %v13783_v2  ;;  %v14177_v7 = vpack.c.bf16 %v1461_v11, %v1419_v54  ;;  %v1463_v53 = vsel %vm49_vm7, %v1416_v14, 0.0  ;;  %v20193_v8 = vrot.slane %v13379_v33, 1  ;;  %v315_v1 = vrot.slane %v13724_v10, 7  ;;  %v164_v54 = vld [vmem:[%s20062_s0 + $0xf0] sm:$0xff] }
 0x131   :  { %11041 = vmatpush3.bf16.msra.mxu1 %v1625_v18  ;;  %10980 = vmatprep.mubr.msk.bf16.mxu1 %vm546_vm3, %v13766_v43  ;;  %v1459_v18 = vsel %vm49_vm7, %v1420_v24, 0.0  ;;  %v14184_v24 = vpack.c.bf16 %v1463_v53, %v1417_v29  ;;  %v20549_v10 = vrot.slane %v13638_v15, 7  ;;  %v20195_v14 = vrot.slane %v14046_v3, 7 }
 0x132   :  { %13195 = vmatprep.subr.msk.bf16.mxu1 %vm640_vm2, %v14122_v34  ;;  %v14158_v38 = vpack.c.bf16 %v1459_v18, %v1421_v55  ;;  %v1465_v55 = vsel %vm49_vm7, %v1414_v60, 0.0  ;;  %v1413_v18 = vsel %vm1377_vm6, %v1339_v57, %v1340_v58  ;;  %v1412_v30 = vsel %vm1377_vm6, %v1340_v58, %v20193_v8  ;;  %v165_v57 = vld [vmem:[%s20062_s0 + $0xf8] sm:$0xff] }
 0x133   :  { %v14192_v25 = vpack.c.bf16 %v1465_v55, %v1415_v5  ;;  %v1467_v0 = vsel %vm49_vm7, %v1412_v30, 0.0  ;;  %v14223_v58 = vadd.f32 %v13426_v48, %v196_v56  ;;  %v397_v11 = vsel %vm357_vm4, %v20549_v10, %v315_v1 }
 0x134   :  { %v14202_v59 = vpack.c.bf16 %v1467_v0, %v1413_v18  ;;  %v14233_v29 = vadd.f32 %v13358_v26, %v164_v54  ;;  %v14238_v5 = vadd.f32 %v13358_v26, %v165_v57  ;;  %v20551_v53 = vrot.slane %v13727_v9, 7 }
 0x135   :  { %20548 = vst [vmem:[#allocation77_spill] sm:$0xff] %v14223_v58  ;;  %v1981_v48 = vrot.slane %v14223_v58, 7  ;;  %v442_v60 = vsel %vm46_vm5, %v397_v11, 0.0  ;;  %v20189_v55 = vrot.slane %v13476_v62, 1  ;;  %v20190_v30 = vrot.slane %v14223_v58, 1 }
 0x136   :  { %20550 = vst [vmem:[#allocation78_spill] sm:$0xff] %v14238_v5  ;;  %v396_v15 = vsel %vm357_vm4, %v315_v1, %v20551_v53  ;;  %v20192_v18 = vrot.slane %v14233_v29, 1  ;;  %v20552_v0 = vrot.slane %v13730_v28, 7  ;;  %v321_v1 = vrot.slane %v13379_v33, 7 }
 0x137   :  { %v1983_v9 = vsel %vm357_vm4, %v20195_v14, %v1981_v48  ;;  %v2722_v54 = vrot.slane %v14238_v5, 1  ;;  %v14262_v57 = vpack.c.bf16 %v396_v15, %v442_v60  ;;  %v2723_v11 = vrot.slane %v13730_v28, 1  ;;  %v20565_v28 = vld [vmem:[#allocation22_spill] sm:$0xff] }
 0x138   :  { %10981 = vmatmul.mubr.msk.bf16.gmra.mrb[40].mxu1 %vm546_vm3, %v13785_v46  ;;  %v1982_v26 = vsel %vm357_vm4, %v1981_v48, %v20552_v0  ;;  %v1988_v56 = vsel %vm46_vm5, %v1983_v9, 0.0  ;;  %v322_v53 = vrot.slane %v13382_v35, 7  ;;  %v20555_v9 = vrot.slane %v13851_v50, 7 }
 0x139   :  { %10984 = vmatprep.mubr.msk.bf16.mxu1 %vm546_vm3, %v13796_v20  ;;  %20553 = vst [vmem:[#allocation79_spill] sm:$0xff] %v14262_v57  ;;  %v14264_v10 = vpack.c.bf16 %v1982_v26, %v1988_v56  ;;  %v2725_v48 = vsel %vm1377_vm6, %v2722_v54, %v20189_v55  ;;  %v2726_v15 = vsel %vm1377_vm6, %v20192_v18, %v2722_v54  ;;  %v20191_v50 = vrot.slane %v13417_v45, 7 }
 0x13a   :  { %v2729_v60 = vsel %vm49_vm7, %v2725_v48, 0.0  ;;  %v2724_v0 = vsel %vm1377_vm6, %v20190_v30, %v2723_v11  ;;  %v2727_v26 = vsel %vm1377_vm6, %v2723_v11, %v1315_v41  ;;  %v391_v56 = vsel %vm357_vm4, %v20555_v9, %v321_v1 }
 0x13b   :  { %20554 = vst [vmem:[#allocation80_spill] sm:$0xff] %v14264_v10  ;;  %v14294_v54 = vpack.c.bf16 %v2729_v60, %v2726_v15  ;;  %v2731_v48 = vsel %vm49_vm7, %v2727_v26, 0.0  ;;  %v390_v31 = vsel %vm357_vm4, %v321_v1, %v322_v53  ;;  %v448_v41 = vsel %vm46_vm5, %v391_v56, 0.0  ;;  %v20559_v26 = vld [vmem:[#allocation12_spill] sm:$0xff]  ;;  %v20560_v56 = vld [vmem:[#allocation14_spill] sm:$0xff] }
 0x13c   :  { %v14298_v55 = vpack.c.bf16 %v2731_v48, %v2724_v0  ;;  %v323_v11 = vrot.slane %v13398_v40, 7  ;;  %v14305_v30 = vpack.c.bf16 %v390_v31, %v448_v41  ;;  %v326_v0 = vrot.slane %v13476_v62, 7 }
 0x13d   :  { %20556 = vst [vmem:[#allocation81_spill] sm:$0xff] %v14294_v54  ;;  %v327_v9 = vrot.slane %v20559_v26, 7  ;;  %v328_v48 = vrot.slane %v20560_v56, 7  ;;  %v332_v17 = vrot.slane %v20565_v28, 7 }
 0x13e   :  { %20557 = vst [vmem:[#allocation82_spill] sm:$0xff] %v14298_v55  ;;  %20558 = vst [vmem:[#allocation83_spill] sm:$0xff] %v14305_v30  ;;  %v389_v15 = vsel %vm357_vm4, %v322_v53, %v323_v11  ;;  %v388_v1 = vsel %vm357_vm4, %v323_v11, %v20191_v50  ;;  %v20194_v53 = vrot.slane %v14238_v5, 7  ;;  %v20562_v11 = vld [vmem:[#allocation15_spill] sm:$0xff]  ;;  %v20564_v55 = vld [vmem:[#allocation21_spill] sm:$0xff] }
 0x13f   :  { %v450_v60 = vsel %vm46_vm5, %v389_v15, 0.0  ;;  %v329_v15 = vrot.slane %v20562_v11, 7  ;;  %v385_v50 = vsel %vm357_vm4, %v327_v9, %v328_v48  ;;  %v331_v54 = vrot.slane %v20564_v55, 7 }
 0x140   :  { %10985 = vmatmul.mubr.msk.bf16.gmra.mrb[44].mxu1 %vm546_vm3, %v13805_v47  ;;  %v14323_v31 = vpack.c.bf16 %v388_v1, %v450_v60  ;;  %v387_v41 = vsel %vm357_vm4, %v20194_v53, %v326_v0  ;;  %v386_v1 = vsel %vm357_vm4, %v326_v0, %v327_v9  ;;  %v454_v8 = vsel %vm46_vm5, %v385_v50, 0.0  ;;  %v20563_v53 = vld [vmem:[#allocation19_spill] sm:$0xff] }
 0x141   :  { %10988 = vmatprep.mubr.msk.bf16.mxu1 %vm546_vm3, %v13823_v49  ;;  %v452_v60 = vsel %vm46_vm5, %v387_v41, 0.0  ;;  %v384_v18 = vsel %vm357_vm4, %v328_v48, %v329_v15  ;;  %v330_v14 = vrot.slane %v20563_v53, 7  ;;  %v20568_v9 = vld [vmem:[#allocation23_spill] sm:$0xff]  ;;  %v381_v50 = vsel %vm357_vm4, %v331_v54, %v332_v17 }
 0x142   :  { %20561 = vst [vmem:[#allocation12_spill] sm:$0xff] %v14323_v31  ;;  %v14347_v10 = vpack.c.bf16 %v386_v1, %v452_v60  ;;  %v14349_v5 = vpack.c.bf16 %v384_v18, %v454_v8  ;;  %v333_v48 = vrot.slane %v20568_v9, 7  ;;  %v20569_v1 = vld [vmem:[#allocation24_spill] sm:$0xff] }
 0x143   :  { %v383_v0 = vsel %vm357_vm4, %v329_v15, %v330_v14  ;;  %v382_v41 = vsel %vm357_vm4, %v330_v14, %v331_v54  ;;  %v458_v15 = vsel %vm46_vm5, %v381_v50, 0.0  ;;  %v334_v60 = vrot.slane %v20569_v1, 7 }
 0x144   :  { %20566 = vst [vmem:[#allocation14_spill] sm:$0xff] %v14347_v10  ;;  %20567 = vst [vmem:[#allocation15_spill] sm:$0xff] %v14349_v5  ;;  %v456_v8 = vsel %vm46_vm5, %v383_v0, 0.0  ;;  %v380_v18 = vsel %vm357_vm4, %v332_v17, %v333_v48  ;;  %v20574_v17 = vld [vmem:[#allocation27_spill] sm:$0xff] }
 0x145   :  { %v379_v14 = vsel %vm357_vm4, %v333_v48, %v334_v60  ;;  %v337_v54 = vrot.slane %v20574_v17, 7 }
 0x148   :  { %10989 = vmatmul.mubr.msk.bf16.gmra.mrb[48].mxu1 %vm546_vm3, %v13830_v22 }
 0x149   :  { %10992 = vmatprep.mubr.msk.bf16.mxu1 %vm546_vm3, %v13853_v42 }
 0x150   :  { %10993 = vmatmul.mubr.msk.bf16.gmra.mrb[52].mxu1 %vm546_vm3, %v13862_v21 }
 0x151   :  { %10996 = vmatprep.mubr.msk.bf16.mxu1 %vm546_vm3, %v13894_v19 }
 0x158   :  { %10997 = vmatmul.mubr.msk.bf16.gmra.mrb[56].mxu1 %vm546_vm3, %v14262_v57 }
 0x159   :  { %11000 = vmatprep.mubr.msk.bf16.mxu1 %vm546_vm3, %v13923_v63  ;;  %v14373_v63 = vpack.c.bf16 %v380_v18, %v458_v15  ;;  %v20575_v18 = vld [vmem:[#allocation29_spill] sm:$0xff] }
 0x15a   :  { %v338_v15 = vrot.slane %v20575_v18, 7 }
 0x15b   :  { %20573 = vst [vmem:[#allocation21_spill] sm:$0xff] %v14373_v63 }
 0x160   :  { %11001 = vmatmul.mubr.msk.bf16.gmra.mrb[60].mxu1 %vm546_vm3, %v13933_v6  ;;  %v14371_v6 = vpack.c.bf16 %v382_v41, %v456_v8  ;;  %v460_v41 = vsel %vm46_vm5, %v379_v14, 0.0 }
 0x161   :  { %11004 = vmatprep.mubr.msk.bf16.mxu1 %vm546_vm3, %v14305_v30 }
 0x162   :  { %20572 = vst [vmem:[#allocation19_spill] sm:$0xff] %v14371_v6  ;;  %v20658_v44 = vld [vmem:[#allocation21_spill] sm:$0xff] }
 0x168   :  { %11005 = vmatmul.mubr.msk.bf16.gmra.mrb[0].mxu1 %vm546_vm3, %v14323_v31 }
 0x169   :  { %11008 = vmatprep.mubr.bf16.mxu1 %v20537_v4 }
 0x170   :  { %11009 = vmatmul.mubr.msk.bf16.gmra.mrb[4].mxu1 %vm546_vm3, %v14347_v10  ;;  %v20570_v10 = vld [vmem:[#allocation25_spill] sm:$0xff] }
 0x171   :  { %11012 = vmatprep.mubr.msk.bf16.mxu1 %vm546_vm3, %v14349_v5  ;;  %v335_v31 = vrot.slane %v20570_v10, 7  ;;  %v20571_v5 = vld [vmem:[#allocation26_spill] sm:$0xff] }
 0x172   :  { %v336_v30 = vrot.slane %v20571_v5, 7 }
 0x173   :  { %v378_v50 = vsel %vm357_vm4, %v334_v60, %v335_v31 }
 0x174   :  { %v377_v0 = vsel %vm357_vm4, %v335_v31, %v336_v30  ;;  %v376_v8 = vsel %vm357_vm4, %v336_v30, %v337_v54  ;;  %v14395_v21 = vpack.c.bf16 %v378_v50, %v460_v41  ;;  %v375_v31 = vsel %vm357_vm4, %v337_v54, %v338_v15  ;;  %v20580_v30 = vld [vmem:[#allocation40_spill] sm:$0xff] }
 0x175   :  { %v462_v48 = vsel %vm46_vm5, %v377_v0, 0.0  ;;  %v341_v60 = vrot.slane %v20580_v30, 7  ;;  %v464_v50 = vsel %vm46_vm5, %v375_v31, 0.0 }
 0x176   :  { %20578 = vst [vmem:[#allocation22_spill] sm:$0xff] %v14395_v21  ;;  %v14397_v42 = vpack.c.bf16 %v376_v8, %v462_v48  ;;  %v342_v8 = vrot.slane %v13889_v61, 7  ;;  %v343_v48 = vrot.slane %v13900_v39, 7 }
 0x178   :  { %11013 = vmatmul.mubr.msk.bf16.gmra.mrb[8].mxu1 %vm546_vm3, %v14371_v6  ;;  %v20576_v6 = vld [vmem:[#allocation30_spill] sm:$0xff]  ;;  %20579 = vst [vmem:[#allocation23_spill] sm:$0xff] %v14397_v42 }
 0x179   :  { %11016 = vmatprep.mubr.msk.bf16.mxu1 %vm546_vm3, %v14373_v63  ;;  %v339_v57 = vrot.slane %v20576_v6, 7  ;;  %v20577_v63 = vld [vmem:[#allocation39_spill] sm:$0xff] }
 0x17a   :  { %v340_v19 = vrot.slane %v20577_v63, 7 }
 0x17b   :  { %v374_v0 = vsel %vm357_vm4, %v338_v15, %v339_v57 }
 0x17c   :  { %v373_v14 = vsel %vm357_vm4, %v339_v57, %v340_v19  ;;  %v372_v41 = vsel %vm357_vm4, %v340_v19, %v341_v60  ;;  %v14419_v22 = vpack.c.bf16 %v374_v0, %v464_v50  ;;  %v371_v57 = vsel %vm357_vm4, %v341_v60, %v342_v8  ;;  %v20584_v19 = vld [vmem:[#allocation57_spill] sm:$0xff] }
 0x17d   :  { %v466_v54 = vsel %vm46_vm5, %v373_v14, 0.0  ;;  %v345_v15 = vrot.slane %v20584_v19, 7  ;;  %v370_v14 = vsel %vm357_vm4, %v342_v8, %v343_v48  ;;  %v468_v0 = vsel %vm46_vm5, %v371_v57, 0.0 }
 0x17e   :  { %20582 = vst [vmem:[#allocation24_spill] sm:$0xff] %v14419_v22  ;;  %v14421_v49 = vpack.c.bf16 %v372_v41, %v466_v54  ;;  %v20585_v41 = vld [vmem:[#allocation63_spill] sm:$0xff]  ;;  %v14443_v46 = vpack.c.bf16 %v370_v14, %v468_v0 }
 0x17f   :  { %v346_v54 = vrot.slane %v20585_v41, 7 }
 0x180   :  { %11017 = vmatmul.mubr.msk.bf16.gmra.mrb[12].mxu1 %vm546_vm3, %v14395_v21  ;;  %20583 = vst [vmem:[#allocation25_spill] sm:$0xff] %v14421_v49  ;;  %20588 = vst [vmem:[#allocation26_spill] sm:$0xff] %v14443_v46 }
 0x181   :  { %11020 = vmatprep.mubr.msk.bf16.mxu1 %vm546_vm3, %v14397_v42  ;;  %v20581_v42 = vld [vmem:[#allocation56_spill] sm:$0xff]  ;;  %v367_v8 = vsel %vm357_vm4, %v345_v15, %v346_v54 }
 0x182   :  { %v344_v21 = vrot.slane %v20581_v42, 7  ;;  %v472_v14 = vsel %vm46_vm5, %v367_v8, 0.0 }
 0x184   :  { %v369_v31 = vsel %vm357_vm4, %v343_v48, %v344_v21  ;;  %v368_v50 = vsel %vm357_vm4, %v344_v21, %v345_v15  ;;  %v20590_v21 = vld [vmem:[#allocation66_spill] sm:$0xff] }
 0x185   :  { %v470_v60 = vsel %vm46_vm5, %v369_v31, 0.0  ;;  %v349_v48 = vrot.slane %v20590_v21, 7 }
 0x186   :  { %v14445_v43 = vpack.c.bf16 %v368_v50, %v470_v60  ;;  %v20591_v50 = vld [vmem:[#allocation69_spill] sm:$0xff] }
 0x187   :  { %v350_v60 = vrot.slane %v20591_v50, 7 }
 0x188   :  { %11021 = vmatmul.mubr.msk.bf16.gmra.mrb[16].mxu1 %vm546_vm3, %v14419_v22  ;;  %v20586_v22 = vld [vmem:[#allocation64_spill] sm:$0xff]  ;;  %20589 = vst [vmem:[#allocation27_spill] sm:$0xff] %v14445_v43 }
 0x189   :  { %11024 = vmatprep.mubr.msk.bf16.mxu1 %vm546_vm3, %v14421_v49  ;;  %v347_v47 = vrot.slane %v20586_v22, 7  ;;  %v20587_v49 = vld [vmem:[#allocation65_spill] sm:$0xff] }
 0x18a   :  { %v348_v20 = vrot.slane %v20587_v49, 7 }
 0x18b   :  { %v366_v31 = vsel %vm357_vm4, %v346_v54, %v347_v47 }
 0x18c   :  { %v365_v57 = vsel %vm357_vm4, %v347_v47, %v348_v20  ;;  %v364_v0 = vsel %vm357_vm4, %v348_v20, %v349_v48  ;;  %v14467_v21 = vpack.c.bf16 %v366_v31, %v472_v14  ;;  %v363_v47 = vsel %vm357_vm4, %v349_v48, %v350_v60  ;;  %v20596_v20 = vld [vmem:[#allocation72_spill] sm:$0xff] }
 0x18d   :  { %v474_v15 = vsel %vm46_vm5, %v365_v57, 0.0  ;;  %v353_v54 = vrot.slane %v20596_v20, 7  ;;  %v476_v31 = vsel %vm46_vm5, %v363_v47, 0.0 }
 0x18e   :  { %20594 = vst [vmem:[#allocation29_spill] sm:$0xff] %v14467_v21  ;;  %v14469_v49 = vpack.c.bf16 %v364_v0, %v474_v15  ;;  %v354_v0 = vrot.slane %v14043_v16, 7 }
 0x190   :  { %11025 = vmatmul.mubr.msk.bf16.gmra.mrb[20].mxu1 %vm546_vm3, %v14443_v46  ;;  %v20592_v46 = vld [vmem:[#allocation70_spill] sm:$0xff]  ;;  %20595 = vst [vmem:[#allocation30_spill] sm:$0xff] %v14469_v49 }
 0x191   :  { %11028 = vmatprep.mubr.msk.bf16.mxu1 %vm546_vm3, %v14445_v43  ;;  %v351_v2 = vrot.slane %v20592_v46, 7  ;;  %v20593_v43 = vld [vmem:[#allocation71_spill] sm:$0xff] }
 0x192   :  { %v352_v58 = vrot.slane %v20593_v43, 7 }
 0x193   :  { %v362_v57 = vsel %vm357_vm4, %v350_v60, %v351_v2 }
 0x194   :  { %v361_v8 = vsel %vm357_vm4, %v351_v2, %v352_v58  ;;  %v360_v14 = vsel %vm357_vm4, %v352_v58, %v353_v54  ;;  %v14489_v15 = vpack.c.bf16 %v362_v57, %v476_v31  ;;  %v359_v2 = vsel %vm357_vm4, %v353_v54, %v354_v0  ;;  %v14515_v57 = vld [vmem:[%s20066_s4 + $0x8] sm:$0x3] }
 0x195   :  { %v478_v48 = vsel %vm46_vm5, %v361_v8, 0.0  ;;  %v20599_v58 = vrot.slane %v14046_v3, 7  ;;  %v480_v47 = vsel %vm46_vm5, %v359_v2, 0.0  ;;  %v2001_v54 = vsel %vm640_vm2, %v14122_v34, 0 }
 0x196   :  { %20597 = vst [vmem:[#allocation39_spill] sm:$0xff] %v14489_v15 }
 0x197   :  { %v358_v60 = vsel %vm357_vm4, %v354_v0, %v20599_v58  ;;  %v20665_v12 = vld [vmem:[#allocation30_spill] sm:$0xff] }
 0x198   :  { %11029 = vmatmul.mubr.msk.bf16.gmra.mrb[24].mxu1 %vm546_vm3, %v14467_v21  ;;  %v14505_v8 = vpack.c.bf16 %v358_v60, %v480_v47 }
 0x199   :  { %11032 = vmatprep.mubr.msk.bf16.mxu1 %vm546_vm3, %v14469_v49  ;;  %v14491_v49 = vpack.c.bf16 %v360_v14, %v478_v48 }
 0x19a   :  { %20600 = vst [vmem:[#allocation56_spill] sm:$0xff] %v14505_v8 }
 0x19b   :  { %20598 = vst [vmem:[#allocation40_spill] sm:$0xff] %v14491_v49 }
 0x1a0   :  { %11033 = vmatmul.mubr.msk.bf16.gmra.mrb[28].mxu1 %vm546_vm3, %v14489_v15 }
 0x1a1   :  { %11036 = vmatprep.mubr.msk.bf16.mxu1 %vm546_vm3, %v14491_v49 }
 0x1a8   :  { %11037 = vmatmul.mubr.msk.bf16.gmra.mrb[32].mxu1 %vm546_vm3, %v14505_v8 }
 0x1a9   :  { %11042 = vmatprep.mubr.bf16.mxu1 %v20537_v4 }
 0x1b0   :  { %11043 = vmatmul.mubr.msk.bf16.vlgmr.msra.gmra.mrb[36].mxu1 %vm546_vm3, %v14062_v27 }
 0x1b1   :  { %11107 = vmatpush3.bf16.msra.mxu1 %v2001_v54  ;;  %11046 = vmatprep.mubr.msk.bf16.mxu1 %vm546_vm3, %v14081_v36 }
 0x1b2   :  { %13196 = vmatprep.subr.msk.bf16.mxu1 %vm640_vm2, %v14515_v57 }
 0x1b8   :  { %11047 = vmatmul.mubr.msk.bf16.gmra.mrb[40].mxu1 %vm546_vm3, %v14094_v32 }
 0x1b9   :  { %11050 = vmatprep.mubr.msk.bf16.mxu1 %vm546_vm3, %v14102_v51 }
 0x1ba   :  { %v14523_v31 = vpop.f32.mrb[4].mxu0 }
 0x1bb   :  { %20601 = vst [vmem:[#allocation57_spill] sm:$0xff] %v14523_v31  ;;  %v14527_v34 = vpop.f32.mrb[5].mxu0 }
 0x1bc   :  { %20602 = vst [vmem:[#allocation63_spill] sm:$0xff] %v14527_v34  ;;  %v14531_v14 = vpop.f32.mrb[6].mxu0 }
 0x1bd   :  { %20603 = vst [vmem:[#allocation64_spill] sm:$0xff] %v14531_v14  ;;  %v14533_v48 = vpop.f32.mrb[7].mxu0 }
 0x1be   :  { %20604 = vst [vmem:[#allocation69_spill] sm:$0xff] %v14533_v48 }
 0x1c0   :  { %11051 = vmatmul.mubr.msk.bf16.gmra.mrb[44].mxu1 %vm546_vm3, %v14109_v52 }
 0x1c1   :  { %11054 = vmatprep.mubr.msk.bf16.mxu1 %vm546_vm3, %v14134_v13 }
 0x1c2   :  { %v14535_v0 = vpop.f32.mrb[8].mxu0 }
 0x1c3   :  { %20605 = vst [vmem:[#allocation70_spill] sm:$0xff] %v14535_v0  ;;  %v14539_v2 = vpop.f32.mrb[9].mxu0 }
 0x1c4   :  { %20606 = vst [vmem:[#allocation71_spill] sm:$0xff] %v14539_v2  ;;  %v14543_v58 = vpop.f32.mrb[10].mxu0 }
 0x1c5   :  { %20607 = vst [vmem:[#allocation72_spill] sm:$0xff] %v14543_v58  ;;  %v14545_v60 = vpop.f32.mrb[11].mxu0  ;;  %v1342_v58 = vrot.slane %v13382_v35, 1  ;;  %v20621_v35 = vrot.slane %v13379_v33, 1 }
 0x1c6   :  { %20608 = vst [vmem:[#allocation84_spill] sm:$0xff] %v14545_v60 }
 0x1c8   :  { %11055 = vmatmul.mubr.msk.bf16.gmra.mrb[48].mxu1 %vm546_vm3, %v14142_v23 }
 0x1c9   :  { %11058 = vmatprep.mubr.msk.bf16.mxu1 %vm546_vm3, %v14152_v37 }
 0x1ca   :  { %v14547_v47 = vpop.f32.mrb[12].mxu0 }
 0x1cb   :  { %20609 = vst [vmem:[#allocation85_spill] sm:$0xff] %v14547_v47  ;;  %v14551_v54 = vpop.f32.mrb[13].mxu0 }
 0x1cc   :  { %20610 = vst [vmem:[#allocation86_spill] sm:$0xff] %v14551_v54  ;;  %v14555_v0 = vpop.f32.mrb[14].mxu0 }
 0x1cd   :  { %20611 = vst [vmem:[#allocation87_spill] sm:$0xff] %v14555_v0  ;;  %v14557_v2 = vpop.f32.mrb[15].mxu0  ;;  %v1343_v0 = vrot.slane %v13398_v40, 1  ;;  %v1411_v40 = vsel %vm1377_vm6, %v20621_v35, %v1342_v58 }
 0x1ce   :  { %20612 = vst [vmem:[#allocation88_spill] sm:$0xff] %v14557_v2 }
 0x1d0   :  { %11059 = vmatmul.mubr.msk.bf16.gmra.mrb[52].mxu1 %vm546_vm3, %v14158_v38 }
 0x1d1   :  { %11062 = vmatprep.mubr.msk.bf16.mxu1 %vm546_vm3, %v14177_v7 }
 0x1d2   :  { %v14559_v48 = vpop.f32.mrb[16].mxu0 }
 0x1d3   :  { %20613 = vst [vmem:[#allocation89_spill] sm:$0xff] %v14559_v48  ;;  %v14563_v60 = vpop.f32.mrb[17].mxu0 }
 0x1d4   :  { %20614 = vst [vmem:[#allocation90_spill] sm:$0xff] %v14563_v60  ;;  %v14567_v47 = vpop.f32.mrb[18].mxu0 }
 0x1d5   :  { %20615 = vst [vmem:[#allocation91_spill] sm:$0xff] %v14567_v47  ;;  %v14569_v54 = vpop.f32.mrb[19].mxu0  ;;  %v1410_v47 = vsel %vm1377_vm6, %v1342_v58, %v1343_v0 }
 0x1d6   :  { %20616 = vst [vmem:[#allocation92_spill] sm:$0xff] %v14569_v54 }
 0x1d8   :  { %11063 = vmatmul.mubr.msk.bf16.gmra.mrb[56].mxu1 %vm546_vm3, %v14184_v24 }
 0x1d9   :  { %11066 = vmatprep.mubr.msk.bf16.mxu1 %vm546_vm3, %v14192_v25 }
 0x1da   :  { %v14573_v14 = vpop.f32.mrb[20].mxu0 }
 0x1db   :  { %20617 = vst [vmem:[#allocation93_spill] sm:$0xff] %v14573_v14  ;;  %v14577_v48 = vpop.f32.mrb[21].mxu0  ;;  %v1469_v14 = vsel %vm49_vm7, %v1410_v47, 0.0 }
 0x1dc   :  { %20618 = vst [vmem:[#allocation94_spill] sm:$0xff] %v14577_v48  ;;  %v14581_v60 = vpop.f32.mrb[22].mxu0  ;;  %v1344_v48 = vrot.slane %v13417_v45, 1  ;;  %v14594_v2 = vpack.c.bf16 %v1469_v14, %v1411_v40  ;;  %v1347_v40 = vrot.slane %v20559_v26, 1 }
 0x1dd   :  { %20619 = vst [vmem:[#allocation95_spill] sm:$0xff] %v14581_v60  ;;  %v14585_v54 = vpop.f32.mrb[23].mxu0 }
 0x1de   :  { %20620 = vst [vmem:[#allocation96_spill] sm:$0xff] %v14585_v54  ;;  %20622 = vst [vmem:[#allocation97_spill] sm:$0xff] %v14594_v2  ;;  %v20625_v54 = vrot.slane %v14233_v29, 1  ;;  %v1409_v14 = vsel %vm1377_vm6, %v1343_v0, %v1344_v48 }
 0x1e0   :  { %11067 = vmatmul.mubr.msk.bf16.gmra.mrb[60].mxu1 %vm546_vm3, %v14202_v59  ;;  %v1408_v33 = vsel %vm1377_vm6, %v1344_v48, %v20625_v54  ;;  %v1350_v54 = vrot.slane %v20563_v53, 1  ;;  %v20632_v53 = vrot.slane %v13476_v62, 1  ;;  %v1354_v62 = vrot.slane %v20569_v1, 1 }
 0x1e1   :  { %11070 = vmatprep.mubr.msk.bf16.mxu1 %vm546_vm3, %v14594_v2  ;;  %v1471_v35 = vsel %vm49_vm7, %v1408_v33, 0.0 }
 0x1e2   :  { %v14596_v34 = vpop.f32.mrb[24].mxu0  ;;  %v14620_v31 = vpack.c.bf16 %v1471_v35, %v1409_v14 }
 0x1e3   :  { %20623 = vst [vmem:[#allocation98_spill] sm:$0xff] %v14596_v34  ;;  %v14600_v60 = vpop.f32.mrb[25].mxu0  ;;  %v1349_v34 = vrot.slane %v20562_v11, 1  ;;  %v1407_v11 = vsel %vm1377_vm6, %v20632_v53, %v1347_v40  ;;  %v1357_v53 = vrot.slane %v20574_v17, 1 }
 0x1e4   :  { %20624 = vst [vmem:[#allocation99_spill] sm:$0xff] %v14600_v60  ;;  %v14608_v58 = vpop.f32.mrb[26].mxu0  ;;  %v1348_v60 = vrot.slane %v20560_v56, 1 }
 0x1e5   :  { %20626 = vst [vmem:[#allocation100_spill] sm:$0xff] %v14608_v58  ;;  %v14610_v47 = vpop.f32.mrb[27].mxu0  ;;  %v1404_v26 = vsel %vm1377_vm6, %v1349_v34, %v1350_v54  ;;  %v20666_v58 = vld [vmem:[#allocation80_spill] sm:$0xff] }
 0x1e6   :  { %20627 = vst [vmem:[#allocation101_spill] sm:$0xff] %v14610_v47  ;;  %v1406_v48 = vsel %vm1377_vm6, %v1347_v40, %v1348_v60  ;;  %v1405_v14 = vsel %vm1377_vm6, %v1348_v60, %v1349_v34  ;;  %v1475_v35 = vsel %vm49_vm7, %v1404_v26, 0.0  ;;  %v1356_v26 = vrot.slane %v20571_v5, 1 }
 0x1e7   :  { %v1473_v33 = vsel %vm49_vm7, %v1406_v48, 0.0  ;;  %v14653_v40 = vpack.c.bf16 %v1475_v35, %v1405_v14  ;;  %v1355_v48 = vrot.slane %v20570_v10, 1  ;;  %v1360_v14 = vrot.slane %v20577_v63, 1 }
 0x1e8   :  { %11071 = vmatmul.mubr.msk.bf16.gmra.mrb[0].mxu1 %vm546_vm3, %v14620_v31  ;;  %v1361_v35 = vrot.slane %v20580_v30, 1 }
 0x1e9   :  { %11074 = vmatprep.mubr.bf16.mxu1 %v20537_v4  ;;  %v1399_v10 = vsel %vm1377_vm6, %v1354_v62, %v1355_v48 }
 0x1ea   :  { %v14622_v2 = vpop.f32.mrb[28].mxu0  ;;  %v1393_v30 = vsel %vm1377_vm6, %v1360_v14, %v1361_v35 }
 0x1eb   :  { %20628 = vst [vmem:[#allocation102_spill] sm:$0xff] %v14622_v2  ;;  %v14626_v47 = vpop.f32.mrb[29].mxu0  ;;  %v14651_v2 = vpack.c.bf16 %v1473_v33, %v1407_v11  ;;  %v1358_v11 = vrot.slane %v20575_v18, 1  ;;  %v1397_v18 = vsel %vm1377_vm6, %v1356_v26, %v1357_v53 }
 0x1ec   :  { %20629 = vst [vmem:[#allocation103_spill] sm:$0xff] %v14626_v47  ;;  %v14630_v0 = vpop.f32.mrb[30].mxu0  ;;  %v1352_v47 = vrot.slane %v20565_v28, 1 }
 0x1ed   :  { %20630 = vst [vmem:[#allocation104_spill] sm:$0xff] %v14630_v0  ;;  %v14635_v56 = vpop.f32.mrb[31].mxu0  ;;  %v1351_v0 = vrot.slane %v20564_v55, 1  ;;  %v1396_v5 = vsel %vm1377_vm6, %v1357_v53, %v1358_v11 }
 0x1ee   :  { %20631 = vst [vmem:[#allocation105_spill] sm:$0xff] %v14635_v56  ;;  %v1353_v56 = vrot.slane %v20568_v9, 1 }
 0x1ef   :  { %v1402_v34 = vsel %vm1377_vm6, %v1351_v0, %v1352_v47  ;;  %v1403_v55 = vsel %vm1377_vm6, %v1350_v54, %v1351_v0  ;;  %v1483_v0 = vsel %vm49_vm7, %v1396_v5, 0.0 }
 0x1f0   :  { %11075 = vmatmul.mubr.msk.bf16.gmra.mrb[4].mxu1 %vm546_vm3, %v14651_v2  ;;  %v1400_v28 = vsel %vm1377_vm6, %v1353_v56, %v1354_v62  ;;  %v1477_v9 = vsel %vm49_vm7, %v1402_v34, 0.0  ;;  %v1401_v1 = vsel %vm1377_vm6, %v1352_v47, %v1353_v56  ;;  %v1398_v47 = vsel %vm1377_vm6, %v1355_v48, %v1356_v26 }
 0x1f1   :  { %11078 = vmatprep.mubr.msk.bf16.mxu1 %vm546_vm3, %v14653_v40  ;;  %v1479_v60 = vsel %vm49_vm7, %v1400_v28, 0.0  ;;  %v14675_v33 = vpack.c.bf16 %v1477_v9, %v1403_v55  ;;  %v1481_v17 = vsel %vm49_vm7, %v1398_v47, 0.0  ;;  %v1359_v56 = vrot.slane %v20576_v6, 1 }
 0x1f2   :  { %v14677_v54 = vpack.c.bf16 %v1479_v60, %v1401_v1  ;;  %v1362_v34 = vrot.slane %v13889_v61, 1  ;;  %v14699_v28 = vpack.c.bf16 %v1481_v17, %v1399_v10  ;;  %v14701_v62 = vpack.c.bf16 %v1483_v0, %v1397_v18  ;;  %v20633_v17 = vld [vmem:[#allocation65_spill] sm:$0xff]  ;;  %v20634_v0 = vld [vmem:[#allocation66_spill] sm:$0xff] }
 0x1f3   :  { %v1394_v55 = vsel %vm1377_vm6, %v1359_v56, %v1360_v14  ;;  %v1395_v6 = vsel %vm1377_vm6, %v1358_v11, %v1359_v56  ;;  %v1363_v1 = vrot.slane %v13900_v39, 1  ;;  %v1364_v60 = vrot.slane %v20581_v42, 1 }
 0x1f4   :  { %v1392_v63 = vsel %vm1377_vm6, %v1361_v35, %v1362_v34  ;;  %v1485_v61 = vsel %vm49_vm7, %v1394_v55, 0.0  ;;  %v1365_v48 = vrot.slane %v20584_v19, 1  ;;  %v1366_v26 = vrot.slane %v20585_v41, 1 }
 0x1f5   :  { %v1487_v9 = vsel %vm49_vm7, %v1392_v63, 0.0  ;;  %v14723_v53 = vpack.c.bf16 %v1485_v61, %v1395_v6  ;;  %v1390_v47 = vsel %vm1377_vm6, %v1363_v1, %v1364_v60  ;;  %v1391_v42 = vsel %vm1377_vm6, %v1362_v34, %v1363_v1 }
 0x1f6   :  { %v14725_v11 = vpack.c.bf16 %v1487_v9, %v1393_v30  ;;  %v1388_v39 = vsel %vm1377_vm6, %v1365_v48, %v1366_v26  ;;  %v1489_v19 = vsel %vm49_vm7, %v1390_v47, 0.0  ;;  %v1389_v41 = vsel %vm1377_vm6, %v1364_v60, %v1365_v48 }
 0x1f7   :  { %v1491_v5 = vsel %vm49_vm7, %v1388_v39, 0.0  ;;  %v1367_v10 = vrot.slane %v20586_v22, 1  ;;  %v1368_v18 = vrot.slane %v20633_v17, 1  ;;  %v1369_v56 = vrot.slane %v20634_v0, 1 }
 0x1f8   :  { %11079 = vmatmul.mubr.msk.bf16.gmra.mrb[8].mxu1 %vm546_vm3, %v14675_v33  ;;  %v1370_v14 = vrot.slane %v20591_v50, 1  ;;  %v14747_v35 = vpack.c.bf16 %v1489_v19, %v1391_v42  ;;  %v14749_v34 = vpack.c.bf16 %v1491_v5, %v1389_v41  ;;  %v1371_v30 = vrot.slane %v20592_v46, 1  ;;  %v20635_v5 = vld [vmem:[#allocation77_spill] sm:$0xff] }
 0x1f9   :  { %11082 = vmatprep.mubr.msk.bf16.mxu1 %vm546_vm3, %v14677_v54  ;;  %v1386_v55 = vsel %vm1377_vm6, %v1367_v10, %v1368_v18  ;;  %v1387_v63 = vsel %vm1377_vm6, %v1366_v26, %v1367_v10  ;;  %v1385_v6 = vsel %vm1377_vm6, %v1368_v18, %v1369_v56  ;;  %v1372_v9 = vrot.slane %v20593_v43, 1 }
 0x1fa   :  { %v1384_v22 = vsel %vm1377_vm6, %v1369_v56, %v1370_v14  ;;  %v1493_v50 = vsel %vm49_vm7, %v1386_v55, 0.0  ;;  %v1373_v1 = vrot.slane %v20596_v20, 1  ;;  %v1374_v60 = vrot.slane %v14043_v16, 1  ;;  %v20637_v56 = vld [vmem:[#allocation44_spill] sm:$0xff]  ;;  %v9828_v55 = vld [vmem:[%s20066_s4 + $0xa] sm:$0x3] }
 0x1fb   :  { %v1495_v61 = vsel %vm49_vm7, %v1384_v22, 0.0  ;;  %v14771_v48 = vpack.c.bf16 %v1493_v50, %v1387_v63  ;;  %v1382_v47 = vsel %vm1377_vm6, %v1371_v30, %v1372_v9  ;;  %v1383_v46 = vsel %vm1377_vm6, %v1370_v14, %v1371_v30  ;;  %v20638_v22 = vld [vmem:[#allocation43_spill] sm:$0xff]  ;;  %v20639_v63 = vld [vmem:[#allocation45_spill] sm:$0xff]  ;;  %v20640_v50 = vld [vmem:[#allocation46_spill] sm:$0xff] }
 0x1fc   :  { %v14773_v26 = vpack.c.bf16 %v1495_v61, %v1385_v6  ;;  %v1380_v43 = vsel %vm1377_vm6, %v1373_v1, %v1374_v60  ;;  %v1497_v16 = vsel %vm49_vm7, %v1382_v47, 0.0  ;;  %v1381_v20 = vsel %vm1377_vm6, %v1372_v9, %v1373_v1  ;;  %v20641_v6 = vld [vmem:[#allocation47_spill] sm:$0xff]  ;;  %v20643_v61 = vld [vmem:[#allocation49_spill] sm:$0xff]  ;;  %v20644_v30 = vld [vmem:[#allocation50_spill] sm:$0xff] }
 0x1fd   :  { %v1499_v39 = vsel %vm49_vm7, %v1380_v43, 0.0  ;;  %v1375_v42 = vrot.slane %v14046_v3, 1  ;;  %v14792_v19 = vpack.c.bf16 %v1497_v16, %v1383_v46  ;;  %v20636_v10 = vrot.slane %v20635_v5, 1  ;;  %v20645_v9 = vld [vmem:[#allocation51_spill] sm:$0xff]  ;;  %v20646_v1 = vld [vmem:[#allocation54_spill] sm:$0xff] }
 0x1fe   :  { %v14794_v41 = vpack.c.bf16 %v1499_v39, %v1381_v20  ;;  %v2367_v14 = vsel %vm640_vm2, %v14515_v57, 0  ;;  %v20642_v57 = vld [vmem:[#allocation48_spill] sm:$0xff]  ;;  %v20648_v47 = vld [vmem:[#allocation58_spill] sm:$0xff]  ;;  %v20649_v43 = vld [vmem:[#allocation59_spill] sm:$0xff]  ;;  %v1980_v46 = vrot.slane %v14233_v29, 7  ;;  %v20651_v20 = vrot.slane %v13417_v45, 7 }
 0x1ff   :  { %v1378_v17 = vsel %vm1377_vm6, %v1375_v42, %v20636_v10  ;;  %v1379_v18 = vsel %vm1377_vm6, %v1374_v60, %v1375_v42  ;;  %v20647_v60 = vld [vmem:[#allocation79_spill] sm:$0xff]  ;;  %v20652_v42 = vld [vmem:[#allocation12_spill] sm:$0xff]  ;;  %v20653_v10 = vld [vmem:[#allocation78_spill] sm:$0xff] }
 0x200   :  { %11083 = vmatmul.mubr.msk.bf16.gmra.mrb[12].mxu1 %vm546_vm3, %v14699_v28  ;;  %v1501_v3 = vsel %vm49_vm7, %v1378_v17, 0.0  ;;  %v20650_v16 = vld [vmem:[#allocation83_spill] sm:$0xff]  ;;  %v1985_v39 = vsel %vm357_vm4, %v20651_v20, %v1980_v46  ;;  %v20654_v17 = vrot.slane %v20653_v10, 7  ;;  %v20655_v45 = vld [vmem:[#allocation14_spill] sm:$0xff] }
 0x201   :  { %11086 = vmatprep.mubr.msk.bf16.mxu1 %vm546_vm3, %v14701_v62  ;;  %v14808_v0 = vpack.c.bf16 %v1501_v3, %v1379_v18  ;;  %v1986_v3 = vsel %vm46_vm5, %v1985_v39, 0.0  ;;  %v20657_v20 = vld [vmem:[#allocation19_spill] sm:$0xff] }
 0x202   :  { %v1984_v18 = vsel %vm357_vm4, %v1980_v46, %v20654_v17  ;;  %v20659_v46 = vld [vmem:[#allocation22_spill] sm:$0xff]  ;;  %v20660_v39 = vld [vmem:[#allocation23_spill] sm:$0xff]  ;;  %v20661_v17 = vld [vmem:[#allocation24_spill] sm:$0xff] }
 0x208   :  { %11087 = vmatmul.mubr.msk.bf16.gmra.mrb[16].mxu1 %vm546_vm3, %v14723_v53 }
 0x209   :  { %11090 = vmatprep.mubr.msk.bf16.mxu1 %vm546_vm3, %v14725_v11 }
 0x210   :  { %11091 = vmatmul.mubr.msk.bf16.gmra.mrb[20].mxu1 %vm546_vm3, %v14747_v35 }
 0x211   :  { %11094 = vmatprep.mubr.msk.bf16.mxu1 %vm546_vm3, %v14749_v34 }
 0x218   :  { %11095 = vmatmul.mubr.msk.bf16.gmra.mrb[24].mxu1 %vm546_vm3, %v14771_v48 }
 0x219   :  { %11098 = vmatprep.mubr.msk.bf16.mxu1 %vm546_vm3, %v14773_v26 }
 0x220   :  { %11099 = vmatmul.mubr.msk.bf16.gmra.mrb[28].mxu1 %vm546_vm3, %v14792_v19 }
 0x221   :  { %11102 = vmatprep.mubr.msk.bf16.mxu1 %vm546_vm3, %v14794_v41 }
 0x228   :  { %11103 = vmatmul.mubr.msk.bf16.gmra.mrb[32].mxu1 %vm546_vm3, %v14808_v0 }
 0x229   :  { %11108 = vmatprep.mubr.msk.bf16.mxu1 %vm546_vm3, %v20637_v56  ;;  %v14859_v56 = vpack.c.bf16 %v1984_v18, %v1986_v3  ;;  %v20662_v18 = vld [vmem:[#allocation25_spill] sm:$0xff]  ;;  %v20663_v3 = vld [vmem:[#allocation26_spill] sm:$0xff] }
 0x230   :  { %11109 = vmatmul.mubr.msk.bf16.vlgmr.msra.gmra.mrb[36].mxu1 %vm546_vm3, %v20638_v22 }
 0x231   :  { %11173 = vmatpush3.bf16.msra.mxu1 %v2367_v14  ;;  %11112 = vmatprep.mubr.msk.bf16.mxu1 %vm546_vm3, %v20639_v63  ;;  %v20656_v14 = vld [vmem:[#allocation15_spill] sm:$0xff] }
 0x232   :  { %13197 = vmatprep.subr.msk.bf16.mxu1 %vm640_vm2, %v9828_v55 }
 0x238   :  { %11113 = vmatmul.mubr.msk.bf16.gmra.mrb[40].mxu1 %vm546_vm3, %v20640_v50 }
 0x239   :  { %11116 = vmatprep.mubr.msk.bf16.mxu1 %vm546_vm3, %v20641_v6 }
 0x240   :  { %11117 = vmatmul.mubr.msk.bf16.gmra.mrb[44].mxu1 %vm546_vm3, %v20642_v57 }
 0x241   :  { %11120 = vmatprep.mubr.msk.bf16.mxu1 %vm546_vm3, %v20643_v61 }
 0x248   :  { %11121 = vmatmul.mubr.msk.bf16.gmra.mrb[48].mxu1 %vm546_vm3, %v20644_v30 }
 0x249   :  { %11124 = vmatprep.mubr.msk.bf16.mxu1 %vm546_vm3, %v20645_v9 }
 0x250   :  { %11125 = vmatmul.mubr.msk.bf16.gmra.mrb[52].mxu1 %vm546_vm3, %v20646_v1 }
 0x251   :  { %11128 = vmatprep.mubr.msk.bf16.mxu1 %vm546_vm3, %v20647_v60 }
 0x258   :  { %11129 = vmatmul.mubr.msk.bf16.gmra.mrb[56].mxu1 %vm546_vm3, %v20648_v47 }
 0x259   :  { %11132 = vmatprep.mubr.msk.bf16.mxu1 %vm546_vm3, %v20649_v43 }
 0x260   :  { %11133 = vmatmul.mubr.msk.bf16.gmra.mrb[60].mxu1 %vm546_vm3, %v20650_v16 }
 0x261   :  { %11136 = vmatprep.mubr.msk.bf16.mxu1 %vm546_vm3, %v20652_v42 }
 0x268   :  { %11137 = vmatmul.mubr.msk.bf16.gmra.mrb[0].mxu1 %vm546_vm3, %v14859_v56 }
 0x269   :  { %11140 = vmatprep.mubr.msk.bf16.mxu1 %vm546_vm3, %v20655_v45  ;;  %v20664_v45 = vld [vmem:[#allocation27_spill] sm:$0xff] }
 0x270   :  { %11141 = vmatmul.mubr.msk.bf16.gmra.mrb[4].mxu1 %vm546_vm3, %v20656_v14 }
 0x271   :  { %11144 = vmatprep.mubr.msk.bf16.mxu1 %vm546_vm3, %v20657_v20 }
 0x278   :  { %11145 = vmatmul.mubr.msk.bf16.gmra.mrb[8].mxu1 %vm546_vm3, %v20658_v44 }
 0x279   :  { %11148 = vmatprep.mubr.msk.bf16.mxu1 %vm546_vm3, %v20659_v46 }
 0x280   :  { %11149 = vmatmul.mubr.msk.bf16.gmra.mrb[12].mxu1 %vm546_vm3, %v20660_v39 }
 0x281   :  { %11152 = vmatprep.mubr.msk.bf16.mxu1 %vm546_vm3, %v20661_v17 }
 0x288   :  { %11153 = vmatmul.mubr.msk.bf16.gmra.mrb[16].mxu1 %vm546_vm3, %v20662_v18 }
 0x289   :  { %11156 = vmatprep.mubr.msk.bf16.mxu1 %vm546_vm3, %v20663_v3  ;;  %v20667_v3 = vld [vmem:[#allocation8_spill] sm:$0xff] }
 0x290   :  { %11157 = vmatmul.mubr.msk.bf16.gmra.mrb[20].mxu1 %vm546_vm3, %v20664_v45  ;;  %v20668_v45 = vld [vmem:[#allocation10_spill] sm:$0xff] }
 0x291   :  { %11160 = vmatprep.mubr.msk.bf16.mxu1 %vm546_vm3, %v14467_v21  ;;  %v2743_v21 = vsel %vm640_vm2, %v9828_v55, 0  ;;  %v20672_v55 = vld [vmem:[#allocation28_spill] sm:$0xff] }
 0x298   :  { %11161 = vmatmul.mubr.msk.bf16.gmra.mrb[24].mxu1 %vm546_vm3, %v20665_v12  ;;  %v9861_v12 = vld [vmem:[%s20066_s4 + $0xc] sm:$0x3] }
 0x299   :  { %11164 = vmatprep.mubr.msk.bf16.mxu1 %vm546_vm3, %v14489_v15  ;;  %v20674_v15 = vld [vmem:[#allocation34_spill] sm:$0xff] }
 0x2a0   :  { %11165 = vmatmul.mubr.msk.bf16.gmra.mrb[28].mxu1 %vm546_vm3, %v14491_v49  ;;  %v20669_v49 = vld [vmem:[#allocation13_spill] sm:$0xff] }
 0x2a1   :  { %11168 = vmatprep.mubr.msk.bf16.mxu1 %vm546_vm3, %v14505_v8  ;;  %v20670_v8 = vld [vmem:[#allocation16_spill] sm:$0xff] }
 0x2a8   :  { %11169 = vmatmul.mubr.msk.bf16.gmra.mrb[32].mxu1 %vm546_vm3, %v20666_v58  ;;  %v20671_v58 = vld [vmem:[#allocation20_spill] sm:$0xff] }
 0x2a9   :  { %11174 = vmatprep.mubr.msk.bf16.mxu1 %vm546_vm3, %v20667_v3  ;;  %v20673_v3 = vld [vmem:[#allocation33_spill] sm:$0xff] }
 0x2b0   :  { %11175 = vmatmul.mubr.msk.bf16.vlgmr.msra.gmra.mrb[36].mxu1 %vm546_vm3, %v20668_v45  ;;  %v20677_v45 = vld [vmem:[#allocation53_spill] sm:$0xff] }
 0x2b1   :  { %11239 = vmatpush3.bf16.msra.mxu1 %v2743_v21  ;;  %11178 = vmatprep.mubr.msk.bf16.mxu1 %vm546_vm3, %v20669_v49  ;;  %v20675_v21 = vld [vmem:[#allocation37_spill] sm:$0xff]  ;;  %v20676_v49 = vld [vmem:[#allocation38_spill] sm:$0xff] }
 0x2b2   :  { %13198 = vmatprep.subr.msk.bf16.mxu1 %vm640_vm2, %v9861_v12 }
 0x2b8   :  { %11179 = vmatmul.mubr.msk.bf16.gmra.mrb[40].mxu1 %vm546_vm3, %v20670_v8  ;;  %v20678_v8 = vld [vmem:[#allocation55_spill] sm:$0xff] }
 0x2b9   :  { %11182 = vmatprep.mubr.msk.bf16.mxu1 %vm546_vm3, %v20671_v58  ;;  %v20679_v58 = vld [vmem:[#allocation62_spill] sm:$0xff] }
 0x2c0   :  { %11183 = vmatmul.mubr.msk.bf16.gmra.mrb[44].mxu1 %vm546_vm3, %v20672_v55  ;;  %v20680_v55 = vld [vmem:[#allocation9_spill] sm:$0xff] }
 0x2c1   :  { %11186 = vmatprep.mubr.msk.bf16.mxu1 %vm546_vm3, %v20673_v3  ;;  %v20681_v3 = vld [vmem:[#allocation11_spill] sm:$0xff] }
 0x2c8   :  { %11187 = vmatmul.mubr.msk.bf16.gmra.mrb[48].mxu1 %vm546_vm3, %v20674_v15 }
 0x2c9   :  { %11190 = vmatprep.mubr.msk.bf16.mxu1 %vm546_vm3, %v20675_v21  ;;  %v14932_v21 = vpack.c.bf16 %v20653_v10, %v14233_v29  ;;  %v20688_v29 = vld [vmem:[#allocation36_spill] sm:$0xff]  ;;  %v20689_v10 = vld [vmem:[#allocation41_spill] sm:$0xff] }
 0x2cb   :  { %20682 = vst [vmem:[#allocation65_spill] sm:$0xff] %v14932_v21 }
 0x2d0   :  { %11191 = vmatmul.mubr.msk.bf16.gmra.mrb[52].mxu1 %vm546_vm3, %v20676_v49 }
 0x2d1   :  { %11194 = vmatprep.mubr.msk.bf16.mxu1 %vm546_vm3, %v20677_v45  ;;  %v20683_v45 = vld [vmem:[#allocation17_spill] sm:$0xff] }
 0x2d8   :  { %11195 = vmatmul.mubr.msk.bf16.gmra.mrb[56].mxu1 %vm546_vm3, %v20678_v8  ;;  %v20684_v8 = vld [vmem:[#allocation18_spill] sm:$0xff] }
 0x2d9   :  { %11198 = vmatprep.mubr.msk.bf16.mxu1 %vm546_vm3, %v20679_v58  ;;  %v20685_v58 = vld [vmem:[#allocation31_spill] sm:$0xff] }
 0x2e0   :  { %11199 = vmatmul.mubr.msk.bf16.gmra.mrb[60].mxu1 %vm546_vm3, %v20680_v55  ;;  %v20686_v55 = vld [vmem:[#allocation32_spill] sm:$0xff] }
 0x2e1   :  { %11202 = vmatprep.mubr.msk.bf16.mxu1 %vm546_vm3, %v20681_v3  ;;  %v20687_v3 = vld [vmem:[#allocation35_spill] sm:$0xff] }
 0x2e8   :  { %11203 = vmatmul.mubr.msk.bf16.gmra.mrb[0].mxu1 %vm546_vm3, %v14932_v21  ;;  %v20690_v21 = vld [vmem:[#allocation52_spill] sm:$0xff] }
 0x2e9   :  { %11206 = vmatprep.mubr.msk.bf16.mxu1 %vm546_vm3, %v20683_v45  ;;  %v20691_v45 = vld [vmem:[#allocation60_spill] sm:$0xff] }
 0x2f0   :  { %11207 = vmatmul.mubr.msk.bf16.gmra.mrb[4].mxu1 %vm546_vm3, %v20684_v8  ;;  %v20692_v8 = vld [vmem:[#allocation61_spill] sm:$0xff] }
 0x2f1   :  { %11210 = vmatprep.mubr.msk.bf16.mxu1 %vm546_vm3, %v20685_v58  ;;  %v20693_v58 = vld [vmem:[#allocation67_spill] sm:$0xff] }
 0x2f8   :  { %11211 = vmatmul.mubr.msk.bf16.gmra.mrb[8].mxu1 %vm546_vm3, %v20686_v55  ;;  %v20694_v55 = vld [vmem:[#allocation68_spill] sm:$0xff] }
 0x2f9   :  { %11214 = vmatprep.mubr.msk.bf16.mxu1 %vm546_vm3, %v20687_v3  ;;  %v20695_v3 = vld [vmem:[#allocation74_spill] sm:$0xff] }
 0x300   :  { %11215 = vmatmul.mubr.msk.bf16.gmra.mrb[12].mxu1 %vm546_vm3, %v20688_v29  ;;  %v20696_v29 = vld [vmem:[#allocation75_spill] sm:$0xff] }
 0x301   :  { %11218 = vmatprep.mubr.msk.bf16.mxu1 %vm546_vm3, %v20689_v10  ;;  %v20697_v10 = vld [vmem:[#allocation76_spill] sm:$0xff] }
 0x308   :  { %11219 = vmatmul.mubr.msk.bf16.gmra.mrb[16].mxu1 %vm546_vm3, %v20690_v21 }
 0x309   :  { %11222 = vmatprep.mubr.msk.bf16.mxu1 %vm546_vm3, %v20691_v45  ;;  %v20698_v45 = vld [vmem:[#allocation42_spill] sm:$0xff] }
 0x30a   :  { %v14968_v21 = vpack.c.bf16 %v20698_v45, %v20635_v5  ;;  %v9923_v45 = vld [vmem:[%s20066_s4 + $0x10] sm:$0x3] }
 0x310   :  { %11223 = vmatmul.mubr.msk.bf16.gmra.mrb[20].mxu1 %vm546_vm3, %v20692_v8 }
 0x311   :  { %11226 = vmatprep.mubr.msk.bf16.mxu1 %vm546_vm3, %v20693_v58 }
 0x318   :  { %11227 = vmatmul.mubr.msk.bf16.gmra.mrb[24].mxu1 %vm546_vm3, %v20694_v55  ;;  %v3101_v55 = vsel %vm640_vm2, %v9861_v12, 0  ;;  %v20699_v12 = vld [vmem:[#allocation97_spill] sm:$0xff] }
 0x319   :  { %11230 = vmatprep.mubr.msk.bf16.mxu1 %vm546_vm3, %v20695_v3  ;;  %v9892_v3 = vld [vmem:[%s20066_s4 + $0xe] sm:$0x3] }
 0x31a   :  { %v3459_v5 = vsel %vm640_vm2, %v9892_v3, 0 }
 0x320   :  { %11231 = vmatmul.mubr.msk.bf16.gmra.mrb[28].mxu1 %vm546_vm3, %v20696_v29 }
 0x321   :  { %11234 = vmatprep.mubr.msk.bf16.mxu1 %vm546_vm3, %v20697_v10 }
 0x328   :  { %11235 = vmatmul.mubr.msk.bf16.gmra.mrb[32].mxu1 %vm546_vm3, %v14968_v21 }
 0x329   :  { %11240 = vmatprep.mubr.msk.bf16.mxu1 %vm546_vm3, %v14062_v27  ;;  %v20700_v27 = vld [vmem:[#allocation81_spill] sm:$0xff] }
 0x330   :  { %11241 = vmatmul.mubr.msk.bf16.vlgmr.msra.gmra.mrb[36].mxu1 %vm546_vm3, %v14081_v36 }
 0x331   :  { %11305 = vmatpush3.bf16.msra.mxu1 %v3101_v55  ;;  %11244 = vmatprep.mubr.msk.bf16.mxu1 %vm546_vm3, %v14094_v32  ;;  %v20724_v55 = vld [vmem:[#allocation31_spill] sm:$0xff] }
 0x332   :  { %13199 = vmatprep.subr.msk.bf16.mxu1 %vm640_vm2, %v9892_v3  ;;  %v20723_v3 = vld [vmem:[#allocation18_spill] sm:$0xff] }
 0x338   :  { %11245 = vmatmul.mubr.msk.bf16.gmra.mrb[40].mxu1 %vm546_vm3, %v14102_v51 }
 0x339   :  { %11248 = vmatprep.mubr.msk.bf16.mxu1 %vm546_vm3, %v14109_v52 }
 0x340   :  { %11249 = vmatmul.mubr.msk.bf16.gmra.mrb[44].mxu1 %vm546_vm3, %v14134_v13 }
 0x341   :  { %11252 = vmatprep.mubr.msk.bf16.mxu1 %vm546_vm3, %v14142_v23 }
 0x348   :  { %11253 = vmatmul.mubr.msk.bf16.gmra.mrb[48].mxu1 %vm546_vm3, %v14152_v37 }
 0x349   :  { %11256 = vmatprep.mubr.msk.bf16.mxu1 %vm546_vm3, %v14158_v38 }
 0x350   :  { %11257 = vmatmul.mubr.msk.bf16.gmra.mrb[52].mxu1 %vm546_vm3, %v14177_v7 }
 0x351   :  { %11260 = vmatprep.mubr.msk.bf16.mxu1 %vm546_vm3, %v14184_v24 }
 0x358   :  { %11261 = vmatmul.mubr.msk.bf16.gmra.mrb[56].mxu1 %vm546_vm3, %v14192_v25 }
 0x359   :  { %11264 = vmatprep.mubr.msk.bf16.mxu1 %vm546_vm3, %v14202_v59 }
 0x360   :  { %11265 = vmatmul.mubr.msk.bf16.gmra.mrb[60].mxu1 %vm546_vm3, %v20699_v12 }
 0x361   :  { %11268 = vmatprep.mubr.msk.bf16.mxu1 %vm546_vm3, %v14620_v31 }
 0x368   :  { %11269 = vmatmul.mubr.msk.bf16.gmra.mrb[0].mxu1 %vm546_vm3, %v20700_v27 }
 0x369   :  { %11272 = vmatprep.mubr.msk.bf16.mxu1 %vm546_vm3, %v14651_v2  ;;  %v20701_v2 = vld [vmem:[#allocation82_spill] sm:$0xff] }
 0x370   :  { %11273 = vmatmul.mubr.msk.bf16.gmra.mrb[4].mxu1 %vm546_vm3, %v14653_v40 }
 0x371   :  { %11276 = vmatprep.mubr.msk.bf16.mxu1 %vm546_vm3, %v14675_v33 }
 0x378   :  { %11277 = vmatmul.mubr.msk.bf16.gmra.mrb[8].mxu1 %vm546_vm3, %v14677_v54 }
 0x379   :  { %11280 = vmatprep.mubr.msk.bf16.mxu1 %vm546_vm3, %v14699_v28 }
 0x380   :  { %11281 = vmatmul.mubr.msk.bf16.gmra.mrb[12].mxu1 %vm546_vm3, %v14701_v62 }
 0x381   :  { %11284 = vmatprep.mubr.msk.bf16.mxu1 %vm546_vm3, %v14723_v53 }
 0x388   :  { %11285 = vmatmul.mubr.msk.bf16.gmra.mrb[16].mxu1 %vm546_vm3, %v14725_v11 }
 0x389   :  { %11288 = vmatprep.mubr.msk.bf16.mxu1 %vm546_vm3, %v14747_v35 }
 0x390   :  { %11289 = vmatmul.mubr.msk.bf16.gmra.mrb[20].mxu1 %vm546_vm3, %v14749_v34 }
 0x391   :  { %11292 = vmatprep.mubr.msk.bf16.mxu1 %vm546_vm3, %v14771_v48 }
 0x398   :  { %11293 = vmatmul.mubr.msk.bf16.gmra.mrb[24].mxu1 %vm546_vm3, %v14773_v26 }
 0x399   :  { %11296 = vmatprep.mubr.msk.bf16.mxu1 %vm546_vm3, %v14792_v19 }
 0x3a0   :  { %11297 = vmatmul.mubr.msk.bf16.gmra.mrb[28].mxu1 %vm546_vm3, %v14794_v41 }
 0x3a1   :  { %11300 = vmatprep.mubr.msk.bf16.mxu1 %vm546_vm3, %v14808_v0 }
 0x3a8   :  { %11301 = vmatmul.mubr.msk.bf16.gmra.mrb[32].mxu1 %vm546_vm3, %v20701_v2 }
 0x3a9   :  { %11306 = vmatprep.mubr.msk.bf16.mxu1 %vm546_vm3, %v20638_v22  ;;  %v20702_v22 = vld [vmem:[#allocation26_spill] sm:$0xff] }
 0x3b0   :  { %11307 = vmatmul.mubr.msk.bf16.vlgmr.msra.gmra.mrb[36].mxu1 %vm546_vm3, %v20639_v63  ;;  %v20703_v63 = vld [vmem:[#allocation27_spill] sm:$0xff] }
 0x3b1   :  { %11371 = vmatpush3.bf16.msra.mxu1 %v3459_v5  ;;  %11310 = vmatprep.mubr.msk.bf16.mxu1 %vm546_vm3, %v20640_v50  ;;  %v20704_v50 = vld [vmem:[#allocation29_spill] sm:$0xff]  ;;  %v20725_v5 = vld [vmem:[#allocation32_spill] sm:$0xff] }
 0x3b2   :  { %13200 = vmatprep.subr.msk.bf16.mxu1 %vm640_vm2, %v9923_v45 }
 0x3b8   :  { %11311 = vmatmul.mubr.msk.bf16.gmra.mrb[40].mxu1 %vm546_vm3, %v20641_v6  ;;  %v20706_v6 = vld [vmem:[#allocation39_spill] sm:$0xff] }
 0x3b9   :  { %11314 = vmatprep.mubr.msk.bf16.mxu1 %vm546_vm3, %v20642_v57  ;;  %v20707_v57 = vld [vmem:[#allocation40_spill] sm:$0xff] }
 0x3c0   :  { %11315 = vmatmul.mubr.msk.bf16.gmra.mrb[44].mxu1 %vm546_vm3, %v20643_v61  ;;  %v20708_v61 = vld [vmem:[#allocation56_spill] sm:$0xff] }
 0x3c1   :  { %11318 = vmatprep.mubr.msk.bf16.mxu1 %vm546_vm3, %v20644_v30  ;;  %v20709_v30 = vld [vmem:[#allocation80_spill] sm:$0xff] }
 0x3c8   :  { %11319 = vmatmul.mubr.msk.bf16.gmra.mrb[48].mxu1 %vm546_vm3, %v20645_v9  ;;  %v20710_v9 = vld [vmem:[#allocation10_spill] sm:$0xff] }
 0x3c9   :  { %11322 = vmatprep.mubr.msk.bf16.mxu1 %vm546_vm3, %v20646_v1  ;;  %v3817_v1 = vsel %vm640_vm2, %v9923_v45, 0  ;;  %v20726_v45 = vld [vmem:[#allocation35_spill] sm:$0xff] }
 0x3d0   :  { %11323 = vmatmul.mubr.msk.bf16.gmra.mrb[52].mxu1 %vm546_vm3, %v20647_v60  ;;  %v20711_v60 = vld [vmem:[#allocation13_spill] sm:$0xff] }
 0x3d1   :  { %11326 = vmatprep.mubr.msk.bf16.mxu1 %vm546_vm3, %v20648_v47  ;;  %v20712_v47 = vld [vmem:[#allocation16_spill] sm:$0xff] }
 0x3d8   :  { %11327 = vmatmul.mubr.msk.bf16.gmra.mrb[56].mxu1 %vm546_vm3, %v20649_v43  ;;  %v20713_v43 = vld [vmem:[#allocation20_spill] sm:$0xff] }
 0x3d9   :  { %11330 = vmatprep.mubr.msk.bf16.mxu1 %vm546_vm3, %v20650_v16  ;;  %v20714_v16 = vld [vmem:[#allocation28_spill] sm:$0xff] }
 0x3e0   :  { %11331 = vmatmul.mubr.msk.bf16.gmra.mrb[60].mxu1 %vm546_vm3, %v20652_v42  ;;  %v20715_v42 = vld [vmem:[#allocation33_spill] sm:$0xff] }
 0x3e1   :  { %11334 = vmatprep.mubr.msk.bf16.mxu1 %vm546_vm3, %v14859_v56  ;;  %v20716_v56 = vld [vmem:[#allocation37_spill] sm:$0xff] }
 0x3e8   :  { %11335 = vmatmul.mubr.bf16.gmra.mrb[0].mxu1 %v20537_v4 }
 0x3e9   :  { %11338 = vmatprep.mubr.msk.bf16.mxu1 %vm546_vm3, %v20656_v14  ;;  %v20717_v14 = vld [vmem:[#allocation53_spill] sm:$0xff] }
 0x3f0   :  { %11339 = vmatmul.mubr.msk.bf16.gmra.mrb[4].mxu1 %vm546_vm3, %v20657_v20  ;;  %v20718_v20 = vld [vmem:[#allocation55_spill] sm:$0xff] }
 0x3f1   :  { %11342 = vmatprep.mubr.msk.bf16.mxu1 %vm546_vm3, %v20658_v44  ;;  %v20705_v44 = vld [vmem:[#allocation30_spill] sm:$0xff] }
 0x3f8   :  { %11343 = vmatmul.mubr.msk.bf16.gmra.mrb[8].mxu1 %vm546_vm3, %v20659_v46  ;;  %v20719_v46 = vld [vmem:[#allocation62_spill] sm:$0xff] }
 0x3f9   :  { %11346 = vmatprep.mubr.msk.bf16.mxu1 %vm546_vm3, %v20660_v39  ;;  %v20720_v39 = vld [vmem:[#allocation9_spill] sm:$0xff] }
 0x400   :  { %11347 = vmatmul.mubr.msk.bf16.gmra.mrb[12].mxu1 %vm546_vm3, %v20661_v17  ;;  %v20721_v17 = vld [vmem:[#allocation11_spill] sm:$0xff] }
 0x401   :  { %11350 = vmatprep.mubr.msk.bf16.mxu1 %vm546_vm3, %v20662_v18  ;;  %v20722_v18 = vld [vmem:[#allocation65_spill] sm:$0xff] }
 0x408   :  { %11351 = vmatmul.mubr.msk.bf16.gmra.mrb[16].mxu1 %vm546_vm3, %v20702_v22  ;;  %v20727_v22 = vld [vmem:[#allocation36_spill] sm:$0xff] }
 0x409   :  { %11354 = vmatprep.mubr.msk.bf16.mxu1 %vm546_vm3, %v20703_v63  ;;  %v20728_v63 = vld [vmem:[#allocation41_spill] sm:$0xff] }
 0x410   :  { %11355 = vmatmul.mubr.msk.bf16.gmra.mrb[20].mxu1 %vm546_vm3, %v20704_v50  ;;  %v20729_v50 = vld [vmem:[#allocation52_spill] sm:$0xff] }
 0x411   :  { %11358 = vmatprep.mubr.msk.bf16.mxu1 %vm546_vm3, %v20705_v44  ;;  %v20730_v44 = vld [vmem:[#allocation60_spill] sm:$0xff] }
 0x418   :  { %11359 = vmatmul.mubr.msk.bf16.gmra.mrb[24].mxu1 %vm546_vm3, %v20706_v6  ;;  %v20731_v6 = vld [vmem:[#allocation68_spill] sm:$0xff] }
 0x419   :  { %11362 = vmatprep.mubr.msk.bf16.mxu1 %vm546_vm3, %v20707_v57  ;;  %v20732_v57 = vld [vmem:[#allocation74_spill] sm:$0xff] }
 0x420   :  { %11363 = vmatmul.mubr.msk.bf16.gmra.mrb[28].mxu1 %vm546_vm3, %v20708_v61  ;;  %v9129_v61 = vld [vmem:[%s20072_s10] sm:$0x3] }
 0x421   :  { %11366 = vmatprep.mubr.msk.bf16.mxu1 %vm546_vm3, %v20709_v30  ;;  %v9138_v30 = vsel %vm640_vm2, %v9129_v61, 0 }
 0x428   :  { %11367 = vmatmul.mubr.bf16.gmra.mrb[32].mxu1 %v20537_v4 }
 0x429   :  { %11372 = vmatprep.mubr.msk.bf16.mxu1 %vm546_vm3, %v20710_v9 }
 0x430   :  { %11373 = vmatmul.mubr.msk.bf16.vlgmr.msra.gmra.mrb[36].mxu1 %vm546_vm3, %v20711_v60 }
 0x431   :  { %11437 = vmatpush3.bf16.msra.mxu1 %v3817_v1  ;;  %11376 = vmatprep.mubr.msk.bf16.mxu1 %vm546_vm3, %v20712_v47 }
 0x432   :  { %13210 = vmatprep.subr.msk.bf16.mxu1 %vm640_vm2, %v9129_v61 }
 0x438   :  { %11377 = vmatmul.mubr.msk.bf16.gmra.mrb[40].mxu1 %vm546_vm3, %v20713_v43 }
 0x439   :  { %11380 = vmatprep.mubr.msk.bf16.mxu1 %vm546_vm3, %v20714_v16 }
 0x440   :  { %11381 = vmatmul.mubr.msk.bf16.gmra.mrb[44].mxu1 %vm546_vm3, %v20715_v42 }
 0x441   :  { %11384 = vmatprep.mubr.msk.bf16.mxu1 %vm546_vm3, %v20674_v15 }
 0x448   :  { %11385 = vmatmul.mubr.msk.bf16.gmra.mrb[48].mxu1 %vm546_vm3, %v20716_v56 }
 0x449   :  { %11388 = vmatprep.mubr.msk.bf16.mxu1 %vm546_vm3, %v20676_v49 }
 0x450   :  { %11389 = vmatmul.mubr.msk.bf16.gmra.mrb[52].mxu1 %vm546_vm3, %v20717_v14 }
 0x451   :  { %11392 = vmatprep.mubr.msk.bf16.mxu1 %vm546_vm3, %v20718_v20 }
 0x458   :  { %11393 = vmatmul.mubr.msk.bf16.gmra.mrb[56].mxu1 %vm546_vm3, %v20719_v46 }
 0x459   :  { %11396 = vmatprep.mubr.msk.bf16.mxu1 %vm546_vm3, %v20720_v39 }
 0x460   :  { %11397 = vmatmul.mubr.msk.bf16.gmra.mrb[60].mxu1 %vm546_vm3, %v20721_v17 }
 0x461   :  { %11400 = vmatprep.mubr.msk.bf16.mxu1 %vm546_vm3, %v20722_v18 }
 0x468   :  { %11401 = vmatmul.mubr.bf16.gmra.mrb[0].mxu1 %v20537_v4 }
 0x469   :  { %11404 = vmatprep.mubr.msk.bf16.mxu1 %vm546_vm3, %v20723_v3 }
 0x470   :  { %11405 = vmatmul.mubr.msk.bf16.gmra.mrb[4].mxu1 %vm546_vm3, %v20724_v55 }
 0x471   :  { %11408 = vmatprep.mubr.msk.bf16.mxu1 %vm546_vm3, %v20725_v5 }
 0x478   :  { %11409 = vmatmul.mubr.msk.bf16.gmra.mrb[8].mxu1 %vm546_vm3, %v20726_v45 }
 0x479   :  { %11412 = vmatprep.mubr.msk.bf16.mxu1 %vm546_vm3, %v20727_v22 }
 0x480   :  { %11413 = vmatmul.mubr.msk.bf16.gmra.mrb[12].mxu1 %vm546_vm3, %v20728_v63 }
 0x481   :  { %11416 = vmatprep.mubr.msk.bf16.mxu1 %vm546_vm3, %v20729_v50 }
 0x488   :  { %11417 = vmatmul.mubr.msk.bf16.gmra.mrb[16].mxu1 %vm546_vm3, %v20730_v44 }
 0x489   :  { %11420 = vmatprep.mubr.msk.bf16.mxu1 %vm546_vm3, %v20692_v8 }
 0x490   :  { %11421 = vmatmul.mubr.msk.bf16.gmra.mrb[20].mxu1 %vm546_vm3, %v20693_v58 }
 0x491   :  { %11424 = vmatprep.mubr.msk.bf16.mxu1 %vm546_vm3, %v20731_v6 }
 0x498   :  { %11425 = vmatmul.mubr.msk.bf16.gmra.mrb[24].mxu1 %vm546_vm3, %v20732_v57 }
 0x499   :  { %11428 = vmatprep.mubr.msk.bf16.mxu1 %vm546_vm3, %v20696_v29 }
 0x4a0   :  { %11429 = vmatmul.mubr.msk.bf16.gmra.mrb[28].mxu1 %vm546_vm3, %v20697_v10 }
 0x4a1   :  { %11432 = vmatprep.mubr.msk.bf16.mxu1 %vm546_vm3, %v14968_v21 }
 0x4a8   :  { %11433 = vmatmul.mubr.bf16.gmra.mrb[32].mxu1 %v20537_v4 }
 0x4a9   :  { %11438 = vmatprep.mubr.msk.bf16.mxu1 %vm546_vm3, %v14081_v36  ;;  %v20733_v36 = vld [vmem:[#allocation8_spill] sm:$0xff] }
 0x4b0   :  { %11439 = vmatmul.mubr.msk.bf16.vlgmr.msra.gmra.mrb[36].mxu1 %vm546_vm3, %v14094_v32  ;;  %v20734_v32 = vld [vmem:[#allocation17_spill] sm:$0xff] }
 0x4b1   :  { %11442 = vmatprep.mubr.msk.bf16.mxu1 %vm546_vm3, %v14102_v51  ;;  %12097 = vmatpush3.bf16.msra.mxu1 %v9138_v30  ;;  %v20735_v51 = vld [vmem:[#allocation57_spill] sm:$0xff] }
 0x4b8   :  { %11443 = vmatmul.mubr.msk.bf16.gmra.mrb[40].mxu1 %vm546_vm3, %v14109_v52 }
 0x4b9   :  { %11446 = vmatprep.mubr.msk.bf16.mxu1 %vm546_vm3, %v14134_v13 }
 0x4c0   :  { %11447 = vmatmul.mubr.msk.bf16.gmra.mrb[44].mxu1 %vm546_vm3, %v14142_v23  ;;  %v20736_v23 = vld [vmem:[#allocation63_spill] sm:$0xff] }
 0x4c1   :  { %11450 = vmatprep.mubr.msk.bf16.mxu1 %vm546_vm3, %v14152_v37 }
 0x4c8   :  { %11451 = vmatmul.mubr.msk.bf16.gmra.mrb[48].mxu1 %vm546_vm3, %v14158_v38 }
 0x4c9   :  { %11454 = vmatprep.mubr.msk.bf16.mxu1 %vm546_vm3, %v14177_v7  ;;  %v20737_v7 = vld [vmem:[#allocation64_spill] sm:$0xff] }
 0x4d0   :  { %11455 = vmatmul.mubr.msk.bf16.gmra.mrb[52].mxu1 %vm546_vm3, %v14184_v24 }
 0x4d1   :  { %11458 = vmatprep.mubr.msk.bf16.mxu1 %vm546_vm3, %v14192_v25 }
 0x4d8   :  { %11459 = vmatmul.mubr.msk.bf16.gmra.mrb[56].mxu1 %vm546_vm3, %v14202_v59 }
 0x4d9   :  { %11462 = vmatprep.mubr.msk.bf16.mxu1 %vm546_vm3, %v20699_v12 }
 0x4e0   :  { %11463 = vmatmul.mubr.msk.bf16.gmra.mrb[60].mxu1 %vm546_vm3, %v14620_v31 }
 0x4e1   :  { %11466 = vmatprep.mubr.msk.bf16.mxu1 %vm546_vm3, %v20700_v27 }
 0x4e8   :  { %11467 = vmatmul.mubr.bf16.gmra.mrb[0].mxu1 %v20537_v4 }
 0x4e9   :  { %11470 = vmatprep.mubr.msk.bf16.mxu1 %vm546_vm3, %v14653_v40 }
 0x4f0   :  { %11471 = vmatmul.mubr.msk.bf16.gmra.mrb[4].mxu1 %vm546_vm3, %v14675_v33 }
 0x4f1   :  { %11474 = vmatprep.mubr.msk.bf16.mxu1 %vm546_vm3, %v14677_v54 }
 0x4f8   :  { %11475 = vmatmul.mubr.msk.bf16.gmra.mrb[8].mxu1 %vm546_vm3, %v14699_v28 }
 0x4f9   :  { %11478 = vmatprep.mubr.msk.bf16.mxu1 %vm546_vm3, %v14701_v62 }
 0x500   :  { %11479 = vmatmul.mubr.msk.bf16.gmra.mrb[12].mxu1 %vm546_vm3, %v14723_v53 }
 0x501   :  { %11482 = vmatprep.mubr.msk.bf16.mxu1 %vm546_vm3, %v14725_v11 }
 0x508   :  { %11483 = vmatmul.mubr.msk.bf16.gmra.mrb[16].mxu1 %vm546_vm3, %v14747_v35 }
 0x509   :  { %11486 = vmatprep.mubr.msk.bf16.mxu1 %vm546_vm3, %v14749_v34 }
 0x510   :  { %11487 = vmatmul.mubr.msk.bf16.gmra.mrb[20].mxu1 %vm546_vm3, %v14771_v48 }
 0x511   :  { %11490 = vmatprep.mubr.msk.bf16.mxu1 %vm546_vm3, %v14773_v26 }
 0x518   :  { %11491 = vmatmul.mubr.msk.bf16.gmra.mrb[24].mxu1 %vm546_vm3, %v14792_v19 }
 0x519   :  { %11494 = vmatprep.mubr.msk.bf16.mxu1 %vm546_vm3, %v14794_v41  ;;  %v20739_v41 = vld [vmem:[#allocation70_spill] sm:$0xff] }
 0x520   :  { %11495 = vmatmul.mubr.msk.bf16.gmra.mrb[28].mxu1 %vm546_vm3, %v14808_v0 }
 0x521   :  { %11498 = vmatprep.mubr.msk.bf16.mxu1 %vm546_vm3, %v20701_v2 }
 0x528   :  { %11499 = vmatmul.mubr.bf16.gmra.mrb[32].mxu1 %v20537_v4 }
 0x529   :  { %12098 = vmatprep.mubr.msk.bf16.mxu1 %vm546_vm3, %v20733_v36 }
 0x530   :  { %12099 = vmatmul.mubr.msk.bf16.vlgmr.msra.gmra.mrb[64].mxu1 %vm546_vm3, %v20710_v9  ;;  %v20740_v9 = vld [vmem:[#allocation71_spill] sm:$0xff] }
 0x531   :  { %12102 = vmatprep.mubr.msk.bf16.mxu1 %vm546_vm3, %v20711_v60 }
 0x538   :  { %12103 = vmatmul.mubr.msk.bf16.gmra.mrb[68].mxu1 %vm546_vm3, %v20712_v47 }
 0x539   :  { %12106 = vmatprep.mubr.msk.bf16.mxu1 %vm546_vm3, %v20713_v43 }
 0x540   :  { %12107 = vmatmul.mubr.msk.bf16.gmra.mrb[72].mxu1 %vm546_vm3, %v20714_v16 }
 0x541   :  { %12110 = vmatprep.mubr.msk.bf16.mxu1 %vm546_vm3, %v20715_v42 }
 0x548   :  { %12111 = vmatmul.mubr.msk.bf16.gmra.mrb[76].mxu1 %vm546_vm3, %v20674_v15  ;;  %v20738_v15 = vld [vmem:[#allocation69_spill] sm:$0xff] }
 0x549   :  { %12114 = vmatprep.mubr.msk.bf16.mxu1 %vm546_vm3, %v20716_v56 }
 0x550   :  { %12115 = vmatmul.mubr.msk.bf16.gmra.mrb[80].mxu1 %vm546_vm3, %v20676_v49 }
 0x551   :  { %12118 = vmatprep.mubr.msk.bf16.mxu1 %vm546_vm3, %v20717_v14 }
 0x558   :  { %12119 = vmatmul.mubr.msk.bf16.gmra.mrb[84].mxu1 %vm546_vm3, %v20718_v20  ;;  %v20741_v20 = vld [vmem:[#allocation72_spill] sm:$0xff] }
 0x559   :  { %12122 = vmatprep.mubr.msk.bf16.mxu1 %vm546_vm3, %v20719_v46 }
 0x560   :  { %12123 = vmatmul.mubr.msk.bf16.gmra.mrb[88].mxu1 %vm546_vm3, %v20720_v39  ;;  %v20742_v39 = vld [vmem:[#allocation84_spill] sm:$0xff] }
 0x561   :  { %12126 = vmatprep.mubr.msk.bf16.mxu1 %vm546_vm3, %v20721_v17 }
 0x568   :  { %12127 = vmatmul.mubr.msk.bf16.gmra.mrb[92].mxu1 %vm546_vm3, %v20722_v18 }
 0x569   :  { %12130 = vmatprep.mubr.msk.bf16.mxu1 %vm546_vm3, %v20734_v32  ;;  %v20743_v32 = vld [vmem:[#allocation85_spill] sm:$0xff] }
 0x570   :  { %12131 = vmatmul.mubr.msk.bf16.gmra.mrb[96].mxu1 %vm546_vm3, %v20723_v3 }
 0x571   :  { %12134 = vmatprep.mubr.msk.bf16.mxu1 %vm546_vm3, %v20724_v55 }
 0x578   :  { %12135 = vmatmul.mubr.msk.bf16.gmra.mrb[100].mxu1 %vm546_vm3, %v20725_v5 }
 0x579   :  { %12138 = vmatprep.mubr.msk.bf16.mxu1 %vm546_vm3, %v20726_v45 }
 0x580   :  { %12139 = vmatmul.mubr.msk.bf16.gmra.mrb[104].mxu1 %vm546_vm3, %v20727_v22 }
 0x581   :  { %12142 = vmatprep.mubr.msk.bf16.mxu1 %vm546_vm3, %v20728_v63 }
 0x583   :  { %v11440_v49 = vpop.f32.mrb[36].mxu1 }
 0x584   :  { %v15285_v52 = vadd.f32 %v11440_v49, %v20735_v51  ;;  %v3853_v13 = vpop.f32.mrb[37].mxu1 }
 0x585   :  { %v15288_v37 = vadd.f32 %v3853_v13, %v20736_v23  ;;  %v11441_v38 = vpop.f32.mrb[38].mxu1  ;;  %v20744_v23 = vld [vmem:[#allocation86_spill] sm:$0xff] }
 0x586   :  { %v15291_v24 = vadd.f32 %v11441_v38, %v20737_v7  ;;  %v3856_v25 = vpop.f32.mrb[39].mxu1  ;;  %v4308_v40 = vmul.f32 %v15285_v52, %v15285_v52  ;;  %v4176_v11 = vsel %vm4172_vm8, %v15285_v52, 0.0 }
 0x587   :  { %v4306_v59 = vmul.f32 %v15288_v37, %v15288_v37  ;;  %v15296_v31 = vadd.f32 %v3856_v25, %v20738_v15  ;;  %v4173_v33 = vsel %vm4172_vm8, %v15288_v37, 0.0  ;;  %v20745_v15 = vld [vmem:[#allocation87_spill] sm:$0xff] }
 0x588   :  { %12143 = vmatmul.mubr.msk.bf16.gmra.mrb[108].mxu1 %vm546_vm3, %v20729_v50  ;;  %v4309_v62 = vmul.f32 %v15291_v24, %v15291_v24  ;;  %v4373_v27 = vsel %vm4172_vm8, %v4308_v40, 0.0  ;;  %v4178_v2 = vsel %vm4172_vm8, %v15291_v24, 0.0 }
 0x589   :  { %v4174_v54 = vsel %vm4172_vm8, %v15296_v31, 0.0  ;;  %v4307_v28 = vmul.f32 %v15296_v31, %v15296_v31  ;;  %12146 = vmatprep.mubr.msk.bf16.mxu1 %vm546_vm3, %v20730_v44  ;;  %v4370_v35 = vsel %vm4172_vm8, %v4306_v59, 0.0 }
 0x58a   :  { %v4175_v53 = vadd.f32 %v4174_v54, %v4173_v33  ;;  %v4375_v47 = vsel %vm4172_vm8, %v4309_v62, 0.0 }
 0x58b   :  { %v4371_v34 = vsel %vm4172_vm8, %v4307_v28, 0.0  ;;  %v11444_v48 = vpop.f32.mrb[40].mxu1 }
 0x58c   :  { %v4177_v26 = vadd.f32 %v4176_v11, %v4175_v53  ;;  %v4372_v19 = vadd.f32 %v4371_v34, %v4370_v35  ;;  %v15317_v0 = vadd.f32 %v11444_v48, %v20739_v41  ;;  %v3869_v12 = vpop.f32.mrb[41].mxu1  ;;  %v20746_v53 = vld [vmem:[#allocation88_spill] sm:$0xff] }
 0x58d   :  { %v15323_v1 = vadd.f32 %v3869_v12, %v20740_v9  ;;  %v11445_v60 = vpop.f32.mrb[42].mxu1 }
 0x58e   :  { %v4374_v43 = vadd.f32 %v4373_v27, %v4372_v19  ;;  %v4179_v16 = vadd.f32 %v4178_v2, %v4177_v26  ;;  %v3872_v42 = vpop.f32.mrb[43].mxu1  ;;  %v15331_v46 = vadd.f32 %v11445_v60, %v20741_v20  ;;  %v4312_v45 = vmul.f32 %v15317_v0, %v15317_v0  ;;  %v20748_v20 = vld [vmem:[#allocation90_spill] sm:$0xff] }
 0x58f   :  { %v4180_v56 = vsel %vm4172_vm8, %v15323_v1, 0.0  ;;  %v4310_v14 = vmul.f32 %v15323_v1, %v15323_v1  ;;  %v15334_v17 = vadd.f32 %v3872_v42, %v20742_v39  ;;  %v4184_v44 = vsel %vm4172_vm8, %v15317_v0, 0.0 }
 0x590   :  { %v4181_v18 = vadd.f32 %v4180_v56, %v4179_v16  ;;  %v4376_v3 = vadd.f32 %v4375_v47, %v4374_v43  ;;  %12147 = vmatmul.mubr.msk.bf16.gmra.mrb[112].mxu1 %vm546_vm3, %v20692_v8  ;;  %v4313_v61 = vmul.f32 %v15331_v46, %v15331_v46  ;;  %v4186_v51 = vsel %vm4172_vm8, %v15331_v46, 0.0  ;;  %v20747_v16 = vld [vmem:[#allocation89_spill] sm:$0xff] }
 0x591   :  { %v4377_v55 = vsel %vm4172_vm8, %v4310_v14, 0.0  ;;  %v4182_v5 = vsel %vm4172_vm8, %v15334_v17, 0.0  ;;  %12150 = vmatprep.mubr.msk.bf16.mxu1 %vm546_vm3, %v20693_v58  ;;  %v4311_v50 = vmul.f32 %v15334_v17, %v15334_v17  ;;  %v4381_v25 = vsel %vm4172_vm8, %v4312_v45, 0.0 }
 0x592   :  { %v4378_v22 = vadd.f32 %v4377_v55, %v4376_v3  ;;  %v4183_v63 = vadd.f32 %v4182_v5, %v4181_v18  ;;  %v4383_v35 = vsel %vm4172_vm8, %v4313_v61, 0.0  ;;  %v20749_v5 = vld [vmem:[#allocation91_spill] sm:$0xff] }
 0x593   :  { %v11448_v8 = vpop.f32.mrb[44].mxu1  ;;  %v4379_v36 = vsel %vm4172_vm8, %v4311_v50, 0.0 }
 0x594   :  { %v4185_v30 = vadd.f32 %v4184_v44, %v4183_v63  ;;  %v15353_v58 = vadd.f32 %v11448_v8, %v20743_v32  ;;  %v3885_v49 = vpop.f32.mrb[45].mxu1  ;;  %v4380_v13 = vadd.f32 %v4379_v36, %v4378_v22  ;;  %v20750_v8 = vld [vmem:[#allocation92_spill] sm:$0xff] }
 0x595   :  { %v15358_v38 = vadd.f32 %v3885_v49, %v20744_v23  ;;  %v11449_v7 = vpop.f32.mrb[46].mxu1 }
 0x596   :  { %v4187_v59 = vadd.f32 %v4186_v51, %v4185_v30  ;;  %v15362_v40 = vadd.f32 %v11449_v7, %v20745_v15  ;;  %v3888_v33 = vpop.f32.mrb[47].mxu1  ;;  %v4382_v54 = vadd.f32 %v4381_v25, %v4380_v13  ;;  %v4316_v12 = vmul.f32 %v15353_v58, %v15353_v58 }
 0x597   :  { %v4188_v28 = vsel %vm4172_vm8, %v15358_v38, 0.0  ;;  %v4314_v62 = vmul.f32 %v15358_v38, %v15358_v38  ;;  %v15369_v11 = vadd.f32 %v3888_v33, %v20746_v53  ;;  %v4192_v2 = vsel %vm4172_vm8, %v15353_v58, 0.0 }
 0x598   :  { %v4189_v34 = vadd.f32 %v4188_v28, %v4187_v59  ;;  %12151 = vmatmul.mubr.msk.bf16.gmra.mrb[116].mxu1 %vm546_vm3, %v20731_v6  ;;  %v4384_v48 = vadd.f32 %v4383_v35, %v4382_v54  ;;  %v4317_v47 = vmul.f32 %v15362_v40, %v15362_v40  ;;  %v4389_v3 = vsel %vm4172_vm8, %v4316_v12, 0.0  ;;  %v20751_v28 = vld [vmem:[#allocation93_spill] sm:$0xff]  ;;  %v20753_v12 = vld [vmem:[#allocation95_spill] sm:$0xff] }
 0x599   :  { %v4385_v26 = vsel %vm4172_vm8, %v4314_v62, 0.0  ;;  %v4190_v19 = vsel %vm4172_vm8, %v15369_v11, 0.0  ;;  %v4315_v41 = vmul.f32 %v15369_v11, %v15369_v11  ;;  %12154 = vmatprep.mubr.msk.bf16.mxu1 %vm546_vm3, %v20732_v57  ;;  %v4194_v57 = vsel %vm4172_vm8, %v15362_v40, 0.0 }
 0x59a   :  { %v4191_v27 = vadd.f32 %v4190_v19, %v4189_v34  ;;  %v4386_v6 = vadd.f32 %v4385_v26, %v4384_v48  ;;  %v4391_v30 = vsel %vm4172_vm8, %v4317_v47, 0.0  ;;  %v20752_v34 = vld [vmem:[#allocation94_spill] sm:$0xff]  ;;  %v20754_v47 = vld [vmem:[#allocation96_spill] sm:$0xff] }
 0x59b   :  { %v4387_v9 = vsel %vm4172_vm8, %v4315_v41, 0.0  ;;  %v11452_v60 = vpop.f32.mrb[48].mxu1 }
 0x59c   :  { %v4193_v43 = vadd.f32 %v4192_v2, %v4191_v27  ;;  %v15389_v42 = vadd.f32 %v11452_v60, %v20747_v16  ;;  %v3901_v56 = vpop.f32.mrb[49].mxu1  ;;  %v4388_v14 = vadd.f32 %v4387_v9, %v4386_v6 }
 0x59d   :  { %v15394_v39 = vadd.f32 %v3901_v56, %v20748_v20  ;;  %v11453_v18 = vpop.f32.mrb[50].mxu1 }
 0x59e   :  { %v4195_v55 = vadd.f32 %v4194_v57, %v4193_v43  ;;  %v15398_v45 = vadd.f32 %v11453_v18, %v20749_v5  ;;  %v3904_v22 = vpop.f32.mrb[51].mxu1  ;;  %v4390_v63 = vadd.f32 %v4389_v3, %v4388_v14  ;;  %v4320_v23 = vmul.f32 %v15389_v42, %v15389_v42 }
 0x59f   :  { %v4196_v50 = vsel %vm4172_vm8, %v15394_v39, 0.0  ;;  %v4318_v44 = vmul.f32 %v15394_v39, %v15394_v39  ;;  %v15405_v61 = vadd.f32 %v3904_v22, %v20750_v8  ;;  %v4200_v25 = vsel %vm4172_vm8, %v15389_v42, 0.0  ;;  %v20755_v8 = vld [vmem:[#allocation98_spill] sm:$0xff] }
 0x5a0   :  { %v4197_v36 = vadd.f32 %v4196_v50, %v4195_v55  ;;  %12155 = vmatmul.mubr.msk.bf16.gmra.mrb[120].mxu1 %vm546_vm3, %v20696_v29  ;;  %v4392_v32 = vadd.f32 %v4391_v30, %v4390_v63  ;;  %v4321_v33 = vmul.f32 %v15398_v45, %v15398_v45  ;;  %v4397_v19 = vsel %vm4172_vm8, %v4320_v23, 0.0 }
 0x5a1   :  { %v4393_v49 = vsel %vm4172_vm8, %v4318_v44, 0.0  ;;  %v4198_v51 = vsel %vm4172_vm8, %v15405_v61, 0.0  ;;  %v4319_v13 = vmul.f32 %v15405_v61, %v15405_v61  ;;  %12158 = vmatprep.mubr.msk.bf16.mxu1 %vm546_vm3, %v20697_v10  ;;  %v4202_v10 = vsel %vm4172_vm8, %v15398_v45, 0.0 }
 0x5a2   :  { %v4199_v7 = vadd.f32 %v4198_v51, %v4197_v36  ;;  %v4394_v29 = vadd.f32 %v4393_v49, %v4392_v32  ;;  %v4399_v16 = vsel %vm4172_vm8, %v4321_v33, 0.0  ;;  %v20756_v51 = vld [vmem:[#allocation99_spill] sm:$0xff] }
 0x5a3   :  { %v4395_v59 = vsel %vm4172_vm8, %v4319_v13, 0.0  ;;  %v11456_v15 = vpop.f32.mrb[52].mxu1 }
 0x5a4   :  { %v4201_v54 = vadd.f32 %v4200_v25, %v4199_v7  ;;  %v15425_v62 = vadd.f32 %v11456_v15, %v20751_v28  ;;  %v3917_v53 = vpop.f32.mrb[53].mxu1  ;;  %v4396_v35 = vadd.f32 %v4395_v59, %v4394_v29  ;;  %v20757_v29 = vld [vmem:[#allocation100_spill] sm:$0xff] }
 0x5a5   :  { %v15430_v48 = vadd.f32 %v3917_v53, %v20752_v34  ;;  %v11457_v26 = vpop.f32.mrb[54].mxu1  ;;  %v20758_v53 = vld [vmem:[#allocation101_spill] sm:$0xff] }
 0x5a6   :  { %v4203_v41 = vadd.f32 %v4202_v10, %v4201_v54  ;;  %v15434_v27 = vadd.f32 %v11457_v26, %v20753_v12  ;;  %v3920_v2 = vpop.f32.mrb[55].mxu1  ;;  %v4398_v6 = vadd.f32 %v4397_v19, %v4396_v35  ;;  %v4324_v3 = vmul.f32 %v15425_v62, %v15425_v62 }
 0x5a7   :  { %v4204_v9 = vsel %vm4172_vm8, %v15430_v48, 0.0  ;;  %v4322_v60 = vmul.f32 %v15430_v48, %v15430_v48  ;;  %v15441_v43 = vadd.f32 %v3920_v2, %v20754_v47  ;;  %v4208_v5 = vsel %vm4172_vm8, %v15425_v62, 0.0 }
 0x5a8   :  { %v4205_v56 = vadd.f32 %v4204_v9, %v4203_v41  ;;  %12159 = vmatmul.mubr.msk.bf16.gmra.mrb[124].mxu1 %vm546_vm3, %v14968_v21  ;;  %v4400_v57 = vadd.f32 %v4399_v16, %v4398_v6  ;;  %v4325_v50 = vmul.f32 %v15434_v27, %v15434_v27  ;;  %v4210_v32 = vsel %vm4172_vm8, %v15434_v27, 0.0 }
 0x5a9   :  { %v4401_v14 = vsel %vm4172_vm8, %v4322_v60, 0.0  ;;  %v4206_v20 = vsel %vm4172_vm8, %v15441_v43, 0.0  ;;  %v4323_v18 = vmul.f32 %v15441_v43, %v15441_v43  ;;  %v4405_v7 = vsel %vm4172_vm8, %v4324_v3, 0.0 }
 0x5aa   :  { %v4207_v55 = vadd.f32 %v4206_v20, %v4205_v56  ;;  %v4402_v22 = vadd.f32 %v4401_v14, %v4400_v57  ;;  %v4407_v35 = vsel %vm4172_vm8, %v4325_v50, 0.0  ;;  %v20759_v14 = vld [vmem:[#allocation102_spill] sm:$0xff] }
 0x5ab   :  { %v4403_v63 = vsel %vm4172_vm8, %v4323_v18, 0.0  ;;  %v11460_v21 = vpop.f32.mrb[56].mxu1 }
 0x5ac   :  { %v4209_v44 = vadd.f32 %v4208_v5, %v4207_v55  ;;  %v15459_v30 = vadd.f32 %v11460_v21, %v20755_v8  ;;  %v3933_v36 = vpop.f32.mrb[57].mxu1  ;;  %v4404_v49 = vadd.f32 %v4403_v63, %v4402_v22  ;;  %v20760_v5 = vld [vmem:[#allocation103_spill] sm:$0xff] }
 0x5ad   :  { %v15464_v13 = vadd.f32 %v3933_v36, %v20756_v51  ;;  %v11461_v23 = vpop.f32.mrb[58].mxu1 }
 0x5ae   :  { %v4211_v25 = vadd.f32 %v4210_v32, %v4209_v44  ;;  %v15468_v59 = vadd.f32 %v11461_v23, %v20757_v29  ;;  %v3936_v15 = vpop.f32.mrb[59].mxu1  ;;  %v4406_v33 = vadd.f32 %v4405_v7, %v4404_v49  ;;  %v4328_v2 = vmul.f32 %v15459_v30, %v15459_v30  ;;  %v20761_v44 = vld [vmem:[#allocation104_spill] sm:$0xff]  ;;  %v20762_v23 = vld [vmem:[#allocation105_spill] sm:$0xff] }
 0x5af   :  { %v4212_v54 = vsel %vm4172_vm8, %v15464_v13, 0.0  ;;  %v4326_v28 = vmul.f32 %v15464_v13, %v15464_v13  ;;  %v15475_v10 = vadd.f32 %v3936_v15, %v20758_v53  ;;  %v4216_v9 = vsel %vm4172_vm8, %v15459_v30, 0.0 }
 0x5b0   :  { %v4213_v34 = vadd.f32 %v4212_v54, %v4211_v25  ;;  %v4408_v26 = vadd.f32 %v4407_v35, %v4406_v33  ;;  %v4329_v56 = vmul.f32 %v15468_v59, %v15468_v59  ;;  %v4218_v3 = vsel %vm4172_vm8, %v15468_v59, 0.0 }
 0x5b1   :  { %v4409_v19 = vsel %vm4172_vm8, %v4326_v28, 0.0  ;;  %v4214_v41 = vsel %vm4172_vm8, %v15475_v10, 0.0  ;;  %v4327_v12 = vmul.f32 %v15475_v10, %v15475_v10  ;;  %v4413_v21 = vsel %vm4172_vm8, %v4328_v2, 0.0 }
 0x5b2   :  { %v4215_v6 = vadd.f32 %v4214_v41, %v4213_v34  ;;  %v4410_v60 = vadd.f32 %v4409_v19, %v4408_v26  ;;  %v4415_v25 = vsel %vm4172_vm8, %v4329_v56, 0.0 }
 0x5b3   :  { %v4411_v47 = vsel %vm4172_vm8, %v4327_v12, 0.0  ;;  %v11464_v16 = vpop.f32.mrb[60].mxu1 }
 0x5b4   :  { %v4217_v57 = vadd.f32 %v4216_v9, %v4215_v6  ;;  %v15491_v20 = vadd.f32 %v11464_v16, %v20759_v14  ;;  %v3949_v18 = vpop.f32.mrb[61].mxu1  ;;  %v4412_v55 = vadd.f32 %v4411_v47, %v4410_v60 }
 0x5b5   :  { %v15496_v22 = vadd.f32 %v3949_v18, %v20760_v5  ;;  %v11465_v63 = vpop.f32.mrb[62].mxu1 }
 0x5b6   :  { %v4219_v50 = vadd.f32 %v4218_v3, %v4217_v57  ;;  %v15500_v8 = vadd.f32 %v11465_v63, %v20761_v44  ;;  %v3952_v36 = vpop.f32.mrb[63].mxu1  ;;  %v4414_v32 = vadd.f32 %v4413_v21, %v4412_v55  ;;  %v4332_v53 = vmul.f32 %v15491_v20, %v15491_v20 }
 0x5b7   :  { %v4220_v49 = vsel %vm4172_vm8, %v15496_v22, 0.0  ;;  %v4330_v51 = vmul.f32 %v15496_v22, %v15496_v22  ;;  %v15507_v7 = vadd.f32 %v3952_v36, %v20762_v23  ;;  %v4224_v34 = vsel %vm4172_vm8, %v15491_v20, 0.0 }
 0x5b8   :  { %v4221_v29 = vadd.f32 %v4220_v49, %v4219_v50  ;;  %v4416_v15 = vadd.f32 %v4415_v25, %v4414_v32  ;;  %v4333_v12 = vmul.f32 %v15500_v8, %v15500_v8  ;;  %v4226_v9 = vsel %vm4172_vm8, %v15500_v8, 0.0 }
 0x5b9   :  { %v4417_v33 = vsel %vm4172_vm8, %v4330_v51, 0.0  ;;  %v4222_v54 = vsel %vm4172_vm8, %v15507_v7, 0.0  ;;  %v4331_v28 = vmul.f32 %v15507_v7, %v15507_v7  ;;  %v4421_v16 = vsel %vm4172_vm8, %v4332_v53, 0.0 }
 0x5ba   :  { %v4223_v35 = vadd.f32 %v4222_v54, %v4221_v29  ;;  %v4418_v26 = vadd.f32 %v4417_v33, %v4416_v15  ;;  %v4423_v55 = vsel %vm4172_vm8, %v4333_v12, 0.0 }
 0x5bb   :  { %v4419_v19 = vsel %vm4172_vm8, %v4331_v28, 0.0  ;;  %v15520_v41 = vpop.f32.mrb[0].mxu1 }
 0x5bc   :  { %v4225_v2 = vadd.f32 %v4224_v34, %v4223_v35  ;;  %v15524_v6 = vpop.f32.mrb[1].mxu1  ;;  %v4420_v60 = vadd.f32 %v4419_v19, %v4418_v26  ;;  %v4336_v44 = vmul.f32 %v15520_v41, %v15520_v41  ;;  %v4232_v49 = vsel %vm4172_vm8, %v15520_v41, 0.0 }
 0x5bd   :  { %v15528_v47 = vpop.f32.mrb[2].mxu1  ;;  %v4334_v57 = vmul.f32 %v15524_v6, %v15524_v6  ;;  %v4228_v3 = vsel %vm4172_vm8, %v15524_v6, 0.0 }
 0x5be   :  { %v4227_v56 = vadd.f32 %v4226_v9, %v4225_v2  ;;  %v15533_v14 = vpop.f32.mrb[3].mxu1  ;;  %v4422_v18 = vadd.f32 %v4421_v16, %v4420_v60  ;;  %v4337_v25 = vmul.f32 %v15528_v47, %v15528_v47  ;;  %v4234_v54 = vsel %vm4172_vm8, %v15528_v47, 0.0 }
 0x5bf   :  { %v4335_v63 = vmul.f32 %v15533_v14, %v15533_v14  ;;  %v4230_v50 = vsel %vm4172_vm8, %v15533_v14, 0.0  ;;  %v4425_v36 = vsel %vm4172_vm8, %v4334_v57, 0.0  ;;  %v4429_v35 = vsel %vm4172_vm8, %v4336_v44, 0.0 }
 0x5c0   :  { %v4229_v5 = vadd.f32 %v4228_v3, %v4227_v56  ;;  %v4424_v21 = vadd.f32 %v4423_v55, %v4422_v18  ;;  %v4431_v9 = vsel %vm4172_vm8, %v4337_v25, 0.0 }
 0x5c1   :  { %v4427_v15 = vsel %vm4172_vm8, %v4335_v63, 0.0 }
 0x5c2   :  { %v4231_v32 = vadd.f32 %v4230_v50, %v4229_v5  ;;  %v4426_v51 = vadd.f32 %v4425_v36, %v4424_v21 }
 0x5c3   :  { %v15547_v23 = vpop.f32.mrb[4].mxu1 }
 0x5c4   :  { %v4233_v29 = vadd.f32 %v4232_v49, %v4231_v32  ;;  %v15552_v33 = vpop.f32.mrb[5].mxu1  ;;  %v4428_v28 = vadd.f32 %v4427_v15, %v4426_v51  ;;  %v4340_v18 = vmul.f32 %v15547_v23, %v15547_v23  ;;  %v4240_v5 = vsel %vm4172_vm8, %v15547_v23, 0.0 }
 0x5c5   :  { %v15556_v53 = vpop.f32.mrb[6].mxu1  ;;  %v4338_v26 = vmul.f32 %v15552_v33, %v15552_v33  ;;  %v4236_v2 = vsel %vm4172_vm8, %v15552_v33, 0.0 }
 0x5c6   :  { %v4235_v34 = vadd.f32 %v4234_v54, %v4233_v29  ;;  %v15561_v19 = vpop.f32.mrb[7].mxu1  ;;  %v4430_v12 = vadd.f32 %v4429_v35, %v4428_v28  ;;  %v4341_v50 = vmul.f32 %v15556_v53, %v15556_v53  ;;  %v4242_v49 = vsel %vm4172_vm8, %v15556_v53, 0.0 }
 0x5c7   :  { %v4339_v16 = vmul.f32 %v15561_v19, %v15561_v19  ;;  %v4238_v57 = vsel %vm4172_vm8, %v15561_v19, 0.0  ;;  %v4433_v3 = vsel %vm4172_vm8, %v4338_v26, 0.0  ;;  %v4437_v29 = vsel %vm4172_vm8, %v4340_v18, 0.0 }
 0x5c8   :  { %v4237_v60 = vadd.f32 %v4236_v2, %v4235_v34  ;;  %v4432_v56 = vadd.f32 %v4431_v9, %v4430_v12  ;;  %v4439_v26 = vsel %vm4172_vm8, %v4341_v50, 0.0 }
 0x5c9   :  { %v4435_v36 = vsel %vm4172_vm8, %v4339_v16, 0.0 }
 0x5ca   :  { %v4239_v55 = vadd.f32 %v4238_v57, %v4237_v60  ;;  %v4434_v63 = vadd.f32 %v4433_v3, %v4432_v56 }
 0x5cb   :  { %v15575_v21 = vpop.f32.mrb[8].mxu1 }
 0x5cc   :  { %v4241_v44 = vadd.f32 %v4240_v5, %v4239_v55  ;;  %v15580_v32 = vpop.f32.mrb[9].mxu1  ;;  %v4436_v51 = vadd.f32 %v4435_v36, %v4434_v63  ;;  %v4344_v16 = vmul.f32 %v15575_v21, %v15575_v21  ;;  %v4248_v18 = vsel %vm4172_vm8, %v15575_v21, 0.0 }
 0x5cd   :  { %v15584_v25 = vpop.f32.mrb[10].mxu1  ;;  %v4342_v54 = vmul.f32 %v15580_v32, %v15580_v32  ;;  %v4244_v34 = vsel %vm4172_vm8, %v15580_v32, 0.0 }
 0x5ce   :  { %v4243_v15 = vadd.f32 %v4242_v49, %v4241_v44  ;;  %v15589_v28 = vpop.f32.mrb[11].mxu1  ;;  %v4438_v35 = vadd.f32 %v4437_v29, %v4436_v51  ;;  %v4345_v5 = vmul.f32 %v15584_v25, %v15584_v25  ;;  %v4250_v36 = vsel %vm4172_vm8, %v15584_v25, 0.0 }
 0x5cf   :  { %v4343_v2 = vmul.f32 %v15589_v28, %v15589_v28  ;;  %v4246_v60 = vsel %vm4172_vm8, %v15589_v28, 0.0  ;;  %v4441_v56 = vsel %vm4172_vm8, %v4342_v54, 0.0  ;;  %v4445_v29 = vsel %vm4172_vm8, %v4344_v16, 0.0 }
 0x5d0   :  { %v4245_v12 = vadd.f32 %v4244_v34, %v4243_v15  ;;  %v4440_v9 = vadd.f32 %v4439_v26, %v4438_v35 }
 0x5d1   :  { %v4443_v50 = vsel %vm4172_vm8, %v4343_v2, 0.0 }
 0x5d2   :  { %v4247_v57 = vadd.f32 %v4246_v60, %v4245_v12  ;;  %v4442_v3 = vadd.f32 %v4441_v56, %v4440_v9  ;;  %v4447_v12 = vsel %vm4172_vm8, %v4345_v5, 0.0 }
 0x5d3   :  { %v15603_v55 = vpop.f32.mrb[12].mxu1 }
 0x5d4   :  { %20763 = vst [vmem:[#allocation66_spill] sm:$0xff] %v15603_v55  ;;  %v4249_v63 = vadd.f32 %v4248_v18, %v4247_v57  ;;  %v15608_v44 = vpop.f32.mrb[13].mxu1  ;;  %v4444_v49 = vadd.f32 %v4443_v50, %v4442_v3  ;;  %v4348_v56 = vmul.f32 %v15603_v55, %v15603_v55  ;;  %v4256_v3 = vsel %vm4172_vm8, %v15603_v55, 0.0 }
 0x5d5   :  { %v15612_v51 = vpop.f32.mrb[14].mxu1  ;;  %v4346_v54 = vmul.f32 %v15608_v44, %v15608_v44  ;;  %v4252_v26 = vsel %vm4172_vm8, %v15608_v44, 0.0 }
 0x5d6   :  { %20764 = vst [vmem:[#allocation77_spill] sm:$0xff] %v15612_v51  ;;  %v4251_v15 = vadd.f32 %v4250_v36, %v4249_v63  ;;  %v15617_v35 = vpop.f32.mrb[15].mxu1  ;;  %v4446_v34 = vadd.f32 %v4445_v29, %v4444_v49  ;;  %v4349_v5 = vmul.f32 %v15612_v51, %v15612_v51 }
 0x5d7   :  { %v4347_v9 = vmul.f32 %v15617_v35, %v15617_v35  ;;  %v4254_v16 = vsel %vm4172_vm8, %v15617_v35, 0.0  ;;  %v4449_v57 = vsel %vm4172_vm8, %v4346_v54, 0.0 }
 0x5d8   :  { %v4253_v2 = vadd.f32 %v4252_v26, %v4251_v15  ;;  %v4448_v60 = vadd.f32 %v4447_v12, %v4446_v34  ;;  %v4258_v15 = vsel %vm4172_vm8, %v15612_v51, 0.0  ;;  %v4453_v26 = vsel %vm4172_vm8, %v4348_v56, 0.0 }
 0x5d9   :  { %v4451_v49 = vsel %vm4172_vm8, %v4347_v9, 0.0 }
 0x5da   :  { %v4255_v18 = vadd.f32 %v4254_v16, %v4253_v2  ;;  %v4450_v63 = vadd.f32 %v4449_v57, %v4448_v60  ;;  %v4455_v57 = vsel %vm4172_vm8, %v4349_v5, 0.0 }
 0x5db   :  { %v15631_v50 = vpop.f32.mrb[16].mxu1 }
 0x5dc   :  { %20765 = vst [vmem:[#allocation44_spill] sm:$0xff] %v15631_v50  ;;  %v4257_v36 = vadd.f32 %v4256_v3, %v4255_v18  ;;  %v15636_v29 = vpop.f32.mrb[17].mxu1  ;;  %v4452_v34 = vadd.f32 %v4451_v49, %v4450_v63 }
 0x5dd   :  { %20766 = vst [vmem:[#allocation43_spill] sm:$0xff] %v15636_v29  ;;  %v15640_v54 = vpop.f32.mrb[18].mxu1  ;;  %v4350_v2 = vmul.f32 %v15636_v29, %v15636_v29  ;;  %v4260_v9 = vsel %vm4172_vm8, %v15636_v29, 0.0 }
 0x5de   :  { %20767 = vst [vmem:[#allocation45_spill] sm:$0xff] %v15640_v54  ;;  %v4259_v12 = vadd.f32 %v4258_v15, %v4257_v36  ;;  %v15645_v60 = vpop.f32.mrb[19].mxu1  ;;  %v4454_v16 = vadd.f32 %v4453_v26, %v4452_v34  ;;  %v4352_v36 = vmul.f32 %v15631_v50, %v15631_v50  ;;  %v4264_v34 = vsel %vm4172_vm8, %v15631_v50, 0.0 }
 0x5df   :  { %20768 = vst [vmem:[#allocation46_spill] sm:$0xff] %v15645_v60  ;;  %v4351_v3 = vmul.f32 %v15645_v60, %v15645_v60  ;;  %v4262_v56 = vsel %vm4172_vm8, %v15645_v60, 0.0  ;;  %v4457_v49 = vsel %vm4172_vm8, %v4350_v2, 0.0  ;;  %v4353_v5 = vmul.f32 %v15640_v54, %v15640_v54 }
 0x5e0   :  { %v4261_v18 = vadd.f32 %v4260_v9, %v4259_v12  ;;  %v4456_v63 = vadd.f32 %v4455_v57, %v4454_v16  ;;  %v4266_v57 = vsel %vm4172_vm8, %v15640_v54, 0.0 }
 0x5e1   :  { %v4459_v16 = vsel %vm4172_vm8, %v4351_v3, 0.0 }
 0x5e2   :  { %v4263_v15 = vadd.f32 %v4262_v56, %v4261_v18  ;;  %v4458_v26 = vadd.f32 %v4457_v49, %v4456_v63  ;;  %v4461_v18 = vsel %vm4172_vm8, %v4352_v36, 0.0 }
 0x5e3   :  { %v15659_v4 = vpop.f32.mrb[20].mxu1 }
 0x5e4   :  { %20769 = vst [vmem:[#allocation47_spill] sm:$0xff] %v15659_v4  ;;  %v4265_v12 = vadd.f32 %v4264_v34, %v4263_v15  ;;  %v15664_v9 = vpop.f32.mrb[21].mxu1  ;;  %v4460_v60 = vadd.f32 %v4459_v16, %v4458_v26  ;;  %v4463_v15 = vsel %vm4172_vm8, %v4353_v5, 0.0 }
 0x5e5   :  { %20770 = vst [vmem:[#allocation48_spill] sm:$0xff] %v15664_v9  ;;  %v15668_v2 = vpop.f32.mrb[22].mxu1  ;;  %v4354_v63 = vmul.f32 %v15664_v9, %v15664_v9  ;;  %v4268_v3 = vsel %vm4172_vm8, %v15664_v9, 0.0 }
 0x5e6   :  { %20771 = vst [vmem:[#allocation49_spill] sm:$0xff] %v15668_v2  ;;  %v4267_v56 = vadd.f32 %v4266_v57, %v4265_v12  ;;  %v15673_v49 = vpop.f32.mrb[23].mxu1  ;;  %v4462_v50 = vadd.f32 %v4461_v18, %v4460_v60  ;;  %v4356_v12 = vmul.f32 %v15659_v4, %v15659_v4  ;;  %v4272_v60 = vsel %vm4172_vm8, %v15659_v4, 0.0 }
 0x5e7   :  { %20772 = vst [vmem:[#allocation50_spill] sm:$0xff] %v15673_v49  ;;  %v4355_v26 = vmul.f32 %v15673_v49, %v15673_v49  ;;  %v4270_v36 = vsel %vm4172_vm8, %v15673_v49, 0.0  ;;  %v4465_v57 = vsel %vm4172_vm8, %v4354_v63, 0.0  ;;  %v4357_v5 = vmul.f32 %v15668_v2, %v15668_v2 }
 0x5e8   :  { %v4269_v34 = vadd.f32 %v4268_v3, %v4267_v56  ;;  %v4464_v16 = vadd.f32 %v4463_v15, %v4462_v50  ;;  %v4274_v15 = vsel %vm4172_vm8, %v15668_v2, 0.0 }
 0x5e9   :  { %v4467_v50 = vsel %vm4172_vm8, %v4355_v26, 0.0  ;;  %v4471_v26 = vsel %vm4172_vm8, %v4357_v5, 0.0 }
 0x5ea   :  { %v4271_v54 = vadd.f32 %v4270_v36, %v4269_v34  ;;  %v4466_v18 = vadd.f32 %v4465_v57, %v4464_v16  ;;  %v4469_v34 = vsel %vm4172_vm8, %v4356_v12, 0.0 }
 0x5eb   :  { %v15687_v9 = vpop.f32.mrb[24].mxu1 }
 0x5ec   :  { %20773 = vst [vmem:[#allocation51_spill] sm:$0xff] %v15687_v9  ;;  %v4273_v56 = vadd.f32 %v4272_v60, %v4271_v54  ;;  %v15692_v3 = vpop.f32.mrb[25].mxu1  ;;  %v4468_v49 = vadd.f32 %v4467_v50, %v4466_v18  ;;  %v4280_v5 = vsel %vm4172_vm8, %v15687_v9, 0.0 }
 0x5ed   :  { %20774 = vst [vmem:[#allocation54_spill] sm:$0xff] %v15692_v3  ;;  %v15696_v63 = vpop.f32.mrb[26].mxu1  ;;  %v4358_v16 = vmul.f32 %v15692_v3, %v15692_v3  ;;  %v4276_v54 = vsel %vm4172_vm8, %v15692_v3, 0.0 }
 0x5ee   :  { %20775 = vst [vmem:[#allocation79_spill] sm:$0xff] %v15696_v63  ;;  %v4275_v36 = vadd.f32 %v4274_v15, %v4273_v56  ;;  %v15701_v57 = vpop.f32.mrb[27].mxu1  ;;  %v4470_v4 = vadd.f32 %v4469_v34, %v4468_v49  ;;  %v4360_v56 = vmul.f32 %v15687_v9, %v15687_v9  ;;  %v9954_v49 = vld [vmem:[%s20069_s7 + $0x4] sm:$0xf] }
 0x5ef   :  { %20776 = vst [vmem:[#allocation58_spill] sm:$0xff] %v15701_v57  ;;  %v4359_v18 = vmul.f32 %v15701_v57, %v15701_v57  ;;  %v4278_v12 = vsel %vm4172_vm8, %v15701_v57, 0.0  ;;  %v4473_v15 = vsel %vm4172_vm8, %v4358_v16, 0.0  ;;  %13201 = vmatprep.subr.msk.bf16.mxu0 %vm5056_vm9, %v9954_v49 }
 0x5f0   :  { %v4277_v60 = vadd.f32 %v4276_v54, %v4275_v36  ;;  %v4472_v50 = vadd.f32 %v4471_v26, %v4470_v4  ;;  %v4361_v4 = vmul.f32 %v15696_v63, %v15696_v63 }
 0x5f1   :  { %v4475_v16 = vsel %vm4172_vm8, %v4359_v18, 0.0 }
 0x5f2   :  { %v4279_v2 = vadd.f32 %v4278_v12, %v4277_v60  ;;  %v4474_v34 = vadd.f32 %v4473_v15, %v4472_v50  ;;  %v4282_v60 = vsel %vm4172_vm8, %v15696_v63, 0.0  ;;  %v4477_v50 = vsel %vm4172_vm8, %v4360_v56, 0.0 }
 0x5f3   :  { %v15718_v36 = vpop.f32.mrb[28].mxu1  ;;  %v4479_v18 = vsel %vm4172_vm8, %v4361_v4, 0.0 }
 0x5f4   :  { %20777 = vst [vmem:[#allocation59_spill] sm:$0xff] %v15718_v36  ;;  %v4281_v54 = vadd.f32 %v4280_v5, %v4279_v2  ;;  %v15724_v26 = vpop.f32.mrb[29].mxu1  ;;  %v4476_v12 = vadd.f32 %v4475_v16, %v4474_v34 }
 0x5f5   :  { %20778 = vst [vmem:[#allocation83_spill] sm:$0xff] %v15724_v26  ;;  %v15728_v57 = vpop.f32.mrb[30].mxu1  ;;  %v4362_v9 = vmul.f32 %v15724_v26, %v15724_v26  ;;  %v4284_v2 = vsel %vm4172_vm8, %v15724_v26, 0.0 }
 0x5f6   :  { %20779 = vst [vmem:[#allocation12_spill] sm:$0xff] %v15728_v57  ;;  %v4283_v15 = vadd.f32 %v4282_v60, %v4281_v54  ;;  %v15733_v3 = vpop.f32.mrb[31].mxu1  ;;  %v4478_v29 = vadd.f32 %v4477_v50, %v4476_v12  ;;  %v4364_v54 = vmul.f32 %v15718_v36, %v15718_v36  ;;  %v4288_v12 = vsel %vm4172_vm8, %v15718_v36, 0.0 }
 0x5f7   :  { %20780 = vst [vmem:[#allocation78_spill] sm:$0xff] %v15733_v3  ;;  %v4363_v34 = vmul.f32 %v15733_v3, %v15733_v3  ;;  %v4286_v56 = vsel %vm4172_vm8, %v15733_v3, 0.0  ;;  %v4481_v60 = vsel %vm4172_vm8, %v4362_v9, 0.0  ;;  %v4365_v4 = vmul.f32 %v15728_v57, %v15728_v57 }
 0x5f8   :  { %v4285_v5 = vadd.f32 %v4284_v2, %v4283_v15  ;;  %v4480_v16 = vadd.f32 %v4479_v18, %v4478_v29  ;;  %v4290_v18 = vsel %vm4172_vm8, %v15728_v57, 0.0 }
 0x5f9   :  { %v4483_v29 = vsel %vm4172_vm8, %v4363_v34, 0.0  ;;  %v4487_v34 = vsel %vm4172_vm8, %v4365_v4, 0.0 }
 0x5fa   :  { %v4287_v63 = vadd.f32 %v4286_v56, %v4285_v5  ;;  %v4482_v50 = vadd.f32 %v4481_v60, %v4480_v16  ;;  %v4485_v5 = vsel %vm4172_vm8, %v4364_v54, 0.0 }
 0x5fb   :  { %v15747_v26 = vpop.f32.mrb[32].mxu1 }
 0x5fc   :  { %20781 = vst [vmem:[#allocation14_spill] sm:$0xff] %v15747_v26  ;;  %v4289_v15 = vadd.f32 %v4288_v12, %v4287_v63  ;;  %v15752_v2 = vpop.f32.mrb[33].mxu1  ;;  %v4484_v3 = vadd.f32 %v4483_v29, %v4482_v50  ;;  %v5058_v29 = vsel %vm5056_vm9, %v9954_v49, 0  ;;  %v4296_v49 = vsel %vm4172_vm8, %v15747_v26, 0.0 }
 0x5fd   :  { %20782 = vst [vmem:[#allocation15_spill] sm:$0xff] %v15752_v2  ;;  %v15756_v9 = vpop.f32.mrb[34].mxu1  ;;  %v4366_v16 = vmul.f32 %v15752_v2, %v15752_v2  ;;  %v4292_v63 = vsel %vm4172_vm8, %v15752_v2, 0.0  ;;  %11503 = vmatpush3.bf16.msra.mxu0 %v5058_v29 }
 0x5fe   :  { %v4291_v56 = vadd.f32 %v4290_v18, %v4289_v15  ;;  %v15761_v60 = vpop.f32.mrb[35].mxu1  ;;  %v4486_v36 = vadd.f32 %v4485_v5, %v4484_v3  ;;  %v15774_v3 = vld [vmem:[%s20069_s7] sm:$0xf]  ;;  %v4368_v15 = vmul.f32 %v15747_v26, %v15747_v26 }
 0x5ff   :  { %v4367_v50 = vmul.f32 %v15761_v60, %v15761_v60  ;;  %v4294_v54 = vsel %vm4172_vm8, %v15761_v60, 0.0  ;;  %20783 = vst [vmem:[#allocation19_spill] sm:$0xff] %v15774_v3  ;;  %v4489_v4 = vsel %vm4172_vm8, %v4366_v16, 0.0  ;;  %13202 = vmatprep.subr.msk.bf16.mxu0 %vm5056_vm9, %v15774_v3  ;;  %v4298_v16 = vsel %vm4172_vm8, %v15756_v9, 0.0 }
 0x600   :  { %v4293_v12 = vadd.f32 %v4292_v63, %v4291_v56  ;;  %v4488_v57 = vadd.f32 %v4487_v34, %v4486_v36  ;;  %v4369_v56 = vmul.f32 %v15756_v9, %v15756_v9  ;;  %v4493_v3 = vsel %vm4172_vm8, %v4368_v15, 0.0 }
 0x601   :  { %v4491_v34 = vsel %vm4172_vm8, %v4367_v50, 0.0 }
 0x602   :  { %v4295_v18 = vadd.f32 %v4294_v54, %v4293_v12  ;;  %v4490_v36 = vadd.f32 %v4489_v4, %v4488_v57 }
 0x603   :  { %v15783_v5 = vpop.f32.mrb[64].mxu1 }
 0x604   :  { %20784 = vst [vmem:[#allocation21_spill] sm:$0xff] %v15783_v5  ;;  %v4297_v63 = vadd.f32 %v4296_v49, %v4295_v18  ;;  %v15788_v29 = vpop.f32.mrb[65].mxu1  ;;  %v4492_v12 = vadd.f32 %v4491_v34, %v4490_v36  ;;  %v4495_v5 = vsel %vm4172_vm8, %v4369_v56, 0.0 }
 0x605   :  { %20785 = vst [vmem:[#allocation22_spill] sm:$0xff] %v15788_v29  ;;  %v15792_v54 = vpop.f32.mrb[66].mxu1 }
 0x606   :  { %20786 = vst [vmem:[#allocation23_spill] sm:$0xff] %v15792_v54  ;;  %v4299_v26 = vadd.f32 %v4298_v16, %v4297_v63  ;;  %v15795_v57 = vpop.f32.mrb[67].mxu1  ;;  %v4494_v4 = vadd.f32 %v4493_v3, %v4492_v12 }
 0x607   :  { %20787 = vst [vmem:[#allocation24_spill] sm:$0xff] %v15795_v57 }
 0x608   :  { %v4300_v2 = vrot.slane %v4299_v26, 4  ;;  %v4496_v18 = vadd.f32 %v4495_v5, %v4494_v4 }
 0x60a   :  { %v4301_v49 = vadd.f32 %v4300_v2, %v4299_v26  ;;  %v4497_v50 = vrot.slane %v4496_v18, 4 }
 0x60b   :  { %v15798_v51 = vpop.f32.mrb[68].mxu1 }
 0x60c   :  { %20788 = vst [vmem:[#allocation25_spill] sm:$0xff] %v15798_v51  ;;  %v4302_v29 = vrot.slane %v4301_v49, 2  ;;  %v15800_v55 = vpop.f32.mrb[69].mxu1  ;;  %v4498_v36 = vadd.f32 %v4497_v50, %v4496_v18  ;;  %v20830_v51 = vld [vmem:[#allocation58_spill] sm:$0xff] }
 0x60d   :  { %20789 = vst [vmem:[#allocation34_spill] sm:$0xff] %v15800_v55  ;;  %v15802_v34 = vpop.f32.mrb[70].mxu1 }
 0x60e   :  { %20790 = vst [vmem:[#allocation38_spill] sm:$0xff] %v15802_v34  ;;  %v4303_v54 = vadd.f32 %v4302_v29, %v4301_v49  ;;  %v15804_v15 = vpop.f32.mrb[71].mxu1  ;;  %v4499_v63 = vrot.slane %v4498_v36, 2 }
 0x60f   :  { %20791 = vst [vmem:[#allocation61_spill] sm:$0xff] %v15804_v15 }
 0x610   :  { %v4304_v16 = vrot.slane %v4303_v54, 1  ;;  %v4500_v3 = vadd.f32 %v4499_v63, %v4498_v36 }
 0x612   :  { %v4305_v12 = vadd.f32 %v4304_v16, %v4303_v54  ;;  %v4501_v56 = vrot.slane %v4500_v3, 1 }
 0x613   :  { %v15806_v57 = vpop.f32.mrb[72].mxu1 }
 0x614   :  { %20792 = vst [vmem:[#allocation67_spill] sm:$0xff] %v15806_v57  ;;  %v4503_v26 = vmul.f32 0.001953125, %v4305_v12  ;;  %v15808_v2 = vpop.f32.mrb[73].mxu1  ;;  %v4502_v5 = vadd.f32 %v4501_v56, %v4500_v3 }
 0x615   :  { %20793 = vst [vmem:[#allocation75_spill] sm:$0xff] %v15808_v2  ;;  %v15810_v4 = vpop.f32.mrb[74].mxu1 }
 0x616   :  { %20794 = vst [vmem:[#allocation76_spill] sm:$0xff] %v15810_v4  ;;  %v4505_v55 = vmul.f32 %v4503_v26, %v4503_v26  ;;  %v15812_v18 = vpop.f32.mrb[75].mxu1  ;;  %v4504_v50 = vmul.f32 0.001953125, %v4502_v5 }
 0x617   :  { %20795 = vst [vmem:[#allocation42_spill] sm:$0xff] %v15812_v18 }
 0x618   :  { %v4506_v29 = vsub.f32 %v4504_v50, %v4505_v55  ;;  %v4508_v55 = vld [vmem:[%s20067_s5] sm:$0x1] }
 0x61a   :  { %v4507_v49 = vmax.f32 %v4506_v29, 0.0  ;;  %v4512_v29 = vld [vmem:[%s20068_s6] sm:$0x1] }
 0x61b   :  { %v15814_v15 = vpop.f32.mrb[76].mxu1 }
 0x61c   :  { %20796 = vst [vmem:[#allocation97_spill] sm:$0xff] %v15814_v15  ;;  %v15816_v34 = vpop.f32.mrb[77].mxu1  ;;  %v4509_v54 = vadd.f32 1e-05, %v4507_v49 }
 0x61d   :  { %20797 = vst [vmem:[#allocation81_spill] sm:$0xff] %v15816_v34  ;;  %v15818_v36 = vpop.f32.mrb[78].mxu1 }
 0x61e   :  { %20798 = vst [vmem:[#allocation82_spill] sm:$0xff] %v15818_v36  ;;  %v15820_v63 = vpop.f32.mrb[79].mxu1  ;;  %13218 = vrsqrt.f32 %v4509_v54 }
 0x61f   :  { %20799 = vst [vmem:[#allocation26_spill] sm:$0xff] %v15820_v63 }
 0x623   :  { %v15822_v16 = vpop.f32.mrb[80].mxu1 }
 0x624   :  { %20800 = vst [vmem:[#allocation27_spill] sm:$0xff] %v15822_v16  ;;  %v15824_v3 = vpop.f32.mrb[81].mxu1  ;;  %v20805_v16 = vld [vmem:[#allocation7_spill] sm:$0xff] }
 0x625   :  { %20801 = vst [vmem:[#allocation29_spill] sm:$0xff] %v15824_v3  ;;  %v15826_v12 = vpop.f32.mrb[82].mxu1 }
 0x626   :  { %20802 = vst [vmem:[#allocation30_spill] sm:$0xff] %v15826_v12  ;;  %v15828_v56 = vpop.f32.mrb[83].mxu1 }
 0x627   :  { %20803 = vst [vmem:[#allocation39_spill] sm:$0xff] %v15828_v56 }
 0x628   :  { %v13219_v5 = vpop.eup %13218 }
 0x629   :  { %v4511_v50 = vmul.f32 %v13219_v5, %v4508_v55 }
 0x62b   :  { %v15836_v49 = vpop.f32.mrb[84].mxu1  ;;  %v4513_v54 = vmul.f32 %v4511_v50, %v4503_v26  ;;  %v15839_v63 = vrot.slane %v4511_v50, %v20805_v16 }
 0x62c   :  { %20804 = vst [vmem:[#allocation40_spill] sm:$0xff] %v15836_v49  ;;  %v15841_v3 = vpop.f32.mrb[85].mxu1  ;;  %v20820_v49 = vld [vmem:[#allocation48_spill] sm:$0xff] }
 0x62d   :  { %20806 = vst [vmem:[#allocation56_spill] sm:$0xff] %v15841_v3  ;;  %v15843_v12 = vpop.f32.mrb[86].mxu1  ;;  %v4514_v56 = vsub.f32 %v4512_v29, %v4513_v54  ;;  %v4582_v36 = vmul.f32 %v15839_v63, %v15761_v60  ;;  %v15851_v55 = vmul.f32 %v15288_v37, %v15839_v63  ;;  %v15855_v26 = vmul.f32 %v15296_v31, %v15839_v63  ;;  %v20819_v3 = vld [vmem:[#allocation45_spill] sm:$0xff] }
 0x62e   :  { %20807 = vst [vmem:[#allocation80_spill] sm:$0xff] %v15843_v12  ;;  %v15847_v34 = vpop.f32.mrb[87].mxu1  ;;  %v15859_v5 = vmul.f32 %v15285_v52, %v15839_v63  ;;  %v15866_v60 = vmul.f32 %v15291_v24, %v15839_v63  ;;  %v15870_v29 = vmul.f32 %v15323_v1, %v15839_v63  ;;  %v15874_v37 = vmul.f32 %v15334_v17, %v15839_v63  ;;  %v20818_v12 = vld [vmem:[#allocation44_spill] sm:$0xff] }
 0x62f   :  { %20808 = vst [vmem:[#allocation10_spill] sm:$0xff] %v15847_v34  ;;  %v15862_v50 = vrot.slane %v4514_v56, %v20805_v16  ;;  %v15878_v31 = vmul.f32 %v15317_v0, %v15839_v63  ;;  %v15882_v52 = vmul.f32 %v15331_v46, %v15839_v63  ;;  %v15886_v24 = vmul.f32 %v15358_v38, %v15839_v63  ;;  %v20817_v34 = vld [vmem:[#allocation46_spill] sm:$0xff] }
 0x630   :  { %v15890_v1 = vmul.f32 %v15369_v11, %v15839_v63  ;;  %v15897_v17 = vmul.f32 %v15353_v58, %v15839_v63  ;;  %v15901_v0 = vmul.f32 %v15362_v40, %v15839_v63  ;;  %v15905_v46 = vmul.f32 %v15394_v39, %v15839_v63 }
 0x631   :  { %v15893_v56 = vadd.f32 %v15862_v50, %v4582_v36  ;;  %v15909_v38 = vmul.f32 %v15405_v61, %v15839_v63  ;;  %v15913_v11 = vmul.f32 %v15389_v42, %v15839_v63  ;;  %v15917_v58 = vmul.f32 %v15398_v45, %v15839_v63 }
 0x632   :  { %v15921_v40 = vmul.f32 %v15430_v48, %v15839_v63  ;;  %v15927_v39 = vmul.f32 %v15441_v43, %v15839_v63  ;;  %v15931_v61 = vmul.f32 %v15425_v62, %v15839_v63  ;;  %v15935_v42 = vmul.f32 %v15434_v27, %v15839_v63 }
 0x633   :  { %20809 = vst [vmem:[#allocation13_spill] sm:$0xff] %v15893_v56  ;;  %v15923_v36 = vpop.f32.mrb[88].mxu1  ;;  %v15939_v45 = vmul.f32 %v15464_v13, %v15839_v63  ;;  %v15945_v54 = vmul.f32 %v15475_v10, %v15839_v63  ;;  %v15949_v43 = vmul.f32 %v15459_v30, %v15839_v63  ;;  %v15953_v62 = vmul.f32 %v15468_v59, %v15839_v63 }
 0x634   :  { %20810 = vst [vmem:[#allocation16_spill] sm:$0xff] %v15923_v36  ;;  %v15941_v48 = vpop.f32.mrb[89].mxu1  ;;  %v15957_v27 = vmul.f32 %v15496_v22, %v15839_v63  ;;  %v15963_v16 = vmul.f32 %v15507_v7, %v15839_v63  ;;  %v15967_v10 = vmul.f32 %v15491_v20, %v15839_v63  ;;  %v15971_v30 = vmul.f32 %v15500_v8, %v15839_v63  ;;  %v20816_v36 = vld [vmem:[#allocation43_spill] sm:$0xff] }
 0x635   :  { %20811 = vst [vmem:[#allocation20_spill] sm:$0xff] %v15941_v48  ;;  %v15959_v13 = vpop.f32.mrb[90].mxu1  ;;  %v15975_v59 = vmul.f32 %v15839_v63, %v15524_v6  ;;  %v15985_v7 = vmul.f32 %v15520_v41, %v15839_v63  ;;  %v15989_v20 = vmul.f32 %v15528_v47, %v15839_v63  ;;  %v15993_v8 = vmul.f32 %v15839_v63, %v15552_v33  ;;  %v20815_v48 = vld [vmem:[#allocation77_spill] sm:$0xff] }
 0x636   :  { %20812 = vst [vmem:[#allocation28_spill] sm:$0xff] %v15959_v13  ;;  %v15977_v22 = vpop.f32.mrb[91].mxu1  ;;  %v15981_v13 = vmul.f32 %v15839_v63, %v15533_v14  ;;  %v15997_v6 = vmul.f32 %v15839_v63, %v15561_v19  ;;  %v16001_v14 = vmul.f32 %v15547_v23, %v15839_v63  ;;  %v16005_v41 = vmul.f32 %v15556_v53, %v15839_v63 }
 0x637   :  { %20813 = vst [vmem:[#allocation33_spill] sm:$0xff] %v15977_v22  ;;  %v16009_v47 = vmul.f32 %v15839_v63, %v15580_v32  ;;  %v16013_v33 = vmul.f32 %v15839_v63, %v15589_v28  ;;  %v16017_v19 = vmul.f32 %v15575_v21, %v15839_v63  ;;  %v16021_v23 = vmul.f32 %v15584_v25, %v15839_v63  ;;  %v20814_v22 = vld [vmem:[#allocation66_spill] sm:$0xff] }
 0x638   :  { %v16025_v53 = vmul.f32 %v15839_v63, %v15608_v44  ;;  %v16029_v32 = vmul.f32 %v15839_v63, %v15617_v35  ;;  %v16033_v28 = vmul.f32 %v20814_v22, %v15839_v63  ;;  %v16037_v21 = vmul.f32 %v20815_v48, %v15839_v63 }
 0x639   :  { %v16041_v25 = vmul.f32 %v15839_v63, %v20816_v36  ;;  %v16045_v44 = vmul.f32 %v15839_v63, %v20817_v34  ;;  %v16049_v35 = vmul.f32 %v20818_v12, %v15839_v63  ;;  %v16053_v22 = vmul.f32 %v20819_v3, %v15839_v63  ;;  %v20822_v36 = vld [vmem:[#allocation50_spill] sm:$0xff]  ;;  %v20823_v34 = vld [vmem:[#allocation47_spill] sm:$0xff]  ;;  %v20825_v12 = vld [vmem:[#allocation49_spill] sm:$0xff] }
 0x63a   :  { %v16057_v48 = vmul.f32 %v15839_v63, %v20820_v49  ;;  %v16063_v18 = vmul.f32 %v15839_v63, %v20822_v36  ;;  %v16067_v4 = vmul.f32 %v20823_v34, %v15839_v63  ;;  %v16071_v2 = vmul.f32 %v20825_v12, %v15839_v63  ;;  %v20827_v3 = vld [vmem:[#allocation54_spill] sm:$0xff]  ;;  %v20832_v36 = vld [vmem:[#allocation51_spill] sm:$0xff] }
 0x63b   :  { %v16059_v15 = vpop.f32.mrb[92].mxu1  ;;  %v16075_v57 = vmul.f32 %v15839_v63, %v20827_v3  ;;  %v16085_v56 = vmul.f32 %v20832_v36, %v15839_v63  ;;  %v20834_v34 = vld [vmem:[#allocation79_spill] sm:$0xff]  ;;  %v20841_v36 = vld [vmem:[#allocation12_spill] sm:$0xff] }
 0x63c   :  { %20821 = vst [vmem:[#allocation37_spill] sm:$0xff] %v16059_v15  ;;  %20824 = vst [vmem:[#allocation53_spill] sm:$0xff] %v16067_v4  ;;  %v16077_v49 = vpop.f32.mrb[93].mxu1  ;;  %v16081_v15 = vmul.f32 %v15839_v63, %v20830_v51  ;;  %v16089_v4 = vmul.f32 %v20834_v34, %v15839_v63  ;;  %v20836_v12 = vld [vmem:[#allocation83_spill] sm:$0xff] }
 0x63d   :  { %20826 = vst [vmem:[#allocation55_spill] sm:$0xff] %v16071_v2  ;;  %20828 = vst [vmem:[#allocation62_spill] sm:$0xff] %v16075_v57  ;;  %v16093_v2 = vmul.f32 %v15839_v63, %v20836_v12  ;;  %v16095_v3 = vpop.f32.mrb[94].mxu1  ;;  %v20839_v57 = vld [vmem:[#allocation78_spill] sm:$0xff]  ;;  %v20840_v51 = vld [vmem:[#allocation59_spill] sm:$0xff] }
 0x63e   :  { %20829 = vst [vmem:[#allocation9_spill] sm:$0xff] %v16077_v49  ;;  %20831 = vst [vmem:[#allocation11_spill] sm:$0xff] %v16081_v15  ;;  %v16099_v49 = vmul.f32 %v15839_v63, %v20839_v57  ;;  %v16103_v15 = vmul.f32 %v20840_v51, %v15839_v63  ;;  %v20842_v34 = vld [vmem:[#allocation15_spill] sm:$0xff]  ;;  %v16113_v12 = vpop.f32.mrb[95].mxu1  ;;  %v16121_v57 = vmul.f32 %v15756_v9, %v15839_v63 }
 0x63f   :  { %20833 = vst [vmem:[#allocation65_spill] sm:$0xff] %v16085_v56  ;;  %20835 = vst [vmem:[#allocation18_spill] sm:$0xff] %v16089_v4  ;;  %v16107_v56 = vmul.f32 %v20841_v36, %v15839_v63  ;;  %v16111_v4 = vmul.f32 %v15839_v63, %v20842_v34  ;;  %v16125_v51 = vadd.f32 %v15862_v50, %v15851_v55 }
 0x640   :  { %20837 = vst [vmem:[#allocation31_spill] sm:$0xff] %v16093_v2  ;;  %20838 = vst [vmem:[#allocation32_spill] sm:$0xff] %v16095_v3  ;;  %v20844_v3 = vld [vmem:[#allocation14_spill] sm:$0xff]  ;;  %v16129_v36 = vadd.f32 %v15862_v50, %v15855_v26  ;;  %v16133_v34 = vadd.f32 %v15862_v50, %v15859_v5  ;;  %v16141_v9 = vadd.f32 %v15862_v50, %v15870_v29 }
 0x641   :  { %20843 = vst [vmem:[#allocation35_spill] sm:$0xff] %v16113_v12  ;;  %v16117_v2 = vmul.f32 %v20844_v3, %v15839_v63  ;;  %v16137_v3 = vadd.f32 %v15862_v50, %v15866_v60  ;;  %v16145_v63 = vadd.f32 %v15862_v50, %v15874_v37  ;;  %v16149_v55 = vadd.f32 %v15862_v50, %v15878_v31 }
 0x642   :  { %v16153_v26 = vadd.f32 %v15862_v50, %v15882_v52  ;;  %v16157_v5 = vadd.f32 %v15862_v50, %v15886_v24  ;;  %v16161_v60 = vadd.f32 %v15862_v50, %v15890_v1  ;;  %v16165_v29 = vadd.f32 %v15862_v50, %v15897_v17 }
 0x643   :  { %v16169_v37 = vadd.f32 %v15862_v50, %v15901_v0  ;;  %v16173_v31 = vadd.f32 %v15862_v50, %v15905_v46  ;;  %v16177_v52 = vadd.f32 %v15862_v50, %v15909_v38  ;;  %v16181_v24 = vadd.f32 %v15862_v50, %v15913_v11  ;;  %v16195_v46 = vpop.f32.mrb[96].mxu1 }
 0x644   :  { %v16185_v1 = vadd.f32 %v15862_v50, %v15917_v58  ;;  %v16189_v17 = vadd.f32 %v15862_v50, %v15921_v40  ;;  %v16193_v0 = vadd.f32 %v15862_v50, %v15927_v39  ;;  %20845 = vst [vmem:[#allocation36_spill] sm:$0xff] %v16195_v46  ;;  %v16199_v38 = vadd.f32 %v15862_v50, %v15931_v61  ;;  %v16213_v39 = vpop.f32.mrb[97].mxu1 }
 0x645   :  { %v16203_v11 = vadd.f32 %v15862_v50, %v15935_v42  ;;  %v16207_v58 = vadd.f32 %v15862_v50, %v15939_v45  ;;  %v16211_v40 = vadd.f32 %v15862_v50, %v15945_v54  ;;  %20846 = vst [vmem:[#allocation41_spill] sm:$0xff] %v16213_v39  ;;  %v16217_v46 = vadd.f32 %v15862_v50, %v15949_v43  ;;  %v16231_v54 = vpop.f32.mrb[98].mxu1 }
 0x646   :  { %v16221_v61 = vadd.f32 %v15862_v50, %v15953_v62  ;;  %v16225_v42 = vadd.f32 %v15862_v50, %v15957_v27  ;;  %v16229_v45 = vadd.f32 %v15862_v50, %v15963_v16  ;;  %20847 = vst [vmem:[#allocation52_spill] sm:$0xff] %v16231_v54  ;;  %v16235_v39 = vadd.f32 %v15862_v50, %v15967_v10  ;;  %v16249_v16 = vpop.f32.mrb[99].mxu1 }
 0x647   :  { %v16239_v43 = vadd.f32 %v15862_v50, %v15971_v30  ;;  %v16243_v62 = vadd.f32 %v15862_v50, %v15975_v59  ;;  %v16247_v27 = vadd.f32 %v15862_v50, %v15981_v13  ;;  %20848 = vst [vmem:[#allocation60_spill] sm:$0xff] %v16249_v16  ;;  %v16253_v54 = vadd.f32 %v15862_v50, %v15985_v7 }
 0x648   :  { %v16257_v10 = vadd.f32 %v15862_v50, %v15989_v20  ;;  %v16261_v30 = vadd.f32 %v15862_v50, %v15993_v8  ;;  %v16265_v59 = vadd.f32 %v15862_v50, %v15997_v6  ;;  %v16269_v13 = vadd.f32 %v15862_v50, %v16001_v14 }
 0x649   :  { %v16273_v7 = vadd.f32 %v15862_v50, %v16005_v41  ;;  %v16277_v20 = vadd.f32 %v15862_v50, %v16009_v47  ;;  %v16281_v8 = vadd.f32 %v15862_v50, %v16013_v33  ;;  %v16285_v6 = vadd.f32 %v15862_v50, %v16017_v19 }
 0x64a   :  { %v16289_v14 = vadd.f32 %v15862_v50, %v16021_v23  ;;  %v16293_v41 = vadd.f32 %v15862_v50, %v16025_v53  ;;  %v16297_v47 = vadd.f32 %v15862_v50, %v16029_v32  ;;  %v16301_v33 = vadd.f32 %v15862_v50, %v16033_v28 }
 0x64b   :  { %v16305_v19 = vadd.f32 %v15862_v50, %v16037_v21  ;;  %v16309_v23 = vadd.f32 %v15862_v50, %v16041_v25  ;;  %v16313_v53 = vadd.f32 %v15862_v50, %v16045_v44  ;;  %v16317_v32 = vadd.f32 %v15862_v50, %v16049_v35  ;;  %v16331_v16 = vpop.f32.mrb[100].mxu1  ;;  %v20854_v44 = vld [vmem:[#allocation53_spill] sm:$0xff]  ;;  %v20856_v35 = vld [vmem:[#allocation55_spill] sm:$0xff] }
 0x64c   :  { %v16321_v28 = vadd.f32 %v15862_v50, %v16053_v22  ;;  %v16325_v21 = vadd.f32 %v15862_v50, %v16057_v48  ;;  %v16329_v25 = vadd.f32 %v15862_v50, %v16063_v18  ;;  %20853 = vst [vmem:[#allocation57_spill] sm:$0xff] %v16331_v16  ;;  %v16335_v12 = vadd.f32 %v15862_v50, %v20854_v44  ;;  %v20858_v22 = vld [vmem:[#allocation62_spill] sm:$0xff]  ;;  %v20859_v48 = vld [vmem:[#allocation11_spill] sm:$0xff]  ;;  %v16349_v18 = vpop.f32.mrb[101].mxu1 }
 0x64d   :  { %20849 = vst [vmem:[#allocation68_spill] sm:$0xff] %v16317_v32  ;;  %v16339_v32 = vadd.f32 %v15862_v50, %v20856_v35  ;;  %20860 = vst [vmem:[#allocation69_spill] sm:$0xff] %v16349_v18  ;;  %v20862_v44 = vld [vmem:[#allocation18_spill] sm:$0xff]  ;;  %v20863_v35 = vld [vmem:[#allocation31_spill] sm:$0xff]  ;;  %v16371_v18 = vadd.f32 %v15862_v50, %v16103_v15 }
 0x64e   :  { %20850 = vst [vmem:[#allocation74_spill] sm:$0xff] %v16321_v28  ;;  %20851 = vst [vmem:[#allocation8_spill] sm:$0xff] %v16325_v21  ;;  %v16343_v28 = vadd.f32 %v15862_v50, %v20858_v22  ;;  %v16347_v21 = vadd.f32 %v15862_v50, %v20859_v48  ;;  %v16365_v22 = vadd.f32 %v15862_v50, %v16099_v49  ;;  %v16367_v48 = vpop.f32.mrb[102].mxu1 }
 0x64f   :  { %20852 = vst [vmem:[#allocation17_spill] sm:$0xff] %v16329_v25  ;;  %20855 = vst [vmem:[#allocation63_spill] sm:$0xff] %v16335_v12  ;;  %v20861_v25 = vld [vmem:[#allocation65_spill] sm:$0xff]  ;;  %v16357_v12 = vadd.f32 %v15862_v50, %v20862_v44  ;;  %v16379_v44 = vadd.f32 %v15862_v50, %v16111_v4  ;;  %v16385_v49 = vpop.f32.mrb[103].mxu1 }
 0x650   :  { %20857 = vst [vmem:[#allocation64_spill] sm:$0xff] %v16339_v32  ;;  %v16353_v16 = vadd.f32 %v15862_v50, %v20861_v25  ;;  %v16361_v32 = vadd.f32 %v15862_v50, %v20863_v35  ;;  %20864 = vst [vmem:[#allocation70_spill] sm:$0xff] %v16367_v48  ;;  %v16375_v25 = vadd.f32 %v15862_v50, %v16107_v56  ;;  %v20874_v4 = vld [vmem:[#allocation13_spill] sm:$0xff] }
 0x651   :  { %20865 = vst [vmem:[#allocation71_spill] sm:$0xff] %v16371_v18  ;;  %20867 = vst [vmem:[#allocation84_spill] sm:$0xff] %v16379_v44  ;;  %v16383_v35 = vadd.f32 %v15862_v50, %v16117_v2  ;;  %v16389_v48 = vadd.f32 %v15862_v50, %v16121_v57  ;;  %v16400_v44 = vmax.f32 %v20874_v4, 0.0  ;;  %v20877_v50 = vld [vmem:[#allocation19_spill] sm:$0xff]  ;;  %v16419_v4 = vmax.f32 %v16137_v3, 0.0 }
 0x652   :  { %20866 = vst [vmem:[#allocation72_spill] sm:$0xff] %v16375_v25  ;;  %20869 = vst [vmem:[#allocation86_spill] sm:$0xff] %v16385_v49  ;;  %v16407_v49 = vmax.f32 %v16129_v36, 0.0  ;;  %v16411_v57 = vsel %vm5056_vm9, %v20877_v50, 0  ;;  %v16422_v2 = vmax.f32 %v16141_v9, 0.0  ;;  %v16433_v50 = vmax.f32 %v16153_v26, 0.0 }
 0x653   :  { %20868 = vst [vmem:[#allocation85_spill] sm:$0xff] %v16383_v35  ;;  %v16391_v15 = vpop.f32.mrb[104].mxu1  ;;  %20875 = vst [vmem:[#allocation91_spill] sm:$0xff] %v16400_v44  ;;  %v16404_v35 = vmax.f32 %v16125_v51, 0.0  ;;  %v16425_v51 = vmax.f32 %v16145_v63, 0.0  ;;  %v16439_v3 = vmax.f32 %v16161_v60, 0.0 }
 0x654   :  { %20870 = vst [vmem:[#allocation87_spill] sm:$0xff] %v16391_v15  ;;  %v16393_v18 = vpop.f32.mrb[105].mxu1  ;;  %20880 = vst [vmem:[#allocation95_spill] sm:$0xff] %v16419_v4  ;;  %v16444_v9 = vmax.f32 %v16165_v29, 0.0  ;;  %v16447_v63 = vmax.f32 %v16169_v37, 0.0  ;;  %v16453_v26 = vmax.f32 %v16177_v52, 0.0 }
 0x655   :  { %20871 = vst [vmem:[#allocation88_spill] sm:$0xff] %v16393_v18  ;;  %v16395_v56 = vpop.f32.mrb[106].mxu1  ;;  %20876 = vst [vmem:[#allocation92_spill] sm:$0xff] %v16404_v35  ;;  %v16461_v60 = vmax.f32 %v16185_v1, 0.0  ;;  %v16464_v29 = vmax.f32 %v16189_v17, 0.0  ;;  %v16467_v37 = vmax.f32 %v16193_v0, 0.0 }
 0x656   :  { %20872 = vst [vmem:[#allocation89_spill] sm:$0xff] %v16395_v56  ;;  %v16397_v25 = vpop.f32.mrb[107].mxu1  ;;  %v16416_v56 = vmax.f32 %v16133_v34, 0.0  ;;  %20881 = vst [vmem:[#allocation96_spill] sm:$0xff] %v16422_v2  ;;  %v16436_v34 = vmax.f32 %v16157_v5, 0.0  ;;  %v16458_v5 = vmax.f32 %v16181_v24, 0.0 }
 0x657   :  { %20873 = vst [vmem:[#allocation90_spill] sm:$0xff] %v16397_v25  ;;  %v16430_v25 = vmax.f32 %v16149_v55, 0.0  ;;  %20883 = vst [vmem:[#allocation99_spill] sm:$0xff] %v16439_v3  ;;  %v16450_v55 = vmax.f32 %v16173_v31, 0.0  ;;  %v16470_v31 = vmax.f32 %v16199_v38, 0.0  ;;  %v16473_v52 = vmax.f32 %v16203_v11, 0.0 }
 0x658   :  { %20879 = vst [vmem:[#allocation94_spill] sm:$0xff] %v16416_v56  ;;  %20885 = vst [vmem:[#allocation101_spill] sm:$0xff] %v16447_v63  ;;  %v16479_v24 = vmax.f32 %v16211_v40, 0.0  ;;  %v16482_v1 = vmax.f32 %v16217_v46, 0.0  ;;  %v16485_v17 = vmax.f32 %v16221_v61, 0.0  ;;  %v16488_v0 = vmax.f32 %v16225_v42, 0.0 }
 0x659   :  { %20886 = vst [vmem:[#allocation102_spill] sm:$0xff] %v16450_v55  ;;  %20888 = vst [vmem:[#allocation104_spill] sm:$0xff] %v16458_v5  ;;  %v16491_v38 = vmax.f32 %v16229_v45, 0.0  ;;  %v16494_v11 = vmax.f32 %v16235_v39, 0.0  ;;  %v16500_v40 = vmax.f32 %v16243_v62, 0.0  ;;  %v16503_v46 = vmax.f32 %v16247_v27, 0.0 }
 0x65a   :  { %20889 = vst [vmem:[#allocation105_spill] sm:$0xff] %v16461_v60  ;;  %20890 = vst [vmem:[#allocation66_spill] sm:$0xff] %v16464_v29  ;;  %v16506_v61 = vmax.f32 %v16253_v54, 0.0  ;;  %v16509_v42 = vmax.f32 %v16257_v10, 0.0  ;;  %v16512_v45 = vmax.f32 %v16261_v30, 0.0  ;;  %v16515_v39 = vmax.f32 %v16265_v59, 0.0 }
 0x65b   :  { %v16413_v18 = vpop.f32.mrb[108].mxu1  ;;  %20891 = vst [vmem:[#allocation77_spill] sm:$0xff] %v16467_v37  ;;  %20893 = vst [vmem:[#allocation46_spill] sm:$0xff] %v16482_v1  ;;  %v16520_v62 = vmax.f32 %v16269_v13, 0.0  ;;  %v16523_v27 = vmax.f32 %v16273_v7, 0.0  ;;  %v16526_v54 = vmax.f32 %v16277_v20, 0.0 }
 0x65c   :  { %20878 = vst [vmem:[#allocation93_spill] sm:$0xff] %v16413_v18  ;;  %v16427_v36 = vpop.f32.mrb[109].mxu1  ;;  %20894 = vst [vmem:[#allocation44_spill] sm:$0xff] %v16503_v46  ;;  %v16529_v10 = vmax.f32 %v16281_v8, 0.0  ;;  %v16534_v30 = vmax.f32 %v16285_v6, 0.0  ;;  %v16537_v59 = vmax.f32 %v16289_v14, 0.0 }
 0x65d   :  { %20882 = vst [vmem:[#allocation98_spill] sm:$0xff] %v16427_v36  ;;  %v16441_v18 = vpop.f32.mrb[110].mxu1  ;;  %20895 = vst [vmem:[#allocation45_spill] sm:$0xff] %v16506_v61  ;;  %v16540_v13 = vmax.f32 %v16293_v41, 0.0  ;;  %v16543_v7 = vmax.f32 %v16297_v47, 0.0  ;;  %v16548_v20 = vmax.f32 %v16301_v33, 0.0 }
 0x65e   :  { %20884 = vst [vmem:[#allocation100_spill] sm:$0xff] %v16441_v18  ;;  %v16455_v36 = vpop.f32.mrb[111].mxu1  ;;  %20896 = vst [vmem:[#allocation48_spill] sm:$0xff] %v16509_v42  ;;  %v16551_v8 = vmax.f32 %v16305_v19, 0.0  ;;  %v16554_v6 = vmax.f32 %v16309_v23, 0.0  ;;  %v16557_v14 = vmax.f32 %v16313_v53, 0.0 }
 0x65f   :  { %20887 = vst [vmem:[#allocation103_spill] sm:$0xff] %v16455_v36  ;;  %v16476_v36 = vmax.f32 %v16207_v58, 0.0  ;;  %v16497_v58 = vmax.f32 %v16239_v43, 0.0  ;;  %v20903_v41 = vld [vmem:[#allocation68_spill] sm:$0xff]  ;;  %v20904_v47 = vld [vmem:[#allocation74_spill] sm:$0xff]  ;;  %v20908_v61 = vld [vmem:[#allocation17_spill] sm:$0xff] }
 0x660   :  { %20900 = vst [vmem:[#allocation54_spill] sm:$0xff] %v16551_v8  ;;  %20901 = vst [vmem:[#allocation58_spill] sm:$0xff] %v16554_v6  ;;  %v16562_v15 = vmax.f32 %v20903_v41, 0.0  ;;  %v16565_v44 = vmax.f32 %v20904_v47, 0.0  ;;  %v16571_v19 = vmax.f32 %v20908_v61, 0.0  ;;  %v20910_v8 = vld [vmem:[#allocation63_spill] sm:$0xff] }
 0x661   :  { %20892 = vst [vmem:[#allocation43_spill] sm:$0xff] %v16476_v36  ;;  %v16574_v23 = vmax.f32 %v20910_v8, 0.0  ;;  %v20911_v6 = vld [vmem:[#allocation64_spill] sm:$0xff]  ;;  %v16583_v41 = vmax.f32 %v16347_v21, 0.0  ;;  %v16586_v47 = vmax.f32 %v16353_v16, 0.0  ;;  %v16592_v61 = vmax.f32 %v16361_v32, 0.0 }
 0x662   :  { %20905 = vst [vmem:[#allocation79_spill] sm:$0xff] %v16565_v44  ;;  %20909 = vst [vmem:[#allocation78_spill] sm:$0xff] %v16571_v19  ;;  %v16577_v53 = vmax.f32 %v20911_v6, 0.0  ;;  %v16595_v8 = vmax.f32 %v16365_v22, 0.0  ;;  %v20919_v6 = vld [vmem:[#allocation71_spill] sm:$0xff]  ;;  %v4719_v21 = vrot.slane %v16404_v35, 7  ;;  %v16798_v19 = vpack.c.bf16 %v16461_v60, %v16458_v5 }
 0x663   :  { %v16517_v43 = vpop.f32.mrb[112].mxu1  ;;  %20914 = vst [vmem:[#allocation15_spill] sm:$0xff] %v16583_v41  ;;  %20915 = vst [vmem:[#allocation14_spill] sm:$0xff] %v16586_v47  ;;  %v20922_v47 = vld [vmem:[#allocation72_spill] sm:$0xff]  ;;  %v16812_v5 = vpack.c.bf16 %v16473_v52, %v16470_v31  ;;  %v16873_v60 = vpack.c.bf16 %v16543_v7, %v16540_v13 }
 0x664   :  { %20897 = vst [vmem:[#allocation50_spill] sm:$0xff] %v16517_v43  ;;  %v16531_v18 = vpop.f32.mrb[113].mxu1  ;;  %20912 = vst [vmem:[#allocation59_spill] sm:$0xff] %v16577_v53  ;;  %v16598_v53 = vmax.f32 %v20919_v6, 0.0  ;;  %v16606_v41 = vmax.f32 %v20922_v47, 0.0  ;;  %v16635_v47 = vpack.c.bf16 %v16407_v49, %v16404_v35  ;;  %v20954_v35 = vld [vmem:[#allocation102_spill] sm:$0xff] }
 0x665   :  { %20898 = vst [vmem:[#allocation47_spill] sm:$0xff] %v16531_v18  ;;  %v16545_v43 = vpop.f32.mrb[114].mxu1  ;;  %20917 = vst [vmem:[#allocation55_spill] sm:$0xff] %v16592_v61  ;;  %v16794_v44 = vpack.c.bf16 %v16453_v26, %v20954_v35 }
 0x666   :  { %20899 = vst [vmem:[#allocation49_spill] sm:$0xff] %v16545_v43  ;;  %v16559_v18 = vpop.f32.mrb[115].mxu1  ;;  %v20906_v43 = vld [vmem:[#allocation8_spill] sm:$0xff]  ;;  %20918 = vst [vmem:[#allocation62_spill] sm:$0xff] %v16595_v8  ;;  %11505 = vmatmul.mubr.msk.bf16.vlgmr.msra.gmra.mrb[32].mxu0 %vm4172_vm8, %v16635_v47 }
 0x667   :  { %20902 = vst [vmem:[#allocation51_spill] sm:$0xff] %v16559_v18  ;;  %v16568_v33 = vmax.f32 %v20906_v43, 0.0  ;;  %v16580_v18 = vmax.f32 %v16343_v28, 0.0  ;;  %v16589_v43 = vmax.f32 %v16357_v12, 0.0  ;;  %20920 = vst [vmem:[#allocation11_spill] sm:$0xff] %v16598_v53  ;;  %v16601_v28 = vmax.f32 %v16389_v48, 0.0  ;;  %11569 = vmatpush3.bf16.msra.mxu0 %v16411_v57 }
 0x668   :  { %20923 = vst [vmem:[#allocation18_spill] sm:$0xff] %v16606_v41  ;;  %v20924_v12 = vld [vmem:[#allocation84_spill] sm:$0xff]  ;;  %v20929_v53 = vrot.slane %v16407_v49, 7  ;;  %20931 = vst [vmem:[#allocation74_spill] sm:$0xff] %v16635_v47  ;;  %v16694_v57 = vld [vmem:[%s20069_s7 + $0x8] sm:$0xf] }
 0x669   :  { %20907 = vst [vmem:[#allocation83_spill] sm:$0xff] %v16568_v33  ;;  %20913 = vst [vmem:[#allocation12_spill] sm:$0xff] %v16580_v18  ;;  %v20933_v55 = vrot.slane %v16601_v28, 7  ;;  %13203 = vmatprep.subr.msk.bf16.mxu0 %vm5056_vm9, %v16694_v57 }
 0x66a   :  { %20916 = vst [vmem:[#allocation53_spill] sm:$0xff] %v16589_v43  ;;  %20921 = vst [vmem:[#allocation65_spill] sm:$0xff] %v16601_v28  ;;  %v16609_v43 = vmax.f32 %v20924_v12, 0.0  ;;  %v4839_v16 = vsel %vm357_vm4, %v4719_v21, %v20929_v53  ;;  %v20944_v47 = vld [vmem:[#allocation14_spill] sm:$0xff] }
 0x66b   :  { %v16613_v8 = vpop.f32.mrb[116].mxu1  ;;  %v4840_v63 = vsel %vm357_vm4, %v20933_v55, %v4719_v21  ;;  %20941 = vst [vmem:[#allocation84_spill] sm:$0xff] %v16694_v57  ;;  %v20942_v32 = vld [vmem:[#allocation59_spill] sm:$0xff]  ;;  %v16777_v57 = vpack.c.bf16 %v16439_v3, %v16436_v34  ;;  %20964 = vst [vmem:[#allocation108_spill] sm:$0xff] %v16794_v44 }
 0x66c   :  { %20925 = vst [vmem:[#allocation31_spill] sm:$0xff] %v16609_v43  ;;  %20926 = vst [vmem:[#allocation13_spill] sm:$0xff] %v16613_v8  ;;  %v16619_v61 = vpop.f32.mrb[117].mxu1  ;;  %v4841_v48 = vsel %vm46_vm5, %v4840_v63, 0.0  ;;  %v20946_v63 = vld [vmem:[#allocation55_spill] sm:$0xff] }
 0x66d   :  { %20927 = vst [vmem:[#allocation19_spill] sm:$0xff] %v16619_v61  ;;  %v16625_v4 = vpop.f32.mrb[118].mxu1  ;;  %v16661_v21 = vpack.c.bf16 %v4839_v16, %v4841_v48  ;;  %v20943_v48 = vld [vmem:[#allocation15_spill] sm:$0xff]  ;;  %20962 = vst [vmem:[#allocation106_spill] sm:$0xff] %v16777_v57 }
 0x66e   :  { %20928 = vst [vmem:[#allocation68_spill] sm:$0xff] %v16625_v4  ;;  %v16637_v12 = vpop.f32.mrb[119].mxu1  ;;  %v20948_v55 = vld [vmem:[#allocation11_spill] sm:$0xff]  ;;  %v20956_v4 = vrot.slane %v16416_v56, 1  ;;  %20965 = vst [vmem:[#allocation109_spill] sm:$0xff] %v16798_v19 }
 0x66f   :  { %20932 = vst [vmem:[#allocation8_spill] sm:$0xff] %v16637_v12  ;;  %20934 = vst [vmem:[#allocation17_spill] sm:$0xff] %v16661_v21 }
 0x670   :  { %20967 = vst [vmem:[#allocation111_spill] sm:$0xff] %v16812_v5  ;;  %v16829_v5 = vpack.c.bf16 %v16491_v38, %v16488_v0  ;;  %20983 = vst [vmem:[#allocation116_spill] sm:$0xff] %v16873_v60 }
 0x671   :  { %v20945_v21 = vld [vmem:[#allocation53_spill] sm:$0xff] }
 0x673   :  { %v16667_v12 = vpop.f32.mrb[120].mxu1 }
 0x674   :  { %20935 = vst [vmem:[#allocation63_spill] sm:$0xff] %v16667_v12  ;;  %v16673_v16 = vpop.f32.mrb[121].mxu1  ;;  %v20940_v12 = vld [vmem:[#allocation58_spill] sm:$0xff] }
 0x675   :  { %20936 = vst [vmem:[#allocation64_spill] sm:$0xff] %v16673_v16  ;;  %v16679_v22 = vpop.f32.mrb[122].mxu1  ;;  %v20939_v16 = vld [vmem:[#allocation54_spill] sm:$0xff] }
 0x676   :  { %20937 = vst [vmem:[#allocation71_spill] sm:$0xff] %v16679_v22  ;;  %v16685_v61 = vpop.f32.mrb[123].mxu1  ;;  %v20950_v22 = vld [vmem:[#allocation95_spill] sm:$0xff]  ;;  %v16877_v35 = vpack.c.bf16 %v20939_v16, %v16548_v20 }
 0x677   :  { %20938 = vst [vmem:[#allocation72_spill] sm:$0xff] %v16685_v61  ;;  %v16758_v42 = vpack.c.bf16 %v20950_v22, %v16416_v56  ;;  %v16764_v61 = vpack.c.bf16 %v16425_v51, %v16422_v2  ;;  %v21000_v8 = vrot.slane %v20950_v22, 7 }
 0x678   :  { %20984 = vst [vmem:[#allocation117_spill] sm:$0xff] %v16877_v35  ;;  %v16901_v35 = vpack.c.bf16 %v20945_v21, %v20944_v47 }
 0x679   :  { %20958 = vst [vmem:[#allocation14_spill] sm:$0xff] %v16758_v42  ;;  %20959 = vst [vmem:[#allocation55_spill] sm:$0xff] %v16764_v61  ;;  %11508 = vmatprep.mubr.msk.bf16.mxu0 %vm4172_vm8, %v16758_v42  ;;  %v16818_v42 = vpack.c.bf16 %v16479_v24, %v16476_v36  ;;  %v20974_v36 = vld [vmem:[#allocation12_spill] sm:$0xff] }
 0x67a   :  { %11509 = vmatmul.mubr.msk.bf16.gmra.mrb[36].mxu0 %vm4172_vm8, %v16764_v61  ;;  %v16865_v61 = vpack.c.bf16 %v16529_v10, %v16526_v54  ;;  %v16897_v60 = vpack.c.bf16 %v20943_v48, %v20974_v36  ;;  %20990 = vst [vmem:[#allocation123_spill] sm:$0xff] %v16901_v35 }
 0x67b   :  { %v16714_v18 = vpop.f32.mrb[124].mxu1  ;;  %20968 = vst [vmem:[#allocation112_spill] sm:$0xff] %v16818_v42  ;;  %v16851_v42 = vpack.c.bf16 %v16515_v39, %v16512_v45 }
 0x67c   :  { %20949 = vst [vmem:[#allocation54_spill] sm:$0xff] %v16714_v18  ;;  %v16720_v53 = vpop.f32.mrb[125].mxu1  ;;  %v20953_v18 = vld [vmem:[#allocation101_spill] sm:$0xff]  ;;  %20981 = vst [vmem:[#allocation114_spill] sm:$0xff] %v16865_v61  ;;  %v20994_v61 = vld [vmem:[#allocation92_spill] sm:$0xff] }
 0x67d   :  { %20951 = vst [vmem:[#allocation58_spill] sm:$0xff] %v16720_v53  ;;  %v16726_v6 = vpop.f32.mrb[126].mxu1  ;;  %v16805_v53 = vpack.c.bf16 %v16467_v37, %v16464_v29  ;;  %v20971_v29 = vmov %v16568_v33  ;;  %v20972_v37 = vld [vmem:[#allocation78_spill] sm:$0xff]  ;;  %20978 = vst [vmem:[#allocation12_spill] sm:$0xff] %v16851_v42  ;;  %v16881_v33 = vpack.c.bf16 %v16557_v14, %v20940_v12 }
 0x67e   :  { %20952 = vst [vmem:[#allocation59_spill] sm:$0xff] %v16726_v6  ;;  %v16732_v43 = vpop.f32.mrb[127].mxu1  ;;  %v20957_v6 = vrot.slane %v16407_v49, 1  ;;  %20989 = vst [vmem:[#allocation122_spill] sm:$0xff] %v16897_v60  ;;  %v21005_v60 = vrot.slane %v16422_v2, 7 }
 0x67f   :  { %20955 = vst [vmem:[#allocation15_spill] sm:$0xff] %v16732_v43  ;;  %v16768_v43 = vpack.c.bf16 %v16433_v50, %v16430_v25  ;;  %20966 = vst [vmem:[#allocation110_spill] sm:$0xff] %v16805_v53  ;;  %v16822_v53 = vpack.c.bf16 %v16485_v17, %v16482_v1  ;;  %v16836_v1 = vpack.c.bf16 %v16497_v58, %v16494_v11 }
 0x680   :  { %v16743_v28 = vsel %vm1377_vm6, %v20957_v6, %v20956_v4  ;;  %v16786_v6 = vpack.c.bf16 %v20953_v18, %v16444_v9  ;;  %v20970_v4 = vld [vmem:[#allocation79_spill] sm:$0xff]  ;;  %20985 = vst [vmem:[#allocation118_spill] sm:$0xff] %v16881_v33 }
 0x681   :  { %20960 = vst [vmem:[#allocation11_spill] sm:$0xff] %v16768_v43  ;;  %11512 = vmatprep.mubr.msk.bf16.mxu0 %vm4172_vm8, %v16768_v43  ;;  %20969 = vst [vmem:[#allocation113_spill] sm:$0xff] %v16822_v53  ;;  %v16843_v53 = vpack.c.bf16 %v16503_v46, %v16500_v40  ;;  %v16855_v43 = vpack.c.bf16 %v16523_v27, %v16520_v62  ;;  %v16922_v35 = vsel %vm49_vm7, %v16743_v28, 0.0  ;;  %v21004_v28 = vrot.slane %v16425_v51, 7 }
 0x682   :  { %20963 = vst [vmem:[#allocation107_spill] sm:$0xff] %v16786_v6  ;;  %20973 = vst [vmem:[#allocation79_spill] sm:$0xff] %v16829_v5  ;;  %v20977_v5 = vld [vmem:[#allocation62_spill] sm:$0xff]  ;;  %11513 = vmatmul.mubr.msk.bf16.gmra.mrb[40].mxu0 %vm4172_vm8, %v16777_v57  ;;  %v16869_v57 = vpack.c.bf16 %v16537_v59, %v16534_v30 }
 0x683   :  { %20975 = vst [vmem:[#allocation83_spill] sm:$0xff] %v16836_v1  ;;  %20976 = vst [vmem:[#allocation78_spill] sm:$0xff] %v16843_v53  ;;  %11516 = vmatprep.mubr.msk.bf16.mxu0 %vm4172_vm8, %v16786_v6  ;;  %v16885_v1 = vpack.c.bf16 %v20970_v4, %v16562_v15  ;;  %v16889_v6 = vpack.c.bf16 %v20972_v37, %v20971_v29  ;;  %v16905_v33 = vpack.c.bf16 %v20977_v5, %v20946_v63 }
 0x684   :  { %20979 = vst [vmem:[#allocation62_spill] sm:$0xff] %v16855_v43  ;;  %20982 = vst [vmem:[#allocation115_spill] sm:$0xff] %v16869_v57  ;;  %v16893_v57 = vpack.c.bf16 %v20942_v32, %v16574_v23  ;;  %v21403_v43 = vmov 0.0|0.0  }
 0x685   :  { %20986 = vst [vmem:[#allocation119_spill] sm:$0xff] %v16885_v1  ;;  %20987 = vst [vmem:[#allocation120_spill] sm:$0xff] %v16889_v6  ;;  %v16909_v1 = vpack.c.bf16 %v16606_v41, %v20948_v55  ;;  %v20993_v6 = vrot.slane %v16407_v49, 1 }
 0x686   :  { %20988 = vst [vmem:[#allocation121_spill] sm:$0xff] %v16893_v57  ;;  %20991 = vst [vmem:[#allocation124_spill] sm:$0xff] %v16905_v33  ;;  %v20995_v57 = vrot.slane %v20994_v61, 1  ;;  %v21001_v33 = vrot.slane %v16416_v56, 7  ;;  %v21003_v61 = vrot.slane %v16407_v49, 7 }
 0x687   :  { %20992 = vst [vmem:[#allocation125_spill] sm:$0xff] %v16909_v1  ;;  %20999 = vst [vmem:[#allocation126_spill] sm:$0xff] %v16922_v35  ;;  %v4835_v35 = vsel %vm357_vm4, %v21005_v60, %v21004_v28 }
 0x688   :  { %v16917_v42 = vsel %vm1377_vm6, %v20995_v57, %v20993_v6  ;;  %v4837_v1 = vsel %vm357_vm4, %v21001_v33, %v21000_v8  ;;  %v21002_v53 = vmov %v21001_v33  ;;  %v21007_v33 = vmov %v21000_v8 }
 0x689   :  { %20997 = vst [vmem:[#allocation6_spill] sm:$0xff] %v16917_v42  ;;  %v4838_v57 = vsel %vm357_vm4, %v21003_v61, %v21002_v53  ;;  %v21006_v42 = vmov %v21005_v60  ;;  %v21008_v8 = vrot.slane %v16433_v50, 7  ;;  %v21009_v61 = vrot.slane %v16430_v25, 7 }
 0x68a   :  { %v4843_v6 = vsel %vm46_vm5, %v4838_v57, 0.0  ;;  %v4836_v49 = vsel %vm357_vm4, %v21007_v33, %v21006_v42  ;;  %v21012_v42 = vrot.slane %v16439_v3, 7  ;;  %v21013_v33 = vrot.slane %v16436_v34, 7  ;;  %11517 = vmatmul.mubr.msk.bf16.gmra.mrb[44].mxu0 %vm4172_vm8, %v16794_v44  ;;  %v21022_v44 = vld [vmem:[#allocation102_spill] sm:$0xff] }
 0x68b   :  { %v4833_v53 = vsel %vm357_vm4, %v21009_v61, %v21008_v8  ;;  %v16956_v57 = vpack.c.bf16 %v4837_v1, %v4843_v6  ;;  %v4845_v56 = vsel %vm46_vm5, %v4836_v49, 0.0  ;;  %v21011_v60 = vmov %v21009_v61  ;;  %11520 = vmatprep.mubr.msk.bf16.mxu0 %vm4172_vm8, %v16798_v19 }
 0x68c   :  { %v4834_v22 = vsel %vm357_vm4, %v21004_v28, %v21011_v60  ;;  %v4831_v2 = vsel %vm357_vm4, %v21013_v33, %v21012_v42  ;;  %v16974_v1 = vpack.c.bf16 %v4835_v35, %v4845_v56  ;;  %v21015_v49 = vmov %v21013_v33 }
 0x68d   :  { %21010 = vst [vmem:[#allocation127_spill] sm:$0xff] %v16956_v57  ;;  %v4847_v6 = vsel %vm46_vm5, %v4834_v22, 0.0  ;;  %v4832_v61 = vsel %vm357_vm4, %v21008_v8, %v21015_v49  ;;  %v21016_v60 = vrot.slane %v20953_v18, 7  ;;  %v21017_v28 = vrot.slane %v16444_v9, 7 }
 0x68e   :  { %21014 = vst [vmem:[#allocation128_spill] sm:$0xff] %v16974_v1  ;;  %v16992_v35 = vpack.c.bf16 %v4833_v53, %v4847_v6  ;;  %v4849_v56 = vsel %vm46_vm5, %v4832_v61, 0.0  ;;  %v21020_v33 = vrot.slane %v16439_v3, 7  ;;  %v21021_v8 = vrot.slane %v16453_v26, 7 }
 0x68f   :  { %v4829_v42 = vsel %vm357_vm4, %v21017_v28, %v21016_v60  ;;  %v21019_v22 = vmov %v21017_v28  ;;  %v21023_v1 = vrot.slane %v21022_v44, 7  ;;  %v17008_v28 = vpack.c.bf16 %v4831_v2, %v4849_v56 }
 0x690   :  { %21018 = vst [vmem:[#allocation129_spill] sm:$0xff] %v16992_v35  ;;  %v4830_v49 = vsel %vm357_vm4, %v21020_v33, %v21019_v22  ;;  %v21026_v61 = vrot.slane %v20953_v18, 7  ;;  %v21027_v22 = vld [vmem:[#allocation105_spill] sm:$0xff]  ;;  %v21029_v35 = vld [vmem:[#allocation104_spill] sm:$0xff] }
 0x691   :  { %v4827_v60 = vsel %vm357_vm4, %v21023_v1, %v21021_v8  ;;  %21024 = vst [vmem:[#allocation130_spill] sm:$0xff] %v17008_v28  ;;  %v4851_v53 = vsel %vm46_vm5, %v4830_v49, 0.0  ;;  %v21025_v6 = vmov %v21023_v1  ;;  %v21028_v33 = vrot.slane %v21027_v22, 7  ;;  %v21036_v28 = vld [vmem:[#allocation66_spill] sm:$0xff] }
 0x692   :  { %v4828_v19 = vsel %vm357_vm4, %v21026_v61, %v21025_v6  ;;  %v21030_v57 = vrot.slane %v21029_v35, 7  ;;  %v17024_v1 = vpack.c.bf16 %v4829_v42, %v4851_v53  ;;  %v21033_v49 = vmov %v21021_v8  ;;  %v21034_v6 = vld [vmem:[#allocation77_spill] sm:$0xff] }
 0x693   :  { %v4853_v2 = vsel %vm46_vm5, %v4828_v19, 0.0  ;;  %v21035_v61 = vrot.slane %v21034_v6, 7  ;;  %v21037_v18 = vrot.slane %v21036_v28, 7  ;;  %v21040_v53 = vmov %v21028_v33 }
 0x694   :  { %v4825_v3 = vsel %vm357_vm4, %v21030_v57, %v21028_v33  ;;  %21031 = vst [vmem:[#allocation104_spill] sm:$0xff] %v17024_v1  ;;  %v21032_v56 = vmov %v21030_v57  ;;  %v17040_v57 = vpack.c.bf16 %v4827_v60, %v4853_v2 }
 0x695   :  { %v4826_v8 = vsel %vm357_vm4, %v21033_v49, %v21032_v56  ;;  %v4823_v44 = vsel %vm357_vm4, %v21037_v18, %v21035_v61  ;;  %v21039_v19 = vmov %v21037_v18  ;;  %v21041_v56 = vrot.slane %v16473_v52, 7 }
 0x696   :  { %21038 = vst [vmem:[#allocation66_spill] sm:$0xff] %v17040_v57  ;;  %v4855_v42 = vsel %vm46_vm5, %v4826_v8, 0.0  ;;  %v4824_v33 = vsel %vm357_vm4, %v21040_v53, %v21039_v19  ;;  %v21042_v49 = vrot.slane %v16470_v31, 7  ;;  %v21045_v8 = vmov %v21035_v61  ;;  %v21047_v53 = vld [vmem:[#allocation43_spill] sm:$0xff] }
 0x697   :  { %v17056_v18 = vpack.c.bf16 %v4825_v3, %v4855_v42  ;;  %v4857_v60 = vsel %vm46_vm5, %v4824_v33, 0.0  ;;  %v21046_v19 = vrot.slane %v16479_v24, 7  ;;  %v21048_v57 = vrot.slane %v21047_v53, 7 }
 0x698   :  { %v4821_v1 = vsel %vm357_vm4, %v21042_v49, %v21041_v56  ;;  %v21044_v2 = vmov %v21042_v49  ;;  %v17072_v56 = vpack.c.bf16 %v4823_v44, %v4857_v60  ;;  %v21051_v33 = vrot.slane %v16473_v52, 7 }
 0x699   :  { %21043 = vst [vmem:[#allocation131_spill] sm:$0xff] %v17056_v18  ;;  %v4822_v61 = vsel %vm357_vm4, %v21045_v8, %v21044_v2  ;;  %v4819_v22 = vsel %vm357_vm4, %v21048_v57, %v21046_v19  ;;  %v21050_v42 = vmov %v21048_v57  ;;  %v21052_v2 = vrot.slane %v16485_v17, 7  ;;  %v21053_v8 = vld [vmem:[#allocation46_spill] sm:$0xff] }
 0x69a   :  { %21049 = vst [vmem:[#allocation43_spill] sm:$0xff] %v17072_v56  ;;  %v4859_v3 = vsel %vm46_vm5, %v4822_v61, 0.0  ;;  %v4820_v49 = vsel %vm357_vm4, %v21051_v33, %v21050_v42  ;;  %v21054_v18 = vrot.slane %v21053_v8, 7  ;;  %v21057_v61 = vmov %v21046_v19 }
 0x69b   :  { %v17088_v57 = vpack.c.bf16 %v4821_v1, %v4859_v3  ;;  %v4861_v44 = vsel %vm46_vm5, %v4820_v49, 0.0  ;;  %v21058_v42 = vrot.slane %v16491_v38, 7  ;;  %v21059_v33 = vrot.slane %v16488_v0, 7 }
 0x69c   :  { %v4817_v6 = vsel %vm357_vm4, %v21054_v18, %v21052_v2  ;;  %v21056_v60 = vmov %v21054_v18  ;;  %v21060_v18 = vld [vmem:[#allocation110_spill] sm:$0xff]  ;;  %v17106_v1 = vpack.c.bf16 %v4819_v22, %v4861_v44 }
 0x69d   :  { %21055 = vst [vmem:[#allocation46_spill] sm:$0xff] %v17088_v57  ;;  %v4818_v19 = vsel %vm357_vm4, %v21057_v61, %v21056_v60  ;;  %v4815_v56 = vsel %vm357_vm4, %v21059_v33, %v21058_v42  ;;  %11521 = vmatmul.mubr.msk.bf16.gmra.mrb[48].mxu0 %vm4172_vm8, %v21060_v18  ;;  %v21062_v49 = vmov %v21059_v33  ;;  %v21063_v61 = vrot.slane %v16497_v58, 7  ;;  %v21065_v33 = vld [vmem:[#allocation111_spill] sm:$0xff] }
 0x69e   :  { %21061 = vst [vmem:[#allocation132_spill] sm:$0xff] %v17106_v1  ;;  %v4863_v3 = vsel %vm46_vm5, %v4818_v19, 0.0  ;;  %v4816_v60 = vsel %vm357_vm4, %v21052_v2, %v21062_v49  ;;  %v21064_v57 = vrot.slane %v16494_v11, 7  ;;  %11524 = vmatprep.mubr.msk.bf16.mxu0 %vm4172_vm8, %v21065_v33  ;;  %v21068_v18 = vrot.slane %v16491_v38, 7 }
 0x69f   :  { %v17124_v22 = vpack.c.bf16 %v4817_v6, %v4863_v3  ;;  %v4865_v44 = vsel %vm46_vm5, %v4816_v60, 0.0  ;;  %v21069_v2 = vrot.slane %v16503_v46, 7  ;;  %v21070_v1 = vrot.slane %v16500_v40, 7 }
 0x6a0   :  { %v4813_v42 = vsel %vm357_vm4, %v21064_v57, %v21063_v61  ;;  %v21067_v19 = vmov %v21064_v57  ;;  %v17140_v61 = vpack.c.bf16 %v4815_v56, %v4865_v44  ;;  %v21073_v60 = vrot.slane %v16497_v58, 7 }
 0x6a1   :  { %21066 = vst [vmem:[#allocation133_spill] sm:$0xff] %v17124_v22  ;;  %v4814_v49 = vsel %vm357_vm4, %v21068_v18, %v21067_v19  ;;  %v4811_v57 = vsel %vm357_vm4, %v21070_v1, %v21069_v2  ;;  %v21072_v3 = vmov %v21070_v1  ;;  %v21074_v18 = vrot.slane %v16515_v39, 7 }
 0x6a2   :  { %21071 = vst [vmem:[#allocation134_spill] sm:$0xff] %v17140_v61  ;;  %v4867_v6 = vsel %vm46_vm5, %v4814_v49, 0.0  ;;  %v4812_v33 = vsel %vm357_vm4, %v21073_v60, %v21072_v3  ;;  %v21075_v19 = vrot.slane %v16512_v45, 7  ;;  %v21078_v49 = vld [vmem:[#allocation48_spill] sm:$0xff]  ;;  %v21080_v3 = vrot.slane %v16523_v27, 7 }
 0x6a3   :  { %v17156_v1 = vpack.c.bf16 %v4813_v42, %v4867_v6  ;;  %v4869_v56 = vsel %vm46_vm5, %v4812_v33, 0.0  ;;  %v21079_v2 = vrot.slane %v21078_v49, 7  ;;  %v21081_v60 = vrot.slane %v16520_v62, 7  ;;  %v21150_v49 = vld [vmem:[#allocation31_spill] sm:$0xff] }
 0x6a4   :  { %v4809_v22 = vsel %vm357_vm4, %v21075_v19, %v21074_v18  ;;  %v21077_v44 = vmov %v21075_v19  ;;  %v17172_v18 = vpack.c.bf16 %v4811_v57, %v4869_v56  ;;  %v21084_v6 = vrot.slane %v16515_v39, 7 }
 0x6a5   :  { %21076 = vst [vmem:[#allocation135_spill] sm:$0xff] %v17156_v1  ;;  %v4810_v61 = vsel %vm357_vm4, %v21079_v2, %v21077_v44  ;;  %v4807_v46 = vsel %vm357_vm4, %v21081_v60, %v21080_v3  ;;  %v21083_v33 = vmov %v21081_v60  ;;  %v21085_v44 = vrot.slane %v16529_v10, 7 }
 0x6a6   :  { %21082 = vst [vmem:[#allocation136_spill] sm:$0xff] %v17172_v18  ;;  %v4871_v42 = vsel %vm46_vm5, %v4810_v61, 0.0  ;;  %v4808_v19 = vsel %vm357_vm4, %v21084_v6, %v21083_v33  ;;  %v21086_v2 = vrot.slane %v16526_v54, 7  ;;  %v21089_v56 = vrot.slane %v16523_v27, 7 }
 0x6a7   :  { %v17188_v3 = vpack.c.bf16 %v4809_v22, %v4871_v42  ;;  %v4873_v57 = vsel %vm46_vm5, %v4808_v19, 0.0  ;;  %v21090_v33 = vrot.slane %v16537_v59, 7  ;;  %v21091_v6 = vrot.slane %v16534_v30, 7 }
 0x6a8   :  { %v4805_v1 = vsel %vm357_vm4, %v21086_v2, %v21085_v44  ;;  %v21088_v61 = vmov %v21086_v2  ;;  %v17204_v44 = vpack.c.bf16 %v4807_v46, %v4873_v57  ;;  %v21094_v19 = vrot.slane %v16529_v10, 7 }
 0x6a9   :  { %21087 = vst [vmem:[#allocation137_spill] sm:$0xff] %v17188_v3  ;;  %v4806_v60 = vsel %vm357_vm4, %v21089_v56, %v21088_v61  ;;  %v4803_v18 = vsel %vm357_vm4, %v21091_v6, %v21090_v33  ;;  %v21093_v42 = vmov %v21091_v6  ;;  %v21095_v61 = vrot.slane %v16543_v7, 7 }
 0x6aa   :  { %21092 = vst [vmem:[#allocation138_spill] sm:$0xff] %v17204_v44  ;;  %v4875_v22 = vsel %vm46_vm5, %v4806_v60, 0.0  ;;  %v4804_v2 = vsel %vm357_vm4, %v21094_v19, %v21093_v42  ;;  %v21096_v56 = vrot.slane %v16540_v13, 7  ;;  %v21099_v60 = vrot.slane %v16537_v59, 7 }
 0x6ab   :  { %v17220_v33 = vpack.c.bf16 %v4805_v1, %v4875_v22  ;;  %v4877_v46 = vsel %vm46_vm5, %v4804_v2, 0.0  ;;  %v21100_v42 = vrot.slane %v20939_v16, 7  ;;  %v21101_v19 = vrot.slane %v16548_v20, 7 }
 0x6ac   :  { %v4801_v3 = vsel %vm357_vm4, %v21096_v56, %v21095_v61  ;;  %v21098_v57 = vmov %v21096_v56  ;;  %v21102_v61 = vld [vmem:[#allocation112_spill] sm:$0xff]  ;;  %v17238_v1 = vpack.c.bf16 %v4803_v18, %v4877_v46  ;;  %v21105_v56 = vrot.slane %v16543_v7, 7 }
 0x6ad   :  { %21097 = vst [vmem:[#allocation139_spill] sm:$0xff] %v17220_v33  ;;  %v4802_v6 = vsel %vm357_vm4, %v21099_v60, %v21098_v57  ;;  %v4799_v44 = vsel %vm357_vm4, %v21101_v19, %v21100_v42  ;;  %11525 = vmatmul.mubr.msk.bf16.gmra.mrb[52].mxu0 %vm4172_vm8, %v21102_v61  ;;  %v21104_v2 = vmov %v21101_v19  ;;  %v21106_v60 = vrot.slane %v16557_v14, 7  ;;  %v21108_v19 = vld [vmem:[#allocation113_spill] sm:$0xff] }
 0x6ae   :  { %21103 = vst [vmem:[#allocation140_spill] sm:$0xff] %v17238_v1  ;;  %v4879_v22 = vsel %vm46_vm5, %v4802_v6, 0.0  ;;  %v4800_v57 = vsel %vm357_vm4, %v21105_v56, %v21104_v2  ;;  %v21107_v33 = vrot.slane %v20940_v12, 7  ;;  %11528 = vmatprep.mubr.msk.bf16.mxu0 %vm4172_vm8, %v21108_v19  ;;  %v21111_v61 = vrot.slane %v20939_v16, 7 }
 0x6af   :  { %v17256_v18 = vpack.c.bf16 %v4801_v3, %v4879_v22  ;;  %v4881_v46 = vsel %vm46_vm5, %v4800_v57, 0.0  ;;  %v21112_v56 = vrot.slane %v20970_v4, 7  ;;  %v21113_v1 = vrot.slane %v16562_v15, 7 }
 0x6b0   :  { %v4797_v42 = vsel %vm357_vm4, %v21107_v33, %v21106_v60  ;;  %v21110_v6 = vmov %v21107_v33  ;;  %v17272_v60 = vpack.c.bf16 %v4799_v44, %v4881_v46  ;;  %v21116_v57 = vrot.slane %v16557_v14, 7 }
 0x6b1   :  { %21109 = vst [vmem:[#allocation141_spill] sm:$0xff] %v17256_v18  ;;  %v4798_v2 = vsel %vm357_vm4, %v21111_v61, %v21110_v6  ;;  %v4795_v33 = vsel %vm357_vm4, %v21113_v1, %v21112_v56  ;;  %v21115_v22 = vmov %v21113_v1  ;;  %v21117_v61 = vrot.slane %v20972_v37, 7 }
 0x6b2   :  { %21114 = vst [vmem:[#allocation142_spill] sm:$0xff] %v17272_v60  ;;  %v4883_v3 = vsel %vm46_vm5, %v4798_v2, 0.0  ;;  %v4796_v19 = vsel %vm357_vm4, %v21116_v57, %v21115_v22  ;;  %v21118_v6 = vrot.slane %v20971_v29, 7  ;;  %v21121_v2 = vmov %v21112_v56 }
 0x6b3   :  { %v17288_v1 = vpack.c.bf16 %v4797_v42, %v4883_v3  ;;  %v4885_v44 = vsel %vm46_vm5, %v4796_v19, 0.0  ;;  %v21122_v22 = vrot.slane %v20942_v32, 7  ;;  %v21123_v57 = vrot.slane %v16574_v23, 7 }
 0x6b4   :  { %v4793_v18 = vsel %vm357_vm4, %v21118_v6, %v21117_v61  ;;  %v21120_v46 = vmov %v21118_v6  ;;  %v17304_v61 = vpack.c.bf16 %v4795_v33, %v4885_v44  ;;  %v21126_v3 = vrot.slane %v20972_v37, 7 }
 0x6b5   :  { %21119 = vst [vmem:[#allocation143_spill] sm:$0xff] %v17288_v1  ;;  %v4794_v56 = vsel %vm357_vm4, %v21121_v2, %v21120_v46  ;;  %v4791_v60 = vsel %vm357_vm4, %v21123_v57, %v21122_v22  ;;  %v21125_v19 = vmov %v21123_v57  ;;  %v21127_v46 = vrot.slane %v20943_v48, 7 }
 0x6b6   :  { %21124 = vst [vmem:[#allocation144_spill] sm:$0xff] %v17304_v61  ;;  %v4887_v42 = vsel %vm46_vm5, %v4794_v56, 0.0  ;;  %v4792_v6 = vsel %vm357_vm4, %v21126_v3, %v21125_v19  ;;  %v21128_v2 = vrot.slane %v20974_v36, 7  ;;  %v21131_v56 = vrot.slane %v20942_v32, 7 }
 0x6b7   :  { %v17320_v22 = vpack.c.bf16 %v4793_v18, %v4887_v42  ;;  %v4889_v33 = vsel %vm46_vm5, %v4792_v6, 0.0  ;;  %v21132_v19 = vrot.slane %v20945_v21, 7  ;;  %v21133_v3 = vrot.slane %v20944_v47, 7 }
 0x6b8   :  { %v4789_v1 = vsel %vm357_vm4, %v21128_v2, %v21127_v46  ;;  %v21130_v44 = vmov %v21128_v2  ;;  %v17336_v46 = vpack.c.bf16 %v4791_v60, %v4889_v33  ;;  %v21136_v6 = vrot.slane %v20943_v48, 7 }
 0x6b9   :  { %21129 = vst [vmem:[#allocation145_spill] sm:$0xff] %v17320_v22  ;;  %v4790_v57 = vsel %vm357_vm4, %v21131_v56, %v21130_v44  ;;  %v4787_v61 = vsel %vm357_vm4, %v21133_v3, %v21132_v19  ;;  %v21135_v42 = vmov %v21133_v3  ;;  %v21137_v44 = vrot.slane %v20977_v5, 7 }
 0x6ba   :  { %21134 = vst [vmem:[#allocation146_spill] sm:$0xff] %v17336_v46  ;;  %v4891_v18 = vsel %vm46_vm5, %v4790_v57, 0.0  ;;  %v4788_v2 = vsel %vm357_vm4, %v21136_v6, %v21135_v42  ;;  %v21138_v56 = vrot.slane %v20946_v63, 7  ;;  %v21141_v57 = vrot.slane %v20945_v21, 7 }
 0x6bb   :  { %v17352_v19 = vpack.c.bf16 %v4789_v1, %v4891_v18  ;;  %v4893_v60 = vsel %vm46_vm5, %v4788_v2, 0.0  ;;  %v21142_v42 = vrot.slane %v16606_v41, 7  ;;  %v21143_v6 = vrot.slane %v20948_v55, 7 }
 0x6bc   :  { %v4785_v22 = vsel %vm357_vm4, %v21138_v56, %v21137_v44  ;;  %v21140_v33 = vmov %v21138_v56  ;;  %v21144_v44 = vld [vmem:[#allocation79_spill] sm:$0xff]  ;;  %v17370_v1 = vpack.c.bf16 %v4787_v61, %v4893_v60  ;;  %v21147_v56 = vrot.slane %v20977_v5, 7 }
 0x6bd   :  { %21139 = vst [vmem:[#allocation147_spill] sm:$0xff] %v17352_v19  ;;  %v4786_v3 = vsel %vm357_vm4, %v21141_v57, %v21140_v33  ;;  %v4783_v46 = vsel %vm357_vm4, %v21143_v6, %v21142_v42  ;;  %11529 = vmatmul.mubr.msk.bf16.gmra.mrb[56].mxu0 %vm4172_vm8, %v21144_v44  ;;  %v21146_v2 = vmov %v21143_v6  ;;  %v21148_v57 = vld [vmem:[#allocation91_spill] sm:$0xff]  ;;  %v21151_v21 = vrot.slane %v21150_v49, 7  ;;  %v21165_v49 = vld [vmem:[#allocation94_spill] sm:$0xff] }
 0x6be   :  { %21145 = vst [vmem:[#allocation148_spill] sm:$0xff] %v17370_v1  ;;  %v4895_v18 = vsel %vm46_vm5, %v4786_v3, 0.0  ;;  %v4784_v33 = vsel %vm357_vm4, %v21147_v56, %v21146_v2  ;;  %v21149_v19 = vrot.slane %v21148_v57, 7  ;;  %v21152_v6 = vld [vmem:[#allocation83_spill] sm:$0xff]  ;;  %v21155_v44 = vrot.slane %v16606_v41, 7  ;;  %v21156_v56 = vld [vmem:[#allocation6_spill] sm:$0xff] }
 0x6bf   :  { %11532 = vmatprep.mubr.msk.bf16.mxu0 %vm4172_vm8, %v21152_v6  ;;  %v17388_v61 = vpack.c.bf16 %v4785_v22, %v4895_v18  ;;  %v4897_v60 = vsel %vm46_vm5, %v4784_v33, 0.0  ;;  %v21154_v3 = vmov %v21151_v21  ;;  %v21157_v1 = vld [vmem:[#allocation126_spill] sm:$0xff]  ;;  %v21162_v6 = vld [vmem:[#allocation95_spill] sm:$0xff] }
 0x6c0   :  { %v4781_v42 = vsel %vm357_vm4, %v21151_v21, %v21149_v19  ;;  %v4782_v2 = vsel %vm357_vm4, %v21155_v44, %v21154_v3  ;;  %v17400_v57 = vpack.c.bf16 %v21157_v1, %v21156_v56  ;;  %v17402_v21 = vpack.c.bf16 %v4783_v46, %v4897_v60  ;;  %v21160_v19 = vld [vmem:[#allocation96_spill] sm:$0xff] }
 0x6c1   :  { %21153 = vst [vmem:[#allocation149_spill] sm:$0xff] %v17388_v61  ;;  %v4899_v22 = vsel %vm46_vm5, %v4782_v2, 0.0  ;;  %v21161_v18 = vrot.slane %v21160_v19, 1  ;;  %v21163_v33 = vrot.slane %v21162_v6, 1  ;;  %v21166_v44 = vrot.slane %v21165_v49, 1 }
 0x6c2   :  { %21158 = vst [vmem:[#allocation6_spill] sm:$0xff] %v17400_v57  ;;  %21159 = vst [vmem:[#allocation126_spill] sm:$0xff] %v17402_v21  ;;  %v17418_v3 = vpack.c.bf16 %v4781_v42, %v4899_v22  ;;  %v21169_v2 = vrot.slane %v16430_v25, 1  ;;  %v21170_v56 = vrot.slane %v16425_v51, 1  ;;  %v21172_v6 = vrot.slane %v21160_v19, 1 }
 0x6c3   :  { %v5849_v61 = vsel %vm1377_vm6, %v21163_v33, %v21161_v18  ;;  %v21164_v41 = vmov %v21163_v33  ;;  %v21174_v22 = vrot.slane %v16433_v50, 1 }
 0x6c4   :  { %v5850_v1 = vsel %vm1377_vm6, %v21166_v44, %v21164_v41  ;;  %21167 = vst [vmem:[#allocation96_spill] sm:$0xff] %v17418_v3  ;;  %v5856_v60 = vsel %vm49_vm7, %v5849_v61, 0.0  ;;  %v5847_v57 = vsel %vm1377_vm6, %v21170_v56, %v21169_v2  ;;  %v21171_v18 = vmov %v21170_v56  ;;  %v21404_v46 = vld [vmem:[#allocation147_spill] sm:$0xff] }
 0x6c5   :  { %v5848_v49 = vsel %vm1377_vm6, %v21172_v6, %v21171_v18  ;;  %v17434_v41 = vpack.c.bf16 %v5856_v60, %v5850_v1  ;;  %v5858_v42 = vsel %vm49_vm7, %v5847_v57, 0.0  ;;  %v21173_v61 = vrot.slane %v16436_v34, 1  ;;  %v21178_v60 = vld [vmem:[#allocation99_spill] sm:$0xff] }
 0x6c6   :  { %v21175_v44 = vmov %v21174_v22  ;;  %v21176_v51 = vmov %v21169_v2  ;;  %v17450_v2 = vpack.c.bf16 %v5858_v42, %v5848_v49  ;;  %v21177_v57 = vrot.slane %v16444_v9, 1  ;;  %v21182_v42 = vld [vmem:[#allocation102_spill] sm:$0xff] }
 0x6c7   :  { %v5845_v33 = vsel %vm1377_vm6, %v21174_v22, %v21173_v61  ;;  %v5846_v19 = vsel %vm1377_vm6, %v21176_v51, %v21175_v44  ;;  %v21179_v56 = vrot.slane %v21178_v60, 1  ;;  %v21181_v50 = vmov %v21173_v61 }
 0x6c8   :  { %v5860_v1 = vsel %vm49_vm7, %v5845_v33, 0.0  ;;  %v21183_v22 = vrot.slane %v21182_v42, 1  ;;  %v21184_v33 = vld [vmem:[#allocation101_spill] sm:$0xff]  ;;  %v21187_v60 = vrot.slane %v16444_v9, 1 }
 0x6c9   :  { %v5843_v18 = vsel %vm1377_vm6, %v21179_v56, %v21177_v57  ;;  %v21180_v6 = vmov %v21179_v56  ;;  %v17466_v61 = vpack.c.bf16 %v5860_v1, %v5846_v19  ;;  %v21185_v44 = vrot.slane %v21184_v33, 1  ;;  %v21191_v33 = vld [vmem:[#allocation78_spill] sm:$0xff] }
 0x6ca   :  { %v5844_v25 = vsel %vm1377_vm6, %v21181_v50, %v21180_v6  ;;  %v5862_v49 = vsel %vm49_vm7, %v5843_v18, 0.0  ;;  %v21188_v1 = vrot.slane %v21029_v35, 1  ;;  %v21189_v18 = vrot.slane %v16453_v26, 1  ;;  %11533 = vmatmul.mubr.msk.bf16.gmra.mrb[60].mxu0 %vm4172_vm8, %v21191_v33  ;;  %v21349_v33 = vld [vmem:[#allocation148_spill] sm:$0xff] }
 0x6cb   :  { %v5841_v51 = vsel %vm1377_vm6, %v21185_v44, %v21183_v22  ;;  %v21186_v57 = vmov %v21185_v44  ;;  %v17482_v56 = vpack.c.bf16 %v5862_v49, %v5844_v25  ;;  %v21192_v44 = vrot.slane %v21036_v28, 1 }
 0x6cc   :  { %v5842_v34 = vsel %vm1377_vm6, %v21187_v60, %v21186_v57  ;;  %v5864_v19 = vsel %vm49_vm7, %v5841_v51, 0.0  ;;  %v5839_v6 = vsel %vm1377_vm6, %v21189_v18, %v21188_v1  ;;  %v21190_v50 = vmov %v21189_v18  ;;  %v21193_v51 = vld [vmem:[#allocation105_spill] sm:$0xff] }
 0x6cd   :  { %v5840_v9 = vsel %vm1377_vm6, %v21183_v22, %v21190_v50  ;;  %v17500_v25 = vpack.c.bf16 %v5864_v19, %v5842_v34  ;;  %v5866_v49 = vsel %vm49_vm7, %v5839_v6, 0.0  ;;  %v21194_v57 = vrot.slane %v21193_v51, 1  ;;  %v21199_v50 = vld [vmem:[#allocation77_spill] sm:$0xff] }
 0x6ce   :  { %v21196_v60 = vmov %v21188_v1  ;;  %v21197_v18 = vmov 0.0|0.0   ;;  %v17517_v34 = vpack.c.bf16 %v5866_v49, %v5840_v9  ;;  %v21198_v6 = vrot.slane %v16470_v31, 1 }
 0x6cf   :  { %v5837_v26 = vsel %vm1377_vm6, %v21194_v57, %v21192_v44  ;;  %v21195_v42 = vmov %v21194_v57  ;;  %11536 = vmatprep.mubr.bf16.mxu0 %v21197_v18  ;;  %v21200_v22 = vrot.slane %v21199_v50, 1  ;;  %v21202_v35 = vrot.slane %v21036_v28, 1 }
 0x6d0   :  { %v5838_v1 = vsel %vm1377_vm6, %v21196_v60, %v21195_v42  ;;  %v5868_v19 = vsel %vm49_vm7, %v5837_v26, 0.0  ;;  %v21203_v49 = vrot.slane %v21047_v53, 1  ;;  %v21204_v26 = vrot.slane %v16473_v52, 1 }
 0x6d1   :  { %v5835_v44 = vsel %vm1377_vm6, %v21200_v22, %v21198_v6  ;;  %v21201_v51 = vmov %v21200_v22  ;;  %v17533_v42 = vpack.c.bf16 %v5868_v19, %v5838_v1  ;;  %v21206_v50 = vrot.slane %v16470_v31, 1 }
 0x6d2   :  { %v5836_v57 = vsel %vm1377_vm6, %v21202_v35, %v21201_v51  ;;  %v5870_v9 = vsel %vm49_vm7, %v5835_v44, 0.0  ;;  %v5833_v60 = vsel %vm1377_vm6, %v21204_v26, %v21203_v49  ;;  %v21205_v6 = vmov %v21204_v26 }
 0x6d3   :  { %v5834_v28 = vsel %vm1377_vm6, %v21206_v50, %v21205_v6  ;;  %v17549_v22 = vpack.c.bf16 %v5870_v9, %v5836_v57  ;;  %v5872_v1 = vsel %vm49_vm7, %v5833_v60, 0.0  ;;  %v21207_v19 = vrot.slane %v21053_v8, 1 }
 0x6d4   :  { %v21208_v44 = vrot.slane %v16479_v24, 1  ;;  %v21210_v52 = vmov %v21203_v49  ;;  %v17565_v49 = vpack.c.bf16 %v5872_v1, %v5834_v28  ;;  %v21211_v9 = vrot.slane %v16488_v0, 1 }
 0x6d5   :  { %v21212_v26 = vrot.slane %v16485_v17, 1  ;;  %v21214_v24 = vmov %v21207_v19  ;;  %v21215_v1 = vrot.slane %v16494_v11, 1 }
 0x6d6   :  { %v5831_v51 = vsel %vm1377_vm6, %v21208_v44, %v21207_v19  ;;  %v21209_v35 = vmov %v21208_v44  ;;  %v21216_v19 = vrot.slane %v16491_v38, 1  ;;  %v21218_v17 = vmov %v21211_v9 }
 0x6d7   :  { %v5832_v31 = vsel %vm1377_vm6, %v21210_v52, %v21209_v35  ;;  %v5874_v57 = vsel %vm49_vm7, %v5831_v51, 0.0  ;;  %v5829_v60 = vsel %vm1377_vm6, %v21212_v26, %v21211_v9  ;;  %v21213_v6 = vmov %v21212_v26 }
 0x6d8   :  { %v5830_v53 = vsel %vm1377_vm6, %v21214_v24, %v21213_v6  ;;  %v17581_v50 = vpack.c.bf16 %v5874_v57, %v5832_v31  ;;  %v5876_v28 = vsel %vm49_vm7, %v5829_v60, 0.0  ;;  %v5827_v44 = vsel %vm1377_vm6, %v21216_v19, %v21215_v1  ;;  %v21223_v24 = vld [vmem:[#allocation45_spill] sm:$0xff] }
 0x6d9   :  { %v21217_v51 = vmov %v21216_v19  ;;  %v17597_v35 = vpack.c.bf16 %v5876_v28, %v5830_v53  ;;  %v5878_v52 = vsel %vm49_vm7, %v5827_v44, 0.0  ;;  %v21219_v31 = vrot.slane %v16500_v40, 1  ;;  %v21225_v28 = vld [vmem:[#allocation44_spill] sm:$0xff] }
 0x6da   :  { %v5828_v8 = vsel %vm1377_vm6, %v21218_v17, %v21217_v51  ;;  %v21220_v57 = vrot.slane %v16497_v58, 1  ;;  %v21222_v38 = vmov %v21215_v1  ;;  %v21224_v53 = vrot.slane %v21223_v24, 1  ;;  %v21229_v51 = vld [vmem:[#allocation12_spill] sm:$0xff] }
 0x6db   :  { %v17613_v60 = vpack.c.bf16 %v5878_v52, %v5828_v8  ;;  %v21226_v1 = vrot.slane %v21225_v28, 1  ;;  %v21228_v58 = vmov %v21219_v31  ;;  %11537 = vmatmul.mubr.msk.bf16.gmra.mrb[64].mxu0 %vm4172_vm8, %v21229_v51  ;;  %v21230_v52 = vrot.slane %v16520_v62, 1  ;;  %v21346_v51 = vld [vmem:[#allocation145_spill] sm:$0xff] }
 0x6dc   :  { %v5825_v9 = vsel %vm1377_vm6, %v21220_v57, %v21219_v31  ;;  %v21221_v26 = vmov %v21220_v57  ;;  %v21231_v31 = vrot.slane %v16515_v39, 1 }
 0x6dd   :  { %v5826_v0 = vsel %vm1377_vm6, %v21222_v38, %v21221_v26  ;;  %v5880_v6 = vsel %vm49_vm7, %v5825_v9, 0.0  ;;  %v5823_v19 = vsel %vm1377_vm6, %v21226_v1, %v21224_v53  ;;  %v21227_v44 = vmov %v21226_v1  ;;  %v21234_v38 = vld [vmem:[#allocation62_spill] sm:$0xff] }
 0x6de   :  { %v5824_v11 = vsel %vm1377_vm6, %v21228_v58, %v21227_v44  ;;  %v17631_v17 = vpack.c.bf16 %v5880_v6, %v5826_v0  ;;  %v5882_v8 = vsel %vm49_vm7, %v5823_v19, 0.0  ;;  %v5821_v57 = vsel %vm1377_vm6, %v21231_v31, %v21230_v52  ;;  %11540 = vmatprep.mubr.msk.bf16.mxu0 %vm4172_vm8, %v21234_v38  ;;  %v21345_v38 = vld [vmem:[#allocation144_spill] sm:$0xff] }
 0x6df   :  { %v21232_v40 = vmov %v21231_v31  ;;  %v21233_v9 = vrot.slane %v16512_v45, 1  ;;  %v17649_v0 = vpack.c.bf16 %v5882_v8, %v5824_v11  ;;  %v5884_v6 = vsel %vm49_vm7, %v5821_v57, 0.0 }
 0x6e0   :  { %v21235_v53 = vrot.slane %v16526_v54, 1  ;;  %v21236_v1 = vrot.slane %v16523_v27, 1  ;;  %v21238_v44 = vmov %v21230_v52  ;;  %v21239_v8 = vrot.slane %v16534_v30, 1 }
 0x6e1   :  { %v5822_v26 = vsel %vm1377_vm6, %v21233_v9, %v21232_v40  ;;  %v21240_v31 = vrot.slane %v16529_v10, 1 }
 0x6e2   :  { %v5819_v39 = vsel %vm1377_vm6, %v21236_v1, %v21235_v53  ;;  %v21237_v19 = vmov %v21236_v1  ;;  %v17665_v52 = vpack.c.bf16 %v5884_v6, %v5822_v26  ;;  %v21242_v27 = vmov %v21235_v53 }
 0x6e3   :  { %v5820_v58 = vsel %vm1377_vm6, %v21238_v44, %v21237_v19  ;;  %v5886_v11 = vsel %vm49_vm7, %v5819_v39, 0.0  ;;  %v5817_v57 = vsel %vm1377_vm6, %v21240_v31, %v21239_v8  ;;  %v21241_v40 = vmov %v21240_v31 }
 0x6e4   :  { %v5818_v62 = vsel %vm1377_vm6, %v21242_v27, %v21241_v40  ;;  %v17681_v9 = vpack.c.bf16 %v5886_v11, %v5820_v58  ;;  %v5888_v26 = vsel %vm49_vm7, %v5817_v57, 0.0  ;;  %v21243_v6 = vrot.slane %v16540_v13, 1 }
 0x6e5   :  { %v21244_v53 = vrot.slane %v16537_v59, 1  ;;  %v21246_v10 = vmov %v21239_v8  ;;  %v17697_v19 = vpack.c.bf16 %v5888_v26, %v5818_v62  ;;  %v21248_v58 = vrot.slane %v16548_v20, 1 }
 0x6e6   :  { %v21249_v11 = vrot.slane %v16543_v7, 1  ;;  %v21251_v59 = vmov %v21243_v6  ;;  %v21253_v27 = vrot.slane %v20940_v12, 1  ;;  %v21254_v62 = vrot.slane %v20939_v16, 1 }
 0x6e7   :  { %v5815_v1 = vsel %vm1377_vm6, %v21244_v53, %v21243_v6  ;;  %v21245_v39 = vmov %v21244_v53  ;;  %21247 = vst [vmem:[#allocation95_spill] sm:$0xff] %v17697_v19  ;;  %v21256_v7 = vmov %v21248_v58 }
 0x6e8   :  { %v5816_v54 = vsel %vm1377_vm6, %v21246_v10, %v21245_v39  ;;  %v5890_v44 = vsel %vm49_vm7, %v5815_v1, 0.0  ;;  %v5813_v8 = vsel %vm1377_vm6, %v21249_v11, %v21248_v58  ;;  %v21250_v31 = vmov %v21249_v11 }
 0x6e9   :  { %v5814_v30 = vsel %vm1377_vm6, %v21251_v59, %v21250_v31  ;;  %v17713_v57 = vpack.c.bf16 %v5890_v44, %v5816_v54  ;;  %v5892_v40 = vsel %vm49_vm7, %v5813_v8, 0.0  ;;  %v5811_v26 = vsel %vm1377_vm6, %v21254_v62, %v21253_v27 }
 0x6ea   :  { %v21255_v6 = vmov %v21254_v62  ;;  %v17729_v53 = vpack.c.bf16 %v5892_v40, %v5814_v30  ;;  %v5894_v1 = vsel %vm49_vm7, %v5811_v26, 0.0  ;;  %v21257_v39 = vrot.slane %v16562_v15, 1  ;;  %v21266_v40 = vld [vmem:[#allocation114_spill] sm:$0xff] }
 0x6eb   :  { %21252 = vst [vmem:[#allocation94_spill] sm:$0xff] %v17713_v57  ;;  %v5812_v13 = vsel %vm1377_vm6, %v21256_v7, %v21255_v6  ;;  %v21258_v10 = vrot.slane %v16557_v14, 1  ;;  %v21260_v16 = vmov %v21253_v27  ;;  %v21262_v8 = vrot.slane %v20971_v29, 1  ;;  %11541 = vmatmul.mubr.msk.bf16.gmra.mrb[68].mxu0 %vm4172_vm8, %v21266_v40  ;;  %v21344_v40 = vld [vmem:[#allocation143_spill] sm:$0xff] }
 0x6ec   :  { %v17745_v58 = vpack.c.bf16 %v5894_v1, %v5812_v13  ;;  %v21263_v31 = vrot.slane %v20970_v4, 1  ;;  %v21265_v14 = vmov %v21257_v39  ;;  %v21268_v26 = vrot.slane %v16574_v23, 1  ;;  %v21272_v1 = vld [vmem:[#allocation115_spill] sm:$0xff] }
 0x6ed   :  { %v5809_v54 = vsel %vm1377_vm6, %v21258_v10, %v21257_v39  ;;  %v21259_v44 = vmov %v21258_v10  ;;  %v21269_v6 = vrot.slane %v20972_v37, 1  ;;  %v21271_v7 = vmov %v21262_v8  ;;  %11544 = vmatprep.mubr.msk.bf16.mxu0 %vm4172_vm8, %v21272_v1  ;;  %v21343_v1 = vld [vmem:[#allocation142_spill] sm:$0xff] }
 0x6ee   :  { %v5810_v20 = vsel %vm1377_vm6, %v21260_v16, %v21259_v44  ;;  %21261 = vst [vmem:[#allocation73_spill] sm:$0xff] %v17745_v58  ;;  %v5896_v11 = vsel %vm49_vm7, %v5809_v54, 0.0  ;;  %v5807_v59 = vsel %vm1377_vm6, %v21263_v31, %v21262_v8  ;;  %v21264_v30 = vmov %v21263_v31 }
 0x6ef   :  { %v5808_v12 = vsel %vm1377_vm6, %v21265_v14, %v21264_v30  ;;  %v17763_v27 = vpack.c.bf16 %v5896_v11, %v5810_v20  ;;  %v5898_v62 = vsel %vm49_vm7, %v5807_v59, 0.0  ;;  %v5805_v4 = vsel %vm1377_vm6, %v21269_v6, %v21268_v26 }
 0x6f0   :  { %v21270_v15 = vmov %v21269_v6  ;;  %v17781_v39 = vpack.c.bf16 %v5898_v62, %v5808_v12  ;;  %v5900_v10 = vsel %vm49_vm7, %v5805_v4, 0.0  ;;  %v21274_v54 = vrot.slane %v20974_v36, 1  ;;  %v21285_v6 = vld [vmem:[#allocation53_spill] sm:$0xff] }
 0x6f1   :  { %21267 = vst [vmem:[#allocation99_spill] sm:$0xff] %v17763_v27  ;;  %v5806_v13 = vsel %vm1377_vm6, %v21271_v7, %v21270_v15  ;;  %v21275_v44 = vrot.slane %v20942_v32, 1  ;;  %v21277_v16 = vmov %v21268_v26  ;;  %v21279_v31 = vrot.slane %v20944_v47, 1 }
 0x6f2   :  { %21273 = vst [vmem:[#allocation102_spill] sm:$0xff] %v17781_v39  ;;  %v17797_v11 = vpack.c.bf16 %v5900_v10, %v5806_v13  ;;  %v21280_v59 = vrot.slane %v20943_v48, 1  ;;  %v21282_v32 = vmov %v21274_v54  ;;  %v21284_v26 = vrot.slane %v20946_v63, 1 }
 0x6f3   :  { %v5803_v37 = vsel %vm1377_vm6, %v21275_v44, %v21274_v54  ;;  %v21276_v29 = vmov %v21275_v44  ;;  %v21286_v4 = vrot.slane %v21285_v6, 1  ;;  %v21288_v48 = vmov %v21279_v31 }
 0x6f4   :  { %v5804_v20 = vsel %vm1377_vm6, %v21277_v16, %v21276_v29  ;;  %21278 = vst [vmem:[#allocation101_spill] sm:$0xff] %v17797_v11  ;;  %v5902_v8 = vsel %vm49_vm7, %v5803_v37, 0.0  ;;  %v5801_v30 = vsel %vm1377_vm6, %v21280_v59, %v21279_v31  ;;  %v21281_v14 = vmov %v21280_v59  ;;  %v21295_v31 = vld [vmem:[#allocation31_spill] sm:$0xff] }
 0x6f5   :  { %v5802_v23 = vsel %vm1377_vm6, %v21282_v32, %v21281_v14  ;;  %v17813_v12 = vpack.c.bf16 %v5902_v8, %v5804_v20  ;;  %v5904_v62 = vsel %vm49_vm7, %v5801_v30, 0.0  ;;  %v5799_v15 = vsel %vm1377_vm6, %v21286_v4, %v21284_v26  ;;  %v21297_v30 = vld [vmem:[#allocation18_spill] sm:$0xff] }
 0x6f6   :  { %v21287_v7 = vmov %v21286_v4  ;;  %v17829_v13 = vpack.c.bf16 %v5904_v62, %v5802_v23  ;;  %v5906_v10 = vsel %vm49_vm7, %v5799_v15, 0.0  ;;  %v21290_v54 = vrot.slane %v20948_v55, 1  ;;  %v21301_v62 = vld [vmem:[#allocation48_spill] sm:$0xff] }
 0x6f7   :  { %21283 = vst [vmem:[#allocation105_spill] sm:$0xff] %v17813_v12  ;;  %v5800_v36 = vsel %vm1377_vm6, %v21288_v48, %v21287_v7  ;;  %v21291_v44 = vrot.slane %v20977_v5, 1  ;;  %v21293_v16 = vmov %v21284_v26  ;;  %v21296_v59 = vrot.slane %v21295_v31, 1 }
 0x6f8   :  { %21289 = vst [vmem:[#allocation77_spill] sm:$0xff] %v17829_v13  ;;  %v17845_v20 = vpack.c.bf16 %v5906_v10, %v5800_v36  ;;  %v21298_v14 = vrot.slane %v21297_v30, 1  ;;  %v21300_v5 = vmov %v21290_v54  ;;  %v7133_v26 = vrot.slane %v21301_v62, 1 }
 0x6f9   :  { %v5797_v37 = vsel %vm1377_vm6, %v21291_v44, %v21290_v54  ;;  %v21292_v29 = vmov %v21291_v44  ;;  %v21303_v7 = vrot.slane %v21301_v62, 7  ;;  %v21304_v48 = vrot.slane %v21223_v24, 7  ;;  %v21307_v44 = vld [vmem:[#allocation116_spill] sm:$0xff]  ;;  %v21347_v62 = vld [vmem:[#allocation146_spill] sm:$0xff] }
 0x6fa   :  { %v5798_v47 = vsel %vm1377_vm6, %v21293_v16, %v21292_v29  ;;  %21294 = vst [vmem:[#allocation44_spill] sm:$0xff] %v17845_v20  ;;  %v5908_v8 = vsel %vm49_vm7, %v5797_v37, 0.0  ;;  %v5795_v32 = vsel %vm1377_vm6, %v21298_v14, %v21296_v59  ;;  %v21299_v23 = vmov %v21298_v14  ;;  %11545 = vmatmul.mubr.msk.bf16.gmra.mrb[72].mxu0 %vm4172_vm8, %v21307_v44  ;;  %v21308_v29 = vld [vmem:[#allocation117_spill] sm:$0xff] }
 0x6fb   :  { %v5796_v63 = vsel %vm1377_vm6, %v21300_v5, %v21299_v23  ;;  %v17862_v6 = vpack.c.bf16 %v5908_v8, %v5798_v47  ;;  %v5910_v4 = vsel %vm49_vm7, %v5795_v32, 0.0  ;;  %v6395_v36 = vsel %vm357_vm4, %v21304_v48, %v21303_v7  ;;  %11548 = vmatprep.mubr.msk.bf16.mxu0 %vm4172_vm8, %v21308_v29  ;;  %v21312_v32 = vld [vmem:[#allocation118_spill] sm:$0xff]  ;;  %v21313_v23 = vld [vmem:[#allocation119_spill] sm:$0xff]  ;;  %v21315_v5 = vld [vmem:[#allocation121_spill] sm:$0xff] }
 0x6fc   :  { %v17866_v15 = vpack.c.bf16 %v5910_v4, %v5796_v63  ;;  %v21305_v55 = vmov %v21304_v48  ;;  %v21306_v10 = vrot.slane %v21225_v28, 7  ;;  %v21309_v47 = vrot.slane %v16512_v45, 1  ;;  %v21314_v45 = vld [vmem:[#allocation120_spill] sm:$0xff]  ;;  %v21316_v63 = vld [vmem:[#allocation122_spill] sm:$0xff]  ;;  %v21319_v7 = vld [vmem:[#allocation125_spill] sm:$0xff] }
 0x6fd   :  { %21302 = vst [vmem:[#allocation53_spill] sm:$0xff] %v17862_v6  ;;  %v21310_v28 = vrot.slane %v21223_v24, 1  ;;  %v21318_v4 = vld [vmem:[#allocation124_spill] sm:$0xff]  ;;  %v21320_v48 = vld [vmem:[#allocation91_spill] sm:$0xff]  ;;  %v21342_v44 = vld [vmem:[#allocation141_spill] sm:$0xff] }
 0x6fe   :  { %v6396_v54 = vsel %vm357_vm4, %v21306_v10, %v21305_v55  ;;  %v7136_v8 = vsel %vm1377_vm6, %v7133_v26, %v21309_v47  ;;  %v21322_v55 = vld [vmem:[#allocation84_spill] sm:$0xff]  ;;  %v21324_v47 = vld [vmem:[#allocation127_spill] sm:$0xff] }
 0x6ff   :  { %v6397_v37 = vsel %vm46_vm5, %v6396_v54, 0.0  ;;  %v7137_v59 = vsel %vm1377_vm6, %v21310_v28, %v7133_v26  ;;  %v7140_v30 = vsel %vm49_vm7, %v7136_v8, 0.0  ;;  %v21317_v26 = vld [vmem:[#allocation123_spill] sm:$0xff]  ;;  %v6036_v10 = vsel %vm5056_vm9, %v21322_v55, 0  ;;  %v21325_v8 = vld [vmem:[#allocation128_spill] sm:$0xff]  ;;  %v21326_v28 = vld [vmem:[#allocation129_spill] sm:$0xff] }
 0x700   :  { %v17886_v16 = vpack.c.bf16 %v6395_v36, %v6397_v37  ;;  %v17898_v14 = vpack.c.bf16 %v7140_v30, %v7137_v59  ;;  %v17918_v36 = vpack.c.bf16 %v21320_v48, %v21295_v31  ;;  %v10046_v54 = vld [vmem:[%s20069_s7 + $0xc] sm:$0xf]  ;;  %v21323_v37 = vld [vmem:[#allocation17_spill] sm:$0xff]  ;;  %v21327_v59 = vld [vmem:[#allocation130_spill] sm:$0xff] }
 0x701   :  { %v21328_v30 = vld [vmem:[#allocation104_spill] sm:$0xff]  ;;  %v21329_v55 = vld [vmem:[#allocation66_spill] sm:$0xff]  ;;  %v21348_v24 = vld [vmem:[#allocation147_spill] sm:$0xff] }
 0x702   :  { %21311 = vst [vmem:[#allocation31_spill] sm:$0xff] %v17898_v14  ;;  %11549 = vmatmul.mubr.msk.bf16.gmra.mrb[76].mxu0 %vm4172_vm8, %v21312_v32  ;;  %21321 = vst [vmem:[#allocation18_spill] sm:$0xff] %v17918_v36  ;;  %v21331_v14 = vld [vmem:[#allocation43_spill] sm:$0xff]  ;;  %v21341_v29 = vld [vmem:[#allocation140_spill] sm:$0xff] }
 0x703   :  { %11552 = vmatprep.mubr.msk.bf16.mxu0 %vm4172_vm8, %v21313_v23  ;;  %v21339_v23 = vld [vmem:[#allocation138_spill] sm:$0xff]  ;;  %v21340_v32 = vld [vmem:[#allocation139_spill] sm:$0xff] }
 0x70a   :  { %11553 = vmatmul.mubr.msk.bf16.gmra.mrb[80].mxu0 %vm4172_vm8, %v21314_v45  ;;  %v21338_v45 = vld [vmem:[#allocation137_spill] sm:$0xff] }
 0x70b   :  { %11556 = vmatprep.mubr.msk.bf16.mxu0 %vm4172_vm8, %v21315_v5  ;;  %v21337_v5 = vld [vmem:[#allocation136_spill] sm:$0xff] }
 0x712   :  { %11557 = vmatmul.mubr.msk.bf16.gmra.mrb[84].mxu0 %vm4172_vm8, %v21316_v63  ;;  %v21336_v63 = vld [vmem:[#allocation135_spill] sm:$0xff] }
 0x713   :  { %11560 = vmatprep.mubr.msk.bf16.mxu0 %vm4172_vm8, %v21317_v26  ;;  %v21335_v26 = vld [vmem:[#allocation134_spill] sm:$0xff] }
 0x71a   :  { %11561 = vmatmul.mubr.msk.bf16.gmra.mrb[88].mxu0 %vm4172_vm8, %v21318_v4  ;;  %v21334_v4 = vld [vmem:[#allocation133_spill] sm:$0xff] }
 0x71b   :  { %11564 = vmatprep.mubr.msk.bf16.mxu0 %vm4172_vm8, %v21319_v7  ;;  %v21333_v7 = vld [vmem:[#allocation132_spill] sm:$0xff] }
 0x722   :  { %11565 = vmatmul.mubr.msk.bf16.gmra.mrb[92].mxu0 %vm4172_vm8, %v17918_v36  ;;  %v21332_v36 = vld [vmem:[#allocation46_spill] sm:$0xff] }
 0x723   :  { %11570 = vmatprep.mubr.bf16.mxu0 %v21197_v18 }
 0x72a   :  { %11571 = vmatmul.mubr.msk.bf16.vlgmr.msra.gmra.mrb[32].mxu0 %vm4172_vm8, %v21323_v37 }
 0x72b   :  { %11635 = vmatpush3.bf16.msra.mxu0 %v6036_v10  ;;  %11574 = vmatprep.mubr.msk.bf16.mxu0 %vm4172_vm8, %v21324_v47  ;;  %v21330_v10 = vld [vmem:[#allocation131_spill] sm:$0xff] }
 0x72c   :  { %13204 = vmatprep.subr.msk.bf16.mxu0 %vm5056_vm9, %v10046_v54 }
 0x732   :  { %11575 = vmatmul.mubr.msk.bf16.gmra.mrb[36].mxu0 %vm4172_vm8, %v21325_v8 }
 0x733   :  { %11578 = vmatprep.mubr.msk.bf16.mxu0 %vm4172_vm8, %v21326_v28 }
 0x73a   :  { %11579 = vmatmul.mubr.msk.bf16.gmra.mrb[40].mxu0 %vm4172_vm8, %v21327_v59 }
 0x73b   :  { %11582 = vmatprep.mubr.msk.bf16.mxu0 %vm4172_vm8, %v21328_v30 }
 0x742   :  { %11583 = vmatmul.mubr.msk.bf16.gmra.mrb[44].mxu0 %vm4172_vm8, %v21329_v55 }
 0x743   :  { %11586 = vmatprep.mubr.msk.bf16.mxu0 %vm4172_vm8, %v21330_v10 }
 0x74a   :  { %11587 = vmatmul.mubr.msk.bf16.gmra.mrb[48].mxu0 %vm4172_vm8, %v21331_v14 }
 0x74b   :  { %11590 = vmatprep.mubr.msk.bf16.mxu0 %vm4172_vm8, %v21332_v36 }
 0x752   :  { %11591 = vmatmul.mubr.msk.bf16.gmra.mrb[52].mxu0 %vm4172_vm8, %v21333_v7 }
 0x753   :  { %11594 = vmatprep.mubr.msk.bf16.mxu0 %vm4172_vm8, %v21334_v4 }
 0x75a   :  { %11595 = vmatmul.mubr.msk.bf16.gmra.mrb[56].mxu0 %vm4172_vm8, %v21335_v26 }
 0x75b   :  { %11598 = vmatprep.mubr.msk.bf16.mxu0 %vm4172_vm8, %v21336_v63 }
 0x762   :  { %11599 = vmatmul.mubr.msk.bf16.gmra.mrb[60].mxu0 %vm4172_vm8, %v21337_v5 }
 0x763   :  { %11602 = vmatprep.mubr.bf16.mxu0 %v21197_v18 }
 0x76a   :  { %11603 = vmatmul.mubr.msk.bf16.gmra.mrb[64].mxu0 %vm4172_vm8, %v21338_v45 }
 0x76b   :  { %11606 = vmatprep.mubr.msk.bf16.mxu0 %vm4172_vm8, %v21339_v23 }
 0x772   :  { %11607 = vmatmul.mubr.msk.bf16.gmra.mrb[68].mxu0 %vm4172_vm8, %v21340_v32 }
 0x773   :  { %11610 = vmatprep.mubr.msk.bf16.mxu0 %vm4172_vm8, %v21341_v29 }
 0x77a   :  { %11611 = vmatmul.mubr.msk.bf16.gmra.mrb[72].mxu0 %vm4172_vm8, %v21342_v44  ;;  %v21350_v44 = vld [vmem:[#allocation149_spill] sm:$0xff] }
 0x77b   :  { %11614 = vmatprep.mubr.msk.bf16.mxu0 %vm4172_vm8, %v21343_v1 }
 0x782   :  { %11615 = vmatmul.mubr.msk.bf16.gmra.mrb[76].mxu0 %vm4172_vm8, %v21344_v40 }
 0x783   :  { %11618 = vmatprep.mubr.msk.bf16.mxu0 %vm4172_vm8, %v21345_v38 }
 0x78a   :  { %11619 = vmatmul.mubr.msk.bf16.gmra.mrb[80].mxu0 %vm4172_vm8, %v21346_v51  ;;  %v6412_v51 = vsel %vm5056_vm9, %v10046_v54, 0 }
 0x78b   :  { %11622 = vmatprep.mubr.msk.bf16.mxu0 %vm4172_vm8, %v21347_v62  ;;  %v21351_v62 = vld [vmem:[#allocation6_spill] sm:$0xff] }
 0x792   :  { %11623 = vmatmul.mubr.msk.bf16.gmra.mrb[84].mxu0 %vm4172_vm8, %v21348_v24  ;;  %v10079_v24 = vld [vmem:[%s20069_s7 + $0x10] sm:$0xf] }
 0x793   :  { %11626 = vmatprep.mubr.msk.bf16.mxu0 %vm4172_vm8, %v21349_v33 }
 0x79a   :  { %11627 = vmatmul.mubr.msk.bf16.gmra.mrb[88].mxu0 %vm4172_vm8, %v21350_v44 }
 0x79b   :  { %11630 = vmatprep.mubr.msk.bf16.mxu0 %vm4172_vm8, %v17402_v21 }
 0x7a2   :  { %11631 = vmatmul.mubr.msk.bf16.gmra.mrb[92].mxu0 %vm4172_vm8, %v17418_v3 }
 0x7a3   :  { %11636 = vmatprep.mubr.bf16.mxu0 %v21197_v18 }
 0x7aa   :  { %11637 = vmatmul.mubr.msk.bf16.vlgmr.msra.gmra.mrb[32].mxu0 %vm4172_vm8, %v21351_v62 }
 0x7ab   :  { %11701 = vmatpush3.bf16.msra.mxu0 %v6412_v51  ;;  %11640 = vmatprep.mubr.msk.bf16.mxu0 %vm4172_vm8, %v17434_v41  ;;  %v21352_v51 = vld [vmem:[#allocation85_spill] sm:$0xff] }
 0x7ac   :  { %13205 = vmatprep.subr.msk.bf16.mxu0 %vm5056_vm9, %v10079_v24  ;;  %v18048_v54 = vmax.f32 %v21352_v51, 0.0  ;;  %v21353_v51 = vrot.slane %v21295_v31, 1  ;;  %v10112_v31 = vld [vmem:[%s20069_s7 + $0x14] sm:$0xf] }
 0x7b2   :  { %11641 = vmatmul.mubr.msk.bf16.gmra.mrb[36].mxu0 %vm4172_vm8, %v17450_v2 }
 0x7b3   :  { %11644 = vmatprep.mubr.msk.bf16.mxu0 %vm4172_vm8, %v17466_v61 }
 0x7ba   :  { %11645 = vmatmul.mubr.msk.bf16.gmra.mrb[40].mxu0 %vm4172_vm8, %v17482_v56 }
 0x7bb   :  { %11648 = vmatprep.mubr.msk.bf16.mxu0 %vm4172_vm8, %v17500_v25 }
 0x7c2   :  { %11649 = vmatmul.mubr.msk.bf16.gmra.mrb[44].mxu0 %vm4172_vm8, %v17517_v34 }
 0x7c3   :  { %11652 = vmatprep.mubr.msk.bf16.mxu0 %vm4172_vm8, %v17533_v42 }
 0x7ca   :  { %11653 = vmatmul.mubr.msk.bf16.gmra.mrb[48].mxu0 %vm4172_vm8, %v17549_v22 }
 0x7cb   :  { %11656 = vmatprep.mubr.msk.bf16.mxu0 %vm4172_vm8, %v17565_v49 }
 0x7d2   :  { %11657 = vmatmul.mubr.msk.bf16.gmra.mrb[52].mxu0 %vm4172_vm8, %v17581_v50 }
 0x7d3   :  { %11660 = vmatprep.mubr.msk.bf16.mxu0 %vm4172_vm8, %v17597_v35 }
 0x7da   :  { %11661 = vmatmul.mubr.msk.bf16.gmra.mrb[56].mxu0 %vm4172_vm8, %v17613_v60 }
 0x7db   :  { %11664 = vmatprep.mubr.msk.bf16.mxu0 %vm4172_vm8, %v17631_v17 }
 0x7e2   :  { %11665 = vmatmul.mubr.msk.bf16.gmra.mrb[60].mxu0 %vm4172_vm8, %v17649_v0 }
 0x7e3   :  { %11668 = vmatprep.mubr.bf16.mxu0 %v21197_v18  ;;  %v5791_v18 = vrot.slane %v21320_v48, 1 }
 0x7ea   :  { %11669 = vmatmul.mubr.msk.bf16.gmra.mrb[64].mxu0 %vm4172_vm8, %v17665_v52 }
 0x7eb   :  { %11672 = vmatprep.mubr.msk.bf16.mxu0 %vm4172_vm8, %v17681_v9 }
 0x7f2   :  { %11673 = vmatmul.mubr.msk.bf16.gmra.mrb[68].mxu0 %vm4172_vm8, %v17697_v19 }
 0x7f3   :  { %11676 = vmatprep.mubr.msk.bf16.mxu0 %vm4172_vm8, %v17713_v57 }
 0x7fa   :  { %11677 = vmatmul.mubr.msk.bf16.gmra.mrb[72].mxu0 %vm4172_vm8, %v17729_v53 }
 0x7fb   :  { %11680 = vmatprep.mubr.msk.bf16.mxu0 %vm4172_vm8, %v17745_v58 }
 0x802   :  { %11681 = vmatmul.mubr.msk.bf16.gmra.mrb[76].mxu0 %vm4172_vm8, %v17763_v27  ;;  %v20438_v27 = vrot.slane %v18048_v54, 1 }
 0x803   :  { %11684 = vmatprep.mubr.msk.bf16.mxu0 %vm4172_vm8, %v17781_v39 }
 0x80a   :  { %11685 = vmatmul.mubr.msk.bf16.gmra.mrb[80].mxu0 %vm4172_vm8, %v17797_v11 }
 0x80b   :  { %11688 = vmatprep.mubr.msk.bf16.mxu0 %vm4172_vm8, %v17813_v12  ;;  %v5793_v12 = vsel %vm1377_vm6, %v5791_v18, %v20438_v27  ;;  %v6778_v27 = vsel %vm5056_vm9, %v10079_v24, 0  ;;  %v21355_v24 = vld [vmem:[#allocation145_spill] sm:$0xff] }
 0x812   :  { %11689 = vmatmul.mubr.msk.bf16.gmra.mrb[84].mxu0 %vm4172_vm8, %v17829_v13  ;;  %v5912_v13 = vsel %vm49_vm7, %v5793_v12, 0.0  ;;  %v21357_v12 = vld [vmem:[#allocation147_spill] sm:$0xff] }
 0x813   :  { %11692 = vmatprep.mubr.msk.bf16.mxu0 %vm4172_vm8, %v17845_v20  ;;  %v5794_v20 = vsel %vm1377_vm6, %v21353_v51, %v5791_v18  ;;  %v21354_v18 = vld [vmem:[#allocation141_spill] sm:$0xff] }
 0x814   :  { %v18070_v11 = vpack.c.bf16 %v5912_v13, %v5794_v20  ;;  %v6392_v13 = vrot.slane %v18048_v54, 7  ;;  %v21358_v20 = vrot.slane %v21320_v48, 7  ;;  %v21361_v48 = vld [vmem:[#allocation74_spill] sm:$0xff] }
 0x81a   :  { %11693 = vmatmul.mubr.msk.bf16.gmra.mrb[88].mxu0 %vm4172_vm8, %v17862_v6 }
 0x81b   :  { %11696 = vmatprep.mubr.msk.bf16.mxu0 %vm4172_vm8, %v17866_v15 }
 0x822   :  { %11697 = vmatmul.mubr.msk.bf16.gmra.mrb[92].mxu0 %vm4172_vm8, %v18070_v11 }
 0x823   :  { %11702 = vmatprep.mubr.msk.bf16.mxu0 %vm4172_vm8, %v21323_v37  ;;  %v21359_v37 = vld [vmem:[#allocation65_spill] sm:$0xff] }
 0x824   :  { %v21360_v51 = vrot.slane %v21359_v37, 7 }
 0x82a   :  { %11703 = vmatmul.mubr.msk.bf16.vlgmr.msra.gmra.mrb[32].mxu0 %vm4172_vm8, %v21324_v47 }
 0x82b   :  { %11767 = vmatpush3.bf16.msra.mxu0 %v6778_v27  ;;  %11706 = vmatprep.mubr.msk.bf16.mxu0 %vm4172_vm8, %v21325_v8  ;;  %v21356_v27 = vld [vmem:[#allocation146_spill] sm:$0xff] }
 0x82c   :  { %13206 = vmatprep.subr.msk.bf16.mxu0 %vm5056_vm9, %v10112_v31 }
 0x832   :  { %11707 = vmatmul.mubr.msk.bf16.gmra.mrb[36].mxu0 %vm4172_vm8, %v21326_v28 }
 0x833   :  { %11710 = vmatprep.mubr.msk.bf16.mxu0 %vm4172_vm8, %v21327_v59 }
 0x83a   :  { %11711 = vmatmul.mubr.msk.bf16.gmra.mrb[40].mxu0 %vm4172_vm8, %v21328_v30 }
 0x83b   :  { %11714 = vmatprep.mubr.msk.bf16.mxu0 %vm4172_vm8, %v21329_v55 }
 0x842   :  { %11715 = vmatmul.mubr.msk.bf16.gmra.mrb[44].mxu0 %vm4172_vm8, %v21330_v10 }
 0x843   :  { %11718 = vmatprep.mubr.msk.bf16.mxu0 %vm4172_vm8, %v21331_v14 }
 0x84a   :  { %11719 = vmatmul.mubr.msk.bf16.gmra.mrb[48].mxu0 %vm4172_vm8, %v21332_v36 }
 0x84b   :  { %11722 = vmatprep.mubr.msk.bf16.mxu0 %vm4172_vm8, %v21333_v7 }
 0x852   :  { %11723 = vmatmul.mubr.msk.bf16.gmra.mrb[52].mxu0 %vm4172_vm8, %v21334_v4 }
 0x853   :  { %11726 = vmatprep.mubr.msk.bf16.mxu0 %vm4172_vm8, %v21335_v26 }
 0x85a   :  { %11727 = vmatmul.mubr.msk.bf16.gmra.mrb[56].mxu0 %vm4172_vm8, %v21336_v63 }
 0x85b   :  { %11730 = vmatprep.mubr.msk.bf16.mxu0 %vm4172_vm8, %v21337_v5 }
 0x862   :  { %11731 = vmatmul.mubr.msk.bf16.gmra.mrb[60].mxu0 %vm4172_vm8, %v17886_v16 }
 0x863   :  { %11734 = vmatprep.mubr.msk.bf16.mxu0 %vm4172_vm8, %v21338_v45  ;;  %v6394_v45 = vsel %vm357_vm4, %v21358_v20, %v6392_v13  ;;  %v7154_v20 = vsel %vm5056_vm9, %v10112_v31, 0  ;;  %v21366_v31 = vld [vmem:[#allocation107_spill] sm:$0xff] }
 0x86a   :  { %11735 = vmatmul.mubr.msk.bf16.gmra.mrb[64].mxu0 %vm4172_vm8, %v21339_v23 }
 0x86b   :  { %11738 = vmatprep.mubr.msk.bf16.mxu0 %vm4172_vm8, %v21340_v32 }
 0x872   :  { %11739 = vmatmul.mubr.msk.bf16.gmra.mrb[68].mxu0 %vm4172_vm8, %v21341_v29 }
 0x873   :  { %11742 = vmatprep.mubr.msk.bf16.mxu0 %vm4172_vm8, %v21354_v18 }
 0x87a   :  { %11743 = vmatmul.mubr.msk.bf16.gmra.mrb[72].mxu0 %vm4172_vm8, %v21343_v1 }
 0x87b   :  { %11746 = vmatprep.mubr.msk.bf16.mxu0 %vm4172_vm8, %v21344_v40 }
 0x882   :  { %11747 = vmatmul.mubr.msk.bf16.gmra.mrb[76].mxu0 %vm4172_vm8, %v21345_v38 }
 0x883   :  { %11750 = vmatprep.mubr.msk.bf16.mxu0 %vm4172_vm8, %v21355_v24 }
 0x88a   :  { %11751 = vmatmul.mubr.msk.bf16.gmra.mrb[80].mxu0 %vm4172_vm8, %v21356_v27 }
 0x88b   :  { %11754 = vmatprep.mubr.msk.bf16.mxu0 %vm4172_vm8, %v21357_v12 }
 0x892   :  { %11755 = vmatmul.mubr.msk.bf16.gmra.mrb[84].mxu0 %vm4172_vm8, %v21349_v33  ;;  %v6393_v33 = vsel %vm357_vm4, %v6392_v13, %v21360_v51  ;;  %v21363_v13 = vld [vmem:[#allocation55_spill] sm:$0xff]  ;;  %v21368_v51 = vld [vmem:[#allocation109_spill] sm:$0xff] }
 0x893   :  { %11758 = vmatprep.mubr.msk.bf16.mxu0 %vm4172_vm8, %v21350_v44  ;;  %v6399_v44 = vsel %vm46_vm5, %v6394_v45, 0.0  ;;  %v21367_v45 = vld [vmem:[#allocation108_spill] sm:$0xff] }
 0x894   :  { %v18152_v12 = vpack.c.bf16 %v6393_v33, %v6399_v44  ;;  %v21364_v33 = vld [vmem:[#allocation11_spill] sm:$0xff]  ;;  %v21365_v44 = vld [vmem:[#allocation106_spill] sm:$0xff] }
 0x89a   :  { %11759 = vmatmul.mubr.msk.bf16.gmra.mrb[88].mxu0 %vm4172_vm8, %v17402_v21  ;;  %v21362_v21 = vld [vmem:[#allocation14_spill] sm:$0xff] }
 0x89b   :  { %11762 = vmatprep.mubr.msk.bf16.mxu0 %vm4172_vm8, %v17418_v3  ;;  %v10145_v3 = vld [vmem:[%s20069_s7 + $0x18] sm:$0xf] }
 0x8a2   :  { %11763 = vmatmul.mubr.msk.bf16.gmra.mrb[92].mxu0 %vm4172_vm8, %v18152_v12 }
 0x8a3   :  { %11768 = vmatprep.mubr.msk.bf16.mxu0 %vm4172_vm8, %v21361_v48  ;;  %v21369_v48 = vld [vmem:[#allocation110_spill] sm:$0xff] }
 0x8aa   :  { %11769 = vmatmul.mubr.msk.bf16.vlgmr.msra.gmra.mrb[32].mxu0 %vm4172_vm8, %v21362_v21 }
 0x8ab   :  { %11833 = vmatpush3.bf16.msra.mxu0 %v7154_v20  ;;  %11772 = vmatprep.mubr.msk.bf16.mxu0 %vm4172_vm8, %v21363_v13  ;;  %v21370_v20 = vld [vmem:[#allocation111_spill] sm:$0xff]  ;;  %v21371_v13 = vld [vmem:[#allocation112_spill] sm:$0xff] }
 0x8ac   :  { %13207 = vmatprep.subr.msk.bf16.mxu0 %vm5056_vm9, %v10145_v3 }
 0x8b2   :  { %11773 = vmatmul.mubr.msk.bf16.gmra.mrb[36].mxu0 %vm4172_vm8, %v21364_v33  ;;  %v21372_v33 = vld [vmem:[#allocation113_spill] sm:$0xff] }
 0x8b3   :  { %11776 = vmatprep.mubr.msk.bf16.mxu0 %vm4172_vm8, %v21365_v44  ;;  %v21373_v44 = vld [vmem:[#allocation79_spill] sm:$0xff] }
 0x8ba   :  { %11777 = vmatmul.mubr.msk.bf16.gmra.mrb[40].mxu0 %vm4172_vm8, %v21366_v31  ;;  %v21374_v31 = vld [vmem:[#allocation83_spill] sm:$0xff] }
 0x8bb   :  { %11780 = vmatprep.mubr.msk.bf16.mxu0 %vm4172_vm8, %v21367_v45  ;;  %v21375_v45 = vld [vmem:[#allocation78_spill] sm:$0xff] }
 0x8c2   :  { %11781 = vmatmul.mubr.msk.bf16.gmra.mrb[44].mxu0 %vm4172_vm8, %v21368_v51  ;;  %v21376_v51 = vld [vmem:[#allocation45_spill] sm:$0xff] }
 0x8c3   :  { %11784 = vmatprep.mubr.msk.bf16.mxu0 %vm4172_vm8, %v21369_v48  ;;  %v21377_v48 = vld [vmem:[#allocation48_spill] sm:$0xff] }
 0x8c4   :  { %v18193_v21 = vpack.c.bf16 %v21377_v48, %v21376_v51  ;;  %v21384_v51 = vld [vmem:[#allocation117_spill] sm:$0xff]  ;;  %v21385_v48 = vld [vmem:[#allocation118_spill] sm:$0xff] }
 0x8c6   :  { %21378 = vst [vmem:[#allocation91_spill] sm:$0xff] %v18193_v21 }
 0x8ca   :  { %11785 = vmatmul.mubr.msk.bf16.gmra.mrb[48].mxu0 %vm4172_vm8, %v21370_v20 }
 0x8cb   :  { %11788 = vmatprep.mubr.msk.bf16.mxu0 %vm4172_vm8, %v21371_v13  ;;  %v21379_v13 = vld [vmem:[#allocation12_spill] sm:$0xff] }
 0x8d2   :  { %11789 = vmatmul.mubr.msk.bf16.gmra.mrb[52].mxu0 %vm4172_vm8, %v21372_v33  ;;  %v21380_v33 = vld [vmem:[#allocation62_spill] sm:$0xff] }
 0x8d3   :  { %11792 = vmatprep.mubr.msk.bf16.mxu0 %vm4172_vm8, %v21373_v44  ;;  %v21381_v44 = vld [vmem:[#allocation114_spill] sm:$0xff] }
 0x8da   :  { %11793 = vmatmul.mubr.msk.bf16.gmra.mrb[56].mxu0 %vm4172_vm8, %v21374_v31  ;;  %v21382_v31 = vld [vmem:[#allocation115_spill] sm:$0xff] }
 0x8db   :  { %11796 = vmatprep.mubr.msk.bf16.mxu0 %vm4172_vm8, %v21375_v45  ;;  %v21383_v45 = vld [vmem:[#allocation116_spill] sm:$0xff] }
 0x8e2   :  { %11797 = vmatmul.mubr.msk.bf16.gmra.mrb[60].mxu0 %vm4172_vm8, %v18193_v21  ;;  %v21386_v21 = vld [vmem:[#allocation119_spill] sm:$0xff] }
 0x8e3   :  { %11800 = vmatprep.mubr.msk.bf16.mxu0 %vm4172_vm8, %v21379_v13  ;;  %v21387_v13 = vld [vmem:[#allocation120_spill] sm:$0xff] }
 0x8ea   :  { %11801 = vmatmul.mubr.msk.bf16.gmra.mrb[64].mxu0 %vm4172_vm8, %v21380_v33  ;;  %v21388_v33 = vld [vmem:[#allocation121_spill] sm:$0xff] }
 0x8eb   :  { %11804 = vmatprep.mubr.msk.bf16.mxu0 %vm4172_vm8, %v21381_v44  ;;  %v21389_v44 = vld [vmem:[#allocation122_spill] sm:$0xff] }
 0x8f2   :  { %11805 = vmatmul.mubr.msk.bf16.gmra.mrb[68].mxu0 %vm4172_vm8, %v21382_v31  ;;  %v21390_v31 = vld [vmem:[#allocation123_spill] sm:$0xff] }
 0x8f3   :  { %11808 = vmatprep.mubr.msk.bf16.mxu0 %vm4172_vm8, %v21383_v45  ;;  %v21391_v45 = vld [vmem:[#allocation124_spill] sm:$0xff] }
 0x8fa   :  { %11809 = vmatmul.mubr.msk.bf16.gmra.mrb[72].mxu0 %vm4172_vm8, %v21384_v51  ;;  %v21392_v51 = vld [vmem:[#allocation125_spill] sm:$0xff] }
 0x8fb   :  { %11812 = vmatprep.mubr.msk.bf16.mxu0 %vm4172_vm8, %v21385_v48  ;;  %v21393_v48 = vld [vmem:[#allocation18_spill] sm:$0xff] }
 0x902   :  { %11813 = vmatmul.mubr.msk.bf16.gmra.mrb[76].mxu0 %vm4172_vm8, %v21386_v21 }
 0x903   :  { %11816 = vmatprep.mubr.msk.bf16.mxu0 %vm4172_vm8, %v21387_v13  ;;  %v18229_v13 = vpack.c.bf16 %v21359_v37, %v18048_v54 }
 0x90a   :  { %11817 = vmatmul.mubr.msk.bf16.gmra.mrb[80].mxu0 %vm4172_vm8, %v21388_v33 }
 0x90b   :  { %11820 = vmatprep.mubr.msk.bf16.mxu0 %vm4172_vm8, %v21389_v44 }
 0x912   :  { %11821 = vmatmul.mubr.msk.bf16.gmra.mrb[84].mxu0 %vm4172_vm8, %v21390_v31  ;;  %v7512_v31 = vsel %vm5056_vm9, %v10145_v3, 0  ;;  %v21394_v3 = vld [vmem:[#allocation31_spill] sm:$0xff] }
 0x913   :  { %11824 = vmatprep.mubr.msk.bf16.mxu0 %vm4172_vm8, %v21391_v45  ;;  %v10176_v45 = vld [vmem:[%s20069_s7 + $0x1c] sm:$0xf] }
 0x91a   :  { %11825 = vmatmul.mubr.msk.bf16.gmra.mrb[88].mxu0 %vm4172_vm8, %v21392_v51 }
 0x91b   :  { %11828 = vmatprep.mubr.msk.bf16.mxu0 %vm4172_vm8, %v21393_v48 }
 0x922   :  { %11829 = vmatmul.mubr.msk.bf16.gmra.mrb[92].mxu0 %vm4172_vm8, %v18229_v13 }
 0x923   :  { %11834 = vmatprep.mubr.msk.bf16.mxu0 %vm4172_vm8, %v21351_v62  ;;  %v21395_v62 = vld [vmem:[#allocation99_spill] sm:$0xff] }
 0x92a   :  { %11835 = vmatmul.mubr.msk.bf16.vlgmr.msra.gmra.mrb[32].mxu0 %vm4172_vm8, %v17434_v41 }
 0x92b   :  { %11899 = vmatpush3.bf16.msra.mxu0 %v7512_v31  ;;  %11838 = vmatprep.mubr.msk.bf16.mxu0 %vm4172_vm8, %v17450_v2  ;;  %v21397_v31 = vld [vmem:[#allocation105_spill] sm:$0xff] }
 0x92c   :  { %13208 = vmatprep.subr.msk.bf16.mxu0 %vm5056_vm9, %v10176_v45 }
 0x932   :  { %11839 = vmatmul.mubr.msk.bf16.gmra.mrb[36].mxu0 %vm4172_vm8, %v17466_v61 }
 0x933   :  { %11842 = vmatprep.mubr.msk.bf16.mxu0 %vm4172_vm8, %v17482_v56 }
 0x93a   :  { %11843 = vmatmul.mubr.msk.bf16.gmra.mrb[40].mxu0 %vm4172_vm8, %v17500_v25 }
 0x93b   :  { %11846 = vmatprep.mubr.msk.bf16.mxu0 %vm4172_vm8, %v17517_v34 }
 0x942   :  { %11847 = vmatmul.mubr.msk.bf16.gmra.mrb[44].mxu0 %vm4172_vm8, %v17533_v42 }
 0x943   :  { %11850 = vmatprep.mubr.msk.bf16.mxu0 %vm4172_vm8, %v17549_v22 }
 0x94a   :  { %11851 = vmatmul.mubr.msk.bf16.gmra.mrb[48].mxu0 %vm4172_vm8, %v17565_v49 }
 0x94b   :  { %11854 = vmatprep.mubr.msk.bf16.mxu0 %vm4172_vm8, %v17581_v50 }
 0x952   :  { %11855 = vmatmul.mubr.msk.bf16.gmra.mrb[52].mxu0 %vm4172_vm8, %v17597_v35 }
 0x953   :  { %11858 = vmatprep.mubr.msk.bf16.mxu0 %vm4172_vm8, %v17613_v60 }
 0x95a   :  { %11859 = vmatmul.mubr.msk.bf16.gmra.mrb[56].mxu0 %vm4172_vm8, %v17631_v17 }
 0x95b   :  { %11862 = vmatprep.mubr.msk.bf16.mxu0 %vm4172_vm8, %v17649_v0 }
 0x962   :  { %11863 = vmatmul.mubr.msk.bf16.gmra.mrb[60].mxu0 %vm4172_vm8, %v21394_v3 }
 0x963   :  { %11866 = vmatprep.mubr.msk.bf16.mxu0 %vm4172_vm8, %v17665_v52  ;;  %v21396_v52 = vld [vmem:[#allocation101_spill] sm:$0xff] }
 0x96a   :  { %11867 = vmatmul.mubr.msk.bf16.gmra.mrb[64].mxu0 %vm4172_vm8, %v17681_v9 }
 0x96b   :  { %11870 = vmatprep.mubr.msk.bf16.mxu0 %vm4172_vm8, %v17697_v19  ;;  %v21398_v19 = vld [vmem:[#allocation77_spill] sm:$0xff] }
 0x972   :  { %11871 = vmatmul.mubr.msk.bf16.gmra.mrb[68].mxu0 %vm4172_vm8, %v17713_v57  ;;  %v21399_v57 = vld [vmem:[#allocation44_spill] sm:$0xff] }
 0x973   :  { %11874 = vmatprep.mubr.msk.bf16.mxu0 %vm4172_vm8, %v17729_v53 }
 0x97a   :  { %11875 = vmatmul.mubr.msk.bf16.gmra.mrb[72].mxu0 %vm4172_vm8, %v17745_v58 }
 0x97b   :  { %11878 = vmatprep.mubr.msk.bf16.mxu0 %vm4172_vm8, %v21395_v62  ;;  %v7134_v62 = vrot.slane %v21359_v37, 1 }
 0x982   :  { %11879 = vmatmul.mubr.msk.bf16.gmra.mrb[76].mxu0 %vm4172_vm8, %v17781_v39  ;;  %v21400_v39 = vld [vmem:[#allocation92_spill] sm:$0xff] }
 0x983   :  { %11882 = vmatprep.mubr.msk.bf16.mxu0 %vm4172_vm8, %v21396_v52  ;;  %v21401_v58 = vrot.slane %v21400_v39, 1  ;;  %v10207_v39 = vld [vmem:[%s20069_s7 + $0x20] sm:$0xf] }
 0x985   :  { %v7138_v52 = vsel %vm1377_vm6, %v7134_v62, %v21401_v58  ;;  %v7870_v58 = vsel %vm5056_vm9, %v10176_v45, 0 }
 0x98a   :  { %11883 = vmatmul.mubr.msk.bf16.gmra.mrb[80].mxu0 %vm4172_vm8, %v21397_v31 }
 0x98b   :  { %11886 = vmatprep.mubr.msk.bf16.mxu0 %vm4172_vm8, %v21398_v19  ;;  %v21402_v19 = vrot.slane %v18048_v54, 1  ;;  %v21428_v54 = vld [vmem:[#allocation118_spill] sm:$0xff] }
 0x992   :  { %11887 = vmatmul.mubr.msk.bf16.gmra.mrb[84].mxu0 %vm4172_vm8, %v21399_v57  ;;  %v7135_v57 = vsel %vm1377_vm6, %v21402_v19, %v7134_v62  ;;  %v21405_v19 = vld [vmem:[#allocation148_spill] sm:$0xff] }
 0x993   :  { %11890 = vmatprep.mubr.msk.bf16.mxu0 %vm4172_vm8, %v17862_v6  ;;  %v7142_v6 = vsel %vm49_vm7, %v7138_v52, 0.0 }
 0x994   :  { %v18311_v37 = vpack.c.bf16 %v7142_v6, %v7135_v57  ;;  %v21406_v57 = vld [vmem:[#allocation149_spill] sm:$0xff]  ;;  %v8228_v6 = vsel %vm5056_vm9, %v10207_v39, 0 }
 0x99a   :  { %11891 = vmatmul.mubr.msk.bf16.gmra.mrb[88].mxu0 %vm4172_vm8, %v17866_v15 }
 0x99b   :  { %11894 = vmatprep.mubr.msk.bf16.mxu0 %vm4172_vm8, %v18070_v11 }
 0x9a2   :  { %11895 = vmatmul.mubr.msk.bf16.gmra.mrb[92].mxu0 %vm4172_vm8, %v18311_v37 }
 0x9a3   :  { %11900 = vmatprep.mubr.msk.bf16.mxu0 %vm4172_vm8, %v21324_v47  ;;  %v21421_v47 = vld [vmem:[#allocation78_spill] sm:$0xff] }
 0x9aa   :  { %11901 = vmatmul.mubr.msk.bf16.vlgmr.msra.gmra.mrb[32].mxu0 %vm4172_vm8, %v21325_v8  ;;  %v21422_v8 = vld [vmem:[#allocation91_spill] sm:$0xff] }
 0x9ab   :  { %11965 = vmatpush3.bf16.msra.mxu0 %v7870_v58  ;;  %11904 = vmatprep.mubr.msk.bf16.mxu0 %vm4172_vm8, %v21326_v28  ;;  %v21423_v28 = vld [vmem:[#allocation62_spill] sm:$0xff] }
 0x9ac   :  { %13209 = vmatprep.subr.msk.bf16.mxu0 %vm5056_vm9, %v10207_v39 }
 0x9b2   :  { %11905 = vmatmul.mubr.msk.bf16.gmra.mrb[36].mxu0 %vm4172_vm8, %v21327_v59  ;;  %v21424_v59 = vld [vmem:[#allocation114_spill] sm:$0xff] }
 0x9b3   :  { %11908 = vmatprep.mubr.msk.bf16.mxu0 %vm4172_vm8, %v21328_v30  ;;  %v21425_v30 = vld [vmem:[#allocation115_spill] sm:$0xff] }
 0x9ba   :  { %11909 = vmatmul.mubr.msk.bf16.gmra.mrb[40].mxu0 %vm4172_vm8, %v21329_v55  ;;  %v21426_v55 = vld [vmem:[#allocation116_spill] sm:$0xff] }
 0x9bb   :  { %11912 = vmatprep.mubr.msk.bf16.mxu0 %vm4172_vm8, %v21330_v10  ;;  %v21427_v10 = vld [vmem:[#allocation117_spill] sm:$0xff] }
 0x9c2   :  { %11913 = vmatmul.mubr.msk.bf16.gmra.mrb[44].mxu0 %vm4172_vm8, %v21331_v14  ;;  %v21412_v14 = vld [vmem:[#allocation106_spill] sm:$0xff] }
 0x9c3   :  { %11916 = vmatprep.mubr.msk.bf16.mxu0 %vm4172_vm8, %v21332_v36  ;;  %v21420_v36 = vld [vmem:[#allocation83_spill] sm:$0xff] }
 0x9ca   :  { %11917 = vmatmul.mubr.msk.bf16.gmra.mrb[48].mxu0 %vm4172_vm8, %v21333_v7  ;;  %v21419_v7 = vld [vmem:[#allocation79_spill] sm:$0xff] }
 0x9cb   :  { %11920 = vmatprep.mubr.msk.bf16.mxu0 %vm4172_vm8, %v21334_v4  ;;  %v21418_v4 = vld [vmem:[#allocation113_spill] sm:$0xff] }
 0x9d2   :  { %11921 = vmatmul.mubr.msk.bf16.gmra.mrb[52].mxu0 %vm4172_vm8, %v21335_v26  ;;  %v21417_v26 = vld [vmem:[#allocation112_spill] sm:$0xff] }
 0x9d3   :  { %11924 = vmatprep.mubr.msk.bf16.mxu0 %vm4172_vm8, %v21336_v63  ;;  %v21416_v63 = vld [vmem:[#allocation110_spill] sm:$0xff] }
 0x9da   :  { %11925 = vmatmul.mubr.msk.bf16.gmra.mrb[56].mxu0 %vm4172_vm8, %v21337_v5  ;;  %v21415_v5 = vld [vmem:[#allocation109_spill] sm:$0xff] }
 0x9db   :  { %11928 = vmatprep.mubr.msk.bf16.mxu0 %vm4172_vm8, %v17886_v16  ;;  %v21411_v16 = vld [vmem:[#allocation11_spill] sm:$0xff] }
 0x9e2   :  { %11929 = vmatmul.mubr.bf16.gmra.mrb[60].mxu0 %v21403_v43 }
 0x9e3   :  { %11932 = vmatprep.mubr.msk.bf16.mxu0 %vm4172_vm8, %v21339_v23  ;;  %v21414_v23 = vld [vmem:[#allocation108_spill] sm:$0xff] }
 0x9ea   :  { %11933 = vmatmul.mubr.msk.bf16.gmra.mrb[64].mxu0 %vm4172_vm8, %v21340_v32  ;;  %v21413_v32 = vld [vmem:[#allocation107_spill] sm:$0xff] }
 0x9eb   :  { %11936 = vmatprep.mubr.msk.bf16.mxu0 %vm4172_vm8, %v21341_v29  ;;  %v21410_v29 = vld [vmem:[#allocation55_spill] sm:$0xff] }
 0x9f2   :  { %11937 = vmatmul.mubr.msk.bf16.gmra.mrb[68].mxu0 %vm4172_vm8, %v21354_v18  ;;  %v21429_v18 = vld [vmem:[#allocation120_spill] sm:$0xff] }
 0x9f3   :  { %11940 = vmatprep.mubr.msk.bf16.mxu0 %vm4172_vm8, %v21343_v1  ;;  %v21407_v1 = vld [vmem:[#allocation126_spill] sm:$0xff] }
 0x9fa   :  { %11941 = vmatmul.mubr.msk.bf16.gmra.mrb[72].mxu0 %vm4172_vm8, %v21344_v40  ;;  %v21408_v40 = vld [vmem:[#allocation96_spill] sm:$0xff] }
 0x9fb   :  { %11944 = vmatprep.mubr.msk.bf16.mxu0 %vm4172_vm8, %v21345_v38  ;;  %v21409_v38 = vld [vmem:[#allocation14_spill] sm:$0xff] }
 0xa02   :  { %11945 = vmatmul.mubr.msk.bf16.gmra.mrb[76].mxu0 %vm4172_vm8, %v21355_v24  ;;  %v21430_v24 = vld [vmem:[#allocation123_spill] sm:$0xff] }
 0xa03   :  { %11948 = vmatprep.mubr.msk.bf16.mxu0 %vm4172_vm8, %v21356_v27  ;;  %v21431_v27 = vld [vmem:[#allocation124_spill] sm:$0xff] }
 0xa0a   :  { %11949 = vmatmul.mubr.msk.bf16.gmra.mrb[80].mxu0 %vm4172_vm8, %v21404_v46 }
 0xa0b   :  { %11952 = vmatprep.mubr.msk.bf16.mxu0 %vm4172_vm8, %v21405_v19 }
 0xa12   :  { %11953 = vmatmul.mubr.msk.bf16.gmra.mrb[84].mxu0 %vm4172_vm8, %v21406_v57 }
 0xa13   :  { %11956 = vmatprep.mubr.msk.bf16.mxu0 %vm4172_vm8, %v21407_v1 }
 0xa1a   :  { %11957 = vmatmul.mubr.msk.bf16.gmra.mrb[88].mxu0 %vm4172_vm8, %v21408_v40 }
 0xa1b   :  { %11960 = vmatprep.mubr.msk.bf16.mxu0 %vm4172_vm8, %v18152_v12 }
 0xa22   :  { %11961 = vmatmul.mubr.bf16.gmra.mrb[92].mxu0 %v21403_v43 }
 0xa23   :  { %11966 = vmatprep.mubr.msk.bf16.mxu0 %vm4172_vm8, %v21409_v38 }
 0xa2a   :  { %11967 = vmatmul.mubr.msk.bf16.vlgmr.msra.gmra.mrb[32].mxu0 %vm4172_vm8, %v21410_v29 }
 0xa2b   :  { %12031 = vmatpush3.bf16.msra.mxu0 %v8228_v6  ;;  %11970 = vmatprep.mubr.msk.bf16.mxu0 %vm4172_vm8, %v21411_v16 }
 0xa32   :  { %11971 = vmatmul.mubr.msk.bf16.gmra.mrb[36].mxu0 %vm4172_vm8, %v21412_v14 }
 0xa33   :  { %11974 = vmatprep.mubr.msk.bf16.mxu0 %vm4172_vm8, %v21413_v32 }
 0xa3a   :  { %11975 = vmatmul.mubr.msk.bf16.gmra.mrb[40].mxu0 %vm4172_vm8, %v21414_v23 }
 0xa3b   :  { %11978 = vmatprep.mubr.msk.bf16.mxu0 %vm4172_vm8, %v21415_v5 }
 0xa42   :  { %11979 = vmatmul.mubr.msk.bf16.gmra.mrb[44].mxu0 %vm4172_vm8, %v21416_v63 }
 0xa43   :  { %11982 = vmatprep.mubr.msk.bf16.mxu0 %vm4172_vm8, %v21370_v20 }
 0xa4a   :  { %11983 = vmatmul.mubr.msk.bf16.gmra.mrb[48].mxu0 %vm4172_vm8, %v21417_v26 }
 0xa4b   :  { %11986 = vmatprep.mubr.msk.bf16.mxu0 %vm4172_vm8, %v21418_v4 }
 0xa52   :  { %11987 = vmatmul.mubr.msk.bf16.gmra.mrb[52].mxu0 %vm4172_vm8, %v21419_v7 }
 0xa53   :  { %11990 = vmatprep.mubr.msk.bf16.mxu0 %vm4172_vm8, %v21420_v36 }
 0xa5a   :  { %11991 = vmatmul.mubr.msk.bf16.gmra.mrb[56].mxu0 %vm4172_vm8, %v21421_v47 }
 0xa5b   :  { %11994 = vmatprep.mubr.msk.bf16.mxu0 %vm4172_vm8, %v21422_v8 }
 0xa62   :  { %11995 = vmatmul.mubr.bf16.gmra.mrb[60].mxu0 %v21403_v43 }
 0xa63   :  { %11998 = vmatprep.mubr.msk.bf16.mxu0 %vm4172_vm8, %v21423_v28 }
 0xa6a   :  { %11999 = vmatmul.mubr.msk.bf16.gmra.mrb[64].mxu0 %vm4172_vm8, %v21424_v59 }
 0xa6b   :  { %12002 = vmatprep.mubr.msk.bf16.mxu0 %vm4172_vm8, %v21425_v30 }
 0xa72   :  { %12003 = vmatmul.mubr.msk.bf16.gmra.mrb[68].mxu0 %vm4172_vm8, %v21426_v55 }
 0xa73   :  { %12006 = vmatprep.mubr.msk.bf16.mxu0 %vm4172_vm8, %v21427_v10 }
 0xa7a   :  { %12007 = vmatmul.mubr.msk.bf16.gmra.mrb[72].mxu0 %vm4172_vm8, %v21428_v54 }
 0xa7b   :  { %12010 = vmatprep.mubr.msk.bf16.mxu0 %vm4172_vm8, %v21386_v21  ;;  %v21432_v21 = vld [vmem:[#allocation95_spill] sm:$0xff] }
 0xa82   :  { %12011 = vmatmul.mubr.msk.bf16.gmra.mrb[76].mxu0 %vm4172_vm8, %v21429_v18 }
 0xa83   :  { %12014 = vmatprep.mubr.msk.bf16.mxu0 %vm4172_vm8, %v21388_v33 }
 0xa8a   :  { %12015 = vmatmul.mubr.msk.bf16.gmra.mrb[80].mxu0 %vm4172_vm8, %v21389_v44 }
 0xa8b   :  { %12018 = vmatprep.mubr.msk.bf16.mxu0 %vm4172_vm8, %v21430_v24 }
 0xa92   :  { %12019 = vmatmul.mubr.msk.bf16.gmra.mrb[84].mxu0 %vm4172_vm8, %v21431_v27 }
 0xa93   :  { %12022 = vmatprep.mubr.msk.bf16.mxu0 %vm4172_vm8, %v21392_v51 }
 0xa9a   :  { %12023 = vmatmul.mubr.msk.bf16.gmra.mrb[88].mxu0 %vm4172_vm8, %v21393_v48 }
 0xa9b   :  { %12026 = vmatprep.mubr.msk.bf16.mxu0 %vm4172_vm8, %v18229_v13 }
 0xaa2   :  { %12027 = vmatmul.mubr.bf16.gmra.mrb[92].mxu0 %v21403_v43 }
 0xaa3   :  { %12032 = vmatprep.mubr.msk.bf16.mxu0 %vm4172_vm8, %v17434_v41  ;;  %v21433_v41 = vld [vmem:[#allocation94_spill] sm:$0xff] }
 0xaaa   :  { %12033 = vmatmul.mubr.msk.bf16.vlgmr.msra.gmra.mrb[32].mxu0 %vm4172_vm8, %v17450_v2  ;;  %v21434_v2 = vld [vmem:[#allocation73_spill] sm:$0xff] }
 0xaab   :  { %12036 = vmatprep.mubr.msk.bf16.mxu0 %vm4172_vm8, %v17466_v61  ;;  %v21435_v61 = vld [vmem:[#allocation99_spill] sm:$0xff] }
 0xab2   :  { %12037 = vmatmul.mubr.msk.bf16.gmra.mrb[36].mxu0 %vm4172_vm8, %v17482_v56  ;;  %v21436_v56 = vld [vmem:[#allocation102_spill] sm:$0xff] }
 0xab3   :  { %12040 = vmatprep.mubr.msk.bf16.mxu0 %vm4172_vm8, %v17500_v25  ;;  %v21437_v25 = vld [vmem:[#allocation101_spill] sm:$0xff] }
 0xaba   :  { %12041 = vmatmul.mubr.msk.bf16.gmra.mrb[40].mxu0 %vm4172_vm8, %v17517_v34  ;;  %v21438_v34 = vld [vmem:[#allocation77_spill] sm:$0xff] }
 0xabb   :  { %12044 = vmatprep.mubr.msk.bf16.mxu0 %vm4172_vm8, %v17533_v42  ;;  %v21439_v42 = vld [vmem:[#allocation44_spill] sm:$0xff] }
 0xac2   :  { %12045 = vmatmul.mubr.msk.bf16.gmra.mrb[44].mxu0 %vm4172_vm8, %v17549_v22  ;;  %v21440_v22 = vld [vmem:[#allocation53_spill] sm:$0xff] }
 0xac3   :  { %12048 = vmatprep.mubr.msk.bf16.mxu0 %vm4172_vm8, %v17565_v49 }
 0xaca   :  { %12049 = vmatmul.mubr.msk.bf16.gmra.mrb[48].mxu0 %vm4172_vm8, %v17581_v50 }
 0xacb   :  { %12052 = vmatprep.mubr.msk.bf16.mxu0 %vm4172_vm8, %v17597_v35 }
 0xad2   :  { %12053 = vmatmul.mubr.msk.bf16.gmra.mrb[52].mxu0 %vm4172_vm8, %v17613_v60 }
 0xad3   :  { %12056 = vmatprep.mubr.msk.bf16.mxu0 %vm4172_vm8, %v17631_v17 }
 0xada   :  { %12057 = vmatmul.mubr.msk.bf16.gmra.mrb[56].mxu0 %vm4172_vm8, %v17649_v0 }
 0xadb   :  { %12060 = vmatprep.mubr.msk.bf16.mxu0 %vm4172_vm8, %v21394_v3 }
 0xae2   :  { %12061 = vmatmul.mubr.bf16.gmra.mrb[60].mxu0 %v21403_v43 }
 0xae3   :  { %12064 = vmatprep.mubr.msk.bf16.mxu0 %vm4172_vm8, %v17681_v9 }
 0xaea   :  { %12065 = vmatmul.mubr.msk.bf16.gmra.mrb[64].mxu0 %vm4172_vm8, %v21432_v21 }
 0xaeb   :  { %12068 = vmatprep.mubr.msk.bf16.mxu0 %vm4172_vm8, %v21433_v41 }
 0xaf2   :  { %12069 = vmatmul.mubr.msk.bf16.gmra.mrb[68].mxu0 %vm4172_vm8, %v17729_v53 }
 0xaf3   :  { %12072 = vmatprep.mubr.msk.bf16.mxu0 %vm4172_vm8, %v21434_v2 }
 0xafa   :  { %12073 = vmatmul.mubr.msk.bf16.gmra.mrb[72].mxu0 %vm4172_vm8, %v21435_v61 }
 0xafb   :  { %12076 = vmatprep.mubr.msk.bf16.mxu0 %vm4172_vm8, %v21436_v56 }
 0xb02   :  { %12077 = vmatmul.mubr.msk.bf16.gmra.mrb[76].mxu0 %vm4172_vm8, %v21437_v25 }
 0xb03   :  { %12080 = vmatprep.mubr.msk.bf16.mxu0 %vm4172_vm8, %v21397_v31 }
 0xb0a   :  { %12081 = vmatmul.mubr.msk.bf16.gmra.mrb[80].mxu0 %vm4172_vm8, %v21438_v34 }
 0xb0b   :  { %12084 = vmatprep.mubr.msk.bf16.mxu0 %vm4172_vm8, %v21439_v42 }
 0xb12   :  { %12085 = vmatmul.mubr.msk.bf16.gmra.mrb[84].mxu0 %vm4172_vm8, %v21440_v22 }
 0xb13   :  { %12088 = vmatprep.mubr.msk.bf16.mxu0 %vm4172_vm8, %v17866_v15 }
 0xb1a   :  { %12089 = vmatmul.mubr.msk.bf16.gmra.mrb[88].mxu0 %vm4172_vm8, %v18070_v11 }
 0xb1b   :  { %12092 = vmatprep.mubr.msk.bf16.mxu0 %vm4172_vm8, %v18311_v37 }
 0xb22   :  { %12093 = vmatmul.mubr.bf16.gmra.mrb[92].mxu0 %v21403_v43 }
 0xb7d   :  { %v18507_v49 = vpop.f32.mrb[32].mxu0 }
 0xb7e   :  { %v18509_v50 = vpop.f32.mrb[33].mxu0  ;;  %v8718_v0 = vmul.f32 %v18507_v49, %v18507_v49  ;;  %v8586_v12 = vsel %vm4172_vm8, %v18507_v49, 0.0 }
 0xb7f   :  { %v8716_v35 = vmul.f32 %v18509_v50, %v18509_v50  ;;  %v18513_v60 = vpop.f32.mrb[34].mxu0  ;;  %v8583_v9 = vsel %vm4172_vm8, %v18509_v50, 0.0 }
 0xb80   :  { %v18515_v17 = vpop.f32.mrb[35].mxu0  ;;  %v8719_v44 = vmul.f32 %v18513_v60, %v18513_v60  ;;  %v8783_v48 = vsel %vm4172_vm8, %v8718_v0, 0.0  ;;  %v8588_v13 = vsel %vm4172_vm8, %v18513_v60, 0.0 }
 0xb81   :  { %v8584_v53 = vsel %vm4172_vm8, %v18515_v17, 0.0  ;;  %v8717_v11 = vmul.f32 %v18515_v17, %v18515_v17  ;;  %v8780_v33 = vsel %vm4172_vm8, %v8716_v35, 0.0 }
 0xb82   :  { %v8585_v15 = vadd.f32 %v8584_v53, %v8583_v9  ;;  %v8785_v37 = vsel %vm4172_vm8, %v8719_v44, 0.0 }
 0xb83   :  { %v8781_v45 = vsel %vm4172_vm8, %v8717_v11, 0.0 }
 0xb84   :  { %v8587_v20 = vadd.f32 %v8586_v12, %v8585_v15  ;;  %v8782_v51 = vadd.f32 %v8781_v45, %v8780_v33 }
 0xb85   :  { %v18534_v3 = vpop.f32.mrb[36].mxu0 }
 0xb86   :  { %v8784_v62 = vadd.f32 %v8783_v48, %v8782_v51  ;;  %v18536_v52 = vpop.f32.mrb[37].mxu0  ;;  %v8589_v31 = vadd.f32 %v8588_v13, %v8587_v20  ;;  %v8722_v1 = vmul.f32 %v18534_v3, %v18534_v3  ;;  %v8594_v14 = vsel %vm4172_vm8, %v18534_v3, 0.0 }
 0xb87   :  { %v8590_v58 = vsel %vm4172_vm8, %v18536_v52, 0.0  ;;  %v8720_v39 = vmul.f32 %v18536_v52, %v18536_v52  ;;  %v18543_v43 = vpop.f32.mrb[38].mxu0 }
 0xb88   :  { %v8591_v46 = vadd.f32 %v8590_v58, %v8589_v31  ;;  %v8786_v19 = vadd.f32 %v8785_v37, %v8784_v62  ;;  %v18545_v57 = vpop.f32.mrb[39].mxu0  ;;  %v8723_v32 = vmul.f32 %v18543_v43, %v18543_v43  ;;  %v8791_v26 = vsel %vm4172_vm8, %v8722_v1, 0.0 }
 0xb89   :  { %v8787_v40 = vsel %vm4172_vm8, %v8720_v39, 0.0  ;;  %v8592_v38 = vsel %vm4172_vm8, %v18545_v57, 0.0  ;;  %v8721_v6 = vmul.f32 %v18545_v57, %v18545_v57  ;;  %v8596_v4 = vsel %vm4172_vm8, %v18543_v43, 0.0 }
 0xb8a   :  { %v8788_v29 = vadd.f32 %v8787_v40, %v8786_v19  ;;  %v8593_v16 = vadd.f32 %v8592_v38, %v8591_v46  ;;  %v8793_v28 = vsel %vm4172_vm8, %v8723_v32, 0.0 }
 0xb8b   :  { %v8789_v23 = vsel %vm4172_vm8, %v8721_v6, 0.0 }
 0xb8c   :  { %v8595_v5 = vadd.f32 %v8594_v14, %v8593_v16  ;;  %v8790_v63 = vadd.f32 %v8789_v23, %v8788_v29 }
 0xb8d   :  { %v18562_v7 = vpop.f32.mrb[40].mxu0 }
 0xb8e   :  { %v8792_v36 = vadd.f32 %v8791_v26, %v8790_v63  ;;  %v18564_v47 = vpop.f32.mrb[41].mxu0  ;;  %v8597_v8 = vadd.f32 %v8596_v4, %v8595_v5  ;;  %v8726_v24 = vmul.f32 %v18562_v7, %v18562_v7  ;;  %v8602_v56 = vsel %vm4172_vm8, %v18562_v7, 0.0 }
 0xb8f   :  { %v8598_v59 = vsel %vm4172_vm8, %v18564_v47, 0.0  ;;  %v8724_v30 = vmul.f32 %v18564_v47, %v18564_v47  ;;  %v18571_v55 = vpop.f32.mrb[42].mxu0 }
 0xb90   :  { %v8599_v10 = vadd.f32 %v8598_v59, %v8597_v8  ;;  %v8794_v54 = vadd.f32 %v8793_v28, %v8792_v36  ;;  %v18573_v18 = vpop.f32.mrb[43].mxu0  ;;  %v8727_v25 = vmul.f32 %v18571_v55, %v18571_v55  ;;  %v8799_v35 = vsel %vm4172_vm8, %v8726_v24, 0.0 }
 0xb91   :  { %v8795_v27 = vsel %vm4172_vm8, %v8724_v30, 0.0  ;;  %v8600_v21 = vsel %vm4172_vm8, %v18573_v18, 0.0  ;;  %v8725_v41 = vmul.f32 %v18573_v18, %v18573_v18  ;;  %v8604_v0 = vsel %vm4172_vm8, %v18571_v55, 0.0 }
 0xb92   :  { %v8796_v2 = vadd.f32 %v8795_v27, %v8794_v54  ;;  %v8601_v61 = vadd.f32 %v8600_v21, %v8599_v10  ;;  %v8801_v12 = vsel %vm4172_vm8, %v8727_v25, 0.0 }
 0xb93   :  { %v8797_v34 = vsel %vm4172_vm8, %v8725_v41, 0.0 }
 0xb94   :  { %v8603_v42 = vadd.f32 %v8602_v56, %v8601_v61  ;;  %v8798_v22 = vadd.f32 %v8797_v34, %v8796_v2 }
 0xb95   :  { %v18590_v9 = vpop.f32.mrb[44].mxu0 }
 0xb96   :  { %v8800_v53 = vadd.f32 %v8799_v35, %v8798_v22  ;;  %v18592_v11 = vpop.f32.mrb[45].mxu0  ;;  %v8605_v15 = vadd.f32 %v8604_v0, %v8603_v42  ;;  %v8730_v13 = vmul.f32 %v18590_v9, %v18590_v9  ;;  %v8610_v46 = vsel %vm4172_vm8, %v18590_v9, 0.0 }
 0xb97   :  { %v8606_v33 = vsel %vm4172_vm8, %v18592_v11, 0.0  ;;  %v8728_v44 = vmul.f32 %v18592_v11, %v18592_v11  ;;  %v18599_v45 = vpop.f32.mrb[46].mxu0 }
 0xb98   :  { %v8607_v20 = vadd.f32 %v8606_v33, %v8605_v15  ;;  %v8802_v51 = vadd.f32 %v8801_v12, %v8800_v53  ;;  %v18601_v48 = vpop.f32.mrb[47].mxu0  ;;  %v8731_v19 = vmul.f32 %v18599_v45, %v18599_v45  ;;  %v8807_v6 = vsel %vm4172_vm8, %v8730_v13, 0.0 }
 0xb99   :  { %v8803_v62 = vsel %vm4172_vm8, %v8728_v44, 0.0  ;;  %v8608_v31 = vsel %vm4172_vm8, %v18601_v48, 0.0  ;;  %v8729_v37 = vmul.f32 %v18601_v48, %v18601_v48  ;;  %v8612_v29 = vsel %vm4172_vm8, %v18599_v45, 0.0 }
 0xb9a   :  { %v8804_v58 = vadd.f32 %v8803_v62, %v8802_v51  ;;  %v8609_v39 = vadd.f32 %v8608_v31, %v8607_v20  ;;  %v8809_v5 = vsel %vm4172_vm8, %v8731_v19, 0.0 }
 0xb9b   :  { %v8805_v1 = vsel %vm4172_vm8, %v8729_v37, 0.0 }
 0xb9c   :  { %v8611_v40 = vadd.f32 %v8610_v46, %v8609_v39  ;;  %v8806_v38 = vadd.f32 %v8805_v1, %v8804_v58 }
 0xb9d   :  { %v18618_v16 = vpop.f32.mrb[48].mxu0 }
 0xb9e   :  { %v8808_v14 = vadd.f32 %v8807_v6, %v8806_v38  ;;  %v18620_v32 = vpop.f32.mrb[49].mxu0  ;;  %v8613_v23 = vadd.f32 %v8612_v29, %v8611_v40  ;;  %v8734_v59 = vmul.f32 %v18618_v16, %v18618_v16  ;;  %v8618_v21 = vsel %vm4172_vm8, %v18618_v16, 0.0 }
 0xb9f   :  { %v8614_v63 = vsel %vm4172_vm8, %v18620_v32, 0.0  ;;  %v8732_v26 = vmul.f32 %v18620_v32, %v18620_v32  ;;  %v18627_v4 = vpop.f32.mrb[50].mxu0 }
 0xba0   :  { %v8615_v36 = vadd.f32 %v8614_v63, %v8613_v23  ;;  %v8810_v8 = vadd.f32 %v8809_v5, %v8808_v14  ;;  %v18629_v28 = vpop.f32.mrb[51].mxu0  ;;  %v8735_v41 = vmul.f32 %v18627_v4, %v18627_v4  ;;  %v8815_v25 = vsel %vm4172_vm8, %v8734_v59, 0.0 }
 0xba1   :  { %v8811_v30 = vsel %vm4172_vm8, %v8732_v26, 0.0  ;;  %v8616_v10 = vsel %vm4172_vm8, %v18629_v28, 0.0  ;;  %v8733_v54 = vmul.f32 %v18629_v28, %v18629_v28  ;;  %v8620_v34 = vsel %vm4172_vm8, %v18627_v4, 0.0 }
 0xba2   :  { %v8812_v24 = vadd.f32 %v8811_v30, %v8810_v8  ;;  %v8617_v27 = vadd.f32 %v8616_v10, %v8615_v36  ;;  %v8817_v53 = vsel %vm4172_vm8, %v8735_v41, 0.0 }
 0xba3   :  { %v8813_v2 = vsel %vm4172_vm8, %v8733_v54, 0.0 }
 0xba4   :  { %v8619_v61 = vadd.f32 %v8618_v21, %v8617_v27  ;;  %v8814_v56 = vadd.f32 %v8813_v2, %v8812_v24 }
 0xba5   :  { %v18646_v42 = vpop.f32.mrb[52].mxu0 }
 0xba6   :  { %v8816_v22 = vadd.f32 %v8815_v25, %v8814_v56  ;;  %v18648_v35 = vpop.f32.mrb[53].mxu0  ;;  %v8621_v0 = vadd.f32 %v8620_v34, %v8619_v61  ;;  %v8738_v13 = vmul.f32 %v18646_v42, %v18646_v42  ;;  %v8626_v46 = vsel %vm4172_vm8, %v18646_v42, 0.0 }
 0xba7   :  { %v8622_v15 = vsel %vm4172_vm8, %v18648_v35, 0.0  ;;  %v8736_v12 = vmul.f32 %v18648_v35, %v18648_v35  ;;  %v18655_v33 = vpop.f32.mrb[54].mxu0 }
 0xba8   :  { %v8623_v44 = vadd.f32 %v8622_v15, %v8621_v0  ;;  %v8818_v20 = vadd.f32 %v8817_v53, %v8816_v22  ;;  %v18657_v51 = vpop.f32.mrb[55].mxu0  ;;  %v8739_v19 = vmul.f32 %v18655_v33, %v18655_v33  ;;  %v8823_v6 = vsel %vm4172_vm8, %v8738_v13, 0.0 }
 0xba9   :  { %v8819_v62 = vsel %vm4172_vm8, %v8736_v12, 0.0  ;;  %v8624_v31 = vsel %vm4172_vm8, %v18657_v51, 0.0  ;;  %v8737_v37 = vmul.f32 %v18657_v51, %v18657_v51  ;;  %v8628_v29 = vsel %vm4172_vm8, %v18655_v33, 0.0 }
 0xbaa   :  { %v8820_v58 = vadd.f32 %v8819_v62, %v8818_v20  ;;  %v8625_v39 = vadd.f32 %v8624_v31, %v8623_v44  ;;  %v8825_v26 = vsel %vm4172_vm8, %v8739_v19, 0.0 }
 0xbab   :  { %v8821_v1 = vsel %vm4172_vm8, %v8737_v37, 0.0 }
 0xbac   :  { %v8627_v40 = vadd.f32 %v8626_v46, %v8625_v39  ;;  %v8822_v38 = vadd.f32 %v8821_v1, %v8820_v58 }
 0xbad   :  { %v18674_v14 = vpop.f32.mrb[56].mxu0 }
 0xbae   :  { %v8824_v23 = vadd.f32 %v8823_v6, %v8822_v38  ;;  %v18676_v5 = vpop.f32.mrb[57].mxu0  ;;  %v8629_v63 = vadd.f32 %v8628_v29, %v8627_v40  ;;  %v8742_v24 = vmul.f32 %v18674_v14, %v18674_v14  ;;  %v8634_v56 = vsel %vm4172_vm8, %v18674_v14, 0.0 }
 0xbaf   :  { %v8630_v36 = vsel %vm4172_vm8, %v18676_v5, 0.0  ;;  %v8740_v8 = vmul.f32 %v18676_v5, %v18676_v5  ;;  %v18683_v59 = vpop.f32.mrb[58].mxu0 }
 0xbb0   :  { %v8631_v30 = vadd.f32 %v8630_v36, %v8629_v63  ;;  %v8826_v10 = vadd.f32 %v8825_v26, %v8824_v23  ;;  %v18685_v54 = vpop.f32.mrb[59].mxu0  ;;  %v8743_v25 = vmul.f32 %v18683_v59, %v18683_v59  ;;  %v8831_v53 = vsel %vm4172_vm8, %v8742_v24, 0.0 }
 0xbb1   :  { %v8827_v27 = vsel %vm4172_vm8, %v8740_v8, 0.0  ;;  %v8632_v21 = vsel %vm4172_vm8, %v18685_v54, 0.0  ;;  %v8741_v41 = vmul.f32 %v18685_v54, %v18685_v54  ;;  %v8636_v15 = vsel %vm4172_vm8, %v18683_v59, 0.0 }
 0xbb2   :  { %v8828_v2 = vadd.f32 %v8827_v27, %v8826_v10  ;;  %v8633_v61 = vadd.f32 %v8632_v21, %v8631_v30  ;;  %v8833_v62 = vsel %vm4172_vm8, %v8743_v25, 0.0 }
 0xbb3   :  { %v8829_v34 = vsel %vm4172_vm8, %v8741_v41, 0.0 }
 0xbb4   :  { %v8635_v22 = vadd.f32 %v8634_v56, %v8633_v61  ;;  %v8830_v0 = vadd.f32 %v8829_v34, %v8828_v2 }
 0xbb5   :  { %v18702_v12 = vpop.f32.mrb[60].mxu0 }
 0xbb6   :  { %v8832_v44 = vadd.f32 %v8831_v53, %v8830_v0  ;;  %v18704_v20 = vpop.f32.mrb[61].mxu0  ;;  %v8637_v13 = vadd.f32 %v8636_v15, %v8635_v22  ;;  %v8746_v1 = vmul.f32 %v18702_v12, %v18702_v12  ;;  %v8642_v63 = vsel %vm4172_vm8, %v18702_v12, 0.0 }
 0xbb7   :  { %v8638_v31 = vsel %vm4172_vm8, %v18704_v20, 0.0  ;;  %v8744_v37 = vmul.f32 %v18704_v20, %v18704_v20  ;;  %v18711_v58 = vpop.f32.mrb[62].mxu0 }
 0xbb8   :  { %v8639_v39 = vadd.f32 %v8638_v31, %v8637_v13  ;;  %v8834_v46 = vadd.f32 %v8833_v62, %v8832_v44  ;;  %v18713_v19 = vpop.f32.mrb[63].mxu0  ;;  %v8747_v26 = vmul.f32 %v18711_v58, %v18711_v58  ;;  %v8839_v10 = vsel %vm4172_vm8, %v8746_v1, 0.0 }
 0xbb9   :  { %v8835_v40 = vsel %vm4172_vm8, %v8744_v37, 0.0  ;;  %v8640_v38 = vsel %vm4172_vm8, %v18713_v19, 0.0  ;;  %v8745_v6 = vmul.f32 %v18713_v19, %v18713_v19  ;;  %v8644_v24 = vsel %vm4172_vm8, %v18711_v58, 0.0 }
 0xbba   :  { %v8836_v29 = vadd.f32 %v8835_v40, %v8834_v46  ;;  %v8641_v23 = vadd.f32 %v8640_v38, %v8639_v39  ;;  %v8841_v61 = vsel %vm4172_vm8, %v8747_v26, 0.0 }
 0xbbb   :  { %v8837_v36 = vsel %vm4172_vm8, %v8745_v6, 0.0 }
 0xbbc   :  { %v8643_v8 = vadd.f32 %v8642_v63, %v8641_v23  ;;  %v8838_v30 = vadd.f32 %v8837_v36, %v8836_v29 }
 0xbbd   :  { %v18730_v27 = vpop.f32.mrb[64].mxu0 }
 0xbbe   :  { %v8840_v21 = vadd.f32 %v8839_v10, %v8838_v30  ;;  %v18732_v41 = vpop.f32.mrb[65].mxu0  ;;  %v8645_v2 = vadd.f32 %v8644_v24, %v8643_v8  ;;  %v8750_v15 = vmul.f32 %v18730_v27, %v18730_v27  ;;  %v8650_v39 = vsel %vm4172_vm8, %v18730_v27, 0.0 }
 0xbbf   :  { %v8646_v56 = vsel %vm4172_vm8, %v18732_v41, 0.0  ;;  %v8748_v25 = vmul.f32 %v18732_v41, %v18732_v41  ;;  %v18739_v34 = vpop.f32.mrb[66].mxu0 }
 0xbc0   :  { %v8647_v22 = vadd.f32 %v8646_v56, %v8645_v2  ;;  %v8842_v0 = vadd.f32 %v8841_v61, %v8840_v21  ;;  %v18741_v53 = vpop.f32.mrb[67].mxu0  ;;  %v8751_v46 = vmul.f32 %v18739_v34, %v18739_v34  ;;  %v8847_v6 = vsel %vm4172_vm8, %v8750_v15, 0.0 }
 0xbc1   :  { %v8843_v44 = vsel %vm4172_vm8, %v8748_v25, 0.0  ;;  %v8648_v13 = vsel %vm4172_vm8, %v18741_v53, 0.0  ;;  %v8749_v62 = vmul.f32 %v18741_v53, %v18741_v53  ;;  %v8652_v29 = vsel %vm4172_vm8, %v18739_v34, 0.0 }
 0xbc2   :  { %v8844_v31 = vadd.f32 %v8843_v44, %v8842_v0  ;;  %v8649_v37 = vadd.f32 %v8648_v13, %v8647_v22  ;;  %v8849_v8 = vsel %vm4172_vm8, %v8751_v46, 0.0 }
 0xbc3   :  { %v8845_v1 = vsel %vm4172_vm8, %v8749_v62, 0.0 }
 0xbc4   :  { %v8651_v40 = vadd.f32 %v8650_v39, %v8649_v37  ;;  %v8846_v38 = vadd.f32 %v8845_v1, %v8844_v31 }
 0xbc5   :  { %v18758_v23 = vpop.f32.mrb[68].mxu0 }
 0xbc6   :  { %21441 = vst [vmem:[#allocation84_spill] sm:$0xff] %v18758_v23  ;;  %v8848_v63 = vadd.f32 %v8847_v6, %v8846_v38  ;;  %v18760_v26 = vpop.f32.mrb[69].mxu0  ;;  %v8653_v36 = vadd.f32 %v8652_v29, %v8651_v40  ;;  %v8754_v56 = vmul.f32 %v18758_v23, %v18758_v23  ;;  %v8658_v13 = vsel %vm4172_vm8, %v18758_v23, 0.0 }
 0xbc7   :  { %v8654_v30 = vsel %vm4172_vm8, %v18760_v26, 0.0  ;;  %v8752_v10 = vmul.f32 %v18760_v26, %v18760_v26  ;;  %v18767_v24 = vpop.f32.mrb[70].mxu0 }
 0xbc8   :  { %21442 = vst [vmem:[#allocation17_spill] sm:$0xff] %v18767_v24  ;;  %v8655_v21 = vadd.f32 %v8654_v30, %v8653_v36  ;;  %v8850_v2 = vadd.f32 %v8849_v8, %v8848_v63  ;;  %v18769_v61 = vpop.f32.mrb[71].mxu0  ;;  %v8755_v62 = vmul.f32 %v18767_v24, %v18767_v24  ;;  %v8855_v46 = vsel %vm4172_vm8, %v8754_v56, 0.0 }
 0xbc9   :  { %21443 = vst [vmem:[#allocation127_spill] sm:$0xff] %v18769_v61  ;;  %v8851_v25 = vsel %vm4172_vm8, %v8752_v10, 0.0  ;;  %v8656_v22 = vsel %vm4172_vm8, %v18769_v61, 0.0  ;;  %v8753_v0 = vmul.f32 %v18769_v61, %v18769_v61  ;;  %v8660_v1 = vsel %vm4172_vm8, %v18767_v24, 0.0 }
 0xbca   :  { %v8852_v15 = vadd.f32 %v8851_v25, %v8850_v2  ;;  %v8657_v44 = vadd.f32 %v8656_v22, %v8655_v21  ;;  %v8857_v63 = vsel %vm4172_vm8, %v8755_v62, 0.0 }
 0xbcb   :  { %v8853_v31 = vsel %vm4172_vm8, %v8753_v0, 0.0 }
 0xbcc   :  { %v8659_v37 = vadd.f32 %v8658_v13, %v8657_v44  ;;  %v8854_v39 = vadd.f32 %v8853_v31, %v8852_v15 }
 0xbcd   :  { %v18786_v40 = vpop.f32.mrb[72].mxu0 }
 0xbce   :  { %21444 = vst [vmem:[#allocation128_spill] sm:$0xff] %v18786_v40  ;;  %v8856_v38 = vadd.f32 %v8855_v46, %v8854_v39  ;;  %v18788_v6 = vpop.f32.mrb[73].mxu0  ;;  %v8661_v29 = vadd.f32 %v8660_v1, %v8659_v37  ;;  %v8758_v56 = vmul.f32 %v18786_v40, %v18786_v40  ;;  %v8666_v13 = vsel %vm4172_vm8, %v18786_v40, 0.0 }
 0xbcf   :  { %21445 = vst [vmem:[#allocation129_spill] sm:$0xff] %v18788_v6  ;;  %v8662_v36 = vsel %vm4172_vm8, %v18788_v6, 0.0  ;;  %v8756_v8 = vmul.f32 %v18788_v6, %v18788_v6  ;;  %v18795_v30 = vpop.f32.mrb[74].mxu0 }
 0xbd0   :  { %21446 = vst [vmem:[#allocation130_spill] sm:$0xff] %v18795_v30  ;;  %v8663_v10 = vadd.f32 %v8662_v36, %v8661_v29  ;;  %v8858_v21 = vadd.f32 %v8857_v63, %v8856_v38  ;;  %v18797_v2 = vpop.f32.mrb[75].mxu0  ;;  %v8759_v62 = vmul.f32 %v18795_v30, %v18795_v30  ;;  %v8863_v46 = vsel %vm4172_vm8, %v8758_v56, 0.0 }
 0xbd1   :  { %21447 = vst [vmem:[#allocation104_spill] sm:$0xff] %v18797_v2  ;;  %v8859_v25 = vsel %vm4172_vm8, %v8756_v8, 0.0  ;;  %v8664_v22 = vsel %vm4172_vm8, %v18797_v2, 0.0  ;;  %v8757_v0 = vmul.f32 %v18797_v2, %v18797_v2  ;;  %v8668_v1 = vsel %vm4172_vm8, %v18795_v30, 0.0 }
 0xbd2   :  { %v8860_v15 = vadd.f32 %v8859_v25, %v8858_v21  ;;  %v8665_v44 = vadd.f32 %v8664_v22, %v8663_v10  ;;  %v8865_v8 = vsel %vm4172_vm8, %v8759_v62, 0.0 }
 0xbd3   :  { %v8861_v31 = vsel %vm4172_vm8, %v8757_v0, 0.0 }
 0xbd4   :  { %v8667_v37 = vadd.f32 %v8666_v13, %v8665_v44  ;;  %v8862_v39 = vadd.f32 %v8861_v31, %v8860_v15 }
 0xbd5   :  { %v18814_v38 = vpop.f32.mrb[76].mxu0 }
 0xbd6   :  { %21448 = vst [vmem:[#allocation66_spill] sm:$0xff] %v18814_v38  ;;  %v8864_v29 = vadd.f32 %v8863_v46, %v8862_v39  ;;  %v18816_v63 = vpop.f32.mrb[77].mxu0  ;;  %v8669_v36 = vadd.f32 %v8668_v1, %v8667_v37  ;;  %v8762_v15 = vmul.f32 %v18814_v38, %v18814_v38  ;;  %v8674_v39 = vsel %vm4172_vm8, %v18814_v38, 0.0 }
 0xbd7   :  { %21449 = vst [vmem:[#allocation131_spill] sm:$0xff] %v18816_v63  ;;  %v8670_v10 = vsel %vm4172_vm8, %v18816_v63, 0.0  ;;  %v8760_v21 = vmul.f32 %v18816_v63, %v18816_v63  ;;  %v18823_v25 = vpop.f32.mrb[78].mxu0 }
 0xbd8   :  { %21450 = vst [vmem:[#allocation43_spill] sm:$0xff] %v18823_v25  ;;  %v8671_v56 = vadd.f32 %v8670_v10, %v8669_v36  ;;  %v8866_v22 = vadd.f32 %v8865_v8, %v8864_v29  ;;  %v18825_v0 = vpop.f32.mrb[79].mxu0  ;;  %v8763_v46 = vmul.f32 %v18823_v25, %v18823_v25  ;;  %v8871_v8 = vsel %vm4172_vm8, %v8762_v15, 0.0 }
 0xbd9   :  { %21451 = vst [vmem:[#allocation46_spill] sm:$0xff] %v18825_v0  ;;  %v8867_v44 = vsel %vm4172_vm8, %v8760_v21, 0.0  ;;  %v8672_v13 = vsel %vm4172_vm8, %v18825_v0, 0.0  ;;  %v8761_v62 = vmul.f32 %v18825_v0, %v18825_v0  ;;  %v8676_v10 = vsel %vm4172_vm8, %v18823_v25, 0.0 }
 0xbda   :  { %v8868_v31 = vadd.f32 %v8867_v44, %v8866_v22  ;;  %v8673_v37 = vadd.f32 %v8672_v13, %v8671_v56  ;;  %v8873_v44 = vsel %vm4172_vm8, %v8763_v46, 0.0 }
 0xbdb   :  { %v8869_v1 = vsel %vm4172_vm8, %v8761_v62, 0.0 }
 0xbdc   :  { %v8675_v29 = vadd.f32 %v8674_v39, %v8673_v37  ;;  %v8870_v36 = vadd.f32 %v8869_v1, %v8868_v31 }
 0xbdd   :  { %v18842_v21 = vpop.f32.mrb[80].mxu0 }
 0xbde   :  { %21452 = vst [vmem:[#allocation132_spill] sm:$0xff] %v18842_v21  ;;  %v8872_v0 = vadd.f32 %v8871_v8, %v8870_v36  ;;  %v18844_v22 = vpop.f32.mrb[81].mxu0  ;;  %v8677_v56 = vadd.f32 %v8676_v10, %v8675_v29  ;;  %v8766_v1 = vmul.f32 %v18842_v21, %v18842_v21 }
 0xbdf   :  { %21453 = vst [vmem:[#allocation133_spill] sm:$0xff] %v18844_v22  ;;  %v8678_v13 = vsel %vm4172_vm8, %v18844_v22, 0.0  ;;  %v8764_v62 = vmul.f32 %v18844_v22, %v18844_v22  ;;  %v18851_v31 = vpop.f32.mrb[82].mxu0  ;;  %v8682_v22 = vsel %vm4172_vm8, %v18842_v21, 0.0 }
 0xbe0   :  { %21454 = vst [vmem:[#allocation134_spill] sm:$0xff] %v18851_v31  ;;  %v8679_v15 = vadd.f32 %v8678_v13, %v8677_v56  ;;  %v8874_v37 = vadd.f32 %v8873_v44, %v8872_v0  ;;  %v18853_v39 = vpop.f32.mrb[83].mxu0  ;;  %v8767_v0 = vmul.f32 %v18851_v31, %v18851_v31  ;;  %v8684_v25 = vsel %vm4172_vm8, %v18851_v31, 0.0 }
 0xbe1   :  { %21455 = vst [vmem:[#allocation135_spill] sm:$0xff] %v18853_v39  ;;  %v8875_v36 = vsel %vm4172_vm8, %v8764_v62, 0.0  ;;  %v8680_v46 = vsel %vm4172_vm8, %v18853_v39, 0.0  ;;  %v8765_v29 = vmul.f32 %v18853_v39, %v18853_v39  ;;  %v8879_v62 = vsel %vm4172_vm8, %v8766_v1, 0.0 }
 0xbe2   :  { %v8876_v8 = vadd.f32 %v8875_v36, %v8874_v37  ;;  %v8681_v10 = vadd.f32 %v8680_v46, %v8679_v15  ;;  %v8881_v36 = vsel %vm4172_vm8, %v8767_v0, 0.0 }
 0xbe3   :  { %v8877_v56 = vsel %vm4172_vm8, %v8765_v29, 0.0 }
 0xbe4   :  { %v8683_v44 = vadd.f32 %v8682_v22, %v8681_v10  ;;  %v8878_v13 = vadd.f32 %v8877_v56, %v8876_v8 }
 0xbe5   :  { %v18870_v38 = vpop.f32.mrb[84].mxu0 }
 0xbe6   :  { %21456 = vst [vmem:[#allocation136_spill] sm:$0xff] %v18870_v38  ;;  %v8880_v39 = vadd.f32 %v8879_v62, %v8878_v13  ;;  %v18872_v37 = vpop.f32.mrb[85].mxu0  ;;  %v8685_v15 = vadd.f32 %v8684_v25, %v8683_v44  ;;  %v8770_v56 = vmul.f32 %v18870_v38, %v18870_v38 }
 0xbe7   :  { %21457 = vst [vmem:[#allocation137_spill] sm:$0xff] %v18872_v37  ;;  %v8686_v46 = vsel %vm4172_vm8, %v18872_v37, 0.0  ;;  %v8768_v22 = vmul.f32 %v18872_v37, %v18872_v37  ;;  %v18879_v29 = vpop.f32.mrb[86].mxu0  ;;  %v8690_v37 = vsel %vm4172_vm8, %v18870_v38, 0.0 }
 0xbe8   :  { %21458 = vst [vmem:[#allocation138_spill] sm:$0xff] %v18879_v29  ;;  %v8687_v1 = vadd.f32 %v8686_v46, %v8685_v15  ;;  %v8882_v8 = vadd.f32 %v8881_v36, %v8880_v39  ;;  %v18881_v10 = vpop.f32.mrb[87].mxu0  ;;  %v8771_v39 = vmul.f32 %v18879_v29, %v18879_v29  ;;  %v8692_v31 = vsel %vm4172_vm8, %v18879_v29, 0.0 }
 0xbe9   :  { %21459 = vst [vmem:[#allocation139_spill] sm:$0xff] %v18881_v10  ;;  %v8883_v13 = vsel %vm4172_vm8, %v8768_v22, 0.0  ;;  %v8688_v25 = vsel %vm4172_vm8, %v18881_v10, 0.0  ;;  %v8769_v0 = vmul.f32 %v18881_v10, %v18881_v10  ;;  %v8887_v22 = vsel %vm4172_vm8, %v8770_v56, 0.0 }
 0xbea   :  { %v8884_v44 = vadd.f32 %v8883_v13, %v8882_v8  ;;  %v8689_v62 = vadd.f32 %v8688_v25, %v8687_v1  ;;  %v8889_v13 = vsel %vm4172_vm8, %v8771_v39, 0.0 }
 0xbeb   :  { %v8885_v15 = vsel %vm4172_vm8, %v8769_v0, 0.0 }
 0xbec   :  { %v8691_v36 = vadd.f32 %v8690_v37, %v8689_v62  ;;  %v8886_v46 = vadd.f32 %v8885_v15, %v8884_v44 }
 0xbed   :  { %v18898_v21 = vpop.f32.mrb[88].mxu0 }
 0xbee   :  { %21460 = vst [vmem:[#allocation140_spill] sm:$0xff] %v18898_v21  ;;  %v8888_v10 = vadd.f32 %v8887_v22, %v8886_v46  ;;  %v18900_v8 = vpop.f32.mrb[89].mxu0  ;;  %v8693_v1 = vadd.f32 %v8692_v31, %v8691_v36  ;;  %v8774_v15 = vmul.f32 %v18898_v21, %v18898_v21 }
 0xbef   :  { %21461 = vst [vmem:[#allocation142_spill] sm:$0xff] %v18900_v8  ;;  %v8694_v25 = vsel %vm4172_vm8, %v18900_v8, 0.0  ;;  %v8772_v37 = vmul.f32 %v18900_v8, %v18900_v8  ;;  %v18907_v0 = vpop.f32.mrb[90].mxu0  ;;  %v8698_v8 = vsel %vm4172_vm8, %v18898_v21, 0.0 }
 0xbf0   :  { %21462 = vst [vmem:[#allocation143_spill] sm:$0xff] %v18907_v0  ;;  %v8695_v56 = vadd.f32 %v8694_v25, %v8693_v1  ;;  %v8890_v44 = vadd.f32 %v8889_v13, %v8888_v10  ;;  %v18909_v62 = vpop.f32.mrb[91].mxu0  ;;  %v8775_v10 = vmul.f32 %v18907_v0, %v18907_v0  ;;  %v8700_v29 = vsel %vm4172_vm8, %v18907_v0, 0.0 }
 0xbf1   :  { %21463 = vst [vmem:[#allocation144_spill] sm:$0xff] %v18909_v62  ;;  %v8891_v46 = vsel %vm4172_vm8, %v8772_v37, 0.0  ;;  %v8696_v31 = vsel %vm4172_vm8, %v18909_v62, 0.0  ;;  %v8773_v39 = vmul.f32 %v18909_v62, %v18909_v62  ;;  %v8895_v37 = vsel %vm4172_vm8, %v8774_v15, 0.0 }
 0xbf2   :  { %v8892_v36 = vadd.f32 %v8891_v46, %v8890_v44  ;;  %v8697_v22 = vadd.f32 %v8696_v31, %v8695_v56  ;;  %v8897_v46 = vsel %vm4172_vm8, %v8775_v10, 0.0 }
 0xbf3   :  { %v8893_v1 = vsel %vm4172_vm8, %v8773_v39, 0.0 }
 0xbf4   :  { %v8699_v13 = vadd.f32 %v8698_v8, %v8697_v22  ;;  %v8894_v25 = vadd.f32 %v8893_v1, %v8892_v36 }
 0xbf5   :  { %v18926_v38 = vpop.f32.mrb[92].mxu0 }
 0xbf6   :  { %v8896_v62 = vadd.f32 %v8895_v37, %v8894_v25  ;;  %v18928_v44 = vpop.f32.mrb[93].mxu0  ;;  %v8701_v56 = vadd.f32 %v8700_v29, %v8699_v13  ;;  %v8778_v1 = vmul.f32 %v18926_v38, %v18926_v38  ;;  %v8706_v0 = vsel %vm4172_vm8, %v18926_v38, 0.0 }
 0xbf7   :  { %v8702_v31 = vsel %vm4172_vm8, %v18928_v44, 0.0  ;;  %v8776_v8 = vmul.f32 %v18928_v44, %v18928_v44  ;;  %v18935_v39 = vpop.f32.mrb[94].mxu0 }
 0xbf8   :  { %v8703_v15 = vadd.f32 %v8702_v31, %v8701_v56  ;;  %v8898_v36 = vadd.f32 %v8897_v46, %v8896_v62  ;;  %v18937_v22 = vpop.f32.mrb[95].mxu0  ;;  %v8779_v62 = vmul.f32 %v18935_v39, %v18935_v39  ;;  %v8708_v21 = vsel %vm4172_vm8, %v18935_v39, 0.0 }
 0xbf9   :  { %v8899_v25 = vsel %vm4172_vm8, %v8776_v8, 0.0  ;;  %v8704_v29 = vsel %vm4172_vm8, %v18937_v22, 0.0  ;;  %v8777_v10 = vmul.f32 %v18937_v22, %v18937_v22  ;;  %v8903_v8 = vsel %vm4172_vm8, %v8778_v1, 0.0 }
 0xbfa   :  { %v8900_v13 = vadd.f32 %v8899_v25, %v8898_v36  ;;  %v8705_v37 = vadd.f32 %v8704_v29, %v8703_v15  ;;  %v8905_v36 = vsel %vm4172_vm8, %v8779_v62, 0.0 }
 0xbfb   :  { %v8901_v56 = vsel %vm4172_vm8, %v8777_v10, 0.0 }
 0xbfc   :  { %v8707_v46 = vadd.f32 %v8706_v0, %v8705_v37  ;;  %v8902_v31 = vadd.f32 %v8901_v56, %v8900_v13 }
 0xbfe   :  { %v8709_v63 = vadd.f32 %v8708_v21, %v8707_v46  ;;  %v8904_v30 = vadd.f32 %v8903_v8, %v8902_v31  ;;  %v21470_v31 = vld [vmem:[#allocation24_spill] sm:$0xff] }
 0xc00   :  { %v8710_v15 = vrot.slane %v8709_v63, 4  ;;  %v8906_v25 = vadd.f32 %v8905_v36, %v8904_v30  ;;  %v18962_v30 = vld [vmem:[%s20073_s11] ss:$0 sm:$0xff] }
 0xc01   :  { %v18978_v8 = vadd.f32 %v18962_v30, %v21470_v31 }
 0xc02   :  { %v8711_v29 = vadd.f32 %v8710_v15, %v8709_v63  ;;  %v8907_v40 = vrot.slane %v8906_v25, 4 }
 0xc03   :  { %21471 = vst [vmem:[#allocation145_spill] sm:$0xff] %v18978_v8  ;;  %v21614_v8 = vld [vmem:[#allocation138_spill] sm:$0xff] }
 0xc04   :  { %v8712_v2 = vrot.slane %v8711_v29, 2  ;;  %v8908_v6 = vadd.f32 %v8907_v40, %v8906_v25  ;;  %v21474_v25 = vld [vmem:[#allocation34_spill] sm:$0xff] }
 0xc06   :  { %v8713_v24 = vadd.f32 %v8712_v2, %v8711_v29  ;;  %v8909_v23 = vrot.slane %v8908_v6, 2  ;;  %v21464_v2 = vld [vmem:[#allocation21_spill] sm:$0xff]  ;;  %v18986_v29 = vadd.f32 %v18962_v30, %v21474_v25 }
 0xc07   :  { %v18966_v62 = vadd.f32 %v21464_v2, %v18962_v30  ;;  %v21484_v2 = vld [vmem:[#allocation76_spill] sm:$0xff] }
 0xc08   :  { %v8714_v10 = vrot.slane %v8713_v24, 1  ;;  %v8910_v0 = vadd.f32 %v8909_v23, %v8908_v6  ;;  %v21466_v23 = vld [vmem:[#allocation22_spill] sm:$0xff]  ;;  %v21468_v6 = vld [vmem:[#allocation23_spill] sm:$0xff]  ;;  %21475 = vst [vmem:[#allocation65_spill] sm:$0xff] %v18986_v29  ;;  %v21608_v29 = vld [vmem:[#allocation137_spill] sm:$0xff] }
 0xc09   :  { %21465 = vst [vmem:[#allocation6_spill] sm:$0xff] %v18966_v62  ;;  %v18974_v46 = vadd.f32 %v21468_v6, %v18962_v30  ;;  %v21486_v6 = vld [vmem:[#allocation42_spill] sm:$0xff]  ;;  %v21612_v62 = vld [vmem:[#allocation136_spill] sm:$0xff] }
 0xc0a   :  { %v8715_v13 = vadd.f32 %v8714_v10, %v8713_v24  ;;  %v8911_v37 = vrot.slane %v8910_v0, 1  ;;  %v18970_v24 = vadd.f32 %v18962_v30, %v21466_v23  ;;  %v21476_v10 = vld [vmem:[#allocation38_spill] sm:$0xff]  ;;  %v19006_v23 = vadd.f32 %v21484_v2, %v18962_v30 }
 0xc0b   :  { %21469 = vst [vmem:[#allocation141_spill] sm:$0xff] %v18974_v46  ;;  %v19010_v31 = vadd.f32 %v18962_v30, %v21486_v6  ;;  %v21610_v46 = vld [vmem:[#allocation139_spill] sm:$0xff] }
 0xc0c   :  { %v8912_v1 = vadd.f32 %v8911_v37, %v8910_v0  ;;  %v18955_v56 = vmul.f32 0.001953125, %v8715_v13  ;;  %21467 = vst [vmem:[#allocation85_spill] sm:$0xff] %v18970_v24  ;;  %v18990_v0 = vadd.f32 %v21476_v10, %v18962_v30  ;;  %v21478_v13 = vld [vmem:[#allocation61_spill] sm:$0xff]  ;;  %21485 = vst [vmem:[#allocation12_spill] sm:$0xff] %v19006_v23 }
 0xc0d   :  { %v18994_v37 = vadd.f32 %v18962_v30, %v21478_v13  ;;  %21487 = vst [vmem:[#allocation119_spill] sm:$0xff] %v19010_v31  ;;  %v21490_v10 = vld [vmem:[#allocation81_spill] sm:$0xff] }
 0xc0e   :  { %v8914_v61 = vmul.f32 0.001953125, %v8912_v1  ;;  %v8915_v21 = vmul.f32 %v18955_v56, %v18955_v56  ;;  %21477 = vst [vmem:[#allocation74_spill] sm:$0xff] %v18990_v0  ;;  %v21480_v1 = vld [vmem:[#allocation67_spill] sm:$0xff]  ;;  %v19018_v13 = vadd.f32 %v18962_v30, %v21490_v10  ;;  %v21498_v23 = vld [vmem:[#allocation29_spill] sm:$0xff]  ;;  %v21574_v0 = vld [vmem:[#allocation8_spill] sm:$0xff] }
 0xc0f   :  { %21479 = vst [vmem:[#allocation111_spill] sm:$0xff] %v18994_v37 }
 0xc10   :  { %v8916_v63 = vsub.f32 %v8914_v61, %v8915_v21  ;;  %v21472_v61 = vld [vmem:[#allocation25_spill] sm:$0xff]  ;;  %v18998_v21 = vadd.f32 %v21480_v1, %v18962_v30  ;;  %21491 = vst [vmem:[#allocation122_spill] sm:$0xff] %v19018_v13  ;;  %v21492_v1 = vld [vmem:[#allocation82_spill] sm:$0xff]  ;;  %v21502_v13 = vld [vmem:[#allocation39_spill] sm:$0xff] }
 0xc11   :  { %v18982_v15 = vadd.f32 %v21472_v61, %v18962_v30  ;;  %v21488_v61 = vld [vmem:[#allocation97_spill] sm:$0xff] }
 0xc12   :  { %v8917_v40 = vmax.f32 %v8916_v63, 0.0  ;;  %21481 = vst [vmem:[#allocation45_spill] sm:$0xff] %v18998_v21  ;;  %v21482_v63 = vld [vmem:[#allocation75_spill] sm:$0xff]  ;;  %v19014_v25 = vadd.f32 %v21488_v61, %v18962_v30  ;;  %v21494_v21 = vld [vmem:[#allocation26_spill] sm:$0xff]  ;;  %v19034_v61 = vadd.f32 %v18962_v30, %v21498_v23 }
 0xc13   :  { %21473 = vst [vmem:[#allocation146_spill] sm:$0xff] %v18982_v15  ;;  %v19026_v2 = vadd.f32 %v18962_v30, %v21494_v21 }
 0xc14   :  { %v8919_v36 = vadd.f32 1e-05, %v8917_v40  ;;  %v19002_v40 = vadd.f32 %v18962_v30, %v21482_v63  ;;  %21489 = vst [vmem:[#allocation121_spill] sm:$0xff] %v19014_v25  ;;  %v19022_v63 = vadd.f32 %v21492_v1, %v18962_v30  ;;  %21499 = vst [vmem:[#allocation105_spill] sm:$0xff] %v19034_v61  ;;  %v21500_v25 = vld [vmem:[#allocation30_spill] sm:$0xff]  ;;  %v19042_v1 = vadd.f32 %v18962_v30, %v21502_v13 }
 0xc15   :  { %21495 = vst [vmem:[#allocation18_spill] sm:$0xff] %v19026_v2  ;;  %v19038_v10 = vadd.f32 %v21500_v25, %v18962_v30  ;;  %v21506_v2 = vld [vmem:[#allocation56_spill] sm:$0xff]  ;;  %v21510_v61 = vld [vmem:[#allocation10_spill] sm:$0xff] }
 0xc16   :  { %21483 = vst [vmem:[#allocation48_spill] sm:$0xff] %v19002_v40  ;;  %13220 = vrsqrt.f32 %v8919_v36  ;;  %21493 = vst [vmem:[#allocation125_spill] sm:$0xff] %v19022_v63  ;;  %v21496_v36 = vld [vmem:[#allocation27_spill] sm:$0xff]  ;;  %v21504_v63 = vld [vmem:[#allocation40_spill] sm:$0xff]  ;;  %v19058_v25 = vadd.f32 %v18962_v30, %v21510_v61 }
 0xc17   :  { %v19030_v6 = vadd.f32 %v21496_v36, %v18962_v30  ;;  %21501 = vst [vmem:[#allocation92_spill] sm:$0xff] %v19038_v10  ;;  %21503 = vst [vmem:[#allocation147_spill] sm:$0xff] %v19042_v1  ;;  %v19046_v21 = vadd.f32 %v21504_v63, %v18962_v30  ;;  %v19050_v36 = vadd.f32 %v18962_v30, %v21506_v2  ;;  %v21512_v10 = vld [vmem:[#allocation16_spill] sm:$0xff]  ;;  %v21562_v40 = vld [vmem:[#allocation47_spill] sm:$0xff] }
 0xc18   :  { %21511 = vst [vmem:[#allocation96_spill] sm:$0xff] %v19058_v25  ;;  %v19062_v13 = vadd.f32 %v21512_v10, %v18962_v30  ;;  %v21514_v1 = vld [vmem:[#allocation20_spill] sm:$0xff]  ;;  %v21522_v25 = vld [vmem:[#allocation9_spill] sm:$0xff] }
 0xc19   :  { %21497 = vst [vmem:[#allocation31_spill] sm:$0xff] %v19030_v6  ;;  %21505 = vst [vmem:[#allocation148_spill] sm:$0xff] %v19046_v21  ;;  %v21508_v6 = vld [vmem:[#allocation80_spill] sm:$0xff]  ;;  %v19066_v63 = vadd.f32 %v18962_v30, %v21514_v1  ;;  %v19082_v10 = vadd.f32 %v18962_v30, %v21522_v25 }
 0xc1a   :  { %21507 = vst [vmem:[#allocation149_spill] sm:$0xff] %v19050_v36  ;;  %v19054_v23 = vadd.f32 %v21508_v6, %v18962_v30  ;;  %21513 = vst [vmem:[#allocation14_spill] sm:$0xff] %v19062_v13  ;;  %v21516_v21 = vld [vmem:[#allocation28_spill] sm:$0xff]  ;;  %v21518_v36 = vld [vmem:[#allocation33_spill] sm:$0xff] }
 0xc1b   :  { %21515 = vst [vmem:[#allocation55_spill] sm:$0xff] %v19066_v63  ;;  %v19070_v2 = vadd.f32 %v21516_v21, %v18962_v30  ;;  %v19074_v6 = vadd.f32 %v18962_v30, %v21518_v36  ;;  %21523 = vst [vmem:[#allocation108_spill] sm:$0xff] %v19082_v10  ;;  %v21524_v13 = vld [vmem:[#allocation32_spill] sm:$0xff]  ;;  %v21526_v63 = vld [vmem:[#allocation35_spill] sm:$0xff] }
 0xc1c   :  { %21509 = vst [vmem:[#allocation126_spill] sm:$0xff] %v19054_v23  ;;  %v21520_v23 = vld [vmem:[#allocation37_spill] sm:$0xff]  ;;  %v19086_v1 = vadd.f32 %v21524_v13, %v18962_v30  ;;  %v19090_v21 = vadd.f32 %v18962_v30, %v21526_v63  ;;  %v21534_v10 = vld [vmem:[#allocation60_spill] sm:$0xff] }
 0xc1d   :  { %21517 = vst [vmem:[#allocation11_spill] sm:$0xff] %v19070_v2  ;;  %21519 = vst [vmem:[#allocation106_spill] sm:$0xff] %v19074_v6  ;;  %v19078_v61 = vadd.f32 %v21520_v23, %v18962_v30  ;;  %v21528_v2 = vld [vmem:[#allocation36_spill] sm:$0xff]  ;;  %v21530_v6 = vld [vmem:[#allocation41_spill] sm:$0xff]  ;;  %v19106_v13 = vadd.f32 %v18962_v30, %v21534_v10 }
 0xc1e   :  { %21525 = vst [vmem:[#allocation109_spill] sm:$0xff] %v19086_v1  ;;  %21527 = vst [vmem:[#allocation110_spill] sm:$0xff] %v19090_v21  ;;  %v19094_v36 = vadd.f32 %v21528_v2, %v18962_v30  ;;  %v19098_v23 = vadd.f32 %v18962_v30, %v21530_v6  ;;  %v21536_v1 = vld [vmem:[#allocation57_spill] sm:$0xff] }
 0xc1f   :  { %21521 = vst [vmem:[#allocation107_spill] sm:$0xff] %v19078_v61  ;;  %v21532_v61 = vld [vmem:[#allocation52_spill] sm:$0xff]  ;;  %21535 = vst [vmem:[#allocation83_spill] sm:$0xff] %v19106_v13  ;;  %v19110_v63 = vadd.f32 %v21536_v1, %v18962_v30  ;;  %v21538_v21 = vld [vmem:[#allocation69_spill] sm:$0xff] }
 0xc20   :  { %21529 = vst [vmem:[#allocation112_spill] sm:$0xff] %v19094_v36  ;;  %21531 = vst [vmem:[#allocation113_spill] sm:$0xff] %v19098_v23  ;;  %v19102_v25 = vadd.f32 %v21532_v61, %v18962_v30  ;;  %v19114_v2 = vadd.f32 %v18962_v30, %v21538_v21  ;;  %v21540_v36 = vld [vmem:[#allocation70_spill] sm:$0xff]  ;;  %v21546_v13 = vld [vmem:[#allocation88_spill] sm:$0xff] }
 0xc21   :  { %21537 = vst [vmem:[#allocation78_spill] sm:$0xff] %v19110_v63  ;;  %v19118_v6 = vadd.f32 %v21540_v36, %v18962_v30  ;;  %v21542_v23 = vld [vmem:[#allocation86_spill] sm:$0xff]  ;;  %v19130_v1 = vadd.f32 %v18962_v30, %v21546_v13  ;;  %v21548_v63 = vld [vmem:[#allocation89_spill] sm:$0xff] }
 0xc22   :  { %21533 = vst [vmem:[#allocation79_spill] sm:$0xff] %v19102_v25  ;;  %21539 = vst [vmem:[#allocation91_spill] sm:$0xff] %v19114_v2  ;;  %v19122_v61 = vadd.f32 %v18962_v30, %v21542_v23  ;;  %v21544_v25 = vld [vmem:[#allocation87_spill] sm:$0xff]  ;;  %v19134_v21 = vadd.f32 %v21548_v63, %v18962_v30  ;;  %v8918_v36 = vld [vmem:[%s20070_s8] sm:$0x1] }
 0xc23   :  { %21541 = vst [vmem:[#allocation62_spill] sm:$0xff] %v19118_v6  ;;  %v19126_v10 = vadd.f32 %v21544_v25, %v18962_v30  ;;  %21547 = vst [vmem:[#allocation116_spill] sm:$0xff] %v19130_v1  ;;  %v21550_v6 = vld [vmem:[#allocation90_spill] sm:$0xff]  ;;  %v21556_v1 = vld [vmem:[#allocation100_spill] sm:$0xff] }
 0xc24   :  { %21543 = vst [vmem:[#allocation114_spill] sm:$0xff] %v19122_v61  ;;  %21549 = vst [vmem:[#allocation117_spill] sm:$0xff] %v19134_v21  ;;  %v19141_v23 = vadd.f32 %v18962_v30, %v21550_v6  ;;  %v21552_v61 = vld [vmem:[#allocation93_spill] sm:$0xff]  ;;  %v19153_v63 = vadd.f32 %v21556_v1, %v18962_v30  ;;  %v13221_v21 = vpop.eup %13220  ;;  %v21558_v2 = vld [vmem:[#allocation103_spill] sm:$0xff] }
 0xc25   :  { %21545 = vst [vmem:[#allocation115_spill] sm:$0xff] %v19126_v10  ;;  %v19145_v25 = vadd.f32 %v21552_v61, %v18962_v30  ;;  %v21554_v10 = vld [vmem:[#allocation98_spill] sm:$0xff]  ;;  %v19157_v31 = vadd.f32 %v18962_v30, %v21558_v2  ;;  %v19165_v61 = vadd.f32 %v18962_v30, %v21562_v40  ;;  %v21572_v40 = vld [vmem:[#allocation68_spill] sm:$0xff] }
 0xc26   :  { %21551 = vst [vmem:[#allocation118_spill] sm:$0xff] %v19141_v23  ;;  %v19149_v13 = vadd.f32 %v18962_v30, %v21554_v10  ;;  %21557 = vst [vmem:[#allocation124_spill] sm:$0xff] %v19153_v63  ;;  %v21560_v6 = vld [vmem:[#allocation50_spill] sm:$0xff]  ;;  %v21564_v10 = vld [vmem:[#allocation49_spill] sm:$0xff] }
 0xc27   :  { %21553 = vst [vmem:[#allocation120_spill] sm:$0xff] %v19145_v25  ;;  %21559 = vst [vmem:[#allocation95_spill] sm:$0xff] %v19157_v31  ;;  %v19161_v23 = vadd.f32 %v21560_v6, %v18962_v30  ;;  %v19169_v25 = vadd.f32 %v21564_v10, %v18962_v30  ;;  %v21568_v63 = vld [vmem:[#allocation13_spill] sm:$0xff]  ;;  %v21570_v31 = vld [vmem:[#allocation19_spill] sm:$0xff]  ;;  %v19189_v10 = vadd.f32 %v18962_v30, %v21574_v0 }
 0xc28   :  { %21555 = vst [vmem:[#allocation123_spill] sm:$0xff] %v19149_v13  ;;  %21563 = vst [vmem:[#allocation73_spill] sm:$0xff] %v19165_v61  ;;  %v21566_v13 = vld [vmem:[#allocation51_spill] sm:$0xff]  ;;  %v19177_v2 = vadd.f32 %v21568_v63, %v18962_v30  ;;  %v19181_v6 = vadd.f32 %v18962_v30, %v21570_v31  ;;  %v19185_v61 = vadd.f32 %v21572_v40, %v18962_v30  ;;  %v8922_v31 = vld [vmem:[%s20071_s9] sm:$0x1]  ;;  %s13250_s9 = smov [#allocation3]  }
 0xc29   :  { %21561 = vst [vmem:[#allocation94_spill] sm:$0xff] %v19161_v23  ;;  %21565 = vst [vmem:[#allocation99_spill] sm:$0xff] %v19169_v25  ;;  %v19173_v1 = vadd.f32 %v18962_v30, %v21566_v13  ;;  %v8921_v23 = vmul.f32 %v13221_v21, %v8918_v36  ;;  %v21576_v13 = vld [vmem:[#allocation63_spill] sm:$0xff]  ;;  %v21582_v40 = vld [vmem:[#allocation72_spill] sm:$0xff]  ;;  %s20032_s27 = sshll.u32 %s13250_s9, 4  ;;  %s9658_s27 = int_to_ptr.vmem [resolvable:$true] %s20032_s27 }
 0xc2a   :  { %21569 = vst [vmem:[#allocation101_spill] sm:$0xff] %v19177_v2  ;;  %21571 = vst [vmem:[#allocation77_spill] sm:$0xff] %v19181_v6  ;;  %v19193_v25 = vadd.f32 %v21576_v13, %v18962_v30  ;;  %v21580_v21 = vld [vmem:[#allocation71_spill] sm:$0xff]  ;;  %v19208_v0 = vadd.f32 %v18962_v30, %v21582_v40  ;;  %v21586_v2 = vld [vmem:[#allocation58_spill] sm:$0xff]  ;;  %s13222_s10 = scalar_lea.vmem %s9658_s27, 2048  ;;  %p13227_p1 = scmp.lt.s32.totalorder %s9658_s27, %s9658_s27 }
 0xc2b   :  { %21567 = vst [vmem:[#allocation102_spill] sm:$0xff] %v19173_v1  ;;  %21573 = vst [vmem:[#allocation44_spill] sm:$0xff] %v19185_v61  ;;  %v21578_v1 = vld [vmem:[#allocation64_spill] sm:$0xff]  ;;  %v19204_v36 = vadd.f32 %v21580_v21, %v18962_v30  ;;  %v8923_v61 = vmul.f32 %v8921_v23, %v18955_v56  ;;  %v21584_v13 = vld [vmem:[#allocation7_spill] sm:$0xff]  ;;  %p13223_p0 = scmp.ne.s32.totalorder %s9658_s27, %s13222_s10  ;;  %p13228_p2 = scmp.lt.s32.totalorder %s13222_s10, %s13222_s10 }
 0xc2c   :  { %21575 = vst [vmem:[#allocation53_spill] sm:$0xff] %v19189_v10  ;;  %21577 = vst [vmem:[#allocation21_spill] sm:$0xff] %v19193_v25  ;;  %v19197_v63 = vadd.f32 %v18962_v30, %v21578_v1  ;;  %v19212_v25 = vrot.slane %v8921_v23, %v21584_v13  ;;  %v21585_v1 = vld [vmem:[#allocation54_spill] sm:$0xff]  ;;  %v9415_v10 = vadd.f32 %v18962_v30, %v21586_v2  ;;  %v21587_v6 = vld [vmem:[#allocation59_spill] sm:$0xff] }
 0xc2d   :  { %21581 = vst [vmem:[#allocation23_spill] sm:$0xff] %v19204_v36  ;;  %21583 = vst [vmem:[#allocation24_spill] sm:$0xff] %v19208_v0  ;;  %v9426_v15 = vadd.f32 %v21587_v6, %v18962_v30  ;;  %v21588_v21 = vld [vmem:[#allocation15_spill] sm:$0xff]  ;;  %v8924_v37 = vsub.f32 %v8922_v31, %v8923_v61  ;;  %v21606_v0 = vld [vmem:[#allocation134_spill] sm:$0xff]  ;;  %p13229_p3 = por %p13228_p2, %p13227_p1 }
 0xc2e   :  { %21579 = vst [vmem:[#allocation22_spill] sm:$0xff] %v19197_v63  ;;  %v9423_v63 = vadd.f32 %v21585_v1, %v18962_v30  ;;  %v9418_v36 = vadd.f32 %v18962_v30, %v21588_v21  ;;  %v8991_v40 = vmul.f32 %v19212_v25, %v18928_v44  ;;  %v8992_v56 = vmul.f32 %v19212_v25, %v18937_v22 }
 0xc2f   :  { %v8993_v23 = vmul.f32 %v18926_v38, %v19212_v25  ;;  %v8994_v1 = vmul.f32 %v18935_v39, %v19212_v25  ;;  %v19232_v2 = vmul.f32 %v19212_v25, %v18509_v50  ;;  %v19236_v30 = vmul.f32 %v19212_v25, %v18515_v17  ;;  %p13230_p4 = pnand %p13229_p3, %p13223_p0 }
 0xc30   :  { %v19240_v44 = vmul.f32 %v18507_v49, %v19212_v25  ;;  %v19243_v22 = vrot.slane %v8924_v37, %v21584_v13  ;;  %v19247_v38 = vmul.f32 %v18513_v60, %v19212_v25  ;;  %v19251_v39 = vmul.f32 %v19212_v25, %v18536_v52 }
 0xc31   :  { %v19255_v50 = vmul.f32 %v19212_v25, %v18545_v57  ;;  %v19259_v17 = vmul.f32 %v18534_v3, %v19212_v25  ;;  %v19263_v49 = vmul.f32 %v18543_v43, %v19212_v25  ;;  %v19267_v60 = vmul.f32 %v19212_v25, %v18564_v47 }
 0xc32   :  { %v19271_v52 = vmul.f32 %v19212_v25, %v18573_v18  ;;  %v9061_v37 = vadd.f32 %v19243_v22, %v8991_v40  ;;  %v9062_v57 = vadd.f32 %v19243_v22, %v8992_v56  ;;  %v9063_v61 = vadd.f32 %v19243_v22, %v8993_v23 }
 0xc33   :  { %v9064_v3 = vadd.f32 %v19243_v22, %v8994_v1  ;;  %v19279_v43 = vmul.f32 %v18562_v7, %v19212_v25  ;;  %v19283_v47 = vmul.f32 %v18571_v55, %v19212_v25  ;;  %v19287_v18 = vmul.f32 %v19212_v25, %v18592_v11 }
 0xc34   :  { %v19291_v6 = vmul.f32 %v19212_v25, %v18601_v48  ;;  %v9125_v31 = vmax.f32 %v9061_v37, 0.0  ;;  %v9126_v13 = vmax.f32 %v9062_v57, 0.0  ;;  %v9127_v21 = vmax.f32 %v9063_v61, 0.0  ;;  %v21590_v57 = vld [vmem:[#allocation84_spill] sm:$0xff]  ;;  %v21591_v61 = vld [vmem:[#allocation17_spill] sm:$0xff] }
 0xc35   :  { %v9128_v40 = vmax.f32 %v9064_v3, 0.0  ;;  %v19295_v7 = vmul.f32 %v18590_v9, %v19212_v25  ;;  %v19299_v55 = vmul.f32 %v18599_v45, %v19212_v25  ;;  %v19303_v11 = vmul.f32 %v19212_v25, %v18620_v32  ;;  %v21592_v3 = vld [vmem:[#allocation129_spill] sm:$0xff] }
 0xc36   :  { %v19307_v48 = vmul.f32 %v19212_v25, %v18629_v28  ;;  %v9489_v56 = vadd.f32 %v9415_v10, %v9125_v31  ;;  %v9490_v23 = vadd.f32 %v9418_v36, %v9126_v13  ;;  %v9491_v1 = vadd.f32 %v9423_v63, %v9127_v21  ;;  %v21589_v63 = vld [vmem:[#allocation127_spill] sm:$0xff]  ;;  %v21593_v31 = vld [vmem:[#allocation104_spill] sm:$0xff] }
 0xc37   :  { %v9492_v37 = vadd.f32 %v9426_v15, %v9128_v40  ;;  %v19311_v9 = vmul.f32 %v18618_v16, %v19212_v25  ;;  %v19315_v45 = vmul.f32 %v18627_v4, %v19212_v25  ;;  %v19319_v32 = vmul.f32 %v19212_v25, %v18648_v35  ;;  %v21594_v13 = vld [vmem:[#allocation128_spill] sm:$0xff]  ;;  %v21595_v40 = vld [vmem:[#allocation130_spill] sm:$0xff] }
 0xc38   :  { %v19323_v28 = vmul.f32 %v19212_v25, %v18657_v51  ;;  %v9523_v10 = vmax.f32 %v9489_v56, %v9491_v1  ;;  %v19327_v15 = vmul.f32 %v18646_v42, %v19212_v25  ;;  %v19331_v16 = vmul.f32 %v18655_v33, %v19212_v25 }
 0xc39   :  { %v9524_v36 = vmax.f32 %v9490_v23, %v9492_v37  ;;  %v19335_v4 = vmul.f32 %v19212_v25, %v18676_v5  ;;  %v19339_v35 = vmul.f32 %v19212_v25, %v18685_v54  ;;  %v19343_v51 = vmul.f32 %v18674_v14, %v19212_v25  ;;  %v21596_v23 = vld [vmem:[#allocation131_spill] sm:$0xff]  ;;  %v21597_v37 = vld [vmem:[#allocation46_spill] sm:$0xff] }
 0xc3a   :  { %v19347_v42 = vmul.f32 %v18683_v59, %v19212_v25  ;;  %9555 = vst.msk [vmem:[#allocation2 + $0xf0] sm:$0xff] %vm4172_vm8, %v9523_v10  ;;  %v19353_v33 = vmul.f32 %v19212_v25, %v18704_v20  ;;  %v19357_v5 = vmul.f32 %v19212_v25, %v18713_v19  ;;  %v19361_v14 = vmul.f32 %v18702_v12, %v19212_v25 }
 0xc3b   :  { %9556 = vst.msk [vmem:[#allocation2 + $0xf8] sm:$0xff] %vm4172_vm8, %v9524_v36  ;;  %v19365_v59 = vmul.f32 %v18711_v58, %v19212_v25  ;;  %v19369_v54 = vmul.f32 %v19212_v25, %v18732_v41  ;;  %v19373_v20 = vmul.f32 %v19212_v25, %v18741_v53  ;;  %v19377_v19 = vmul.f32 %v18730_v27, %v19212_v25  ;;  %v21598_v36 = vld [vmem:[#allocation66_spill] sm:$0xff] }
 0xc3c   :  { %v19381_v12 = vmul.f32 %v18739_v34, %v19212_v25  ;;  %v19385_v58 = vmul.f32 %v19212_v25, %v18760_v26  ;;  %v19389_v41 = vmul.f32 %v19212_v25, %v21589_v63  ;;  %v19393_v53 = vmul.f32 %v21590_v57, %v19212_v25  ;;  %v21599_v57 = vld [vmem:[#allocation43_spill] sm:$0xff] }
 0xc3d   :  { %v19397_v27 = vmul.f32 %v21591_v61, %v19212_v25  ;;  %v19401_v34 = vmul.f32 %v19212_v25, %v21592_v3  ;;  %v19405_v26 = vmul.f32 %v19212_v25, %v21593_v31  ;;  %v19409_v21 = vmul.f32 %v21594_v13, %v19212_v25  ;;  %v21600_v3 = vld [vmem:[#allocation133_spill] sm:$0xff]  ;;  %v21602_v13 = vld [vmem:[#allocation135_spill] sm:$0xff] }
 0xc3e   :  { %v19413_v56 = vmul.f32 %v21595_v40, %v19212_v25  ;;  %v19417_v1 = vmul.f32 %v19212_v25, %v21596_v23  ;;  %v19421_v10 = vmul.f32 %v19212_v25, %v21597_v37  ;;  %v19425_v63 = vmul.f32 %v21598_v36, %v19212_v25  ;;  %v21604_v23 = vld [vmem:[#allocation132_spill] sm:$0xff] }
 0xc3f   :  { %v19429_v61 = vmul.f32 %v21599_v57, %v19212_v25  ;;  %v19433_v31 = vmul.f32 %v19212_v25, %v21600_v3  ;;  %v19437_v40 = vmul.f32 %v19212_v25, %v21602_v13  ;;  %v19441_v37 = vmul.f32 %v21604_v23, %v19212_v25 }
 0xc40   :  { %v19445_v36 = vmul.f32 %v21606_v0, %v19212_v25  ;;  %v19449_v57 = vmul.f32 %v19212_v25, %v21608_v29  ;;  %v19453_v3 = vmul.f32 %v19212_v25, %v21610_v46  ;;  %v19457_v13 = vmul.f32 %v21612_v62, %v19212_v25  ;;  %v21615_v0 = vld [vmem:[#allocation142_spill] sm:$0xff] }
 0xc41   :  { %21601 = vst [vmem:[#allocation25_spill] sm:$0xff] %v19433_v31  ;;  %21603 = vst [vmem:[#allocation34_spill] sm:$0xff] %v19437_v40  ;;  %v19461_v23 = vmul.f32 %v21614_v8, %v19212_v25  ;;  %v21616_v40 = vld [vmem:[#allocation144_spill] sm:$0xff]  ;;  %v19477_v8 = vadd.f32 %v19243_v22, %v19236_v30  ;;  %v19502_v30 = vadd.f32 %v19243_v22, %v19263_v49 }
 0xc42   :  { %21605 = vst [vmem:[#allocation38_spill] sm:$0xff] %v19441_v37  ;;  %21607 = vst [vmem:[#allocation61_spill] sm:$0xff] %v19445_v36  ;;  %v9587_v24 = vld [vmem:[#allocation2 + $0xf0] ss:$2 sm:$0xff]  ;;  %v9619_v37 = vld [vmem:[#allocation2 + $0xf1] ss:$2 sm:$0xff]  ;;  %v8987_v36 = vmul.f32 %v19212_v25, %v21615_v0  ;;  %v8988_v29 = vmul.f32 %v19212_v25, %v21616_v40  ;;  %v19481_v0 = vadd.f32 %v19243_v22, %v19240_v44 }
 0xc43   :  { %21609 = vst [vmem:[#allocation67_spill] sm:$0xff] %v19449_v57  ;;  %21611 = vst [vmem:[#allocation75_spill] sm:$0xff] %v19453_v3  ;;  %v21617_v57 = vld [vmem:[#allocation140_spill] sm:$0xff]  ;;  %v21618_v3 = vld [vmem:[#allocation143_spill] sm:$0xff]  ;;  %v9635_v62 = vmax.f32 %v9587_v24, %v9619_v37  ;;  %v19485_v40 = vadd.f32 %v19243_v22, %v19247_v38  ;;  %v19493_v24 = vadd.f32 %v19243_v22, %v19255_v50 }
 0xc44   :  { %21613 = vst [vmem:[#allocation76_spill] sm:$0xff] %v19457_v13  ;;  %v8989_v46 = vmul.f32 %v21617_v57, %v19212_v25  ;;  %v8990_v31 = vmul.f32 %v21618_v3, %v19212_v25  ;;  %v19473_v13 = vadd.f32 %v19243_v22, %v19232_v2  ;;  %v19489_v25 = vadd.f32 %v19243_v22, %v19251_v39 }
 0xc45   :  { %v19497_v2 = vadd.f32 %v19243_v22, %v19259_v17  ;;  %9651 = vst.msk [vmem:[#allocation3 + $0x78] sm:$0xff] %vm4172_vm8, %v9635_v62  ;;  %v19506_v44 = vadd.f32 %v19243_v22, %v19267_v60  ;;  %v19510_v38 = vadd.f32 %v19243_v22, %v19271_v52  ;;  %v19514_v39 = vadd.f32 %v19243_v22, %v19279_v43 }
 0xc46   :  { %v19518_v50 = vadd.f32 %v19243_v22, %v19283_v47  ;;  %v19522_v17 = vadd.f32 %v19243_v22, %v19287_v18  ;;  %v19526_v49 = vadd.f32 %v19243_v22, %v19291_v6  ;;  %v19530_v60 = vadd.f32 %v19243_v22, %v19295_v7 }
 0xc47   :  { %v19534_v52 = vadd.f32 %v19243_v22, %v19299_v55  ;;  %v19538_v43 = vadd.f32 %v19243_v22, %v19303_v11  ;;  %v19542_v47 = vadd.f32 %v19243_v22, %v19307_v48  ;;  %v19546_v18 = vadd.f32 %v19243_v22, %v19311_v9 }
 0xc48   :  { %v19550_v6 = vadd.f32 %v19243_v22, %v19315_v45  ;;  %v19554_v7 = vadd.f32 %v19243_v22, %v19319_v32  ;;  %v19558_v55 = vadd.f32 %v19243_v22, %v19323_v28  ;;  %v19562_v11 = vadd.f32 %v19243_v22, %v19327_v15  ;;  %v21622_v37 = vld [vmem:[#allocation34_spill] sm:$0xff] }
 0xc49   :  { %v19566_v48 = vadd.f32 %v19243_v22, %v19331_v16  ;;  %v19570_v9 = vadd.f32 %v19243_v22, %v19335_v4  ;;  %v19574_v45 = vadd.f32 %v19243_v22, %v19339_v35  ;;  %v19578_v32 = vadd.f32 %v19243_v22, %v19343_v51  ;;  %v21623_v57 = vld [vmem:[#allocation38_spill] sm:$0xff]  ;;  %v21625_v3 = vld [vmem:[#allocation61_spill] sm:$0xff] }
 0xc4a   :  { %v19582_v28 = vadd.f32 %v19243_v22, %v19347_v42  ;;  %v19586_v15 = vadd.f32 %v19243_v22, %v19353_v33  ;;  %v19590_v16 = vadd.f32 %v19243_v22, %v19357_v5  ;;  %v19594_v4 = vadd.f32 %v19243_v22, %v19361_v14  ;;  %v21626_v62 = vld [vmem:[#allocation67_spill] sm:$0xff] }
 0xc4b   :  { %v19598_v35 = vadd.f32 %v19243_v22, %v19365_v59  ;;  %v19602_v51 = vadd.f32 %v19243_v22, %v19369_v54  ;;  %v19606_v42 = vadd.f32 %v19243_v22, %v19373_v20  ;;  %v19610_v33 = vadd.f32 %v19243_v22, %v19377_v19 }
 0xc4c   :  { %v19614_v5 = vadd.f32 %v19243_v22, %v19381_v12  ;;  %v19618_v14 = vadd.f32 %v19243_v22, %v19385_v58  ;;  %v19622_v59 = vadd.f32 %v19243_v22, %v19389_v41  ;;  %v19626_v54 = vadd.f32 %v19243_v22, %v19393_v53 }
 0xc4d   :  { %v19630_v20 = vadd.f32 %v19243_v22, %v19397_v27  ;;  %v19634_v19 = vadd.f32 %v19243_v22, %v19401_v34  ;;  %v19638_v12 = vadd.f32 %v19243_v22, %v19405_v26  ;;  %v19642_v58 = vadd.f32 %v19243_v22, %v19409_v21  ;;  %v21620_v21 = vld [vmem:[#allocation25_spill] sm:$0xff] }
 0xc4e   :  { %v19646_v41 = vadd.f32 %v19243_v22, %v19413_v56  ;;  %v19650_v53 = vadd.f32 %v19243_v22, %v19417_v1  ;;  %v19654_v27 = vadd.f32 %v19243_v22, %v19421_v10  ;;  %v19658_v34 = vadd.f32 %v19243_v22, %v19425_v63 }
 0xc4f   :  { %v19662_v26 = vadd.f32 %v19243_v22, %v19429_v61  ;;  %v19666_v56 = vadd.f32 %v19243_v22, %v21620_v21  ;;  %v19670_v1 = vadd.f32 %v19243_v22, %v21622_v37  ;;  %v19674_v10 = vadd.f32 %v19243_v22, %v21623_v57 }
 0xc50   :  { %v19678_v63 = vadd.f32 %v19243_v22, %v21625_v3  ;;  %v19682_v61 = vadd.f32 %v19243_v22, %v21626_v62  ;;  %v19694_v57 = vadd.f32 %v19243_v22, %v19461_v23  ;;  %v19700_v3 = vadd.f32 %v19243_v22, %v8988_v29 }
 0xc51   :  { %21619 = vst [vmem:[#allocation42_spill] sm:$0xff] %v19662_v26  ;;  %21621 = vst [vmem:[#allocation97_spill] sm:$0xff] %v19666_v56  ;;  %v21627_v26 = vld [vmem:[#allocation75_spill] sm:$0xff]  ;;  %v21629_v56 = vld [vmem:[#allocation76_spill] sm:$0xff]  ;;  %v19703_v62 = vadd.f32 %v19243_v22, %v8989_v46  ;;  %v9068_v23 = vmax.f32 %v19485_v40, 0.0  ;;  %v9071_v29 = vmax.f32 %v19497_v2, 0.0 }
 0xc52   :  { %21624 = vst [vmem:[#allocation81_spill] sm:$0xff] %v19674_v10  ;;  %v19686_v21 = vadd.f32 %v19243_v22, %v21627_v26  ;;  %v19690_v37 = vadd.f32 %v19243_v22, %v21629_v56  ;;  %21631 = vst [vmem:[#allocation27_spill] sm:$0xff] %v19694_v57  ;;  %v19697_v10 = vadd.f32 %v19243_v22, %v8987_v36  ;;  %v9066_v56 = vmax.f32 %v19477_v8, 0.0 }
 0xc53   :  { %21633 = vst [vmem:[#allocation30_spill] sm:$0xff] %v19700_v3  ;;  %21634 = vst [vmem:[#allocation39_spill] sm:$0xff] %v19703_v62  ;;  %v19706_v26 = vadd.f32 %v19243_v22, %v8990_v31  ;;  %v9069_v36 = vmax.f32 %v19489_v25, 0.0  ;;  %v9072_v46 = vmax.f32 %v19502_v30, 0.0  ;;  %v9073_v62 = vmax.f32 %v19506_v44, 0.0 }
 0xc54   :  { %21628 = vst [vmem:[#allocation82_spill] sm:$0xff] %v19686_v21  ;;  %21630 = vst [vmem:[#allocation26_spill] sm:$0xff] %v19690_v37  ;;  %v9065_v21 = vmax.f32 %v19473_v13, 0.0  ;;  %v9067_v37 = vmax.f32 %v19481_v0, 0.0  ;;  %v9074_v22 = vmax.f32 %v19510_v38, 0.0  ;;  %v9075_v31 = vmax.f32 %v19514_v39, 0.0 }
 0xc55   :  { %21632 = vst [vmem:[#allocation29_spill] sm:$0xff] %v19697_v10  ;;  %21635 = vst [vmem:[#allocation40_spill] sm:$0xff] %v19706_v26  ;;  %v9070_v10 = vmax.f32 %v19493_v24, 0.0  ;;  %v9076_v13 = vmax.f32 %v19518_v50, 0.0  ;;  %v9077_v8 = vmax.f32 %v19522_v17, 0.0  ;;  %v9078_v0 = vmax.f32 %v19526_v49, 0.0 }
 0xc56   :  { %v9079_v40 = vmax.f32 %v19530_v60, 0.0  ;;  %v9080_v25 = vmax.f32 %v19534_v52, 0.0  ;;  %v9081_v24 = vmax.f32 %v19538_v43, 0.0  ;;  %v9082_v2 = vmax.f32 %v19542_v47, 0.0 }
 0xc57   :  { %v9083_v30 = vmax.f32 %v19546_v18, 0.0  ;;  %v9084_v44 = vmax.f32 %v19550_v6, 0.0  ;;  %v9085_v38 = vmax.f32 %v19554_v7, 0.0  ;;  %v9086_v39 = vmax.f32 %v19558_v55, 0.0 }
 0xc58   :  { %v9087_v50 = vmax.f32 %v19562_v11, 0.0  ;;  %v9088_v17 = vmax.f32 %v19566_v48, 0.0  ;;  %v9089_v49 = vmax.f32 %v19570_v9, 0.0  ;;  %v9090_v60 = vmax.f32 %v19574_v45, 0.0  ;;  %v21637_v26 = vld [vmem:[#allocation97_spill] sm:$0xff] }
 0xc59   :  { %v9091_v52 = vmax.f32 %v19578_v32, 0.0  ;;  %v9092_v43 = vmax.f32 %v19582_v28, 0.0  ;;  %v9093_v47 = vmax.f32 %v19586_v15, 0.0  ;;  %v9094_v18 = vmax.f32 %v19590_v16, 0.0  ;;  %v21638_v3 = vld [vmem:[#allocation81_spill] sm:$0xff] }
 0xc5a   :  { %v9095_v6 = vmax.f32 %v19594_v4, 0.0  ;;  %v9096_v7 = vmax.f32 %v19598_v35, 0.0  ;;  %v9097_v55 = vmax.f32 %v19602_v51, 0.0  ;;  %v9098_v11 = vmax.f32 %v19606_v42, 0.0 }
 0xc5b   :  { %v9099_v48 = vmax.f32 %v19610_v33, 0.0  ;;  %v9100_v9 = vmax.f32 %v19614_v5, 0.0  ;;  %v9101_v45 = vmax.f32 %v19618_v14, 0.0  ;;  %v9102_v32 = vmax.f32 %v19622_v59, 0.0  ;;  %v21636_v14 = vld [vmem:[#allocation42_spill] sm:$0xff] }
 0xc5c   :  { %v9103_v28 = vmax.f32 %v19626_v54, 0.0  ;;  %v9104_v15 = vmax.f32 %v19630_v20, 0.0  ;;  %v9105_v16 = vmax.f32 %v19634_v19, 0.0  ;;  %v9106_v4 = vmax.f32 %v19638_v12, 0.0  ;;  %v21639_v57 = vld [vmem:[#allocation82_spill] sm:$0xff] }
 0xc5d   :  { %v9107_v35 = vmax.f32 %v19642_v58, 0.0  ;;  %v9108_v51 = vmax.f32 %v19646_v41, 0.0  ;;  %v9109_v42 = vmax.f32 %v19650_v53, 0.0  ;;  %v9110_v33 = vmax.f32 %v19654_v27, 0.0  ;;  %v21640_v53 = vld [vmem:[#allocation26_spill] sm:$0xff] }
 0xc5e   :  { %v9111_v5 = vmax.f32 %v19658_v34, 0.0  ;;  %v9112_v59 = vmax.f32 %v21636_v14, 0.0  ;;  %v9113_v54 = vmax.f32 %v21637_v26, 0.0  ;;  %v9114_v20 = vmax.f32 %v19670_v1, 0.0  ;;  %v21641_v34 = vld [vmem:[#allocation27_spill] sm:$0xff]  ;;  %v21642_v26 = vld [vmem:[#allocation29_spill] sm:$0xff] }
 0xc5f   :  { %v9115_v19 = vmax.f32 %v21638_v3, 0.0  ;;  %v9116_v12 = vmax.f32 %v19678_v63, 0.0  ;;  %v9117_v58 = vmax.f32 %v19682_v61, 0.0  ;;  %v9118_v41 = vmax.f32 %v21639_v57, 0.0  ;;  %v21643_v3 = vld [vmem:[#allocation30_spill] sm:$0xff]  ;;  %v21644_v61 = vld [vmem:[#allocation39_spill] sm:$0xff] }
 0xc60   :  { %v9119_v27 = vmax.f32 %v21640_v53, 0.0  ;;  %v9120_v14 = vmax.f32 %v21641_v34, 0.0  ;;  %v9121_v1 = vmax.f32 %v21642_v26, 0.0  ;;  %v9122_v63 = vmax.f32 %v21643_v3, 0.0  ;;  %v21645_v53 = vld [vmem:[#allocation40_spill] sm:$0xff]  ;;  %v21646_v26 = vld [vmem:[#allocation85_spill] sm:$0xff] }
 0xc61   :  { %v9123_v57 = vmax.f32 %v21644_v61, 0.0  ;;  %v9124_v34 = vmax.f32 %v21645_v53, 0.0  ;;  %v19769_v3 = vadd.f32 %v21646_v26, %v9065_v21  ;;  %v21648_v61 = vld [vmem:[#allocation145_spill] sm:$0xff]  ;;  %v21650_v21 = vld [vmem:[#allocation6_spill] sm:$0xff] }
 0xc62   :  { %v19772_v53 = vadd.f32 %v21648_v61, %v9066_v56  ;;  %v19775_v26 = vadd.f32 %v21650_v21, %v9067_v37  ;;  %v21654_v61 = vld [vmem:[#allocation65_spill] sm:$0xff]  ;;  %v21656_v21 = vld [vmem:[#allocation111_spill] sm:$0xff] }
 0xc63   :  { %21647 = vst [vmem:[#allocation56_spill] sm:$0xff] %v19769_v3  ;;  %v21652_v3 = vld [vmem:[#allocation141_spill] sm:$0xff]  ;;  %v19784_v37 = vadd.f32 %v21656_v21, %v9070_v10 }
 0xc64   :  { %21649 = vst [vmem:[#allocation80_spill] sm:$0xff] %v19772_v53  ;;  %21651 = vst [vmem:[#allocation10_spill] sm:$0xff] %v19775_v26  ;;  %v19778_v56 = vadd.f32 %v21652_v3, %v9068_v23  ;;  %v19781_v53 = vadd.f32 %v21654_v61, %v9069_v36  ;;  %v21658_v26 = vld [vmem:[#allocation146_spill] sm:$0xff]  ;;  %v21662_v36 = vld [vmem:[#allocation48_spill] sm:$0xff] }
 0xc65   :  { %21657 = vst [vmem:[#allocation28_spill] sm:$0xff] %v19784_v37  ;;  %v19787_v3 = vadd.f32 %v21658_v26, %v9071_v29  ;;  %v21660_v23 = vld [vmem:[#allocation74_spill] sm:$0xff]  ;;  %v19793_v61 = vadd.f32 %v21662_v36, %v9073_v62  ;;  %v21666_v21 = vld [vmem:[#allocation45_spill] sm:$0xff]  ;;  %v21667_v26 = vld [vmem:[#allocation12_spill] sm:$0xff] }
 0xc66   :  { %21653 = vst [vmem:[#allocation16_spill] sm:$0xff] %v19778_v56  ;;  %21655 = vst [vmem:[#allocation20_spill] sm:$0xff] %v19781_v53  ;;  %v19790_v56 = vadd.f32 %v21660_v23, %v9072_v46  ;;  %v21664_v53 = vld [vmem:[#allocation119_spill] sm:$0xff]  ;;  %v19799_v37 = vadd.f32 %v21666_v21, %v9075_v31  ;;  %v19802_v29 = vadd.f32 %v21667_v26, %v9076_v13  ;;  %v21669_v46 = vld [vmem:[#allocation18_spill] sm:$0xff] }
 0xc67   :  { %21659 = vst [vmem:[#allocation33_spill] sm:$0xff] %v19787_v3  ;;  %21663 = vst [vmem:[#allocation9_spill] sm:$0xff] %v19793_v61  ;;  %v19796_v10 = vadd.f32 %v21664_v53, %v9074_v22  ;;  %v21668_v3 = vld [vmem:[#allocation122_spill] sm:$0xff]  ;;  %v21670_v36 = vld [vmem:[#allocation121_spill] sm:$0xff] }
 0xc68   :  { %21661 = vst [vmem:[#allocation37_spill] sm:$0xff] %v19790_v56  ;;  %v19805_v23 = vadd.f32 %v21668_v3, %v9077_v8  ;;  %v19808_v56 = vadd.f32 %v21669_v46, %v9078_v0  ;;  %v19811_v62 = vadd.f32 %v21670_v36, %v9079_v40  ;;  %v21671_v61 = vld [vmem:[#allocation125_spill] sm:$0xff]  ;;  %v21673_v31 = vld [vmem:[#allocation147_spill] sm:$0xff]  ;;  %v21675_v8 = vld [vmem:[#allocation92_spill] sm:$0xff] }
 0xc69   :  { %21665 = vst [vmem:[#allocation32_spill] sm:$0xff] %v19796_v10  ;;  %v19814_v22 = vadd.f32 %v21671_v61, %v9080_v25  ;;  %v21672_v53 = vld [vmem:[#allocation105_spill] sm:$0xff]  ;;  %v19820_v21 = vadd.f32 %v21673_v31, %v9082_v2  ;;  %v21674_v13 = vld [vmem:[#allocation31_spill] sm:$0xff]  ;;  %v19826_v3 = vadd.f32 %v21675_v8, %v9084_v44  ;;  %v21677_v40 = vld [vmem:[#allocation96_spill] sm:$0xff] }
 0xc6a   :  { %v19817_v10 = vadd.f32 %v21672_v53, %v9081_v24  ;;  %v19823_v26 = vadd.f32 %v21674_v13, %v9083_v30  ;;  %v21676_v0 = vld [vmem:[#allocation149_spill] sm:$0xff]  ;;  %v19832_v36 = vadd.f32 %v21677_v40, %v9086_v39  ;;  %v21678_v25 = vld [vmem:[#allocation148_spill] sm:$0xff]  ;;  %v21679_v24 = vld [vmem:[#allocation126_spill] sm:$0xff] }
 0xc6b   :  { %v19829_v46 = vadd.f32 %v21676_v0, %v9085_v38  ;;  %v19835_v61 = vadd.f32 %v21678_v25, %v9087_v50  ;;  %v19838_v53 = vadd.f32 %v21679_v24, %v9088_v17  ;;  %v21680_v2 = vld [vmem:[#allocation55_spill] sm:$0xff]  ;;  %v21681_v30 = vld [vmem:[#allocation106_spill] sm:$0xff]  ;;  %v21684_v39 = vld [vmem:[#allocation108_spill] sm:$0xff] }
 0xc6c   :  { %v19841_v31 = vadd.f32 %v21680_v2, %v9089_v49  ;;  %v19844_v13 = vadd.f32 %v21681_v30, %v9090_v60  ;;  %v21682_v44 = vld [vmem:[#allocation14_spill] sm:$0xff]  ;;  %v21683_v38 = vld [vmem:[#allocation11_spill] sm:$0xff]  ;;  %v19853_v40 = vadd.f32 %v21684_v39, %v9093_v47  ;;  %v21687_v49 = vld [vmem:[#allocation109_spill] sm:$0xff] }
 0xc6d   :  { %v19847_v8 = vadd.f32 %v21682_v44, %v9091_v52  ;;  %v19850_v0 = vadd.f32 %v21683_v38, %v9092_v43  ;;  %v21685_v50 = vld [vmem:[#allocation110_spill] sm:$0xff]  ;;  %v21686_v17 = vld [vmem:[#allocation107_spill] sm:$0xff]  ;;  %v19862_v2 = vadd.f32 %v21687_v49, %v9096_v7  ;;  %v21688_v60 = vld [vmem:[#allocation113_spill] sm:$0xff] }
 0xc6e   :  { %v19856_v25 = vadd.f32 %v21685_v50, %v9094_v18  ;;  %v19859_v24 = vadd.f32 %v21686_v17, %v9095_v6  ;;  %v19865_v30 = vadd.f32 %v21688_v60, %v9097_v55  ;;  %v21689_v52 = vld [vmem:[#allocation83_spill] sm:$0xff]  ;;  %v21690_v43 = vld [vmem:[#allocation112_spill] sm:$0xff]  ;;  %v21693_v6 = vld [vmem:[#allocation114_spill] sm:$0xff] }
 0xc6f   :  { %v19868_v44 = vadd.f32 %v21689_v52, %v9098_v11  ;;  %v19871_v38 = vadd.f32 %v21690_v43, %v9099_v48  ;;  %v21691_v47 = vld [vmem:[#allocation79_spill] sm:$0xff]  ;;  %v19880_v17 = vadd.f32 %v21693_v6, %v9102_v32  ;;  %v21694_v7 = vld [vmem:[#allocation78_spill] sm:$0xff]  ;;  %v21696_v11 = vld [vmem:[#allocation116_spill] sm:$0xff] }
 0xc70   :  { %v19874_v39 = vadd.f32 %v21691_v47, %v9100_v9  ;;  %v21692_v18 = vld [vmem:[#allocation91_spill] sm:$0xff]  ;;  %v19883_v49 = vadd.f32 %v21694_v7, %v9103_v28  ;;  %v21695_v55 = vld [vmem:[#allocation62_spill] sm:$0xff]  ;;  %v19889_v52 = vadd.f32 %v21696_v11, %v9105_v16  ;;  %v21703_v16 = vld [vmem:[#allocation124_spill] sm:$0xff] }
 0xc71   :  { %v19877_v50 = vadd.f32 %v21692_v18, %v9101_v45  ;;  %v19886_v60 = vadd.f32 %v21695_v55, %v9104_v15  ;;  %v21697_v48 = vld [vmem:[#allocation118_spill] sm:$0xff]  ;;  %v21698_v9 = vld [vmem:[#allocation115_spill] sm:$0xff]  ;;  %v21699_v45 = vld [vmem:[#allocation117_spill] sm:$0xff]  ;;  %v19910_v11 = vadd.f32 %v21703_v16, %v9112_v59 }
 0xc72   :  { %v19892_v43 = vadd.f32 %v21697_v48, %v9106_v4  ;;  %v19895_v47 = vadd.f32 %v21698_v9, %v9107_v35  ;;  %v19898_v18 = vadd.f32 %v21699_v45, %v9108_v51  ;;  %v21700_v32 = vld [vmem:[#allocation123_spill] sm:$0xff]  ;;  %v21702_v15 = vld [vmem:[#allocation120_spill] sm:$0xff]  ;;  %v21704_v4 = vld [vmem:[#allocation73_spill] sm:$0xff] }
 0xc73   :  { %v19901_v6 = vadd.f32 %v21700_v32, %v9109_v42  ;;  %v21701_v28 = vld [vmem:[#allocation95_spill] sm:$0xff]  ;;  %v19907_v55 = vadd.f32 %v21702_v15, %v9111_v5  ;;  %v19913_v48 = vadd.f32 %v21704_v4, %v9113_v54  ;;  %v21705_v35 = vld [vmem:[#allocation102_spill] sm:$0xff]  ;;  %v21711_v5 = vld [vmem:[#allocation53_spill] sm:$0xff] }
 0xc74   :  { %v19904_v7 = vadd.f32 %v21701_v28, %v9110_v33  ;;  %v19916_v9 = vadd.f32 %v21705_v35, %v9114_v20  ;;  %v21707_v51 = vld [vmem:[#allocation94_spill] sm:$0xff]  ;;  %v21708_v42 = vld [vmem:[#allocation99_spill] sm:$0xff]  ;;  %v21709_v33 = vld [vmem:[#allocation77_spill] sm:$0xff]  ;;  %v19928_v15 = vadd.f32 %v21711_v5, %v9118_v41 }
 0xc75   :  { %v19919_v45 = vadd.f32 %v21707_v51, %v9115_v19  ;;  %v19922_v32 = vadd.f32 %v21708_v42, %v9116_v12  ;;  %v19925_v28 = vadd.f32 %v21709_v33, %v9117_v58  ;;  %v21713_v59 = vld [vmem:[#allocation101_spill] sm:$0xff]  ;;  %v21715_v54 = vld [vmem:[#allocation44_spill] sm:$0xff]  ;;  %v21717_v20 = vld [vmem:[#allocation22_spill] sm:$0xff] }
 0xc76   :  { %21706 = vst [vmem:[#allocation35_spill] sm:$0xff] %v19916_v9  ;;  %21712 = vst [vmem:[#allocation41_spill] sm:$0xff] %v19928_v15  ;;  %v19931_v16 = vadd.f32 %v21713_v59, %v9119_v27  ;;  %v19934_v4 = vadd.f32 %v21715_v54, %v9120_v14  ;;  %v19937_v35 = vadd.f32 %v21717_v20, %v9121_v1  ;;  %v21718_v19 = vld [vmem:[#allocation24_spill] sm:$0xff]  ;;  %v21719_v12 = vld [vmem:[#allocation21_spill] sm:$0xff] }
 0xc77   :  { %21710 = vst [vmem:[#allocation36_spill] sm:$0xff] %v19925_v28  ;;  %v19940_v51 = vadd.f32 %v21718_v19, %v9122_v63  ;;  %v9487_v42 = vadd.f32 %v21719_v12, %v9123_v57  ;;  %v21720_v9 = vld [vmem:[#allocation23_spill] sm:$0xff]  ;;  %v21721_v33 = vld [vmem:[#allocation10_spill] sm:$0xff]  ;;  %v21722_v28 = vld [vmem:[#allocation56_spill] sm:$0xff] }
 0xc78   :  { %21714 = vst [vmem:[#allocation52_spill] sm:$0xff] %v19931_v16  ;;  %21716 = vst [vmem:[#allocation60_spill] sm:$0xff] %v19934_v4  ;;  %v9488_v58 = vadd.f32 %v21720_v9, %v9124_v34  ;;  %v9493_v41 = vmax.f32 %v21722_v28, %v21721_v33  ;;  %v21723_v5 = vld [vmem:[#allocation16_spill] sm:$0xff]  ;;  %v21725_v59 = vld [vmem:[#allocation33_spill] sm:$0xff]  ;;  %v9499_v34 = vmax.f32 %v19805_v23, %v19811_v62 }
 0xc79   :  { %v21724_v15 = vld [vmem:[#allocation80_spill] sm:$0xff]  ;;  %v21727_v54 = vld [vmem:[#allocation37_spill] sm:$0xff]  ;;  %v9500_v9 = vmax.f32 %v19808_v56, %v19814_v22  ;;  %v9501_v28 = vmax.f32 %v19817_v10, %v19823_v26  ;;  %v9505_v56 = vmax.f32 %v19841_v31, %v19847_v8  ;;  %v9506_v10 = vmax.f32 %v19844_v13, %v19850_v0 }
 0xc7a   :  { %v9494_v27 = vmax.f32 %v21724_v15, %v21723_v5  ;;  %v21726_v16 = vld [vmem:[#allocation20_spill] sm:$0xff]  ;;  %v21729_v20 = vld [vmem:[#allocation9_spill] sm:$0xff]  ;;  %v9502_v15 = vmax.f32 %v19820_v21, %v19826_v3  ;;  %9525 = vst.msk [vmem:[#allocation2] sm:$0xff] %vm4172_vm8, %v9493_v41  ;;  %9531 = vst.msk [vmem:[#allocation2 + $0x30] sm:$0xff] %vm4172_vm8, %v9499_v34  ;;  %v9508_v23 = vmax.f32 %v19856_v25, %v19862_v2 }
 0xc7b   :  { %v9495_v14 = vmax.f32 %v21726_v16, %v21725_v59  ;;  %v21728_v4 = vld [vmem:[#allocation28_spill] sm:$0xff]  ;;  %v9497_v63 = vmax.f32 %v21729_v20, %v19799_v37  ;;  %v9503_v16 = vmax.f32 %v19829_v46, %v19835_v61  ;;  %v9504_v37 = vmax.f32 %v19832_v36, %v19838_v53  ;;  %9532 = vst.msk [vmem:[#allocation2 + $0x38] sm:$0xff] %vm4172_vm8, %v9500_v9 }
 0xc7c   :  { %v9496_v1 = vmax.f32 %v21728_v4, %v21727_v54  ;;  %v21730_v19 = vld [vmem:[#allocation32_spill] sm:$0xff]  ;;  %9526 = vst.msk [vmem:[#allocation2 + $0x8] sm:$0xff] %vm4172_vm8, %v9494_v27  ;;  %v9509_v62 = vmax.f32 %v19865_v30, %v19871_v38  ;;  %v9510_v22 = vmax.f32 %v19868_v44, %v19874_v39  ;;  %v9511_v21 = vmax.f32 %v19877_v50, %v19883_v49 }
 0xc7d   :  { %v9498_v57 = vmax.f32 %v21730_v19, %v19802_v29  ;;  %9527 = vst.msk [vmem:[#allocation2 + $0x10] sm:$0xff] %vm4172_vm8, %v9495_v14  ;;  %v9507_v29 = vmax.f32 %v19853_v40, %v19859_v24  ;;  %9529 = vst.msk [vmem:[#allocation2 + $0x20] sm:$0xff] %vm4172_vm8, %v9497_v63  ;;  %v9512_v26 = vmax.f32 %v19880_v17, %v19886_v60  ;;  %v21731_v31 = vld [vmem:[#allocation35_spill] sm:$0xff]  ;;  %v21735_v24 = vld [vmem:[#allocation41_spill] sm:$0xff] }
 0xc7e   :  { %9528 = vst.msk [vmem:[#allocation2 + $0x18] sm:$0xff] %vm4172_vm8, %v9496_v1  ;;  %9533 = vst.msk [vmem:[#allocation2 + $0x40] sm:$0xff] %vm4172_vm8, %v9501_v28  ;;  %v9513_v3 = vmax.f32 %v19889_v52, %v19895_v47  ;;  %v9514_v46 = vmax.f32 %v19892_v43, %v19898_v18  ;;  %v9515_v36 = vmax.f32 %v19901_v6, %v19907_v55  ;;  %v21733_v0 = vld [vmem:[#allocation36_spill] sm:$0xff] }
 0xc7f   :  { %9530 = vst.msk [vmem:[#allocation2 + $0x28] sm:$0xff] %vm4172_vm8, %v9498_v57  ;;  %9534 = vst.msk [vmem:[#allocation2 + $0x48] sm:$0xff] %vm4172_vm8, %v9502_v15  ;;  %v9516_v61 = vmax.f32 %v19904_v7, %v19910_v11  ;;  %v9517_v53 = vmax.f32 %v19913_v48, %v19919_v45  ;;  %v9518_v13 = vmax.f32 %v21731_v31, %v19922_v32  ;;  %v21732_v8 = vld [vmem:[#allocation52_spill] sm:$0xff] }
 0xc80   :  { %9535 = vst.msk [vmem:[#allocation2 + $0x50] sm:$0xff] %vm4172_vm8, %v9503_v16  ;;  %9536 = vst.msk [vmem:[#allocation2 + $0x58] sm:$0xff] %vm4172_vm8, %v9504_v37  ;;  %v9519_v40 = vmax.f32 %v21733_v0, %v21732_v8  ;;  %v21734_v25 = vld [vmem:[#allocation60_spill] sm:$0xff]  ;;  %v9521_v30 = vmax.f32 %v19937_v35, %v9487_v42  ;;  %v9522_v44 = vmax.f32 %v19940_v51, %v9488_v58 }
 0xc81   :  { %9537 = vst.msk [vmem:[#allocation2 + $0x60] sm:$0xff] %vm4172_vm8, %v9505_v56  ;;  %9538 = vst.msk [vmem:[#allocation2 + $0x68] sm:$0xff] %vm4172_vm8, %v9506_v10  ;;  %v9520_v2 = vmax.f32 %v21735_v24, %v21734_v25 }
 0xc82   :  { %9539 = vst.msk [vmem:[#allocation2 + $0x70] sm:$0xff] %vm4172_vm8, %v9507_v29  ;;  %9540 = vst.msk [vmem:[#allocation2 + $0x78] sm:$0xff] %vm4172_vm8, %v9508_v23  ;;  %v9563_v52 = vld [vmem:[#allocation2 + $0x30] ss:$2 sm:$0xff]  ;;  %v9595_v55 = vld [vmem:[#allocation2 + $0x31] ss:$2 sm:$0xff] }
 0xc83   :  { %9541 = vst.msk [vmem:[#allocation2 + $0x80] sm:$0xff] %vm4172_vm8, %v9509_v62  ;;  %9542 = vst.msk [vmem:[#allocation2 + $0x88] sm:$0xff] %vm4172_vm8, %v9510_v22  ;;  %v9557_v38 = vld [vmem:[#allocation2] ss:$2 sm:$0xff]  ;;  %v9589_v39 = vld [vmem:[#allocation2 + $0x1] ss:$2 sm:$0xff]  ;;  %v9623_v4 = vmax.f32 %v9563_v52, %v9595_v55 }
 0xc84   :  { %9543 = vst.msk [vmem:[#allocation2 + $0x90] sm:$0xff] %vm4172_vm8, %v9511_v21  ;;  %9544 = vst.msk [vmem:[#allocation2 + $0x98] sm:$0xff] %vm4172_vm8, %v9512_v26  ;;  %v9620_v60 = vmax.f32 %v9557_v38, %v9589_v39 }
 0xc85   :  { %9545 = vst.msk [vmem:[#allocation2 + $0xa0] sm:$0xff] %vm4172_vm8, %v9513_v3  ;;  %9546 = vst.msk [vmem:[#allocation2 + $0xa8] sm:$0xff] %vm4172_vm8, %v9514_v46  ;;  %v9559_v50 = vld [vmem:[#allocation2 + $0x10] ss:$2 sm:$0xff]  ;;  %v9591_v49 = vld [vmem:[#allocation2 + $0x11] ss:$2 sm:$0xff] }
 0xc86   :  { %9547 = vst.msk [vmem:[#allocation2 + $0xb0] sm:$0xff] %vm4172_vm8, %v9515_v36  ;;  %9548 = vst.msk [vmem:[#allocation2 + $0xb8] sm:$0xff] %vm4172_vm8, %v9516_v61  ;;  %v9561_v17 = vld [vmem:[#allocation2 + $0x20] ss:$2 sm:$0xff]  ;;  %v9593_v47 = vld [vmem:[#allocation2 + $0x21] ss:$2 sm:$0xff]  ;;  %v9621_v18 = vmax.f32 %v9559_v50, %v9591_v49 }
 0xc87   :  { %9549 = vst.msk [vmem:[#allocation2 + $0xc0] sm:$0xff] %vm4172_vm8, %v9517_v53  ;;  %9550 = vst.msk [vmem:[#allocation2 + $0xc8] sm:$0xff] %vm4172_vm8, %v9518_v13  ;;  %v9565_v43 = vld [vmem:[#allocation2 + $0x40] ss:$2 sm:$0xff]  ;;  %v9567_v6 = vld [vmem:[#allocation2 + $0x50] ss:$2 sm:$0xff]  ;;  %v9622_v11 = vmax.f32 %v9561_v17, %v9593_v47 }
 0xc88   :  { %9551 = vst.msk [vmem:[#allocation2 + $0xd0] sm:$0xff] %vm4172_vm8, %v9519_v40  ;;  %9552 = vst.msk [vmem:[#allocation2 + $0xd8] sm:$0xff] %vm4172_vm8, %v9520_v2  ;;  %v9569_v7 = vld [vmem:[#allocation2 + $0x60] ss:$2 sm:$0xff]  ;;  %v9597_v32 = vld [vmem:[#allocation2 + $0x41] ss:$2 sm:$0xff] }
 0xc89   :  { %9553 = vst.msk [vmem:[#allocation2 + $0xe0] sm:$0xff] %vm4172_vm8, %v9521_v30  ;;  %9554 = vst.msk [vmem:[#allocation2 + $0xe8] sm:$0xff] %vm4172_vm8, %v9522_v44  ;;  %v9571_v48 = vld [vmem:[#allocation2 + $0x70] ss:$2 sm:$0xff]  ;;  %v9599_v12 = vld [vmem:[#allocation2 + $0x51] ss:$2 sm:$0xff]  ;;  %v9624_v42 = vmax.f32 %v9565_v43, %v9597_v32 }
 0xc8a   :  { %9636 = vst.msk [vmem:[#allocation3] sm:$0xff] %vm4172_vm8, %v9620_v60  ;;  %v9573_v45 = vld [vmem:[#allocation2 + $0x80] ss:$2 sm:$0xff]  ;;  %9637 = vst.msk [vmem:[#allocation3 + $0x8] sm:$0xff] %vm4172_vm8, %v9621_v18  ;;  %v9601_v41 = vld [vmem:[#allocation2 + $0x61] ss:$2 sm:$0xff]  ;;  %v9625_v5 = vmax.f32 %v9567_v6, %v9599_v12 }
 0xc8b   :  { %v9575_v35 = vld [vmem:[#allocation2 + $0x90] ss:$2 sm:$0xff]  ;;  %9638 = vst.msk [vmem:[#allocation3 + $0x10] sm:$0xff] %vm4172_vm8, %v9622_v11  ;;  %9639 = vst.msk [vmem:[#allocation3 + $0x18] sm:$0xff] %vm4172_vm8, %v9623_v4  ;;  %v9603_v14 = vld [vmem:[#allocation2 + $0x71] ss:$2 sm:$0xff]  ;;  %v9626_v54 = vmax.f32 %v9569_v7, %v9601_v41 }
 0xc8c   :  { %v9577_v51 = vld [vmem:[#allocation2 + $0xa0] ss:$2 sm:$0xff]  ;;  %9640 = vst.msk [vmem:[#allocation3 + $0x20] sm:$0xff] %vm4172_vm8, %v9624_v42  ;;  %v9605_v1 = vld [vmem:[#allocation2 + $0x81] ss:$2 sm:$0xff]  ;;  %v9627_v19 = vmax.f32 %v9571_v48, %v9603_v14  ;;  %9641 = vst.msk [vmem:[#allocation3 + $0x28] sm:$0xff] %vm4172_vm8, %v9625_v5 }
 0xc8d   :  { %v9579_v58 = vld [vmem:[#allocation2 + $0xb0] ss:$2 sm:$0xff]  ;;  %v9607_v20 = vld [vmem:[#allocation2 + $0x91] ss:$2 sm:$0xff]  ;;  %v9609_v63 = vld [vmem:[#allocation2 + $0xa1] ss:$2 sm:$0xff]  ;;  %v9628_v28 = vmax.f32 %v9573_v45, %v9605_v1 }
 0xc8e   :  { %v9581_v33 = vld [vmem:[#allocation2 + $0xc0] ss:$2 sm:$0xff]  ;;  %v9611_v57 = vld [vmem:[#allocation2 + $0xb1] ss:$2 sm:$0xff]  ;;  %v9613_v34 = vld [vmem:[#allocation2 + $0xc1] ss:$2 sm:$0xff]  ;;  %v9629_v15 = vmax.f32 %v9575_v35, %v9607_v20  ;;  %v9630_v16 = vmax.f32 %v9577_v51, %v9609_v63 }
 0xc8f   :  { %v9583_v27 = vld [vmem:[#allocation2 + $0xd0] ss:$2 sm:$0xff]  ;;  %v9615_v9 = vld [vmem:[#allocation2 + $0xd1] ss:$2 sm:$0xff]  ;;  %9642 = vst.msk [vmem:[#allocation3 + $0x30] sm:$0xff] %vm4172_vm8, %v9626_v54  ;;  %v9631_v56 = vmax.f32 %v9579_v58, %v9611_v57  ;;  %v9632_v10 = vmax.f32 %v9581_v33, %v9613_v34  ;;  %9643 = vst.msk [vmem:[#allocation3 + $0x38] sm:$0xff] %vm4172_vm8, %v9627_v19 }
 0xc90   :  { %v9585_v59 = vld [vmem:[#allocation2 + $0xe0] ss:$2 sm:$0xff]  ;;  %v9617_v37 = vld [vmem:[#allocation2 + $0xe1] ss:$2 sm:$0xff]  ;;  %v9633_v29 = vmax.f32 %v9583_v27, %v9615_v9  ;;  %9644 = vst.msk [vmem:[#allocation3 + $0x40] sm:$0xff] %vm4172_vm8, %v9628_v28  ;;  %9645 = vst.msk [vmem:[#allocation3 + $0x48] sm:$0xff] %vm4172_vm8, %v9629_v15 }
 0xc91   :  { %v9634_v23 = vmax.f32 %v9585_v59, %v9617_v37  ;;  %9646 = vst.msk [vmem:[#allocation3 + $0x50] sm:$0xff] %vm4172_vm8, %v9630_v16  ;;  %9647 = vst.msk [vmem:[#allocation3 + $0x58] sm:$0xff] %vm4172_vm8, %v9631_v56 }
 0xc92   :  { %9648 = vst.msk [vmem:[#allocation3 + $0x60] sm:$0xff] %vm4172_vm8, %v9632_v10  ;;  %9649 = vst.msk [vmem:[#allocation3 + $0x68] sm:$0xff] %vm4172_vm8, %v9633_v29 }
 0xc93   :  { %9650 = vst.msk [vmem:[#allocation3 + $0x70] sm:$0xff] %vm4172_vm8, %v9634_v23 }
 0xc94   :  { %13233 = shalt.err (!%p13230_p4)
}
 0xc95   :  { %s13234_s29 = scalar_lea.hbm %s20074_s12, 2048 }
 0xc96   :  { %p13235_p5 = scmp.ne.s32.totalorder %s20074_s12, %s13234_s29  ;;  %p13238_p6 = scmp.lt.u32.totalorder %s13234_s29, %s20074_s12 }
 0xc98   :  { %p13240_p7 = pnand %p13238_p6, %p13235_p5 }
 0xc9a   :  { %13243 = shalt.err (!%p13240_p7)
}
 0xc9b   :  { %s13251_s5 = smov 128   ;;  %s13252_s6 = smov 8  }
 0xc9c   :  { %9663 = dma.vmem_to_hbm [thread:$0]  %s9658_s27, 2048, %s20074_s12, [#allocation4], %s13251_s5, %s13251_s5, %s13252_s6  }
 0xc9d   :  { %13244 = dma.done.wait [#allocation4], 2048  }
 0xc9e   :  { %13245 = vsyncadd [#allocation4], 4294965248 }
 0xc9f   :  { %9667 = vsyncpa [#allocation4], 1 }

</bundles_post_ra>
